<compile_context>
chip_gen: v6e
topology: v6e:2x2x1
jax: 0.10.0
libtpu: 0.0.40
codegen_flags: <defaults>
</compile_context>

<pallas_src>
import functools
import numpy as np
import jax
import jax.numpy as jnp
from jax import lax
from jax.experimental import pallas as pl
from jax.experimental.pallas import tpu as pltpu


def _round_up(x, m):
    return ((x + m - 1) // m) * m


# -----------------------------------------------------------------------------
# Plain-JAX glue: CustomMappingNetwork  z -> (frequencies, phase_shifts)
# -----------------------------------------------------------------------------
def mapping_network_apply(z, mp):
    h = z
    for i in range(3):
        h = jax.nn.leaky_relu(h @ mp[f"w{i}"] + mp[f"b{i}"], negative_slope=0.2)
    out = h @ mp["w3"] + mp["b3"]
    d = out.shape[-1] // 2
    return out[..., :d], out[..., d:]          # (frequencies, phase_shifts)


# -----------------------------------------------------------------------------
# Pallas kernel — lane-major layout: activations are (H, TN)
# -----------------------------------------------------------------------------
def tallsiren_kernel(pd_ref, sty_ref, w0t_ref, wmidt_ref, bnet_ref,
                     wcdt_ref, wcxt_ref, bc_ref, wl4t_ref, wf4t_ref, b4_ref,
                     out_ref, *, input_dim, compute_dtype):
    Din = input_dim
    cd = compute_dtype
    prec = (lax.Precision.HIGHEST if jnp.dtype(cd) == jnp.dtype(jnp.float32)
            else lax.Precision.DEFAULT)

    pd = pd_ref[0]            # (Din+3, TN): rows 0..Din-1 = points, rest = dirs

    def mm(wt, a):            # wt already in compute dtype; f32 accumulation
        return jnp.dot(wt, a.astype(cd), precision=prec,
                       preferred_element_type=jnp.float32)

    def small_mac(wt, base):  # K<=3 contraction on the VPU (skip MXU pass)
        acc = wt[:, 0:1] * pd[base:base + 1, :]
        for j in range(1, wt.shape[1]):
            acc = acc + wt[:, j:j + 1] * pd[base + j:base + j + 1, :]
        return acc            # (H, TN)

    # ---- layer 0: FiLM-sine on points (K = Din, VPU broadcast-MACs) ----
    pre = small_mac(w0t_ref[...], 0) + bnet_ref[0]
    h = jnp.sin(sty_ref[0, 0] * pre + sty_ref[0, 9])

    # ---- layers 1..7: FiLM-sine; fori_loop bounds (H, TN) live ranges ----
    def film_body(l, h):
        pre = mm(wmidt_ref[l - 1], h) + bnet_ref[l]
        return jnp.sin(sty_ref[0, l] * pre + sty_ref[0, 9 + l])
    h = lax.fori_loop(1, 8, film_body, h)

    # ---- color FiLM on cat([dirs, x]): MXU part (H) + VPU part (K=3) ----
    pre_c = mm(wcxt_ref[...], h) + small_mac(wcdt_ref[...], Din) + bc_ref[...]
    y = jnp.sin(sty_ref[0, 8] * pre_c + sty_ref[0, 17])

    # ---- packed head: rows 0..2 = rgb (sigmoid), row 3 = sigma (linear) ----
    out4 = mm(wl4t_ref[...], y) + mm(wf4t_ref[...], h) + b4_ref[...]   # (4, TN)
    row = lax.broadcasted_iota(jnp.int32, out4.shape, 0)
    out4 = jnp.where(row < 3, jax.nn.sigmoid(out4), out4)
    out_ref[0] = out4.astype(out_ref.dtype)                 # lane-dense store


# -----------------------------------------------------------------------------
# Wrapper: style packing, weight transposition/folding, tiling
# -----------------------------------------------------------------------------
def tallsiren_forward_pallas(points, z, ray_directions, params, *,
                             hidden_dim, tile_n=2048,
                             compute_dtype=jnp.bfloat16):
    B, N, Din = points.shape
    H = hidden_dim
    cd = compute_dtype

    # --- mapping network + FiLM style packing:  (B, 18, H, 1) ---
    freqs, phases = mapping_network_apply(z, params["mapping"])      # (B, 9H)
    freqs = freqs * 15.0 + 30.0
    styles = jnp.concatenate([freqs.reshape(B, 9, H),
                              phases.reshape(B, 9, H)], axis=1)[..., None]

    # --- transposed weights; MXU operands cast to compute dtype ONCE here ---
    w0t = params["w0"].T                                       # (H, Din)  VPU, f32
    wmidt = jnp.swapaxes(params["w_mid"], 1, 2).astype(cd)     # (7, H, H) MXU
    bnet = params["b_net"][..., None]                          # (8, H, 1)
    wcdt = params["wc"][:3].T                                  # (H, 3)    VPU, f32
    wcxt = params["wc"][3:].T.astype(cd)                       # (H, H)    MXU
    bc = params["bc"].T                                        # (H, 1)
    wl4t = jnp.concatenate(                                    # (4, H): rgb rows
        [params["wl"].T, jnp.zeros((1, H), jnp.float32)], 0).astype(cd)
    wf4t = jnp.concatenate(                                    # (4, H): sigma row
        [jnp.zeros((3, H), jnp.float32), params["wf"].T], 0).astype(cd)
    b4 = jnp.concatenate([params["bl"].T, params["bf"].T], 0)  # (4, 1)

    # --- tiling: lane-dense (multiple of 128), rounded UP, >=2 grid steps ---
    tn = _round_up(max(1, min(int(tile_n), N)), 128)
    n_tiles = pl.cdiv(N, tn)
    if B * n_tiles < 2 and N > 128:            # keep both v7x TensorCores busy
        tn = _round_up(pl.cdiv(N, 2), 128)
        n_tiles = pl.cdiv(N, tn)
    n_pad = n_tiles * tn

    # --- single packed (points ++ dirs) input stream, lane-major ---
    pd = jnp.swapaxes(jnp.concatenate([points, ray_directions], axis=-1), 1, 2)
    if n_pad != N:
        pd = jnp.pad(pd, ((0, 0), (0, 0), (0, n_pad - N)))     # (B, Din+3, n_pad)

    kernel = functools.partial(tallsiren_kernel, input_dim=Din,
                               compute_dtype=cd)

    out = pl.pallas_call(
        kernel,
        out_shape=jax.ShapeDtypeStruct((B, 4, n_pad), jnp.float32),
        grid_spec=pltpu.PrefetchScalarGridSpec(
            num_scalar_prefetch=0,
            grid=(B, n_tiles),
            in_specs=[
                pl.BlockSpec((1, Din + 3, tn), lambda b, i: (b, 0, i)),   # pts++dirs
                pl.BlockSpec((1, 18, H, 1), lambda b, i: (b, 0, 0, 0)),   # styles
                pl.BlockSpec((H, Din), lambda b, i: (0, 0)),              # w0^T
                pl.BlockSpec((7, H, H), lambda b, i: (0, 0, 0)),          # w1..7^T
                pl.BlockSpec((8, H, 1), lambda b, i: (0, 0, 0)),          # biases
                pl.BlockSpec((H, 3), lambda b, i: (0, 0)),                # wc_dirs^T
                pl.BlockSpec((H, H), lambda b, i: (0, 0)),                # wc_x^T
                pl.BlockSpec((H, 1), lambda b, i: (0, 0)),                # bc^T
                pl.BlockSpec((4, H), lambda b, i: (0, 0)),                # wl rows
                pl.BlockSpec((4, H), lambda b, i: (0, 0)),                # wf row
                pl.BlockSpec((4, 1), lambda b, i: (0, 0)),                # [bl;bf]
            ],
            out_specs=pl.BlockSpec((1, 4, tn), lambda b, i: (b, 0, i)),
        ),
        compiler_params=pltpu.CompilerParams(
            dimension_semantics=("parallel", "parallel"),
            vmem_limit_bytes=32 * 1024 * 1024),
    )(pd, styles, w0t, wmidt, bnet, wcdt, wcxt, bc, wl4t, wf4t, b4)

    # layout plumbing back to the module's (B, N, 4) contract (cheap XLA op)
    return jnp.swapaxes(out[:, :, :N], 1, 2)


# -----------------------------------------------------------------------------
# Pure-JAX reference (mirrors TALLSIREN.forward) for correctness checking
# -----------------------------------------------------------------------------
def tallsiren_forward_ref(points, z, ray_directions, params, *, hidden_dim):
    H = hidden_dim
    freqs, phases = mapping_network_apply(z, params["mapping"])
    freqs = freqs * 15.0 + 30.0
    x = points
    ws = [params["w0"]] + [params["w_mid"][l] for l in range(7)]
    for l in range(8):
        pre = x @ ws[l] + params["b_net"][l]
        f = freqs[:, None, l * H:(l + 1) * H]
        p = phases[:, None, l * H:(l + 1) * H]
        x = jnp.sin(f * pre + p)
    sigma = x @ params["wf"] + params["bf"]
    cat = jnp.concatenate([ray_directions, x], axis=-1)
    pre = cat @ params["wc"] + params["bc"]
    y = jnp.sin(freqs[:, None, -H:] * pre + phases[:, None, -H:])
    rgb = jax.nn.sigmoid(y @ params["wl"] + params["bl"])
    return jnp.concatenate([rgb, sigma], axis=-1)


# -----------------------------------------------------------------------------
# Deterministic init (same distributions as the PyTorch module inits)
# -----------------------------------------------------------------------------
def init_params(key, *, input_dim, z_dim, map_hidden, hidden_dim):
    H = hidden_dim
    map_out = 9 * H * 2
    keys = iter(jax.random.split(key, 32))

    def uni(shape, bound):
        return jax.random.uniform(next(keys), shape, jnp.float32, -bound, bound)

    def kaiming(shape):                       # kaiming_normal, a=0.2, fan_in
        fan_in = shape[0]
        gain = np.sqrt(2.0 / (1.0 + 0.2 ** 2))
        return (gain / np.sqrt(fan_in)) * jax.random.normal(
            next(keys), shape, jnp.float32)

    def bias(shape, fan_in):
        return uni(shape, 1.0 / np.sqrt(fan_in))

    freq_b = lambda fan_in: np.sqrt(6.0 / fan_in) / 25.0      # frequency_init(25)

    mapping = {}
    dims = [z_dim, map_hidden, map_hidden, map_hidden, map_out]
    for i in range(4):
        w = kaiming((dims[i], dims[i + 1]))
        if i == 3:
            w = w * 0.25                                      # last layer *= 0.25
        mapping[f"w{i}"] = w
        mapping[f"b{i}"] = bias((dims[i + 1],), dims[i])

    params = {
        "mapping": mapping,
        "w0": uni((input_dim, H), 1.0 / input_dim),           # first_layer_film_sine
        "w_mid": uni((7, H, H), freq_b(H)),
        "b_net": jnp.concatenate(
            [bias((1, H), input_dim)] + [bias((1, H), H) for _ in range(7)],
            axis=0),                                          # (8, H)
        "wf": uni((H, 1), freq_b(H)),
        "bf": bias((1, 1), H),
        "wc": uni((3 + H, H), freq_b(3 + H)),
        "bc": bias((1, H), 3 + H),
        "wl": uni((H, 3), freq_b(H)),
        "bl": bias((1, 3), H),
    }
    return params


if __name__ == "__main__":
    # keep wrapper/reference matmuls in true f32 so the f32 parity check is tight
    jax.config.update("jax_default_matmul_precision", "highest")

    B, N, H = 2, 500, 32            # N=500 exercises the round-up padding path
    INPUT_DIM, Z_DIM, MAP_HIDDEN = 3, 64, 64

    key = jax.random.PRNGKey(0)
    k_pts, k_dir, k_z, k_par = jax.random.split(key, 4)

    points = jax.random.normal(k_pts, (B, N, INPUT_DIM), jnp.float32) * 0.3
    ray_directions = jax.random.normal(k_dir, (B, N, 3), jnp.float32)
    ray_directions = ray_directions / jnp.linalg.norm(
        ray_directions, axis=-1, keepdims=True)
    z = jax.random.normal(k_z, (B, Z_DIM), jnp.float32)

    params = init_params(k_par, input_dim=INPUT_DIM, z_dim=Z_DIM,
                         map_hidden=MAP_HIDDEN, hidden_dim=H)

    # --- f32 compute path: strict parity vs. the pure-JAX reference ---
    fwd_f32 = jax.jit(functools.partial(tallsiren_forward_pallas,
                                        hidden_dim=H,
                                        compute_dtype=jnp.float32))
    out = jax.block_until_ready(fwd_f32(points, z, ray_directions, params))
    ref = tallsiren_forward_ref(points, z, ray_directions, params, hidden_dim=H)
    assert out.shape == (B, N, 4)
    np.testing.assert_allclose(np.asarray(out), np.asarray(ref),
                               rtol=1e-3, atol=1e-3)

    # --- default fast path (bf16 MXU operands): compile/run sanity check only;
    #     freq~30 sine stacks are chaotic so bf16 parity is intentionally loose.
    fwd_fast = jax.jit(functools.partial(tallsiren_forward_pallas, hidden_dim=H))
    out_fast = jax.block_until_ready(fwd_fast(points, z, ray_directions, params))
    assert out_fast.shape == (B, N, 4)
    assert bool(jnp.all(jnp.isfinite(out_fast)))

    print("KERNEL_OK")
</pallas_src>

<mosaic_0001>
module attributes {stable_mosaic.version = 11 : i64} {
  func.func @tallsiren_kernel(%arg0: i32, %arg1: i32, %arg2: memref<1x6x512xf32, #tpu.memory_space<vmem>>, %arg3: memref<1x18x32x1xf32, #tpu.memory_space<vmem>>, %arg4: memref<32x3xf32, #tpu.memory_space<vmem>>, %arg5: memref<7x32x32xf32, #tpu.memory_space<vmem>>, %arg6: memref<8x32x1xf32, #tpu.memory_space<vmem>>, %arg7: memref<32x3xf32, #tpu.memory_space<vmem>>, %arg8: memref<32x32xf32, #tpu.memory_space<vmem>>, %arg9: memref<32x1xf32, #tpu.memory_space<vmem>>, %arg10: memref<4x32xf32, #tpu.memory_space<vmem>>, %arg11: memref<4x32xf32, #tpu.memory_space<vmem>>, %arg12: memref<4x1xf32, #tpu.memory_space<vmem>>, %arg13: memref<1x4x512xf32, #tpu.memory_space<vmem>>) attributes {dimension_semantics = [#tpu.dimension_semantics<parallel>, #tpu.dimension_semantics<parallel>], iteration_bounds = array<i64: 2, 1>, scalar_prefetch = 0 : i64, scratch_operands = 0 : i64, tpu.core_type = #tpu.core_type<tc>, window_params = [{transform_indices = @transform_0, window_bounds = array<i64: 1, 6, 512>}, {transform_indices = @transform_1, window_bounds = array<i64: 1, 18, 32, 1>}, {pipeline_mode = #tpu.pipeline_mode<synchronous>, transform_indices = @transform_2, window_bounds = array<i64: 32, 3>}, {pipeline_mode = #tpu.pipeline_mode<synchronous>, transform_indices = @transform_3, window_bounds = array<i64: 7, 32, 32>}, {pipeline_mode = #tpu.pipeline_mode<synchronous>, transform_indices = @transform_4, window_bounds = array<i64: 8, 32, 1>}, {pipeline_mode = #tpu.pipeline_mode<synchronous>, transform_indices = @transform_5, window_bounds = array<i64: 32, 3>}, {pipeline_mode = #tpu.pipeline_mode<synchronous>, transform_indices = @transform_6, window_bounds = array<i64: 32, 32>}, {pipeline_mode = #tpu.pipeline_mode<synchronous>, transform_indices = @transform_7, window_bounds = array<i64: 32, 1>}, {pipeline_mode = #tpu.pipeline_mode<synchronous>, transform_indices = @transform_8, window_bounds = array<i64: 4, 32>}, {pipeline_mode = #tpu.pipeline_mode<synchronous>, transform_indices = @transform_9, window_bounds = array<i64: 4, 32>}, {pipeline_mode = #tpu.pipeline_mode<synchronous>, transform_indices = @transform_10, window_bounds = array<i64: 4, 1>}, {transform_indices = @transform_11, window_bounds = array<i64: 1, 4, 512>}]} {
    %c0 = arith.constant 0 : index
    %c0_0 = arith.constant 0 : index
    %c0_1 = arith.constant 0 : index
    %0 = vector.load %arg2[%c0, %c0_0, %c0_1] : memref<1x6x512xf32, #tpu.memory_space<vmem>>, vector<1x6x512xf32>
    %1 = vector.shape_cast %0 : vector<1x6x512xf32> to vector<6x512xf32>
    %c0_2 = arith.constant 0 : index
    %c0_3 = arith.constant 0 : index
    %2 = vector.load %arg4[%c0_2, %c0_3] : memref<32x3xf32, #tpu.memory_space<vmem>>, vector<32x3xf32>
    %3 = vector.extract_strided_slice %2 {offsets = [0, 0], sizes = [32, 1], strides = [1, 1]} : vector<32x3xf32> to vector<32x1xf32>
    %4 = vector.extract_strided_slice %1 {offsets = [0, 0], sizes = [1, 512], strides = [1, 1]} : vector<6x512xf32> to vector<1x512xf32>
    %5 = vector.broadcast %3 : vector<32x1xf32> to vector<32x512xf32>
    %6 = vector.broadcast %4 : vector<1x512xf32> to vector<32x512xf32>
    %7 = arith.mulf %5, %6 : vector<32x512xf32>
    %8 = vector.extract_strided_slice %2 {offsets = [0, 1], sizes = [32, 1], strides = [1, 1]} : vector<32x3xf32> to vector<32x1xf32>
    %9 = vector.extract_strided_slice %1 {offsets = [1, 0], sizes = [1, 512], strides = [1, 1]} : vector<6x512xf32> to vector<1x512xf32>
    %10 = vector.broadcast %8 : vector<32x1xf32> to vector<32x512xf32>
    %11 = vector.broadcast %9 : vector<1x512xf32> to vector<32x512xf32>
    %12 = arith.mulf %10, %11 : vector<32x512xf32>
    %13 = arith.addf %7, %12 : vector<32x512xf32>
    %14 = vector.extract_strided_slice %2 {offsets = [0, 2], sizes = [32, 1], strides = [1, 1]} : vector<32x3xf32> to vector<32x1xf32>
    %15 = vector.extract_strided_slice %1 {offsets = [2, 0], sizes = [1, 512], strides = [1, 1]} : vector<6x512xf32> to vector<1x512xf32>
    %16 = vector.broadcast %14 : vector<32x1xf32> to vector<32x512xf32>
    %17 = vector.broadcast %15 : vector<1x512xf32> to vector<32x512xf32>
    %18 = arith.mulf %16, %17 : vector<32x512xf32>
    %19 = arith.addf %13, %18 : vector<32x512xf32>
    %c0_4 = arith.constant 0 : index
    %c0_5 = arith.constant 0 : index
    %c0_6 = arith.constant 0 : index
    %20 = vector.load %arg6[%c0_4, %c0_5, %c0_6] : memref<8x32x1xf32, #tpu.memory_space<vmem>>, vector<1x32x1xf32>
    %21 = vector.shape_cast %20 : vector<1x32x1xf32> to vector<32x1xf32>
    %22 = vector.broadcast %21 : vector<32x1xf32> to vector<32x512xf32>
    %23 = arith.addf %19, %22 : vector<32x512xf32>
    %c0_7 = arith.constant 0 : index
    %c0_8 = arith.constant 0 : index
    %c0_9 = arith.constant 0 : index
    %c0_10 = arith.constant 0 : index
    %24 = vector.load %arg3[%c0_7, %c0_8, %c0_9, %c0_10] : memref<1x18x32x1xf32, #tpu.memory_space<vmem>>, vector<1x1x32x1xf32>
    %25 = vector.shape_cast %24 : vector<1x1x32x1xf32> to vector<32x1xf32>
    %26 = vector.broadcast %25 : vector<32x1xf32> to vector<32x512xf32>
    %27 = arith.mulf %26, %23 : vector<32x512xf32>
    %c0_11 = arith.constant 0 : index
    %c9 = arith.constant 9 : index
    %c0_12 = arith.constant 0 : index
    %c0_13 = arith.constant 0 : index
    %28 = vector.load %arg3[%c0_11, %c9, %c0_12, %c0_13] : memref<1x18x32x1xf32, #tpu.memory_space<vmem>>, vector<1x1x32x1xf32>
    %29 = vector.shape_cast %28 : vector<1x1x32x1xf32> to vector<32x1xf32>
    %30 = vector.broadcast %29 : vector<32x1xf32> to vector<32x512xf32>
    %31 = arith.addf %27, %30 : vector<32x512xf32>
    %32 = math.sin %31 : vector<32x512xf32>
    %c1_i32 = arith.constant 1 : i32
    %c7_i32 = arith.constant 7 : i32
    %33 = arith.addi %c1_i32, %c7_i32 : i32
    %c1_i32_14 = arith.constant 1 : i32
    %34 = scf.for %arg14 = %c1_i32 to %33 step %c1_i32_14 iter_args(%arg15 = %32) -> (vector<32x512xf32>)  : i32 {
      %c1_i32_40 = arith.constant 1 : i32
      %88 = arith.subi %arg14, %c1_i32_40 : i32
      %89 = arith.index_cast %88 : i32 to index
      %c0_41 = arith.constant 0 : index
      %c0_42 = arith.constant 0 : index
      %90 = vector.load %arg5[%89, %c0_41, %c0_42] : memref<7x32x32xf32, #tpu.memory_space<vmem>>, vector<1x32x32xf32>
      %91 = vector.shape_cast %90 : vector<1x32x32xf32> to vector<32x32xf32>
      %cst_43 = arith.constant dense<0.000000e+00> : vector<32x512xf32>
      %92 = tpu.matmul %91, %arg15, %cst_43 {dimension_numbers = #tpu.dot_dimension_numbers<[1], [0], [0], [1], [0, 0, 1, 1], [], []>, precision = #tpu.contract_precision<fp32>} : vector<32x32xf32>, vector<32x512xf32>, vector<32x512xf32> -> vector<32x512xf32>
      %93 = arith.index_cast %arg14 : i32 to index
      %c0_44 = arith.constant 0 : index
      %c0_45 = arith.constant 0 : index
      %94 = vector.load %arg6[%93, %c0_44, %c0_45] : memref<8x32x1xf32, #tpu.memory_space<vmem>>, vector<1x32x1xf32>
      %95 = vector.shape_cast %94 : vector<1x32x1xf32> to vector<32x1xf32>
      %96 = vector.broadcast %95 : vector<32x1xf32> to vector<32x512xf32>
      %97 = arith.addf %92, %96 : vector<32x512xf32>
      %c0_46 = arith.constant 0 : index
      %98 = arith.index_cast %arg14 : i32 to index
      %c0_47 = arith.constant 0 : index
      %c0_48 = arith.constant 0 : index
      %99 = vector.load %arg3[%c0_46, %98, %c0_47, %c0_48] : memref<1x18x32x1xf32, #tpu.memory_space<vmem>>, vector<1x1x32x1xf32>
      %100 = vector.shape_cast %99 : vector<1x1x32x1xf32> to vector<32x1xf32>
      %101 = vector.broadcast %100 : vector<32x1xf32> to vector<32x512xf32>
      %102 = arith.mulf %101, %97 : vector<32x512xf32>
      %c9_i32 = arith.constant 9 : i32
      %103 = arith.addi %c9_i32, %arg14 : i32
      %c0_49 = arith.constant 0 : index
      %104 = arith.index_cast %103 : i32 to index
      %c0_50 = arith.constant 0 : index
      %c0_51 = arith.constant 0 : index
      %105 = vector.load %arg3[%c0_49, %104, %c0_50, %c0_51] : memref<1x18x32x1xf32, #tpu.memory_space<vmem>>, vector<1x1x32x1xf32>
      %106 = vector.shape_cast %105 : vector<1x1x32x1xf32> to vector<32x1xf32>
      %107 = vector.broadcast %106 : vector<32x1xf32> to vector<32x512xf32>
      %108 = arith.addf %102, %107 : vector<32x512xf32>
      %109 = math.sin %108 : vector<32x512xf32>
      scf.yield %109 : vector<32x512xf32>
    }
    %c7_i32_15 = arith.constant 7 : i32
    %c0_16 = arith.constant 0 : index
    %c0_17 = arith.constant 0 : index
    %35 = vector.load %arg8[%c0_16, %c0_17] : memref<32x32xf32, #tpu.memory_space<vmem>>, vector<32x32xf32>
    %cst = arith.constant dense<0.000000e+00> : vector<32x512xf32>
    %36 = tpu.matmul %35, %34, %cst {dimension_numbers = #tpu.dot_dimension_numbers<[1], [0], [0], [1], [0, 0, 1, 1], [], []>, precision = #tpu.contract_precision<fp32>} : vector<32x32xf32>, vector<32x512xf32>, vector<32x512xf32> -> vector<32x512xf32>
    %c0_18 = arith.constant 0 : index
    %c0_19 = arith.constant 0 : index
    %37 = vector.load %arg7[%c0_18, %c0_19] : memref<32x3xf32, #tpu.memory_space<vmem>>, vector<32x3xf32>
    %38 = vector.extract_strided_slice %37 {offsets = [0, 0], sizes = [32, 1], strides = [1, 1]} : vector<32x3xf32> to vector<32x1xf32>
    %39 = vector.extract_strided_slice %1 {offsets = [3, 0], sizes = [1, 512], strides = [1, 1]} : vector<6x512xf32> to vector<1x512xf32>
    %40 = vector.broadcast %38 : vector<32x1xf32> to vector<32x512xf32>
    %41 = vector.broadcast %39 : vector<1x512xf32> to vector<32x512xf32>
    %42 = arith.mulf %40, %41 : vector<32x512xf32>
    %43 = vector.extract_strided_slice %37 {offsets = [0, 1], sizes = [32, 1], strides = [1, 1]} : vector<32x3xf32> to vector<32x1xf32>
    %44 = vector.extract_strided_slice %1 {offsets = [4, 0], sizes = [1, 512], strides = [1, 1]} : vector<6x512xf32> to vector<1x512xf32>
    %45 = vector.broadcast %43 : vector<32x1xf32> to vector<32x512xf32>
    %46 = vector.broadcast %44 : vector<1x512xf32> to vector<32x512xf32>
    %47 = arith.mulf %45, %46 : vector<32x512xf32>
    %48 = arith.addf %42, %47 : vector<32x512xf32>
    %49 = vector.extract_strided_slice %37 {offsets = [0, 2], sizes = [32, 1], strides = [1, 1]} : vector<32x3xf32> to vector<32x1xf32>
    %50 = vector.extract_strided_slice %1 {offsets = [5, 0], sizes = [1, 512], strides = [1, 1]} : vector<6x512xf32> to vector<1x512xf32>
    %51 = vector.broadcast %49 : vector<32x1xf32> to vector<32x512xf32>
    %52 = vector.broadcast %50 : vector<1x512xf32> to vector<32x512xf32>
    %53 = arith.mulf %51, %52 : vector<32x512xf32>
    %54 = arith.addf %48, %53 : vector<32x512xf32>
    %55 = arith.addf %36, %54 : vector<32x512xf32>
    %c0_20 = arith.constant 0 : index
    %c0_21 = arith.constant 0 : index
    %56 = vector.load %arg9[%c0_20, %c0_21] : memref<32x1xf32, #tpu.memory_space<vmem>>, vector<32x1xf32>
    %57 = vector.broadcast %56 : vector<32x1xf32> to vector<32x512xf32>
    %58 = arith.addf %55, %57 : vector<32x512xf32>
    %c0_22 = arith.constant 0 : index
    %c8 = arith.constant 8 : index
    %c0_23 = arith.constant 0 : index
    %c0_24 = arith.constant 0 : index
    %59 = vector.load %arg3[%c0_22, %c8, %c0_23, %c0_24] : memref<1x18x32x1xf32, #tpu.memory_space<vmem>>, vector<1x1x32x1xf32>
    %60 = vector.shape_cast %59 : vector<1x1x32x1xf32> to vector<32x1xf32>
    %61 = vector.broadcast %60 : vector<32x1xf32> to vector<32x512xf32>
    %62 = arith.mulf %61, %58 : vector<32x512xf32>
    %c0_25 = arith.constant 0 : index
    %c17 = arith.constant 17 : index
    %c0_26 = arith.constant 0 : index
    %c0_27 = arith.constant 0 : index
    %63 = vector.load %arg3[%c0_25, %c17, %c0_26, %c0_27] : memref<1x18x32x1xf32, #tpu.memory_space<vmem>>, vector<1x1x32x1xf32>
    %64 = vector.shape_cast %63 : vector<1x1x32x1xf32> to vector<32x1xf32>
    %65 = vector.broadcast %64 : vector<32x1xf32> to vector<32x512xf32>
    %66 = arith.addf %62, %65 : vector<32x512xf32>
    %67 = math.sin %66 : vector<32x512xf32>
    %c0_28 = arith.constant 0 : index
    %c0_29 = arith.constant 0 : index
    %68 = vector.load %arg10[%c0_28, %c0_29] : memref<4x32xf32, #tpu.memory_space<vmem>>, vector<4x32xf32>
    %cst_30 = arith.constant dense<0.000000e+00> : vector<4x512xf32>
    %69 = tpu.matmul %68, %67, %cst_30 {dimension_numbers = #tpu.dot_dimension_numbers<[1], [0], [0], [1], [0, 0, 1, 1], [], []>, precision = #tpu.contract_precision<fp32>} : vector<4x32xf32>, vector<32x512xf32>, vector<4x512xf32> -> vector<4x512xf32>
    %c0_31 = arith.constant 0 : index
    %c0_32 = arith.constant 0 : index
    %70 = vector.load %arg11[%c0_31, %c0_32] : memref<4x32xf32, #tpu.memory_space<vmem>>, vector<4x32xf32>
    %cst_33 = arith.constant dense<0.000000e+00> : vector<4x512xf32>
    %71 = tpu.matmul %70, %34, %cst_33 {dimension_numbers = #tpu.dot_dimension_numbers<[1], [0], [0], [1], [0, 0, 1, 1], [], []>, precision = #tpu.contract_precision<fp32>} : vector<4x32xf32>, vector<32x512xf32>, vector<4x512xf32> -> vector<4x512xf32>
    %72 = arith.addf %69, %71 : vector<4x512xf32>
    %c0_34 = arith.constant 0 : index
    %c0_35 = arith.constant 0 : index
    %73 = vector.load %arg12[%c0_34, %c0_35] : memref<4x1xf32, #tpu.memory_space<vmem>>, vector<4x1xf32>
    %74 = vector.broadcast %73 : vector<4x1xf32> to vector<4x512xf32>
    %75 = arith.addf %72, %74 : vector<4x512xf32>
    %76 = tpu.iota {dimensions = array<i32: 0>} : vector<4x512xi32>
    %c3_i32 = arith.constant 3 : i32
    %77 = vector.broadcast %c3_i32 : i32 to vector<4x512xi32>
    %78 = arith.cmpi slt, %76, %77 : vector<4x512xi32>
    %79 = arith.negf %75 : vector<4x512xf32>
    %80 = math.exp %79 : vector<4x512xf32>
    %cst_36 = arith.constant 1.000000e+00 : f32
    %81 = vector.broadcast %cst_36 : f32 to vector<4x512xf32>
    %82 = arith.addf %81, %80 : vector<4x512xf32>
    %83 = arith.divf %81, %82 : vector<4x512xf32>
    %84 = arith.select %78, %83, %75 : vector<4x512xi1>, vector<4x512xf32>
    %c0_37 = arith.constant 0 : index
    %c0_38 = arith.constant 0 : index
    %c0_39 = arith.constant 0 : index
    %85 = vector.load %arg13[%c0_37, %c0_38, %c0_39] : memref<1x4x512xf32, #tpu.memory_space<vmem>>, vector<1x4x512xf32>
    %86 = vector.shape_cast %85 : vector<1x4x512xf32> to vector<4x512xf32>
    %87 = vector.shape_cast %84 : vector<4x512xf32> to vector<1x4x512xf32>
    tpu.vector_store %arg13[%c0_37, %c0_38, %c0_39], %87 {strides = array<i32>} : memref<1x4x512xf32, #tpu.memory_space<vmem>>, vector<1x4x512xf32>,
    return
  }
  func.func @transform_0(%arg0: i32, %arg1: i32) -> (i32, i32, i32) {
    %c0_i32 = arith.constant 0 : i32
    %c0_i32_0 = arith.constant 0 : i32
    return %arg0, %c0_i32, %arg1 : i32, i32, i32
  }
  func.func @transform_1(%arg0: i32, %arg1: i32) -> (i32, i32, i32, i32) {
    %c0_i32 = arith.constant 0 : i32
    %c0_i32_0 = arith.constant 0 : i32
    %c0_i32_1 = arith.constant 0 : i32
    %c0_i32_2 = arith.constant 0 : i32
    return %arg0, %c0_i32, %c0_i32_0, %c0_i32_1 : i32, i32, i32, i32
  }
  func.func @transform_2(%arg0: i32, %arg1: i32) -> (i32, i32) {
    %c0_i32 = arith.constant 0 : i32
    %c0_i32_0 = arith.constant 0 : i32
    %c0_i32_1 = arith.constant 0 : i32
    return %c0_i32, %c0_i32_0 : i32, i32
  }
  func.func @transform_3(%arg0: i32, %arg1: i32) -> (i32, i32, i32) {
    %c0_i32 = arith.constant 0 : i32
    %c0_i32_0 = arith.constant 0 : i32
    %c0_i32_1 = arith.constant 0 : i32
    %c0_i32_2 = arith.constant 0 : i32
    return %c0_i32, %c0_i32_0, %c0_i32_1 : i32, i32, i32
  }
  func.func @transform_4(%arg0: i32, %arg1: i32) -> (i32, i32, i32) {
    %c0_i32 = arith.constant 0 : i32
    %c0_i32_0 = arith.constant 0 : i32
    %c0_i32_1 = arith.constant 0 : i32
    %c0_i32_2 = arith.constant 0 : i32
    return %c0_i32, %c0_i32_0, %c0_i32_1 : i32, i32, i32
  }
  func.func @transform_5(%arg0: i32, %arg1: i32) -> (i32, i32) {
    %c0_i32 = arith.constant 0 : i32
    %c0_i32_0 = arith.constant 0 : i32
    %c0_i32_1 = arith.constant 0 : i32
    return %c0_i32, %c0_i32_0 : i32, i32
  }
  func.func @transform_6(%arg0: i32, %arg1: i32) -> (i32, i32) {
    %c0_i32 = arith.constant 0 : i32
    %c0_i32_0 = arith.constant 0 : i32
    %c0_i32_1 = arith.constant 0 : i32
    return %c0_i32, %c0_i32_0 : i32, i32
  }
  func.func @transform_7(%arg0: i32, %arg1: i32) -> (i32, i32) {
    %c0_i32 = arith.constant 0 : i32
    %c0_i32_0 = arith.constant 0 : i32
    %c0_i32_1 = arith.constant 0 : i32
    return %c0_i32, %c0_i32_0 : i32, i32
  }
  func.func @transform_8(%arg0: i32, %arg1: i32) -> (i32, i32) {
    %c0_i32 = arith.constant 0 : i32
    %c0_i32_0 = arith.constant 0 : i32
    %c0_i32_1 = arith.constant 0 : i32
    return %c0_i32, %c0_i32_0 : i32, i32
  }
  func.func @transform_9(%arg0: i32, %arg1: i32) -> (i32, i32) {
    %c0_i32 = arith.constant 0 : i32
    %c0_i32_0 = arith.constant 0 : i32
    %c0_i32_1 = arith.constant 0 : i32
    return %c0_i32, %c0_i32_0 : i32, i32
  }
  func.func @transform_10(%arg0: i32, %arg1: i32) -> (i32, i32) {
    %c0_i32 = arith.constant 0 : i32
    %c0_i32_0 = arith.constant 0 : i32
    %c0_i32_1 = arith.constant 0 : i32
    return %c0_i32, %c0_i32_0 : i32, i32
  }
  func.func @transform_11(%arg0: i32, %arg1: i32) -> (i32, i32, i32) {
    %c0_i32 = arith.constant 0 : i32
    %c0_i32_0 = arith.constant 0 : i32
    return %arg0, %c0_i32, %arg1 : i32, i32, i32
  }
}

</mosaic_0001>

<bundles_post_ra>
// kernel: tallsiren_forward_pallas.1
= control target key start
LH: loop header
LB: loop body
LE: loop exit
PB: predicated region body
PF: predicated region fallthrough
CT: control target
= control target key end

     0   :  { %s12441_s17 = smov 0   ;;  %s12443_s18 = smov 0   ;;  %s19127_s0 = inlined_call_operand.vmem [shape: f32[2,6,512], index: 0, kind: input, shape index: {}]   ;;  %s19128_s1 = inlined_call_operand.vmem [shape: f32[2,18,32,1], index: 1, kind: input, shape index: {}]   ;;  %s19129_s2 = inlined_call_operand.vmem [shape: f32[32,3], index: 2, kind: input, shape index: {}]   ;;  %s19130_s3 = inlined_call_operand.vmem [shape: f32[7,32,32], index: 3, kind: input, shape index: {}]   ;;  %s19131_s4 = inlined_call_operand.vmem [shape: f32[8,32,1], index: 4, kind: input, shape index: {}]   ;;  %s19132_s5 = inlined_call_operand.vmem [shape: f32[32,3], index: 5, kind: input, shape index: {}]   ;;  %s19133_s6 = inlined_call_operand.vmem [shape: f32[32,32], index: 6, kind: input, shape index: {}]   ;;  %s19134_s7 = inlined_call_operand.vmem [shape: f32[32,1], index: 7, kind: input, shape index: {}]   ;;  %s19135_s8 = inlined_call_operand.vmem [shape: f32[4,32], index: 8, kind: input, shape index: {}]   ;;  %s19136_s9 = inlined_call_operand.vmem [shape: f32[4,32], index: 9, kind: input, shape index: {}]   ;;  %s19137_s10 = inlined_call_operand.vmem [shape: f32[4,1], index: 10, kind: input, shape index: {}]   ;;  %s19138_s11 = inlined_call_operand.vmem [shape: f32[2,4,512], index: 11, kind: output, shape index: {}]  }
   0x1   :  { %s12445_s19 = smov 0  }
   0x2 LB: > { %s33_s20 = sadd.s32 1, %s12289_s18  ;;  %p11378_p0 = scmp.ge.s32.totalorder %s12293_s19, 1  ;;  %s12293_s19 = sphi %s12445_s19, %s21_s19   ;;  %s12289_s18 = sphi %s12443_s18, %s19910_s18   ;;  %s12285_s17 = sphi %s12441_s17, %s19909_s17  }
   0x3   : > { %p35_p1 = scmp.ge.s32.totalorder %s33_s20, 2  ;;  %p368_p2 = scmp.lt.s32.totalorder %s12293_s19, 3 }
   0x5   : > { %s19912_s20 = smov (%p35_p1, %s33_s20), 0  ;;  %p369_p3 = pnand %p11378_p0, %p368_p2 }
   0x7   : > { %372 = sbr.rel (%p369_p3) target bundleno = 2299 (0x8fb), region = 64 }
   0xc   : > { %v452_v0 = vld [vmem:[%s19129_s2 + $0x10] sm:$0xff]  ;;  %v450_v1 = vld [vmem:[%s19129_s2] sm:$0xff]  ;;  %v19141_v2 = vmov 1   ;;  %v19143_v3 = vmov 0   ;;  %p422_p4 = scmp.lt.s32.totalorder %s12285_s17, 1  ;;  %v453_v4 = vld [vmem:[%s19129_s2 + $0x18] sm:$0xff]  ;;  %v474_v23 = vlaneseq }
   0xd   : > { %11976 = vset.pattern.permute.xlu0 %v19141_v2  ;;  %11975 = vset.pattern.permute.xlu1 %v19143_v3  ;;  %v451_v5 = vld [vmem:[%s19129_s2 + $0x8] sm:$0xff]  ;;  %v19139_v6 = vmov 2   ;;  %v634_v7 = vld [vmem:[%s19131_s4] sm:$0xff]  ;;  %v637_v8 = vld [vmem:[%s19131_s4 + $0x18] sm:$0xff] }
   0xe   : > { %466 = vperm.xlu1 %11975, %v452_v0   ;;  %507 = vperm.xlu0 %11976, %v450_v1   ;;  %s19914_s17 = smov (!%p422_p4, %s12285_s17), 1  ;;  %v635_v10 = vld [vmem:[%s19131_s4 + $0x8] sm:$0xff]  ;;  %v636_v12 = vld [vmem:[%s19131_s4 + $0x10] sm:$0xff]  ;;  %v12517_v26 = vshrl.u32 %v474_v23, 7 }
   0xf   : > { %s11603_s27 = sshll.u32 %s19914_s17, 4  ;;  %s11604_s16 = smul.u32 576, %s19914_s17 }
  0x10   : > { %s12476_s30 = scalar_lea.vmem %s19138_s11, %s11603_s27  ;;  %s11602_s12 = sshll.u32 %s19914_s17, 5  ;;  %19396 = vst [vmem:[#allocation2_spill] sm:$0xff] %v12517_v26  ;;  %v476_v29 = vsub.s32 0, %v12517_v26  ;;  %v524_v30 = vsub.s32 1, %v12517_v26  ;;  %v588_v31 = vsub.s32 2, %v12517_v26 }
  0x11   : > { %s12495_s25 = scalar_lea.vmem %s19128_s1, %s11604_s16  ;;  %s429_s15 = scalar_lea.vmem %s19127_s0, %s11602_s12 }
  0x12   : > { %471 = vperm.xlu1 %11975, %v453_v4   ;;  %519 = vperm.xlu0 %11976, %v453_v4   ;;  %v675_v9 = vld [vmem:[%s12495_s25 + $0x8] sm:$0xff]  ;;  %v677_v11 = vld [vmem:[%s12495_s25 + $0x18] sm:$0xff]  ;;  %v674_v14 = vld [vmem:[%s12495_s25] sm:$0xff]  ;;  %s14070_s17 = smov 1  }
  0x13   : > { %v11385_v13 = vld [vmem:[%s12495_s25 + $0x128] sm:$0xff]  ;;  %v11387_v15 = vld [vmem:[%s12495_s25 + $0x138] sm:$0xff]  ;;  %v676_v16 = vld [vmem:[%s12495_s25 + $0x10] sm:$0xff] }
  0x14   : > { %v11384_v17 = vld [vmem:[%s12495_s25 + $0x120] sm:$0xff]  ;;  %v11386_v18 = vld [vmem:[%s12495_s25 + $0x130] sm:$0xff]  ;;  %v12531_v33 = vld [vmem:[%s429_s15 + $0x8] sm:$0x3f] }
  0x15   : > { %v12529_v32 = vld [vmem:[%s429_s15] sm:$0x3f]  ;;  %19398 = vst [vmem:[#allocation4_spill] sm:$0xff] %v12531_v33  ;;  %v12533_v34 = vld [vmem:[%s429_s15 + $0x10] sm:$0x3f]  ;;  %v12541_v39 = vrot.slane %v12531_v33, %v476_v29  ;;  %v529_v44 = vrot.slane %v12531_v33, %v524_v30  ;;  %v12553_v47 = vrot.slane %v12531_v33, %v588_v31 }
  0x16   : > { %11977 = vset.pattern.permute.xlu1 %v19141_v2  ;;  %11979 = vset.pattern.permute.xlu0 %v19139_v6  ;;  %19397 = vst [vmem:[#allocation3_spill] sm:$0xff] %v12529_v32  ;;  %19399 = vst [vmem:[#allocation5_spill] sm:$0xff] %v12533_v34  ;;  %v12535_v35 = vld [vmem:[%s429_s15 + $0x18] sm:$0x3f]  ;;  %v477_v38 = vrot.slane %v12529_v32, %v476_v29  ;;  %v525_v40 = vrot.slane %v12529_v32, %v524_v30 }
  0x17   : > { %511 = vperm.xlu1 %11977, %v451_v5   ;;  %575 = vperm.xlu0 %11979, %v451_v5   ;;  %19400 = vst [vmem:[#allocation6_spill] sm:$0xff] %v12535_v35  ;;  %v12545_v41 = vrot.slane %v12529_v32, %v588_v31  ;;  %v485_v42 = vrot.slane %v12533_v34, %v476_v29 }
  0x18   : > { %v489_v43 = vrot.slane %v12535_v35, %v476_v29  ;;  %v533_v45 = vrot.slane %v12533_v34, %v524_v30  ;;  %v537_v46 = vrot.slane %v12535_v35, %v524_v30  ;;  %v12556_v48 = vrot.slane %v12533_v34, %v588_v31 }
  0x19   : > { %v12559_v49 = vrot.slane %v12535_v35, %v588_v31 }
  0x1b   : > { %515 = vperm.xlu1 %11977, %v452_v0   ;;  %11980 = vset.pattern.permute.xlu0 %v19143_v3 }
  0x1c   : > { %456 = vperm.xlu0 %11980, %v450_v1  }
  0x1f   : > { %11978 = vset.pattern.permute.xlu1 %v19139_v6 }
  0x20   : > { %571 = vperm.xlu1 %11978, %v450_v1   ;;  %461 = vperm.xlu0 %11980, %v451_v5  }
  0x24   : > { %579 = vperm.xlu1 %11978, %v452_v0   ;;  %640 = vperm.xlu0 %11980, %v634_v7  }
  0x28   : > { %583 = vperm.xlu1 %11978, %v453_v4   ;;  %655 = vperm.xlu0 %11980, %v637_v8  }
  0x2c   : > { %11981 = vset.pattern.permute.xlu1 %v19143_v3  ;;  %685 = vperm.xlu0 %11980, %v675_v9  }
  0x2d   : > { %645 = vperm.xlu1 %11981, %v635_v10  }
  0x30   : > { %695 = vperm.xlu0 %11980, %v677_v11  }
  0x31   : > { %650 = vperm.xlu1 %11981, %v636_v12  }
  0x34   : > { %726 = vperm.xlu0 %11980, %v11385_v13  }
  0x35   : > { %680 = vperm.xlu1 %11981, %v674_v14  }
  0x38   : > { %736 = vperm.xlu0 %11980, %v11387_v15  }
  0x39   : > { %690 = vperm.xlu1 %11981, %v676_v16  }
  0x3d   : > { %721 = vperm.xlu1 %11981, %v11384_v17  }
  0x41   : > { %731 = vperm.xlu1 %11981, %v11386_v18  }
  0x89   : > { %v467_v19 = vpop.permute.xlu1 %466  ;;  %v508_v20 = vpop.permute.xlu0 %507 }
  0x8a   : > { %v498_v54 = vmul.f32 %v477_v38, %v467_v19  ;;  %v499_v55 = vmul.f32 %v12541_v39, %v467_v19  ;;  %v500_v56 = vmul.f32 %v485_v42, %v467_v19  ;;  %v501_v58 = vmul.f32 %v489_v43, %v467_v19 }
  0x8b   : > { %v538_v11 = vmul.f32 %v525_v40, %v508_v20  ;;  %v539_v12 = vmul.f32 %v529_v44, %v508_v20  ;;  %v540_v13 = vmul.f32 %v533_v45, %v508_v20  ;;  %v541_v15 = vmul.f32 %v537_v46, %v508_v20 }
  0x8d   : > { %v472_v21 = vpop.permute.xlu1 %471  ;;  %v520_v22 = vpop.permute.xlu0 %519 }
  0x8e   : > { %v502_v59 = vmul.f32 %v477_v38, %v472_v21  ;;  %v503_v62 = vmul.f32 %v12541_v39, %v472_v21  ;;  %v550_v63 = vmul.f32 %v525_v40, %v520_v22  ;;  %v551_v0 = vmul.f32 %v529_v44, %v520_v22 }
  0x8f   : > { %v504_v7 = vmul.f32 %v485_v42, %v472_v21  ;;  %v552_v8 = vmul.f32 %v533_v45, %v520_v22  ;;  %v505_v16 = vmul.f32 %v489_v43, %v472_v21  ;;  %v553_v19 = vmul.f32 %v537_v46, %v520_v22 }
  0x90   : > { %v12579_v23 = vadd.f32 %v550_v63, %v502_v59  ;;  %v12581_v29 = vadd.f32 %v551_v0, %v503_v62 }
  0x91   : > { %v12592_v6 = vadd.f32 %v553_v19, %v505_v16 }
  0x92   : > { %v12512_v24 = vpop.permute.xlu1 %511  ;;  %v12514_v25 = vpop.permute.xlu0 %575 }
  0x93   : > { %v542_v60 = vmul.f32 %v525_v40, %v12512_v24  ;;  %v543_v61 = vmul.f32 %v529_v44, %v12512_v24  ;;  %v544_v1 = vmul.f32 %v533_v45, %v12512_v24  ;;  %v606_v17 = vmul.f32 %v12545_v41, %v12514_v25 }
  0x94   : > { %v607_v18 = vmul.f32 %v12553_v47, %v12514_v25  ;;  %v608_v30 = vmul.f32 %v12556_v48, %v12514_v25  ;;  %v545_v62 = vmul.f32 %v537_v46, %v12512_v24 }
  0x96   : > { %v12522_v27 = vpop.permute.xlu1 %515 }
  0x97   : > { %v12524_v28 = vpop.permute.xlu0 %456  ;;  %v548_v22 = vmul.f32 %v533_v45, %v12522_v27  ;;  %v549_v63 = vmul.f32 %v537_v46, %v12522_v27 }
  0x98   : > { %v492_v45 = vmul.f32 %v485_v42, %v12524_v28  ;;  %v493_v24 = vmul.f32 %v489_v43, %v12524_v28 }
  0x9a   : > { %v556_v19 = vadd.f32 %v540_v13, %v492_v45 }
  0x9b   : > { %v12537_v36 = vpop.permute.xlu1 %571  ;;  %v462_v37 = vpop.permute.xlu0 %461 }
  0x9c   : > { %v494_v52 = vmul.f32 %v477_v38, %v462_v37  ;;  %v495_v53 = vmul.f32 %v12541_v39, %v462_v37  ;;  %v496_v57 = vmul.f32 %v485_v42, %v462_v37 }
  0x9e   : > { %v558_v9 = vadd.f32 %v542_v60, %v494_v52  ;;  %v559_v10 = vadd.f32 %v543_v61, %v495_v53  ;;  %v560_v14 = vadd.f32 %v544_v1, %v496_v57  ;;  %v12585_v52 = vadd.f32 %v552_v8, %v504_v7 }
  0x9f   : > { %v12561_v50 = vpop.permute.xlu1 %579  ;;  %v12563_v51 = vpop.permute.xlu0 %640  ;;  %v497_v53 = vmul.f32 %v489_v43, %v462_v37  ;;  %v546_v60 = vmul.f32 %v525_v40, %v12522_v27  ;;  %v547_v61 = vmul.f32 %v529_v44, %v12522_v27  ;;  %v609_v37 = vmul.f32 %v12559_v49, %v12514_v25 }
  0xa0   : > { %v622_v21 = vadd.f32 %v606_v17, %v558_v9  ;;  %v623_v57 = vadd.f32 %v607_v18, %v559_v10  ;;  %v624_v59 = vadd.f32 %v608_v30, %v560_v14  ;;  %v490_v7 = vmul.f32 %v477_v38, %v12524_v28 }
  0xa1   : > { %v491_v44 = vmul.f32 %v12541_v39, %v12524_v28  ;;  %v561_v27 = vadd.f32 %v545_v62, %v497_v53  ;;  %v12603_v46 = vadd.f32 %v546_v60, %v498_v54  ;;  %v12605_v9 = vadd.f32 %v547_v61, %v499_v55 }
  0xa2   : > { %v12607_v10 = vadd.f32 %v548_v22, %v500_v56  ;;  %v602_v25 = vmul.f32 %v12545_v41, %v12537_v36  ;;  %v12611_v38 = vadd.f32 %v549_v63, %v501_v58  ;;  %v603_v14 = vmul.f32 %v12553_v47, %v12537_v36 }
  0xa3   : > { %v12571_v4 = vpop.permute.xlu1 %583  ;;  %v12573_v5 = vpop.permute.xlu0 %655  ;;  %v554_v42 = vadd.f32 %v538_v11, %v490_v7  ;;  %v604_v28 = vmul.f32 %v12556_v48, %v12537_v36  ;;  %v605_v43 = vmul.f32 %v12559_v49, %v12537_v36  ;;  %v555_v56 = vadd.f32 %v539_v12, %v491_v44 }
  0xa4   : > { %v625_v17 = vadd.f32 %v609_v37, %v561_v27  ;;  %v557_v30 = vadd.f32 %v541_v15, %v493_v24  ;;  %v12635_v13 = vmul.f32 %v12545_v41, %v12561_v50  ;;  %v12639_v15 = vmul.f32 %v12553_v47, %v12561_v50 }
  0xa5   : > { %v618_v53 = vadd.f32 %v602_v25, %v554_v42  ;;  %v619_v11 = vadd.f32 %v603_v14, %v555_v56  ;;  %v12627_v36 = vadd.f32 %v604_v28, %v556_v19  ;;  %v12645_v63 = vmul.f32 %v12556_v48, %v12561_v50 }
  0xa6   : > { %v12629_v22 = vadd.f32 %v605_v43, %v557_v30  ;;  %v12652_v7 = vmul.f32 %v12559_v49, %v12561_v50  ;;  %v615_v24 = vmul.f32 %v12553_v47, %v12571_v4  ;;  %v616_v27 = vmul.f32 %v12556_v48, %v12571_v4 }
  0xa7   : > { %v686_v31 = vpop.permute.xlu0 %685  ;;  %v12671_v47 = vmul.f32 %v12559_v49, %v12571_v4 }
  0xa8   : > { %v646_v20 = vpop.permute.xlu1 %645  ;;  %v12680_v56 = vadd.f32 %v616_v27, %v12585_v52  ;;  %v19161_v52 = vmov 683565275  }
  0xa9   : > { %v662_v0 = vadd.f32 %v646_v20, %v622_v21  ;;  %v663_v1 = vadd.f32 %v646_v20, %v623_v57  ;;  %v664_v8 = vadd.f32 %v646_v20, %v624_v59  ;;  %v665_v57 = vadd.f32 %v646_v20, %v625_v17 }
  0xab   : > { %v12597_v40 = vpop.permute.xlu0 %695  ;;  %v702_v39 = vmul.f32 %v686_v31, %v662_v0  ;;  %v703_v16 = vmul.f32 %v686_v31, %v663_v1  ;;  %v704_v55 = vmul.f32 %v686_v31, %v664_v8  ;;  %v614_v8 = vmul.f32 %v12545_v41, %v12571_v4 }
  0xac   : > { %v705_v44 = vmul.f32 %v686_v31, %v665_v57 }
  0xad   : > { %v12674_v48 = vadd.f32 %v614_v8, %v12579_v23  ;;  %v19151_v8 = vmov 2102212464  }
  0xaf   : > { %v727_v54 = vpop.permute.xlu0 %726 }
  0xb0   : > { %v12619_v18 = vadd.f32 %v727_v54, %v702_v39  ;;  %v12621_v58 = vadd.f32 %v727_v54, %v703_v16  ;;  %v12623_v21 = vadd.f32 %v727_v54, %v704_v55  ;;  %v12661_v39 = vadd.f32 %v12563_v51, %v618_v53 }
  0xb1   : > { %v12663_v16 = vadd.f32 %v727_v54, %v705_v44  ;;  %v12667_v55 = vadd.f32 %v12563_v51, %v619_v11  ;;  %v12677_v54 = vadd.f32 %v615_v24, %v12581_v29 }
  0xb2   : > { %v19147_v60 = vand.u32 2147483647, %v12619_v18  ;;  %v1174_v61 = vand.u32 2139095040, %v12619_v18  ;;  %v19146_v12 = vand.u32 2147483647, %v12621_v58  ;;  %v1278_v59 = vand.u32 2139095040, %v12621_v58 }
  0xb3   : > { %v1382_v37 = vand.u32 2139095040, %v12623_v21  ;;  %v19145_v41 = vand.u32 2147483647, %v12623_v21  ;;  %19401 = vst [vmem:[#allocation7_spill] sm:$0xff] %v12667_v55  ;;  %vm1173_vm13 = vcmp.lt.s32.totalorder %v12619_v18, 0  ;;  %vm1277_vm15 = vcmp.lt.s32.totalorder %v12621_v58, 0 }
  0xb4   : > { %v1175_v20 = vshrl.u32 %v1174_v61, 23  ;;  %v1178_v62 = vand.u32 8388607, %v19147_v60  ;;  %v1279_v0 = vshrl.u32 %v1278_v59, 23  ;;  %v1282_v1 = vand.u32 8388607, %v19146_v12 }
  0xb5   : > { %v1383_v14 = vshrl.u32 %v1382_v37, 23  ;;  %v12688_v49 = vand.u32 8388607, %v19145_v41 }
  0xb6   : > { %v11404_v45 = vadd.s32 4294967169, %v1175_v20  ;;  %v11408_v25 = vadd.s32 4294967169, %v1279_v0  ;;  %v1179_v50 = vor.u32 8388608, %v1178_v62  ;;  %v1283_v28 = vor.u32 8388608, %v1282_v1 }
  0xb7   : > { %v11412_v31 = vadd.s32 4294967169, %v1383_v14  ;;  %v19166_v62 = vmov 2475754826   ;;  %v19154_v1 = vmov 2131351028  }
  0xb8   : > { %v1181_v42 = vadd.s32 1, %v11404_v45  ;;  %v1285_v43 = vadd.s32 1, %v11408_v25  ;;  %v12682_v53 = vshll.u32 %v1179_v50, 8  ;;  %v12684_v57 = vshll.u32 %v1283_v28, 8 }
  0xb9   : > { %v12690_v4 = vadd.s32 1, %v11412_v31  ;;  %v19148_v45 = vmov 920167782   ;;  %v19157_v28 = vmov 1326507024  }
  0xba   : > { %vm1182_vm0 = vcmp.gt.s32.totalorder %v1181_v42, 0  ;;  %vm1286_vm1 = vcmp.gt.s32.totalorder %v1285_v43, 0 }
  0xbb   : > { %v1183_v17 = vsel %vm1182_vm0, %v1181_v42, 0  ;;  %v1287_v11 = vsel %vm1286_vm1, %v1285_v43, 0  ;;  %vm1390_vm6 = vcmp.gt.s32.totalorder %v12690_v4, 0 }
  0xbc   : > { %v1184_v19 = vshrl.u32 %v1183_v17, 5  ;;  %v1185_v30 = vand.u32 31, %v1183_v17  ;;  %v12694_v59 = vshrl.u32 %v1287_v11, 5  ;;  %v1289_v20 = vand.u32 31, %v1287_v11 }
  0xbe   : > { %v1186_v29 = vsub.s32 32, %v1185_v30  ;;  %v1188_v61 = vshll.u32 %v19161_v52, %v1185_v30  ;;  %v1191_v0 = vshll.u32 %v19166_v62, %v1185_v30  ;;  %v1194_v37 = vshll.u32 %v19154_v1, %v1185_v30 }
  0xbf   : > { %v1197_v44 = vshll.u32 %v19151_v8, %v1185_v30  ;;  %v1200_v24 = vshll.u32 %v19148_v45, %v1185_v30  ;;  %vm1203_vm2 = vcmp.lt.s32.totalorder %v1184_v19, 1  ;;  %vm1204_vm3 = vcmp.lt.s32.totalorder %v1184_v19, 2 }
  0xc0   : > { %v1189_v27 = vshrl.u32 %v19166_v62, %v1186_v29  ;;  %v1192_v25 = vshrl.u32 %v19154_v1, %v1186_v29  ;;  %v1195_v14 = vshrl.u32 %v19151_v8, %v1186_v29  ;;  %v1187_v50 = vshrl.u32 %v19161_v52, %v1186_v29 }
  0xc1   : > { %v1198_v42 = vshrl.u32 %v19148_v45, %v1186_v29  ;;  %v1201_v43 = vshrl.u32 %v19157_v28, %v1186_v29  ;;  %v1290_v2 = vsub.s32 32, %v1289_v20  ;;  %vm1205_vm4 = vcmp.lt.s32.totalorder %v1184_v19, 3 }
  0xc2   : > { %v1190_v31 = vor.u32 %v1189_v27, %v1188_v61  ;;  %v1193_v17 = vor.u32 %v1192_v25, %v1191_v0  ;;  %v1196_v11 = vor.u32 %v1195_v14, %v1194_v37  ;;  %vm1206_vm5 = vcmp.lt.s32.totalorder %v1184_v19, 4 }
  0xc3   : > { %v1199_v30 = vor.u32 %v1198_v42, %v1197_v44  ;;  %v1202_v3 = vor.u32 %v1201_v43, %v1200_v24  ;;  %v1292_v29 = vshll.u32 %v19161_v52, %v1289_v20  ;;  %v1293_v37 = vshrl.u32 %v19166_v62, %v1290_v2 }
  0xc4   : > { %v1207_v41 = vsel %vm1203_vm2, %v1187_v50, %v1190_v31  ;;  %v1208_v12 = vsel %vm1206_vm5, %v1196_v11, 2102212464  ;;  %v1211_v60 = vsel %vm1203_vm2, %v1190_v31, %v1193_v17  ;;  %v1215_v23 = vsel %vm1203_vm2, %v1193_v17, %v1196_v11 }
  0xc5   : > { %v1209_v45 = vsel %vm1205_vm4, %v1193_v17, %v1208_v12  ;;  %v1212_v8 = vsel %vm1206_vm5, %v1199_v30, 920167782  ;;  %v1216_v1 = vsel %vm1206_vm5, %v1202_v3, 1326507024  ;;  %v1295_v44 = vshll.u32 %v19166_v62, %v1289_v20 }
  0xc6   : > { %v1213_v61 = vsel %vm1205_vm4, %v1196_v11, %v1212_v8  ;;  %v1217_v0 = vsel %vm1205_vm4, %v1199_v30, %v1216_v1  ;;  %v1210_v24 = vsel %vm1204_vm3, %v1207_v41, %v1209_v45  ;;  %v19402_v14 = vmov 2131351028  }
  0xc7   : > { %v1214_v27 = vsel %vm1204_vm3, %v1211_v60, %v1213_v61  ;;  %v1218_v25 = vsel %vm1204_vm3, %v1215_v23, %v1217_v0  ;;  %v1296_v12 = vshrl.u32 %v19402_v14, %v1290_v2  ;;  %v1294_v1 = vor.u32 %v1293_v37, %v1292_v29 }
  0xc8   : > { %v12718_v3 = vmul.u32.u64.low %v12682_v53, %v1218_v25  ;;  %v12719_v50 = vmul.u32.u64.high %v12682_v53, %v1218_v25, %v12718_v3  ;;  %v12722_v42 = vmul.u32.u64.low %v12682_v53, %v1214_v27  ;;  %v12723_v8 = vmul.u32.u64.high %v12682_v53, %v1214_v27, %v12722_v42 }
  0xc9   : > { %v1297_v43 = vor.u32 %v1296_v12, %v1295_v44  ;;  %v1298_v31 = vshll.u32 %v19402_v14, %v1289_v20  ;;  %v19403_v41 = vmov 2102212464   ;;  %v1291_v60 = vshrl.u32 %v19161_v52, %v1290_v2 }
  0xca   : > { %v1299_v45 = vshrl.u32 %v19403_v41, %v1290_v2  ;;  %v1301_v19 = vshll.u32 %v19403_v41, %v1289_v20  ;;  %v19404_v23 = vmov 920167782   ;;  %v1305_v11 = vshrl.u32 %v19157_v28, %v1290_v2 }
  0xcb   : > { %v1302_v17 = vshrl.u32 %v19404_v23, %v1290_v2  ;;  %v1226_v30 = vmul.u32 %v12682_v53, %v1210_v24  ;;  %v1304_v0 = vshll.u32 %v19404_v23, %v1289_v20  ;;  %vm1307_vm7 = vcmp.lt.s32.totalorder %v12694_v59, 1 }
  0xcc   : > { %v1300_v61 = vor.u32 %v1299_v45, %v1298_v31  ;;  %vm1228_vm8 = vc.u32 %v12719_v50, %v12722_v42  ;;  %v1229_v29 = vadd.s32 1, %v12723_v8  ;;  %vm1308_vm9 = vcmp.lt.s32.totalorder %v12694_v59, 2 }
  0xcd   : > { %v1303_v37 = vor.u32 %v1302_v17, %v1301_v19  ;;  %v1306_v44 = vor.u32 %v1305_v11, %v1304_v0  ;;  %vm1309_vm10 = vcmp.lt.s32.totalorder %v12694_v59, 3  ;;  %vm1310_vm11 = vcmp.lt.s32.totalorder %v12694_v59, 4 }
  0xce   : > { %v1315_v2 = vsel %vm1307_vm7, %v1294_v1, %v1297_v43  ;;  %v1230_v53 = vsel %vm1228_vm8, %v1229_v29, %v12723_v8  ;;  %v1312_v24 = vsel %vm1310_vm11, %v1300_v61, 2102212464  ;;  %v1319_v27 = vsel %vm1307_vm7, %v1297_v43, %v1300_v61 }
  0xcf   : > { %v1316_v20 = vsel %vm1310_vm11, %v1303_v37, 920167782  ;;  %v1231_v25 = vadd.s32 %v1230_v53, %v1226_v30  ;;  %v1311_v12 = vsel %vm1307_vm7, %v1291_v60, %v1294_v1  ;;  %v1320_v31 = vsel %vm1310_vm11, %v1306_v44, 1326507024 }
  0xd0   : > { %v1317_v3 = vsel %vm1309_vm10, %v1300_v61, %v1316_v20  ;;  %v1313_v45 = vsel %vm1309_vm10, %v1297_v43, %v1312_v24  ;;  %v1321_v17 = vsel %vm1309_vm10, %v1303_v37, %v1320_v31  ;;  %v1391_v11 = vsel %vm1390_vm6, %v12690_v4, 0 }
  0xd1   : > { %v1318_v19 = vsel %vm1308_vm9, %v1315_v2, %v1317_v3  ;;  %v1232_v0 = vadd.s32 536870912, %v1231_v25  ;;  %v1322_v8 = vsel %vm1308_vm9, %v1319_v27, %v1321_v17  ;;  %v670_v1 = vadd.f32 %v12573_v5, %v12674_v48 }
  0xd2   : > { %v12750_v29 = vmul.u32.u64.low %v12684_v57, %v1318_v19  ;;  %v12751_v28 = vmul.u32.u64.high %v12684_v57, %v1318_v19, %v12750_v29  ;;  %v12757_v43 = vmul.u32.u64.low %v12684_v57, %v1322_v8  ;;  %v12758_v60 = vmul.u32.u64.high %v12684_v57, %v1322_v8, %v12757_v43 }
  0xd3   : > { %v19160_v30 = vand.u32 2147483647, %v12663_v16  ;;  %v1233_v61 = vshrl.u32 %v1232_v0, 30  ;;  %v1314_v4 = vsel %vm1308_vm9, %v1311_v12, %v1313_v45  ;;  %v1387_v37 = vor.u32 8388608, %v12688_v49 }
  0xd4   : > { %v1393_v44 = vand.u32 31, %v1391_v11  ;;  %v12766_v2 = vadd.f32 %v12671_v47, %v12592_v6  ;;  %v671_v48 = vadd.f32 %v12573_v5, %v12677_v54  ;;  %v12772_v53 = vadd.f32 %v12573_v5, %v12680_v56 }
  0xd5   : > { %v12775_v24 = vmul.f32 %v12597_v40, %v670_v1  ;;  %v1234_v20 = vshll.u32 %v1233_v61, 30  ;;  %v1333_v59 = vadd.s32 1, %v12751_v28  ;;  %v19405_v49 = vand.u32 2139095040, %v12663_v16 }
  0xd6   : > { %v1394_v27 = vsub.s32 32, %v1393_v44  ;;  %v1330_v6 = vmul.u32 %v12684_v57, %v1314_v4  ;;  %vm1332_vm12 = vc.u32 %v12758_v60, %v12750_v29  ;;  %v12785_v47 = vand.u32 8388607, %v19160_v30 }
  0xd7   : > { %v1487_v12 = vshrl.u32 %v19405_v49, 23  ;;  %v12788_v54 = vmul.f32 %v12597_v40, %v671_v48  ;;  %v12791_v56 = vsub.s32 %v1231_v25, %v1234_v20  ;;  %v1334_v3 = vsel %vm1332_vm12, %v1333_v59, %v12751_v28 }
  0xd8   : > { %v12794_v31 = vshll.u32 %v1387_v37, 8  ;;  %v19406_v57 = vand.u32 2147483647, %v12619_v18  ;;  %v1227_v19 = vadd.s32 %v12722_v42, %v12719_v50  ;;  %v1335_v17 = vadd.s32 %v1334_v3, %v1330_v6 }
  0xd9   : > { %v12804_v0 = vshrl.u32 %v1391_v11, 5  ;;  %v1397_v8 = vshrl.u32 %v19166_v62, %v1394_v27  ;;  %v1237_v25 = vsub.s32 0, %v12791_v56  ;;  %v1400_v28 = vshrl.u32 %v19402_v14, %v1394_v27 }
  0xda   : > { %vm12798_vm14 = vcmp.le.f32.partialorder %v19406_v57, 0.7853982  ;;  %v1403_v1 = vshrl.u32 %v19403_v41, %v1394_v27  ;;  %v11416_v43 = vadd.s32 4294967169, %v1487_v12  ;;  %v1257_v4 = vsub.s32 4, %v1233_v61 }
  0xdb   : > { %v1336_v37 = vadd.s32 536870912, %v1335_v17  ;;  %v1396_v48 = vshll.u32 %v19161_v52, %v1393_v44  ;;  %v11405_v50 = vmin.u32 %v1237_v25, %v12791_v56  ;;  %v1399_v42 = vshll.u32 %v19166_v62, %v1393_v44 }
  0xdc   : > { %v1402_v11 = vshll.u32 %v19402_v14, %v1393_v44  ;;  %v1406_v59 = vshrl.u32 %v19404_v23, %v1394_v27  ;;  %v1405_v3 = vshll.u32 %v19403_v41, %v1393_v44  ;;  %v19409_v57 = vmov 1326507024  }
  0xdd   : > { %v1337_v49 = vshrl.u32 %v1336_v37, 30  ;;  %v1398_v6 = vor.u32 %v1397_v8, %v1396_v48  ;;  %v1409_v12 = vshrl.u32 %v19409_v57, %v1394_v27  ;;  %v1239_v30 = vclz %v11405_v50 }
  0xde   : > { %v1401_v52 = vor.u32 %v1400_v28, %v1399_v42  ;;  %v1404_v35 = vor.u32 %v1403_v1, %v1402_v11  ;;  %v1408_v20 = vshll.u32 %v19404_v23, %v1393_v44  ;;  %v1258_v25 = vsel %vm1173_vm13, %v1257_v4, %v1233_v61 }
  0xdf   : > { %v1338_v62 = vshll.u32 %v1337_v49, 30  ;;  %v1407_v33 = vor.u32 %v1406_v59, %v1405_v3  ;;  %vm1411_vm0 = vcmp.lt.s32.totalorder %v12804_v0, 1  ;;  %v11406_v37 = vadd.s32 4294967294, %v1239_v30 }
  0xe0   : > { %v1410_v8 = vor.u32 %v1409_v12, %v1408_v20  ;;  %vm1412_vm1 = vcmp.lt.s32.totalorder %v12804_v0, 2  ;;  %vm1414_vm2 = vcmp.lt.s32.totalorder %v12804_v0, 4  ;;  %v19410_v50 = vmov 683565275  }
  0xe1   : > { %v12825_v48 = vsub.s32 %v1335_v17, %v1338_v62  ;;  %v1395_v28 = vshrl.u32 %v19410_v50, %v1394_v27  ;;  %vm1413_vm3 = vcmp.lt.s32.totalorder %v12804_v0, 3  ;;  %v1420_v44 = vsel %vm1414_vm2, %v1407_v33, 920167782 }
  0xe2   : > { %vm11407_vm4 = vcmp.lt.s32.totalorder %v11406_v37, 0  ;;  %v1260_v61 = vsel %vm12798_vm14, 0, %v1258_v25  ;;  %v19411_v30 = vand.u32 2147483647, %v12621_v58  ;;  %v1419_v62 = vsel %vm1411_vm0, %v1398_v6, %v1401_v52 }
  0xe3   : > { %v1421_v27 = vsel %vm1413_vm3, %v1404_v35, %v1420_v44  ;;  %v1242_v17 = vsel %vm11407_vm4, 0, %v11406_v37  ;;  %v1341_v4 = vsub.s32 0, %v12825_v48  ;;  %v1361_v20 = vsub.s32 4, %v1337_v49 }
  0xe4   : > { %vm12835_vm5 = vcmp.le.f32.partialorder %v19411_v30, 0.7853982  ;;  %v1423_v42 = vsel %vm1411_vm0, %v1401_v52, %v1404_v35  ;;  %v1243_v11 = vsub.s32 32, %v1242_v17  ;;  %v1247_v59 = vsub.s32 4294967266, %v1242_v17 }
  0xe5   : > { %v1416_v3 = vsel %vm1414_vm2, %v1404_v35, 2102212464  ;;  %v1424_v12 = vsel %vm1414_vm2, %v1410_v8, 1326507024  ;;  %v1244_v25 = vshll.u32 %v12791_v56, %v1242_v17  ;;  %v11409_v30 = vmin.u32 %v1341_v4, %v12825_v48 }
  0xe6   : > { %v1422_v37 = vsel %vm1412_vm1, %v1419_v62, %v1421_v27  ;;  %v1425_v44 = vsel %vm1413_vm3, %v1407_v33, %v1424_v12  ;;  %v1245_v34 = vshrl.u32 %v1227_v19, %v1243_v11  ;;  %v1248_v32 = vadd.s32 127, %v1247_v59 }
  0xe7   : > { %v1426_v26 = vsel %vm1412_vm1, %v1423_v42, %v1425_v44  ;;  %v1493_v55 = vadd.s32 1, %v11416_v43  ;;  %v1343_v35 = vclz %v11409_v30  ;;  %v12860_v8 = vsel %vm1277_vm15, %v1361_v20, %v1337_v49 }
  0xe8   : > { %v1415_v56 = vsel %vm1411_vm0, %v1395_v28, %v1398_v6  ;;  %v1417_v62 = vsel %vm1413_vm3, %v1401_v52, %v1416_v3  ;;  %v1246_v27 = vor.u32 %v1245_v34, %v1244_v25  ;;  %v1249_v17 = vshll.u32 %v1248_v32, 23 }
  0xe9   : > { %v12867_v33 = vmul.u32.u64.low %v12794_v31, %v1426_v26  ;;  %v12868_v19 = vmul.u32.u64.high %v12794_v31, %v1426_v26, %v12867_v33  ;;  %v11410_v4 = vadd.s32 4294967294, %v1343_v35  ;;  %vm1494_vm6 = vcmp.gt.s32.totalorder %v1493_v55, 0 }
  0xea   : > { %v12871_v43 = vmul.u32.u64.low %v12794_v31, %v1422_v37  ;;  %v12872_v42 = vmul.u32.u64.high %v12794_v31, %v1422_v37, %v12871_v43  ;;  %v1250_v49 = vor.u32 4788187, %v1249_v17  ;;  %v1331_v6 = vadd.s32 %v12750_v29, %v12758_v60 }
  0xeb   : > { %v1418_v52 = vsel %vm1412_vm1, %v1415_v56, %v1417_v62  ;;  %v1495_v34 = vsel %vm1494_vm6, %v1493_v55, 0  ;;  %v1264_v32 = vadd.s32 3, %v1260_v61  ;;  %vm11411_vm7 = vcmp.lt.s32.totalorder %v11410_v4, 0 }
  0xec   : > { %v1364_v26 = vsel %vm12835_vm5, 0, %v12860_v8  ;;  %v1497_v28 = vand.u32 31, %v1495_v34  ;;  %v1251_v20 = vand.u32 2147483647, %v1250_v49  ;;  %v1253_v11 = vcvt.s32.f32 %v1246_v27 }
  0xed   : > { %v1346_v59 = vsel %vm11411_vm7, 0, %v11410_v4  ;;  %vm1436_vm8 = vc.u32 %v12868_v19, %v12871_v43  ;;  %v1434_v29 = vmul.u32 %v12794_v31, %v1418_v52  ;;  %v1437_v60 = vadd.s32 1, %v12872_v42 }
  0xee   : > { %v1347_v3 = vsub.s32 32, %v1346_v59  ;;  %v1351_v12 = vsub.s32 4294967266, %v1346_v59  ;;  %v1254_v55 = vmul.f32 %v1253_v11, %v1251_v20  ;;  %v1348_v0 = vshll.u32 %v12825_v48, %v1346_v59 }
  0xef   : > { %v12887_v61 = vshrl.u32 %v1495_v34, 5  ;;  %v1498_v25 = vsub.s32 32, %v1497_v28  ;;  %v1438_v44 = vsel %vm1436_vm8, %v1437_v60, %v12872_v42  ;;  %v1500_v35 = vshll.u32 %v19410_v50, %v1497_v28 }
  0xf0   : > { %v1349_v30 = vshrl.u32 %v1331_v6, %v1347_v3  ;;  %v1352_v37 = vadd.s32 127, %v1351_v12  ;;  %v1255_v8 = vxor.u32 2147483648, %v1254_v55  ;;  %v1439_v56 = vadd.s32 %v1438_v44, %v1434_v29 }
  0xf1   : > { %v19414_v62 = vmov 2475754826   ;;  %v1504_v4 = vshrl.u32 %v19402_v14, %v1498_v25  ;;  %v1507_v48 = vshrl.u32 %v19403_v41, %v1498_v25  ;;  %v1506_v42 = vshll.u32 %v19402_v14, %v1497_v28 }
  0xf2   : > { %v1501_v27 = vshrl.u32 %v19414_v62, %v1498_v25  ;;  %v1503_v31 = vshll.u32 %v19414_v62, %v1497_v28  ;;  %v1350_v17 = vor.u32 %v1349_v30, %v1348_v0  ;;  %v1353_v33 = vshll.u32 %v1352_v37, 23 }
  0xf3   : > { %v1256_v49 = vsel %vm1173_vm13, %v1255_v8, %v1254_v55  ;;  %v1440_v6 = vadd.s32 536870912, %v1439_v56  ;;  %v1509_v59 = vshll.u32 %v19403_v41, %v1497_v28  ;;  %v1510_v29 = vshrl.u32 %v19404_v23, %v1498_v25 }
  0xf4   : > { %v1502_v52 = vor.u32 %v1501_v27, %v1500_v35  ;;  %v1259_v34 = vsel %vm12798_vm14, %v12619_v18, %v1256_v49  ;;  %v1354_v20 = vor.u32 4788187, %v1353_v33  ;;  %v1357_v11 = vcvt.s32.f32 %v1350_v17 }
  0xf5   : > { %11982 = vcosq.f32 %v1259_v34  ;;  %v1441_v3 = vshrl.u32 %v1440_v6, 30  ;;  %v1505_v12 = vor.u32 %v1504_v4, %v1503_v31  ;;  %v1508_v55 = vor.u32 %v1507_v48, %v1506_v42 }
  0xf6   : > { %11984 = vsinq.f32 %v1259_v34  ;;  %v1355_v60 = vand.u32 2147483647, %v1354_v20  ;;  %v1513_v0 = vshrl.u32 %v19409_v57, %v1498_v25  ;;  %v12904_v30 = vand.u32 3, %v1264_v32 }
  0xf7   : > { %v1442_v37 = vshll.u32 %v1441_v3, 30  ;;  %v1511_v44 = vor.u32 %v1510_v29, %v1509_v59  ;;  %v12908_v45 = vmul.f32 %v12597_v40, %v12772_v53  ;;  %v1368_v8 = vadd.s32 3, %v1364_v26  ;;  %v12945_v59 = vpop.permute.xlu0 %736 }
  0xf8   : > { %v1358_v35 = vmul.f32 %v1357_v11, %v1355_v60  ;;  %v1512_v27 = vshll.u32 %v19404_v23, %v1497_v28  ;;  %v19415_v31 = vor.u32 8388608, %v12785_v47  ;;  %v1499_v4 = vshrl.u32 %v19410_v50, %v1498_v25 }
  0xf9   : > { %v12915_v33 = vsub.s32 %v1439_v56, %v1442_v37  ;;  %vm1515_vm9 = vcmp.lt.s32.totalorder %v12887_v61, 1  ;;  %vm1518_vm10 = vcmp.lt.s32.totalorder %v12887_v61, 4  ;;  %vm1516_vm11 = vcmp.lt.s32.totalorder %v12887_v61, 2 }
  0xfa   : > { %v12913_v17 = vshll.u32 %v19415_v31, 8  ;;  %v1359_v32 = vxor.u32 2147483648, %v1358_v35  ;;  %v1514_v48 = vor.u32 %v1513_v0, %v1512_v27  ;;  %v1520_v53 = vsel %vm1518_vm10, %v1508_v55, 2102212464 }
  0xfb   : > { %v1523_v26 = vsel %vm1515_vm9, %v1502_v52, %v1505_v12  ;;  %v1445_v47 = vsub.s32 0, %v12915_v33  ;;  %vm1517_vm12 = vcmp.lt.s32.totalorder %v12887_v61, 3  ;;  %v1524_v28 = vsel %vm1518_vm10, %v1511_v44, 920167782 }
  0xfc   : > { %v1360_v25 = vsel %vm1277_vm15, %v1359_v32, %v1358_v35  ;;  %v1519_v56 = vsel %vm1515_vm9, %v1499_v4, %v1502_v52  ;;  %v1521_v49 = vsel %vm1517_vm12, %v1505_v12, %v1520_v53  ;;  %v1525_v6 = vsel %vm1517_vm12, %v1508_v55, %v1524_v28 }
  0xfd   : > { %v1363_v42 = vsel %vm12835_vm5, %v12621_v58, %v1360_v25  ;;  %v11413_v34 = vmin.u32 %v1445_v47, %v12915_v33  ;;  %v1526_v20 = vsel %vm1516_vm11, %v1523_v26, %v1525_v6  ;;  %v1527_v11 = vsel %vm1515_vm9, %v1505_v12, %v1508_v55 }
  0xfe   : > { %11986 = vcosq.f32 %v1363_v42  ;;  %v1528_v52 = vsel %vm1518_vm10, %v1514_v48, 1326507024  ;;  %v12950_v29 = vmul.u32.u64.low %v12913_v17, %v1526_v20  ;;  %v12951_v60 = vmul.u32.u64.high %v12913_v17, %v1526_v20, %v12950_v29 }
  0xff   : > { %vm1263_vm13 = vweird.f32 %v12619_v18  ;;  %11988 = vsinq.f32 %v1363_v42  ;;  %vm1381_vm14 = vcmp.lt.s32.totalorder %v12623_v21, 0  ;;  %v1447_v1 = vclz %v11413_v34 }
 0x100   : > { %v1465_v0 = vsub.s32 4, %v1441_v3  ;;  %vm1266_vm15 = vcmp.lt.s32.totalorder %v12904_v30, 2  ;;  %vm1267_vm0 = vcmp.eq.s32.totalorder %v12904_v30, 0  ;;  %v1529_v12 = vsel %vm1517_vm12, %v1511_v44, %v1528_v52 }
 0x101   : > { %v12962_v55 = vadd.f32 %v12945_v59, %v12775_v24  ;;  %vm1270_vm1 = vcmp.eq.s32.totalorder %v12904_v30, 2  ;;  %v11414_v37 = vadd.s32 4294967294, %v1447_v1  ;;  %v1522_v35 = vsel %vm1516_vm11, %v1519_v56, %v1521_v49 }
 0x102   : > { %v1530_v27 = vsel %vm1516_vm11, %v1527_v11, %v1529_v12  ;;  %v11983_v31 = vpop.eup %11982  ;;  %v1369_v4 = vand.u32 3, %v1368_v8  ;;  %v1435_v32 = vadd.s32 %v12871_v43, %v12868_v19  ;;  %v1466_v26 = vsel %vm1381_vm14, %v1465_v0, %v1441_v3 }
 0x103   : > { %v12972_v44 = vmul.u32.u64.low %v12913_v17, %v1530_v27  ;;  %v12973_v48 = vmul.u32.u64.high %v12913_v17, %v1530_v27, %v12972_v44  ;;  %v11985_v24 = vpop.eup %11984  ;;  %v1271_v53 = vxor.u32 2147483648, %v11983_v31  ;;  %vm11415_vm2 = vcmp.lt.s32.totalorder %v11414_v37, 0 }
 0x104   : > { %v1541_v47 = vadd.s32 1, %v12951_v60  ;;  %v1268_v28 = vxor.u32 2147483648, %v11985_v24  ;;  %v1450_v61 = vsel %vm11415_vm2, 0, %v11414_v37  ;;  %v1538_v25 = vmul.u32 %v12913_v17, %v1522_v35 }
 0x105   : > { %v2006_v8 = vand.u32 2139095040, %v12962_v55  ;;  %v1272_v19 = vsel %vm1270_vm1, %v1271_v53, %v11985_v24  ;;  %v1451_v43 = vsub.s32 32, %v1450_v61  ;;  %v1455_v56 = vsub.s32 4294967266, %v1450_v61 }
 0x106   : > { %v2003_v49 = vand.u32 2147483647, %v12962_v55  ;;  %v1269_v6 = vsel %vm1267_vm0, %v11983_v31, %v1268_v28  ;;  %v1452_v3 = vshll.u32 %v12915_v33, %v1450_v61  ;;  %vm1540_vm3 = vc.u32 %v12973_v48, %v12950_v29 }
 0x107   : > { %v12990_v17 = vadd.f32 %v12945_v59, %v12788_v54  ;;  %v1273_v42 = vsel %vm1266_vm15, %v1269_v6, %v1272_v19  ;;  %v1453_v34 = vshrl.u32 %v1435_v32, %v1451_v43  ;;  %v1456_v20 = vadd.s32 127, %v1455_v56 }
 0x108   : > { %v1542_v11 = vsel %vm1540_vm3, %v1541_v47, %v12951_v60  ;;  %v12997_v52 = vsel %vm1263_vm13, nan, %v1273_v42   ;;  %v19416_v33 = vand.u32 2147483647, %v12623_v21  ;;  %v2007_v54 = vshrl.u32 %v2006_v8, 23 }
 0x109   : > { %v1543_v0 = vadd.s32 %v1542_v11, %v1538_v25  ;;  %v1454_v12 = vor.u32 %v1453_v34, %v1452_v3  ;;  %v1457_v37 = vshll.u32 %v1456_v20, 23  ;;  %v2010_v60 = vand.u32 8388607, %v2003_v49 }
 0x10a   : > { %vm13001_vm4 = vcmp.le.f32.partialorder %v19416_v33, 0.7853982  ;;  %vm1367_vm5 = vweird.f32 %v12621_v58  ;;  %vm1370_vm6 = vcmp.lt.s32.totalorder %v1369_v4, 2  ;;  %v11436_v35 = vadd.s32 4294967169, %v2007_v54 }
 0x10b   : > { %v1468_v30 = vsel %vm13001_vm4, 0, %v1466_v26  ;;  %v1544_v18 = vadd.s32 536870912, %v1543_v0  ;;  %v11987_v27 = vpop.eup %11986  ;;  %vm1371_vm7 = vcmp.eq.s32.totalorder %v1369_v4, 0  ;;  %vm1374_vm8 = vcmp.eq.s32.totalorder %v1369_v4, 2 }
 0x10c   : > { %v1458_v31 = vor.u32 4788187, %v1457_v37  ;;  %v19419_v32 = vand.u32 2147483647, %v12663_v16  ;;  %v2110_v24 = vand.u32 2139095040, %v12990_v17  ;;  %v11989_v53 = vpop.eup %11988  ;;  %v1375_v26 = vxor.u32 2147483648, %v11987_v27 }
 0x10d   : > { %v1472_v47 = vadd.s32 3, %v1468_v30  ;;  %v1545_v28 = vshrl.u32 %v1544_v18, 30  ;;  %v2013_v61 = vadd.s32 1, %v11436_v35  ;;  %v1372_v25 = vxor.u32 2147483648, %v11989_v53 }
 0x10e   : > { %vm13012_vm9 = vcmp.le.f32.partialorder %v19419_v32, 0.7853982  ;;  %v1459_v8 = vand.u32 2147483647, %v1458_v31  ;;  %v1461_v19 = vcvt.s32.f32 %v1454_v12  ;;  %v2011_v43 = vor.u32 8388608, %v2010_v60 }
 0x10f   : > { %v1376_v56 = vsel %vm1374_vm8, %v1375_v26, %v11989_v53  ;;  %v1546_v6 = vshll.u32 %v1545_v28, 30  ;;  %v1569_v3 = vsub.s32 4, %v1545_v28  ;;  %vm2014_vm10 = vcmp.gt.s32.totalorder %v2013_v61, 0 }
 0x110   : > { %v1373_v42 = vsel %vm1371_vm7, %v11987_v27, %v1372_v25  ;;  %v1462_v34 = vmul.f32 %v1461_v19, %v1459_v8  ;;  %v2015_v20 = vsel %vm2014_vm10, %v2013_v61, 0  ;;  %v2111_v11 = vshrl.u32 %v2110_v24, 23 }
 0x111   : > { %v1377_v33 = vsel %vm1370_vm6, %v1373_v42, %v1376_v56  ;;  %v13019_v54 = vand.u32 3, %v1472_v47  ;;  %vm1485_vm11 = vcmp.lt.s32.totalorder %v12663_v16, 0  ;;  %v13022_v37 = vsub.s32 %v1543_v0, %v1546_v6 }
 0x112   : > { %v13026_v12 = vsel %vm1367_vm5, nan, %v1377_v33   ;;  %v1463_v30 = vxor.u32 2147483648, %v1462_v34  ;;  %v13030_v60 = vsel %vm1485_vm11, %v1569_v3, %v1545_v28  ;;  %v2017_v18 = vand.u32 31, %v2015_v20 }
 0x113   : > { %v1539_v4 = vadd.s32 %v12950_v29, %v12973_v48  ;;  %v1549_v35 = vsub.s32 0, %v13022_v37  ;;  %v2016_v27 = vshrl.u32 %v2015_v20, 5  ;;  %v2107_v31 = vand.u32 2147483647, %v12990_v17 }
 0x114   : > { %v1464_v0 = vsel %vm1381_vm14, %v1463_v30, %v1462_v34  ;;  %v2018_v58 = vsub.s32 32, %v2017_v18  ;;  %v13038_v32 = vshll.u32 %v2011_v43, 8  ;;  %v11440_v24 = vadd.s32 4294967169, %v2111_v11 }
 0x115   : > { %v1467_v53 = vsel %vm13001_vm4, %v12623_v21, %v1464_v0  ;;  %v11417_v26 = vmin.u32 %v1549_v35, %v13022_v37  ;;  %v1572_v29 = vsel %vm13012_vm9, 0, %v13030_v60  ;;  %v2020_v48 = vshll.u32 %v19410_v50, %v2017_v18 }
 0x116   : > { %11990 = vcosq.f32 %v1467_v53  ;;  %v2021_v47 = vshrl.u32 %v19414_v62, %v2018_v58  ;;  %v2023_v28 = vshll.u32 %v19414_v62, %v2017_v18  ;;  %v2024_v61 = vshrl.u32 %v19402_v14, %v2018_v58 }
 0x117   : > { %11992 = vsinq.f32 %v1467_v53  ;;  %v1551_v25 = vclz %v11417_v26  ;;  %vm2035_vm12 = vcmp.lt.s32.totalorder %v2016_v27, 1  ;;  %vm2036_vm13 = vcmp.lt.s32.totalorder %v2016_v27, 2 }
 0x118   : > { %v2022_v1 = vor.u32 %v2021_v47, %v2020_v48  ;;  %v2025_v8 = vor.u32 %v2024_v61, %v2023_v28  ;;  %v2026_v19 = vshll.u32 %v19402_v14, %v2017_v18  ;;  %v2027_v43 = vshrl.u32 %v19403_v41, %v2018_v58 }
 0x119   : > { %v11418_v56 = vadd.s32 4294967294, %v1551_v25  ;;  %v2019_v6 = vshrl.u32 %v19410_v50, %v2018_v58  ;;  %v2029_v3 = vshll.u32 %v19403_v41, %v2017_v18  ;;  %v2030_v42 = vshrl.u32 %v19404_v23, %v2018_v58 }
 0x11a   : > { %v2028_v34 = vor.u32 %v2027_v43, %v2026_v19  ;;  %v2032_v20 = vshll.u32 %v19404_v23, %v2017_v18  ;;  %v2033_v11 = vshrl.u32 %v19409_v57, %v2018_v58  ;;  %vm2037_vm14 = vcmp.lt.s32.totalorder %v2016_v27, 3 }
 0x11b   : > { %vm11419_vm15 = vcmp.lt.s32.totalorder %v11418_v56, 0  ;;  %v2031_v33 = vor.u32 %v2030_v42, %v2029_v3  ;;  %vm2038_vm0 = vcmp.lt.s32.totalorder %v2016_v27, 4  ;;  %v2039_v30 = vsel %vm2035_vm12, %v2019_v6, %v2022_v1 }
 0x11c   : > { %v1554_v60 = vsel %vm11419_vm15, 0, %v11418_v56  ;;  %v2034_v35 = vor.u32 %v2033_v11, %v2032_v20  ;;  %v2040_v0 = vsel %vm2038_vm0, %v2028_v34, 2102212464  ;;  %v2043_v53 = vsel %vm2035_vm12, %v2022_v1, %v2025_v8 }
 0x11d   : > { %v1555_v26 = vsub.s32 32, %v1554_v60  ;;  %v1559_v48 = vsub.s32 4294967266, %v1554_v60  ;;  %v2041_v47 = vsel %vm2037_vm14, %v2025_v8, %v2040_v0  ;;  %v2047_v28 = vsel %vm2035_vm12, %v2025_v8, %v2028_v34 }
 0x11e   : > { %v1556_v18 = vshll.u32 %v13022_v37, %v1554_v60  ;;  %v2044_v58 = vsel %vm2038_vm0, %v2031_v33, 920167782  ;;  %v2048_v61 = vsel %vm2038_vm0, %v2034_v35, 1326507024  ;;  %v2117_v25 = vadd.s32 1, %v11440_v24 }
 0x11f   : > { %v1557_v19 = vshrl.u32 %v1539_v4, %v1555_v26  ;;  %v1560_v43 = vadd.s32 127, %v1559_v48  ;;  %v2045_v6 = vsel %vm2037_vm14, %v2028_v34, %v2044_v58  ;;  %v2049_v56 = vsel %vm2037_vm14, %v2031_v33, %v2048_v61 }
 0x120   : > { %vm1471_vm1 = vweird.f32 %v12623_v21  ;;  %v2042_v1 = vsel %vm2036_vm13, %v2039_v30, %v2041_v47  ;;  %v2046_v3 = vsel %vm2036_vm13, %v2043_v53, %v2045_v6  ;;  %v2050_v42 = vsel %vm2036_vm13, %v2047_v28, %v2049_v56 }
 0x121   : > { %vm2118_vm2 = vcmp.gt.s32.totalorder %v2117_v25, 0  ;;  %v1558_v8 = vor.u32 %v1557_v19, %v1556_v18  ;;  %v1561_v37 = vshll.u32 %v1560_v43, 23  ;;  %vm1474_vm3 = vcmp.lt.s32.totalorder %v13019_v54, 2 }
 0x122   : > { %v13070_v20 = vmul.u32.u64.low %v13038_v32, %v2050_v42  ;;  %v13071_v24 = vmul.u32.u64.high %v13038_v32, %v2050_v42, %v13070_v20  ;;  %v13075_v4 = vmul.u32.u64.low %v13038_v32, %v2046_v3  ;;  %v13076_v34 = vmul.u32.u64.high %v13038_v32, %v2046_v3, %v13075_v4 }
 0x123   : > { %v2119_v11 = vsel %vm2118_vm2, %v2117_v25, 0  ;;  %v11991_v33 = vpop.eup %11990  ;;  %vm1475_vm4 = vcmp.eq.s32.totalorder %v13019_v54, 0  ;;  %vm1478_vm5 = vcmp.eq.s32.totalorder %v13019_v54, 2  ;;  %v1562_v27 = vor.u32 4788187, %v1561_v37 }
 0x124   : > { %v2121_v30 = vand.u32 31, %v2119_v11  ;;  %v11993_v60 = vpop.eup %11992  ;;  %v1479_v35 = vxor.u32 2147483648, %v11991_v33  ;;  %v1576_v0 = vadd.s32 3, %v1572_v29  ;;  %v2058_v53 = vmul.u32 %v13038_v32, %v2042_v1 }
 0x125   : > { %v2114_v26 = vand.u32 8388607, %v2107_v31  ;;  %v1476_v48 = vxor.u32 2147483648, %v11993_v60  ;;  %v1563_v47 = vand.u32 2147483647, %v1562_v27  ;;  %v1565_v28 = vcvt.s32.f32 %v1558_v8 }
 0x126   : > { %vm2060_vm6 = vc.u32 %v13071_v24, %v13075_v4  ;;  %v1480_v18 = vsel %vm1478_vm5, %v1479_v35, %v11993_v60  ;;  %v2061_v58 = vadd.s32 1, %v13076_v34  ;;  %v13087_v61 = vshrl.u32 %v2119_v11, 5 }
 0x127   : > { %v2122_v25 = vsub.s32 32, %v2121_v30  ;;  %v1477_v29 = vsel %vm1475_vm4, %v11991_v33, %v1476_v48  ;;  %v1566_v19 = vmul.f32 %v1565_v28, %v1563_v47  ;;  %v2124_v32 = vshll.u32 %v19410_v50, %v2121_v30 }
 0x128   : > { %v2127_v43 = vshll.u32 %v19414_v62, %v2121_v30  ;;  %v1481_v6 = vsel %vm1474_vm3, %v1477_v29, %v1480_v18  ;;  %v2062_v56 = vsel %vm2060_vm6, %v2061_v58, %v13076_v34  ;;  %v2130_v3 = vshll.u32 %v19402_v14, %v2121_v30 }
 0x129   : > { %v2125_v1 = vshrl.u32 %v19414_v62, %v2122_v25  ;;  %v13100_v42 = vsel %vm1471_vm1, nan, %v1481_v6   ;;  %v1567_v8 = vxor.u32 2147483648, %v1566_v19  ;;  %v2063_v37 = vadd.s32 %v2062_v56, %v2058_v53 }
 0x12a   : > { %v2128_v20 = vshrl.u32 %v19402_v14, %v2122_v25  ;;  %v2131_v33 = vshrl.u32 %v19403_v41, %v2122_v25  ;;  %v2133_v54 = vshll.u32 %v19403_v41, %v2121_v30  ;;  %v2134_v27 = vshrl.u32 %v19404_v23, %v2122_v25 }
 0x12b   : > { %v2126_v11 = vor.u32 %v2125_v1, %v2124_v32  ;;  %v1568_v34 = vsel %vm1485_vm11, %v1567_v8, %v1566_v19  ;;  %v2064_v60 = vadd.s32 536870912, %v2063_v37  ;;  %v2136_v21 = vshll.u32 %v19404_v23, %v2121_v30 }
 0x12c   : > { %v2129_v35 = vor.u32 %v2128_v20, %v2127_v43  ;;  %v1571_v53 = vsel %vm13012_vm9, %v12663_v16, %v1568_v34  ;;  %v2132_v48 = vor.u32 %v2131_v33, %v2130_v3  ;;  %v2135_v47 = vor.u32 %v2134_v27, %v2133_v54 }
 0x12d   : > { %v2137_v28 = vshrl.u32 %v19409_v57, %v2122_v25  ;;  %v673_v18 = vadd.f32 %v12573_v5, %v12766_v2  ;;  %11994 = vcosq.f32 %v1571_v53  ;;  %v13117_v58 = vadd.f32 %v12945_v59, %v12908_v45 }
 0x12e   : > { %v2065_v29 = vshrl.u32 %v2064_v60, 30  ;;  %11996 = vsinq.f32 %v1571_v53  ;;  %v13119_v19 = vand.u32 3, %v1576_v0  ;;  %v2115_v30 = vor.u32 8388608, %v2114_v26 }
 0x12f   : > { %v2138_v32 = vor.u32 %v2137_v28, %v2136_v21  ;;  %v2123_v43 = vshrl.u32 %v19410_v50, %v2122_v25  ;;  %vm2139_vm7 = vcmp.lt.s32.totalorder %v13087_v61, 1  ;;  %vm2142_vm8 = vcmp.lt.s32.totalorder %v13087_v61, 4 }
 0x130   : > { %v2066_v44 = vshll.u32 %v2065_v29, 30  ;;  %vm2141_vm9 = vcmp.lt.s32.totalorder %v13087_v61, 3  ;;  %v2144_v5 = vsel %vm2142_vm8, %v2132_v48, 2102212464  ;;  %v2147_v2 = vsel %vm2139_vm7, %v2126_v11, %v2129_v35 }
 0x131   : > { %v2148_v6 = vsel %vm2142_vm8, %v2135_v47, 920167782  ;;  %vm2140_vm10 = vcmp.lt.s32.totalorder %v13087_v61, 2  ;;  %v2151_v56 = vsel %vm2139_vm7, %v2129_v35, %v2132_v48  ;;  %v2089_v26 = vsub.s32 4, %v2065_v29 }
 0x132   : > { %v13125_v45 = vsub.s32 %v2063_v37, %v2066_v44  ;;  %v2149_v0 = vsel %vm2141_vm9, %v2132_v48, %v2148_v6  ;;  %v2152_v25 = vsel %vm2142_vm8, %v2138_v32, 1326507024  ;;  %v2155_v3 = vshll.u32 %v2115_v30, 8 }
 0x133   : > { %v2150_v1 = vsel %vm2140_vm10, %v2147_v2, %v2149_v0  ;;  %v2143_v20 = vsel %vm2139_vm7, %v2123_v43, %v2126_v11  ;;  %v2145_v33 = vsel %vm2141_vm9, %v2129_v35, %v2144_v5  ;;  %v2153_v54 = vsel %vm2141_vm9, %v2135_v47, %v2152_v25 }
 0x134   : > { %v2069_v8 = vsub.s32 0, %v13125_v45  ;;  %v2154_v27 = vsel %vm2140_vm10, %v2151_v56, %v2153_v54  ;;  %v13133_v37 = vmul.u32.u64.low %v2155_v3, %v2150_v1  ;;  %v13134_v34 = vmul.u32.u64.high %v2155_v3, %v2150_v1, %v13133_v37 }
 0x135   : > { %v2214_v60 = vand.u32 2139095040, %v13117_v58  ;;  %v713_v21 = vmul.f32 %v12597_v40, %v673_v18  ;;  %v13140_v48 = vmul.u32.u64.low %v2155_v3, %v2154_v27  ;;  %v13141_v28 = vmul.u32.u64.high %v2155_v3, %v2154_v27, %v13140_v48 }
 0x136   : > { %v11437_v53 = vmin.u32 %v2069_v8, %v13125_v45  ;;  %vm2005_vm11 = vcmp.lt.s32.totalorder %v12962_v55, 0  ;;  %v2146_v11 = vsel %vm2140_vm10, %v2143_v20, %v2145_v33  ;;  %v2211_v35 = vand.u32 2147483647, %v13117_v58 }
 0x137   : > { %v2215_v47 = vshrl.u32 %v2214_v60, 23  ;;  %vm1575_vm12 = vweird.f32 %v12663_v16  ;;  %v13149_v30 = vadd.f32 %v12945_v59, %v713_v21  ;;  %vm13153_vm13 = vcmp.le.f32.partialorder %v2003_v49, 0.7853982 }
 0x138   : > { %v2071_v18 = vclz %v11437_v53  ;;  %v2090_v32 = vsel %vm2005_vm11, %v2089_v26, %v2065_v29  ;;  %vm1578_vm14 = vcmp.lt.s32.totalorder %v13119_v19, 2  ;;  %vm1579_vm15 = vcmp.eq.s32.totalorder %v13119_v19, 0 }
 0x139   : > { %v2165_v61 = vadd.s32 1, %v13134_v34  ;;  %v11444_v44 = vadd.s32 4294967169, %v2215_v47  ;;  %vm1582_vm0 = vcmp.eq.s32.totalorder %v13119_v19, 2  ;;  %v2162_v43 = vmul.u32 %v2155_v3, %v2146_v11 }
 0x13a   : > { %v11438_v59 = vadd.s32 4294967294, %v2071_v18  ;;  %vm2164_vm1 = vc.u32 %v13141_v28, %v13133_v37  ;;  %v11995_v49 = vpop.eup %11994  ;;  %v2092_v5 = vsel %vm13153_vm13, 0, %v2090_v32  ;;  %v2218_v2 = vand.u32 8388607, %v2211_v35 }
 0x13b   : > { %v2166_v29 = vsel %vm2164_vm1, %v2165_v61, %v13134_v34  ;;  %v2221_v6 = vadd.s32 1, %v11444_v44  ;;  %v11997_v0 = vpop.eup %11996  ;;  %v1583_v56 = vxor.u32 2147483648, %v11995_v49  ;;  %v2059_v26 = vadd.s32 %v13075_v4, %v13071_v24 }
 0x13c   : > { %vm11439_vm2 = vcmp.lt.s32.totalorder %v11438_v59, 0  ;;  %v2167_v1 = vadd.s32 %v2166_v29, %v2162_v43  ;;  %v1580_v25 = vxor.u32 2147483648, %v11997_v0  ;;  %v2318_v8 = vand.u32 2139095040, %v13149_v30 }
 0x13d   : > { %v2074_v3 = vsel %vm11439_vm2, 0, %v11438_v59  ;;  %vm2222_vm3 = vcmp.gt.s32.totalorder %v2221_v6, 0  ;;  %v1584_v20 = vsel %vm1582_vm0, %v1583_v56, %v11997_v0  ;;  %v2096_v27 = vadd.s32 3, %v2092_v5 }
 0x13e   : > { %v2075_v33 = vsub.s32 32, %v2074_v3  ;;  %v2079_v54 = vsub.s32 4294967266, %v2074_v3  ;;  %v1581_v34 = vsel %vm1579_vm15, %v11995_v49, %v1580_v25  ;;  %v2168_v60 = vadd.s32 536870912, %v2167_v1 }
 0x13f   : > { %v2219_v21 = vor.u32 8388608, %v2218_v2  ;;  %v2223_v53 = vsel %vm2222_vm3, %v2221_v6, 0  ;;  %v1585_v24 = vsel %vm1578_vm14, %v1581_v34, %v1584_v20  ;;  %v2076_v4 = vshll.u32 %v13125_v45, %v2074_v3  ;;  %v13211_v2 = vpop.permute.xlu1 %650 }
 0x140   : > { %v2077_v48 = vshrl.u32 %v2059_v26, %v2075_v33  ;;  %v2080_v11 = vadd.s32 127, %v2079_v54  ;;  %v13182_v47 = vsel %vm1575_vm12, nan, %v1585_v24   ;;  %v13184_v18 = vshrl.u32 %v2168_v60, 30 }
 0x141   : > { %v2225_v32 = vand.u32 31, %v2223_v53  ;;  %v2319_v61 = vshrl.u32 %v2318_v8, 23  ;;  %v13188_v44 = vadd.f32 %v12563_v51, %v12627_v36  ;;  %v13192_v19 = vadd.f32 %v12563_v51, %v12629_v22 }
 0x142   : > { %v2078_v59 = vor.u32 %v2077_v48, %v2076_v4  ;;  %v2081_v45 = vshll.u32 %v2080_v11, 23  ;;  %v13196_v43 = vadd.f32 %v12635_v13, %v12603_v46  ;;  %v13200_v16 = vadd.f32 %v12639_v15, %v12605_v9 }
 0x143   : > { %v2170_v49 = vshll.u32 %v13184_v18, 30  ;;  %v2226_v5 = vsub.s32 32, %v2225_v32  ;;  %v13205_v36 = vadd.f32 %v12645_v63, %v12607_v10  ;;  %v13207_v51 = vand.u32 3, %v2096_v27  ;;  %v13229_v24 = vpop.permute.xlu1 %680 }
 0x144   : > { %v2082_v29 = vor.u32 4788187, %v2081_v45  ;;  %v2163_v22 = vadd.s32 %v13133_v37, %v13141_v28  ;;  %v13216_v13 = vshll.u32 %v2219_v21, 8  ;;  %v11448_v15 = vadd.s32 4294967169, %v2319_v61 }
 0x145   : > { %v13213_v46 = vsub.s32 %v2167_v1, %v2170_v49  ;;  %v2229_v9 = vshrl.u32 %v19414_v62, %v2226_v5  ;;  %v2085_v0 = vcvt.s32.f32 %v2078_v59  ;;  %v2232_v10 = vshrl.u32 %v19402_v14, %v2226_v5 }
 0x146   : > { %v2083_v6 = vand.u32 2147483647, %v2082_v29  ;;  %v2235_v63 = vshrl.u32 %v19403_v41, %v2226_v5  ;;  %v2224_v26 = vshrl.u32 %v2223_v53, 5  ;;  %v2228_v37 = vshll.u32 %v19410_v50, %v2225_v32 }
 0x147   : > { %v2173_v56 = vsub.s32 0, %v13213_v46  ;;  %v2231_v28 = vshll.u32 %v19414_v62, %v2225_v32  ;;  %v2234_v25 = vshll.u32 %v19402_v14, %v2225_v32  ;;  %v2237_v3 = vshll.u32 %v19403_v41, %v2225_v32 }
 0x148   : > { %v2086_v1 = vmul.f32 %v2085_v0, %v2083_v6  ;;  %v2238_v8 = vshrl.u32 %v19404_v23, %v2226_v5  ;;  %v2230_v33 = vor.u32 %v2229_v9, %v2228_v37  ;;  %v2241_v27 = vshrl.u32 %v19409_v57, %v2226_v5 }
 0x149   : > { %v11441_v20 = vmin.u32 %v2173_v56, %v13213_v46  ;;  %v2233_v54 = vor.u32 %v2232_v10, %v2231_v28  ;;  %v2236_v60 = vor.u32 %v2235_v63, %v2234_v25  ;;  %v2240_v53 = vshll.u32 %v19404_v23, %v2225_v32 }
 0x14a   : > { %v2087_v34 = vxor.u32 2147483648, %v2086_v1  ;;  %v2239_v21 = vor.u32 %v2238_v8, %v2237_v3  ;;  %vm2109_vm4 = vcmp.lt.s32.totalorder %v12990_v17, 0  ;;  %v2193_v48 = vsub.s32 4, %v13184_v18  ;;  %v13247_v3 = vpop.permute.xlu1 %690 }
 0x14b   : > { %v2175_v4 = vclz %v11441_v20  ;;  %vm2243_vm5 = vcmp.lt.s32.totalorder %v2224_v26, 1  ;;  %vm2244_vm6 = vcmp.lt.s32.totalorder %v2224_v26, 2  ;;  %v2227_v61 = vshrl.u32 %v19410_v50, %v2226_v5 }
 0x14c   : > { %v2088_v11 = vsel %vm2005_vm11, %v2087_v34, %v2086_v1  ;;  %v2242_v59 = vor.u32 %v2241_v27, %v2240_v53  ;;  %vm2245_vm7 = vcmp.lt.s32.totalorder %v2224_v26, 3  ;;  %vm2246_vm8 = vcmp.lt.s32.totalorder %v2224_v26, 4 }
 0x14d   : > { %v2091_v32 = vsel %vm13153_vm13, %v12962_v55, %v2088_v11  ;;  %v11442_v45 = vadd.s32 4294967294, %v2175_v4  ;;  %v2251_v49 = vsel %vm2243_vm5, %v2230_v33, %v2233_v54  ;;  %v2248_v29 = vsel %vm2246_vm8, %v2236_v60, 2102212464 }
 0x14e   : > { %11998 = vcosq.f32 %v2091_v32  ;;  %v2252_v9 = vsel %vm2246_vm8, %v2239_v21, 920167782  ;;  %v2255_v6 = vsel %vm2243_vm5, %v2233_v54, %v2236_v60  ;;  %v2256_v5 = vsel %vm2246_vm8, %v2242_v59, 1326507024 }
 0x14f   : > { %12000 = vsinq.f32 %v2091_v32  ;;  %vm11443_vm9 = vcmp.lt.s32.totalorder %v11442_v45, 0  ;;  %v2253_v0 = vsel %vm2245_vm7, %v2236_v60, %v2252_v9  ;;  %v2247_v63 = vsel %vm2243_vm5, %v2227_v61, %v2230_v33 }
 0x150   : > { %v2178_v10 = vsel %vm11443_vm9, 0, %v11442_v45  ;;  %v2254_v40 = vsel %vm2244_vm6, %v2251_v49, %v2253_v0  ;;  %v2257_v56 = vsel %vm2245_vm7, %v2239_v21, %v2256_v5  ;;  %v2249_v1 = vsel %vm2245_vm7, %v2233_v54, %v2248_v29 }
 0x151   : > { %v2179_v37 = vsub.s32 32, %v2178_v10  ;;  %v2183_v28 = vsub.s32 4294967266, %v2178_v10  ;;  %v2258_v25 = vsel %vm2244_vm6, %v2255_v6, %v2257_v56  ;;  %v2180_v33 = vshll.u32 %v13213_v46, %v2178_v10 }
 0x152   : > { %v13250_v8 = vmul.u32.u64.low %v13216_v13, %v2258_v25  ;;  %v13251_v20 = vmul.u32.u64.high %v13216_v13, %v2258_v25, %v13250_v8  ;;  %v13254_v27 = vmul.u32.u64.low %v13216_v13, %v2254_v40  ;;  %v13255_v34 = vmul.u32.u64.high %v13216_v13, %v2254_v40, %v13254_v27 }
 0x153   : > { %v2181_v60 = vshrl.u32 %v2163_v22, %v2179_v37  ;;  %v2184_v21 = vadd.s32 127, %v2183_v28  ;;  %v2325_v53 = vadd.s32 1, %v11448_v15  ;;  %v13261_v54 = vadd.f32 %v12652_v7, %v12611_v38 }
 0x154   : > { %v2194_v4 = vsel %vm2109_vm4, %v2193_v48, %v13184_v18  ;;  %v2250_v11 = vsel %vm2244_vm6, %v2247_v63, %v2249_v1  ;;  %v2315_v61 = vand.u32 2147483647, %v13149_v30  ;;  %v698_v59 = vmul.f32 %v13229_v24, %v12661_v39  ;;  %v13283_v48 = vpop.permute.xlu1 %721 }
 0x155   : > { %v2182_v32 = vor.u32 %v2181_v60, %v2180_v33  ;;  %v2185_v46 = vshll.u32 %v2184_v21, 23  ;;  %vm2326_vm10 = vcmp.gt.s32.totalorder %v2325_v53, 0  ;;  %vm13272_vm11 = vcmp.le.f32.partialorder %v2107_v31, 0.7853982 }
 0x156   : > { %vm2268_vm12 = vc.u32 %v13251_v20, %v13254_v27  ;;  %v2269_v38 = vadd.s32 1, %v13255_v34  ;;  %v2327_v7 = vsel %vm2326_vm10, %v2325_v53, 0  ;;  %vm2098_vm13 = vcmp.lt.s32.totalorder %v13207_v51, 2 }
 0x157   : > { %v2186_v18 = vor.u32 4788187, %v2185_v46  ;;  %v2196_v39 = vsel %vm13272_vm11, 0, %v2194_v4  ;;  %v2266_v15 = vmul.u32 %v13216_v13, %v2250_v11  ;;  %v2329_v26 = vand.u32 31, %v2327_v7 }
 0x158   : > { %vm2095_vm14 = vweird.f32 %v12962_v55  ;;  %vm2099_vm15 = vcmp.eq.s32.totalorder %v13207_v51, 0  ;;  %vm2102_vm0 = vcmp.eq.s32.totalorder %v13207_v51, 2  ;;  %v2270_v31 = vsel %vm2268_vm12, %v2269_v38, %v13255_v34 }
 0x159   : > { %v2322_v45 = vand.u32 8388607, %v2315_v61  ;;  %v2187_v49 = vand.u32 2147483647, %v2186_v18  ;;  %v2189_v29 = vcvt.s32.f32 %v2182_v32  ;;  %v2271_v9 = vadd.s32 %v2270_v31, %v2266_v15 }
 0x15a   : > { %v2330_v6 = vsub.s32 32, %v2329_v26  ;;  %v2200_v0 = vadd.s32 3, %v2196_v39  ;;  %v13291_v13 = vshrl.u32 %v2327_v7, 5  ;;  %v2332_v5 = vshll.u32 %v19410_v50, %v2329_v26 }
 0x15b   : > { %v13295_v10 = vadd.f32 %v13283_v48, %v698_v59  ;;  %v11999_v63 = vpop.eup %11998  ;;  %v2190_v40 = vmul.f32 %v2189_v29, %v2187_v49  ;;  %v2272_v56 = vadd.s32 536870912, %v2271_v9  ;;  %v2335_v28 = vshll.u32 %v19414_v62, %v2329_v26 }
 0x15c   : > { %v2333_v37 = vshrl.u32 %v19414_v62, %v2330_v6  ;;  %v12001_v1 = vpop.eup %12000  ;;  %v2103_v25 = vxor.u32 2147483648, %v11999_v63  ;;  %v2336_v8 = vshrl.u32 %v19402_v14, %v2330_v6  ;;  %v2338_v34 = vshll.u32 %v19402_v14, %v2329_v26 }
 0x15d   : > { %v2342_v33 = vshrl.u32 %v19404_v23, %v2330_v6  ;;  %v2100_v60 = vxor.u32 2147483648, %v12001_v1  ;;  %v2191_v21 = vxor.u32 2147483648, %v2190_v40  ;;  %v13302_v53 = vshrl.u32 %v2272_v56, 30 }
 0x15e   : > { %v2339_v4 = vshrl.u32 %v19403_v41, %v2330_v6  ;;  %v2104_v11 = vsel %vm2102_vm0, %v2103_v25, %v12001_v1  ;;  %v2334_v59 = vor.u32 %v2333_v37, %v2332_v5  ;;  %v2341_v32 = vshll.u32 %v19403_v41, %v2329_v26 }
 0x15f   : > { %v2344_v46 = vshll.u32 %v19404_v23, %v2329_v26  ;;  %v2101_v38 = vsel %vm2099_vm15, %v11999_v63, %v2100_v60  ;;  %v2192_v7 = vsel %vm2109_vm4, %v2191_v21, %v2190_v40  ;;  %v2274_v18 = vshll.u32 %v13302_v53, 30  ;;  %v19426_v60 = vld [vmem:[#allocation7_spill] sm:$0xff] }
 0x160   : > { %v2337_v39 = vor.u32 %v2336_v8, %v2335_v28  ;;  %v2105_v15 = vsel %vm2098_vm13, %v2101_v38, %v2104_v11  ;;  %v2195_v31 = vsel %vm13272_vm11, %v12990_v17, %v2192_v7  ;;  %v2343_v49 = vor.u32 %v2342_v33, %v2341_v32 }
 0x161   : > { %v2345_v29 = vshrl.u32 %v19409_v57, %v2330_v6  ;;  %v13322_v26 = vsel %vm2095_vm14, nan, %v2105_v15   ;;  %12002 = vcosq.f32 %v2195_v31  ;;  %v13324_v5 = vsub.s32 %v2271_v9, %v2274_v18 }
 0x162   : > { %v2340_v63 = vor.u32 %v2339_v4, %v2338_v34  ;;  %12004 = vsinq.f32 %v2195_v31  ;;  %v13326_v40 = vand.u32 3, %v2200_v0  ;;  %v2323_v51 = vor.u32 8388608, %v2322_v45 }
 0x163   : > { %v2346_v56 = vor.u32 %v2345_v29, %v2344_v46  ;;  %v2277_v37 = vsub.s32 0, %v13324_v5  ;;  %vm2347_vm1 = vcmp.lt.s32.totalorder %v13291_v13, 1  ;;  %vm2350_vm2 = vcmp.lt.s32.totalorder %v13291_v13, 4 }
 0x164   : > { %v758_v22 = vand.u32 2139095040, %v13295_v10  ;;  %v2331_v55 = vshrl.u32 %v19410_v50, %v2330_v6  ;;  %vm2349_vm3 = vcmp.lt.s32.totalorder %v13291_v13, 3  ;;  %v2355_v9 = vsel %vm2347_vm1, %v2334_v59, %v2337_v39 }
 0x165   : > { %v2356_v28 = vsel %vm2350_vm2, %v2343_v49, 920167782  ;;  %v11445_v0 = vmin.u32 %v2277_v37, %v13324_v5  ;;  %vm2348_vm4 = vcmp.lt.s32.totalorder %v13291_v13, 2  ;;  %v2352_v45 = vsel %vm2350_vm2, %v2340_v63, 2102212464 }
 0x166   : > { %v2357_v1 = vsel %vm2349_vm3, %v2340_v63, %v2356_v28  ;;  %v2359_v6 = vsel %vm2347_vm1, %v2337_v39, %v2340_v63  ;;  %v2360_v8 = vsel %vm2350_vm2, %v2346_v56, 1326507024  ;;  %v2363_v34 = vshll.u32 %v2323_v51, 8 }
 0x167   : > { %v2358_v25 = vsel %vm2348_vm4, %v2355_v9, %v2357_v1  ;;  %v13346_v33 = vadd.f32 %v13211_v2, %v13196_v43  ;;  %v699_v21 = vmul.f32 %v13229_v24, %v19426_v60  ;;  %v2279_v4 = vclz %v11445_v0 }
 0x168   : > { %v2351_v11 = vsel %vm2347_vm1, %v2331_v55, %v2334_v59  ;;  %v2353_v32 = vsel %vm2349_vm3, %v2337_v39, %v2352_v45  ;;  %v2361_v46 = vsel %vm2349_vm3, %v2343_v49, %v2360_v8  ;;  %vm2213_vm5 = vcmp.lt.s32.totalorder %v13117_v58, 0 }
 0x169   : > { %v13356_v38 = vmul.u32.u64.low %v2363_v34, %v2358_v25  ;;  %v13357_v7 = vmul.u32.u64.high %v2363_v34, %v2358_v25, %v13356_v38  ;;  %v11446_v43 = vadd.s32 4294967294, %v2279_v4  ;;  %v2362_v18 = vsel %vm2348_vm4, %v2359_v6, %v2361_v46 }
 0x16a   : > { %v759_v15 = vshrl.u32 %v758_v22, 23  ;;  %vm2202_vm6 = vcmp.lt.s32.totalorder %v13326_v40, 2  ;;  %vm2203_vm7 = vcmp.eq.s32.totalorder %v13326_v40, 0  ;;  %vm2206_vm8 = vcmp.eq.s32.totalorder %v13326_v40, 2 }
 0x16b   : > { %v13365_v59 = vmul.u32.u64.low %v2363_v34, %v2362_v18  ;;  %v13366_v39 = vmul.u32.u64.high %v2363_v34, %v2362_v18, %v13365_v59  ;;  %vm11447_vm9 = vcmp.lt.s32.totalorder %v11446_v43, 0  ;;  %v2354_v31 = vsel %vm2348_vm4, %v2351_v11, %v2353_v32 }
 0x16c   : > { %v11388_v49 = vadd.s32 4294967169, %v759_v15  ;;  %v2282_v29 = vsel %vm11447_vm9, 0, %v11446_v43  ;;  %v2297_v63 = vsub.s32 4, %v13302_v53  ;;  %v2373_v51 = vadd.s32 1, %v13357_v7 }
 0x16d   : > { %v13374_v56 = vadd.f32 %v13283_v48, %v699_v21  ;;  %v2267_v37 = vadd.s32 %v13254_v27, %v13251_v20  ;;  %v2283_v22 = vsub.s32 32, %v2282_v29  ;;  %v2287_v55 = vsub.s32 4294967266, %v2282_v29 }
 0x16e   : > { %v765_v9 = vadd.s32 1, %v11388_v49  ;;  %v12003_v28 = vpop.eup %12002  ;;  %v2284_v0 = vshll.u32 %v13324_v5, %v2282_v29  ;;  %v2370_v13 = vmul.u32 %v2363_v34, %v2354_v31  ;;  %vm2372_vm10 = vc.u32 %v13366_v39, %v13356_v38 }
 0x16f   : > { %v755_v45 = vand.u32 2147483647, %v13295_v10  ;;  %v12005_v1 = vpop.eup %12004  ;;  %v2207_v25 = vxor.u32 2147483648, %v12003_v28  ;;  %v2285_v6 = vshrl.u32 %v2267_v37, %v2283_v22  ;;  %v2288_v8 = vadd.s32 127, %v2287_v55 }
 0x170   : > { %v2374_v60 = vsel %vm2372_vm10, %v2373_v51, %v13357_v7  ;;  %v2204_v21 = vxor.u32 2147483648, %v12005_v1  ;;  %v2298_v20 = vsel %vm2213_vm5, %v2297_v63, %v13302_v53  ;;  %vm766_vm11 = vcmp.gt.s32.totalorder %v765_v9, 0 }
 0x171   : > { %v2375_v27 = vadd.s32 %v2374_v60, %v2370_v13  ;;  %v2208_v5 = vsel %vm2206_vm8, %v2207_v25, %v12005_v1  ;;  %v2286_v34 = vor.u32 %v2285_v6, %v2284_v0  ;;  %v2289_v4 = vshll.u32 %v2288_v8, 23 }
 0x172   : > { %v767_v11 = vsel %vm766_vm11, %v765_v9, 0  ;;  %v2205_v32 = vsel %vm2203_vm7, %v12003_v28, %v2204_v21  ;;  %v762_v7 = vand.u32 8388607, %v755_v45  ;;  %vm2199_vm12 = vweird.f32 %v12990_v17 }
 0x173   : > { %v2376_v46 = vadd.s32 536870912, %v2375_v27  ;;  %v769_v43 = vand.u32 31, %v767_v11  ;;  %v2209_v53 = vsel %vm2202_vm6, %v2205_v32, %v2208_v5  ;;  %vm13397_vm13 = vcmp.le.f32.partialorder %v2211_v35, 0.7853982 }
 0x174   : > { %v2290_v15 = vor.u32 4788187, %v2289_v4  ;;  %v13401_v59 = vsel %vm2199_vm12, nan, %v2209_v53   ;;  %v862_v29 = vand.u32 2139095040, %v13374_v56  ;;  %v13408_v17 = vmul.f32 %v13229_v24, %v13188_v44 }
 0x175   : > { %v13403_v31 = vshrl.u32 %v2376_v46, 30  ;;  %v770_v49 = vsub.s32 32, %v769_v43  ;;  %v2293_v63 = vcvt.s32.f32 %v2286_v34  ;;  %v2300_v35 = vsel %vm13397_vm13, 0, %v2298_v20 }
 0x176   : > { %v2291_v40 = vand.u32 2147483647, %v2290_v15  ;;  %v763_v37 = vor.u32 8388608, %v762_v7  ;;  %v772_v22 = vshll.u32 %v19410_v50, %v769_v43  ;;  %v768_v1 = vshrl.u32 %v767_v11, 5 }
 0x177   : > { %v2378_v51 = vshll.u32 %v13403_v31, 30  ;;  %v773_v55 = vshrl.u32 %v19414_v62, %v770_v49  ;;  %v776_v28 = vshrl.u32 %v19402_v14, %v770_v49  ;;  %v779_v0 = vshrl.u32 %v19403_v41, %v770_v49 }
 0x178   : > { %v2294_v9 = vmul.f32 %v2293_v63, %v2291_v40  ;;  %v782_v44 = vshrl.u32 %v19404_v23, %v770_v49  ;;  %v775_v25 = vshll.u32 %v19414_v62, %v769_v43  ;;  %v863_v6 = vshrl.u32 %v862_v29, 23 }
 0x179   : > { %v13418_v13 = vsub.s32 %v2375_v27, %v2378_v51  ;;  %v774_v60 = vor.u32 %v773_v55, %v772_v22  ;;  %v778_v21 = vshll.u32 %v19402_v14, %v769_v43  ;;  %v781_v20 = vshll.u32 %v19403_v41, %v769_v43 }
 0x17a   : > { %v2295_v8 = vxor.u32 2147483648, %v2294_v9  ;;  %v777_v34 = vor.u32 %v776_v28, %v775_v25  ;;  %v784_v4 = vshll.u32 %v19404_v23, %v769_v43  ;;  %v785_v32 = vshrl.u32 %v19409_v57, %v770_v49 }
 0x17b   : > { %v2381_v5 = vsub.s32 0, %v13418_v13  ;;  %v2304_v11 = vadd.s32 3, %v2300_v35  ;;  %v780_v46 = vor.u32 %v779_v0, %v778_v21  ;;  %v783_v7 = vor.u32 %v782_v44, %v781_v20 }
 0x17c   : > { %v2296_v27 = vsel %vm2213_vm5, %v2295_v8, %v2294_v9  ;;  %v786_v29 = vor.u32 %v785_v32, %v784_v4  ;;  %v803_v40 = vshll.u32 %v763_v37, 8  ;;  %v771_v63 = vshrl.u32 %v19410_v50, %v770_v49 }
 0x17d   : > { %v2299_v53 = vsel %vm13397_vm13, %v13117_v58, %v2296_v27  ;;  %v11449_v15 = vmin.u32 %v2381_v5, %v13418_v13  ;;  %vm787_vm14 = vcmp.lt.s32.totalorder %v768_v1, 1  ;;  %v11392_v43 = vadd.s32 4294967169, %v863_v6 }
 0x17e   : > { %12006 = vcosq.f32 %v2299_v53  ;;  %vm790_vm15 = vcmp.lt.s32.totalorder %v768_v1, 4  ;;  %v795_v22 = vsel %vm787_vm14, %v774_v60, %v777_v34  ;;  %vm789_vm0 = vcmp.lt.s32.totalorder %v768_v1, 3 }
 0x17f   : > { %12008 = vsinq.f32 %v2299_v53  ;;  %v2383_v51 = vclz %v11449_v15  ;;  %v792_v35 = vsel %vm790_vm15, %v780_v46, 2102212464  ;;  %v796_v55 = vsel %vm790_vm15, %v783_v7, 920167782 }
 0x180   : > { %v799_v9 = vsel %vm787_vm14, %v777_v34, %v780_v46  ;;  %vm788_vm1 = vcmp.lt.s32.totalorder %v768_v1, 2  ;;  %v797_v18 = vsel %vm789_vm0, %v780_v46, %v796_v55  ;;  %v800_v0 = vsel %vm790_vm15, %v786_v29, 1326507024 }
 0x181   : > { %v11450_v28 = vadd.s32 4294967294, %v2383_v51  ;;  %v791_v44 = vsel %vm787_vm14, %v771_v63, %v774_v60  ;;  %v793_v25 = vsel %vm789_vm0, %v777_v34, %v792_v35  ;;  %v798_v37 = vsel %vm788_vm1, %v795_v22, %v797_v18 }
 0x182   : > { %v801_v8 = vsel %vm789_vm0, %v783_v7, %v800_v0  ;;  %v13435_v6 = vmul.u32.u64.low %v803_v40, %v798_v37  ;;  %v13436_v21 = vmul.u32.u64.high %v803_v40, %v798_v37, %v13435_v6  ;;  %v2401_v5 = vsub.s32 4, %v13403_v31 }
 0x183   : > { %vm11451_vm2 = vcmp.lt.s32.totalorder %v11450_v28, 0  ;;  %v802_v49 = vsel %vm788_vm1, %v799_v9, %v801_v8  ;;  %v2371_v60 = vadd.s32 %v13356_v38, %v13366_v39  ;;  %v794_v46 = vsel %vm788_vm1, %v791_v44, %v793_v25 }
 0x184   : > { %v2386_v20 = vsel %vm11451_vm2, 0, %v11450_v28  ;;  %v13440_v4 = vmul.u32.u64.low %v803_v40, %v802_v49  ;;  %v13441_v32 = vmul.u32.u64.high %v803_v40, %v802_v49, %v13440_v4  ;;  %v2305_v7 = vand.u32 3, %v2304_v11 }
 0x185   : > { %v2387_v34 = vsub.s32 32, %v2386_v20  ;;  %v2391_v27 = vsub.s32 4294967266, %v2386_v20  ;;  %vm2317_vm3 = vcmp.lt.s32.totalorder %v13149_v30, 0  ;;  %v859_v53 = vand.u32 2147483647, %v13374_v56 }
 0x186   : > { %v869_v15 = vadd.s32 1, %v11392_v43  ;;  %v2388_v29 = vshll.u32 %v13418_v13, %v2386_v20  ;;  %v813_v22 = vadd.s32 1, %v13436_v21  ;;  %vm2303_vm4 = vweird.f32 %v13117_v58 }
 0x187   : > { %v2389_v63 = vshrl.u32 %v2371_v60, %v2387_v34  ;;  %v2392_v51 = vadd.s32 127, %v2391_v27  ;;  %v2402_v38 = vsel %vm2317_vm3, %v2401_v5, %v13403_v31  ;;  %v810_v39 = vmul.u32 %v803_v40, %v794_v46 }
 0x188   : > { %vm812_vm5 = vc.u32 %v13441_v32, %v13435_v6  ;;  %vm870_vm6 = vcmp.gt.s32.totalorder %v869_v15, 0  ;;  %vm13459_vm7 = vcmp.le.f32.partialorder %v2315_v61, 0.7853982  ;;  %v13465_v55 = vadd.f32 %v13283_v48, %v13408_v17 }
 0x189   : > { %v2390_v1 = vor.u32 %v2389_v63, %v2388_v29  ;;  %v2393_v11 = vshll.u32 %v2392_v51, 23  ;;  %v814_v43 = vsel %vm812_vm5, %v813_v22, %v13436_v21  ;;  %v871_v13 = vsel %vm870_vm6, %v869_v15, 0 }
 0x18a   : > { %v815_v31 = vadd.s32 %v814_v43, %v810_v39  ;;  %v873_v40 = vand.u32 31, %v871_v13  ;;  %vm2306_vm8 = vcmp.lt.s32.totalorder %v2305_v7, 2  ;;  %v2404_v18 = vsel %vm13459_vm7, 0, %v2402_v38 }
 0x18b   : > { %v12007_v9 = vpop.eup %12006  ;;  %v2394_v28 = vor.u32 4788187, %v2393_v11  ;;  %v866_v0 = vand.u32 8388607, %v859_v53  ;;  %vm2307_vm9 = vcmp.eq.s32.totalorder %v2305_v7, 0  ;;  %vm2310_vm10 = vcmp.eq.s32.totalorder %v2305_v7, 2 }
 0x18c   : > { %v12009_v44 = vpop.eup %12008  ;;  %v2311_v61 = vxor.u32 2147483648, %v12007_v9  ;;  %v816_v25 = vadd.s32 536870912, %v815_v31  ;;  %v874_v37 = vsub.s32 32, %v873_v40  ;;  %v2397_v49 = vcvt.s32.f32 %v2390_v1 }
 0x18d   : > { %v2308_v8 = vxor.u32 2147483648, %v12009_v44  ;;  %v2395_v17 = vand.u32 2147483647, %v2394_v28  ;;  %v2408_v20 = vadd.s32 3, %v2404_v18  ;;  %v867_v27 = vor.u32 8388608, %v866_v0 }
 0x18e   : > { %v2312_v21 = vsel %vm2310_vm10, %v2311_v61, %v12009_v44  ;;  %v13471_v5 = vshrl.u32 %v816_v25, 30  ;;  %v877_v4 = vshrl.u32 %v19414_v62, %v874_v37  ;;  %v876_v46 = vshll.u32 %v19410_v50, %v873_v40 }
 0x18f   : > { %v2309_v60 = vsel %vm2307_vm9, %v12007_v9, %v2308_v8  ;;  %v2398_v34 = vmul.f32 %v2397_v49, %v2395_v17  ;;  %v880_v63 = vshrl.u32 %v19402_v14, %v874_v37  ;;  %v883_v51 = vshrl.u32 %v19403_v41, %v874_v37 }
 0x190   : > { %v2313_v15 = vsel %vm2306_vm8, %v2309_v60, %v2312_v21  ;;  %v818_v29 = vshll.u32 %v13471_v5, 30  ;;  %v872_v39 = vshrl.u32 %v871_v13, 5  ;;  %v879_v1 = vshll.u32 %v19414_v62, %v873_v40 }
 0x191   : > { %v13481_v22 = vsel %vm2303_vm4, nan, %v2313_v15   ;;  %v2399_v38 = vxor.u32 2147483648, %v2398_v34  ;;  %v878_v43 = vor.u32 %v877_v4, %v876_v46  ;;  %v882_v7 = vshll.u32 %v19402_v14, %v873_v40 }
 0x192   : > { %v13484_v11 = vsub.s32 %v815_v31, %v818_v29  ;;  %v886_v9 = vshrl.u32 %v19404_v23, %v874_v37  ;;  %v885_v18 = vshll.u32 %v19403_v41, %v873_v40  ;;  %v888_v58 = vshll.u32 %v19404_v23, %v873_v40 }
 0x193   : > { %v2400_v28 = vsel %vm2317_vm3, %v2399_v38, %v2398_v34  ;;  %v889_v0 = vshrl.u32 %v19409_v57, %v874_v37  ;;  %v881_v44 = vor.u32 %v880_v63, %v879_v1  ;;  %v884_v61 = vor.u32 %v883_v51, %v882_v7 }
 0x194   : > { %v2403_v13 = vsel %vm13459_vm7, %v13149_v30, %v2400_v28  ;;  %v821_v31 = vsub.s32 0, %v13484_v11  ;;  %v13499_v25 = vadd.f32 %v13211_v2, %v13200_v16  ;;  %v887_v8 = vor.u32 %v886_v9, %v885_v18 }
 0x195   : > { %12010 = vcosq.f32 %v2403_v13  ;;  %v890_v17 = vor.u32 %v889_v0, %v888_v58  ;;  %v701_v40 = vmul.f32 %v13229_v24, %v13192_v19  ;;  %v13503_v49 = vand.u32 3, %v2408_v20 }
 0x196   : > { %12012 = vsinq.f32 %v2403_v13  ;;  %v11389_v35 = vmin.u32 %v821_v31, %v13484_v11  ;;  %vm891_vm11 = vcmp.lt.s32.totalorder %v872_v39, 1  ;;  %vm893_vm12 = vcmp.lt.s32.totalorder %v872_v39, 3 }
 0x197   : > { %v907_v21 = vshll.u32 %v867_v27, 8  ;;  %v966_v4 = vand.u32 2139095040, %v13465_v55  ;;  %vm894_vm13 = vcmp.lt.s32.totalorder %v872_v39, 4  ;;  %v899_v16 = vsel %vm891_vm11, %v878_v43, %v881_v44 }
 0x198   : > { %v823_v60 = vclz %v11389_v35  ;;  %v903_v34 = vsel %vm891_vm11, %v881_v44, %v884_v61  ;;  %v875_v46 = vshrl.u32 %v19410_v50, %v874_v37  ;;  %v896_v15 = vsel %vm894_vm13, %v884_v61, 2102212464 }
 0x199   : > { %v900_v19 = vsel %vm894_vm13, %v887_v8, 920167782  ;;  %v904_v24 = vsel %vm894_vm13, %v890_v17, 1326507024  ;;  %vm892_vm14 = vcmp.lt.s32.totalorder %v872_v39, 2  ;;  %v967_v1 = vshrl.u32 %v966_v4, 23 }
 0x19a   : > { %v11390_v20 = vadd.s32 4294967294, %v823_v60  ;;  %v901_v29 = vsel %vm893_vm12, %v884_v61, %v900_v19  ;;  %v905_v63 = vsel %vm893_vm12, %v887_v8, %v904_v24  ;;  %v895_v27 = vsel %vm891_vm11, %v875_v46, %v878_v43 }
 0x19b   : > { %v902_v51 = vsel %vm892_vm14, %v899_v16, %v901_v29  ;;  %v906_v38 = vsel %vm892_vm14, %v903_v34, %v905_v63  ;;  %v897_v7 = vsel %vm893_vm12, %v881_v44, %v896_v15  ;;  %v11396_v0 = vadd.s32 4294967169, %v967_v1 }
 0x19c   : > { %vm11391_vm15 = vcmp.lt.s32.totalorder %v11390_v20, 0  ;;  %v13516_v37 = vmul.u32.u64.low %v907_v21, %v906_v38  ;;  %v13517_v9 = vmul.u32.u64.high %v907_v21, %v906_v38, %v13516_v37  ;;  %v13524_v13 = vadd.f32 %v13283_v48, %v701_v40 }
 0x19d   : > { %v826_v28 = vsel %vm11391_vm15, 0, %v11390_v20  ;;  %v13519_v18 = vmul.u32.u64.low %v907_v21, %v902_v51  ;;  %v13520_v58 = vmul.u32.u64.high %v907_v21, %v902_v51, %v13519_v18  ;;  %v811_v43 = vadd.s32 %v13435_v6, %v13441_v32 }
 0x19e   : > { %v827_v31 = vsub.s32 32, %v826_v28  ;;  %v831_v61 = vsub.s32 4294967266, %v826_v28  ;;  %vm2407_vm0 = vweird.f32 %v13149_v30  ;;  %vm2410_vm1 = vcmp.lt.s32.totalorder %v13503_v49, 2 }
 0x19f   : > { %vm757_vm2 = vcmp.lt.s32.totalorder %v13295_v10, 0  ;;  %v898_v44 = vsel %vm892_vm14, %v895_v27, %v897_v7  ;;  %v973_v8 = vadd.s32 1, %v11396_v0  ;;  %v828_v17 = vshll.u32 %v13484_v11, %v826_v28 }
 0x1a0   : > { %v829_v35 = vshrl.u32 %v811_v43, %v827_v31  ;;  %v832_v4 = vadd.s32 127, %v831_v61  ;;  %vm916_vm3 = vc.u32 %v13517_v9, %v13519_v18  ;;  %v841_v48 = vsub.s32 4, %v13471_v5 }
 0x1a1   : > { %v917_v6 = vadd.s32 1, %v13520_v58  ;;  %v963_v32 = vand.u32 2147483647, %v13465_v55  ;;  %vm974_vm4 = vcmp.gt.s32.totalorder %v973_v8, 0  ;;  %v914_v39 = vmul.u32 %v907_v21, %v898_v44 }
 0x1a2   : > { %v12011_v40 = vpop.eup %12010  ;;  %v830_v60 = vor.u32 %v829_v35, %v828_v17  ;;  %v833_v16 = vshll.u32 %v832_v4, 23  ;;  %v975_v34 = vsel %vm974_vm4, %v973_v8, 0  ;;  %vm2411_vm5 = vcmp.eq.s32.totalorder %v13503_v49, 0 }
 0x1a3   : > { %v12013_v46 = vpop.eup %12012  ;;  %v2415_v11 = vxor.u32 2147483648, %v12011_v40  ;;  %v918_v15 = vsel %vm916_vm3, %v917_v6, %v13520_v58  ;;  %v977_v19 = vand.u32 31, %v975_v34  ;;  %vm2414_vm6 = vcmp.eq.s32.totalorder %v13503_v49, 2 }
 0x1a4   : > { %v2412_v24 = vxor.u32 2147483648, %v12013_v46  ;;  %vm13543_vm7 = vcmp.le.f32.partialorder %v755_v45, 0.7853982  ;;  %v834_v29 = vor.u32 4788187, %v833_v16  ;;  %v919_v63 = vadd.s32 %v918_v15, %v914_v39 }
 0x1a5   : > { %v2416_v21 = vsel %vm2414_vm6, %v2415_v11, %v12013_v46  ;;  %v842_v27 = vsel %vm757_vm2, %v841_v48, %v13471_v5  ;;  %v970_v51 = vand.u32 8388607, %v963_v32  ;;  %v978_v38 = vsub.s32 32, %v977_v19 }
 0x1a6   : > { %v2413_v1 = vsel %vm2411_vm5, %v12011_v40, %v2412_v24  ;;  %v835_v7 = vand.u32 2147483647, %v834_v29  ;;  %v837_v37 = vcvt.s32.f32 %v830_v60  ;;  %v920_v28 = vadd.s32 536870912, %v919_v63 }
 0x1a7   : > { %v2417_v45 = vsel %vm2410_vm1, %v2413_v1, %v2416_v21  ;;  %v981_v58 = vshrl.u32 %v19414_v62, %v978_v38  ;;  %v984_v0 = vshrl.u32 %v19402_v14, %v978_v38  ;;  %v1070_v43 = vand.u32 2139095040, %v13524_v13 }
 0x1a8   : > { %v13559_v5 = vsel %vm2407_vm0, nan, %v2417_v45   ;;  %v838_v31 = vmul.f32 %v837_v37, %v835_v7  ;;  %v13561_v61 = vshrl.u32 %v920_v28, 30  ;;  %v987_v44 = vshrl.u32 %v19403_v41, %v978_v38 }
 0x1a9   : > { %v976_v8 = vshrl.u32 %v975_v34, 5  ;;  %v980_v17 = vshll.u32 %v19410_v50, %v977_v19  ;;  %v983_v49 = vshll.u32 %v19414_v62, %v977_v19  ;;  %v990_v35 = vshrl.u32 %v19404_v23, %v978_v38 }
 0x1aa   : > { %v839_v4 = vxor.u32 2147483648, %v838_v31  ;;  %v922_v48 = vshll.u32 %v13561_v61, 30  ;;  %v986_v6 = vshll.u32 %v19402_v14, %v977_v19  ;;  %v989_v30 = vshll.u32 %v19403_v41, %v977_v19 }
 0x1ab   : > { %v982_v40 = vor.u32 %v981_v58, %v980_v17  ;;  %v985_v60 = vor.u32 %v984_v0, %v983_v49  ;;  %v992_v16 = vshll.u32 %v19404_v23, %v977_v19  ;;  %v993_v39 = vshrl.u32 %v19409_v57, %v978_v38 }
 0x1ac   : > { %v840_v34 = vsel %vm757_vm2, %v839_v4, %v838_v31  ;;  %v13574_v46 = vsub.s32 %v919_v63, %v922_v48  ;;  %v988_v11 = vor.u32 %v987_v44, %v986_v6  ;;  %v991_v15 = vor.u32 %v990_v35, %v989_v30 }
 0x1ad   : > { %v843_v24 = vsel %vm13543_vm7, %v13295_v10, %v840_v34  ;;  %v844_v29 = vsel %vm13543_vm7, 0, %v842_v27  ;;  %v971_v21 = vor.u32 8388608, %v970_v51  ;;  %v994_v1 = vor.u32 %v993_v39, %v992_v16 }
 0x1ae   : > { %12014 = vcosq.f32 %v843_v24  ;;  %v925_v19 = vsub.s32 0, %v13574_v46  ;;  %v979_v7 = vshrl.u32 %v19410_v50, %v978_v38  ;;  %v1071_v37 = vshrl.u32 %v1070_v43, 23 }
 0x1af   : > { %12016 = vsinq.f32 %v843_v24  ;;  %vm995_vm8 = vcmp.lt.s32.totalorder %v976_v8, 1  ;;  %vm997_vm9 = vcmp.lt.s32.totalorder %v976_v8, 3  ;;  %vm998_vm10 = vcmp.lt.s32.totalorder %v976_v8, 4 }
 0x1b0   : > { %v11393_v63 = vmin.u32 %v925_v19, %v13574_v46  ;;  %v1000_v28 = vsel %vm998_vm10, %v988_v11, 2102212464  ;;  %v1003_v45 = vsel %vm995_vm8, %v982_v40, %v985_v60  ;;  %v1004_v58 = vsel %vm998_vm10, %v991_v15, 920167782 }
 0x1b1   : > { %v848_v0 = vadd.s32 3, %v844_v29  ;;  %v1005_v20 = vsel %vm997_vm9, %v988_v11, %v1004_v58  ;;  %v1007_v27 = vsel %vm995_vm8, %v985_v60, %v988_v11  ;;  %v1008_v51 = vsel %vm998_vm10, %v994_v1, 1326507024 }
 0x1b2   : > { %v927_v31 = vclz %v11393_v63  ;;  %vm996_vm11 = vcmp.lt.s32.totalorder %v976_v8, 2  ;;  %v999_v44 = vsel %vm995_vm8, %v979_v7, %v982_v40  ;;  %v1011_v17 = vshll.u32 %v971_v21, 8 }
 0x1b3   : > { %v1001_v38 = vsel %vm997_vm9, %v985_v60, %v1000_v28  ;;  %v1006_v43 = vsel %vm996_vm11, %v1003_v45, %v1005_v20  ;;  %v1009_v49 = vsel %vm997_vm9, %v991_v15, %v1008_v51  ;;  %v11400_v35 = vadd.s32 4294967169, %v1071_v37 }
 0x1b4   : > { %v11394_v4 = vadd.s32 4294967294, %v927_v31  ;;  %v1010_v48 = vsel %vm996_vm11, %v1007_v27, %v1009_v49  ;;  %v13589_v6 = vmul.u32.u64.low %v1011_v17, %v1006_v43  ;;  %v13590_v30 = vmul.u32.u64.high %v1011_v17, %v1006_v43, %v13589_v6 }
 0x1b5   : > { %v945_v16 = vsub.s32 4, %v13561_v61  ;;  %v13594_v39 = vmul.u32.u64.low %v1011_v17, %v1010_v48  ;;  %v13595_v34 = vmul.u32.u64.high %v1011_v17, %v1010_v48, %v13594_v39  ;;  %v1077_v40 = vadd.s32 1, %v11400_v35 }
 0x1b6   : > { %v13599_v60 = vadd.f32 %v13211_v2, %v13205_v36  ;;  %vm861_vm12 = vcmp.lt.s32.totalorder %v13374_v56, 0  ;;  %vm11395_vm13 = vcmp.lt.s32.totalorder %v11394_v4, 0  ;;  %v1002_v11 = vsel %vm996_vm11, %v999_v44, %v1001_v38 }
 0x1b7   : > { %v849_v15 = vand.u32 3, %v848_v0  ;;  %v930_v24 = vsel %vm11395_vm13, 0, %v11394_v4  ;;  %v1067_v29 = vand.u32 2147483647, %v13524_v13  ;;  %vm1078_vm14 = vcmp.gt.s32.totalorder %v1077_v40, 0 }
 0x1b8   : > { %vm847_vm15 = vweird.f32 %v13295_v10  ;;  %v915_v21 = vadd.s32 %v13519_v18, %v13517_v9  ;;  %v931_v1 = vsub.s32 32, %v930_v24  ;;  %v935_v19 = vsub.s32 4294967266, %v930_v24 }
 0x1b9   : > { %v1021_v36 = vadd.s32 1, %v13590_v30  ;;  %v946_v7 = vsel %vm861_vm12, %v945_v16, %v13561_v61  ;;  %v1018_v8 = vmul.u32 %v1011_v17, %v1002_v11  ;;  %vm1020_vm0 = vc.u32 %v13595_v34, %v13589_v6 }
 0x1ba   : > { %v1079_v37 = vsel %vm1078_vm14, %v1077_v40, 0  ;;  %v932_v63 = vshll.u32 %v13574_v46, %v930_v24  ;;  %v933_v28 = vshrl.u32 %v915_v21, %v931_v1  ;;  %v936_v45 = vadd.s32 127, %v935_v19 }
 0x1bb   : > { %v1022_v58 = vsel %vm1020_vm0, %v1021_v36, %v13590_v30  ;;  %v12015_v9 = vpop.eup %12014  ;;  %vm854_vm1 = vcmp.eq.s32.totalorder %v849_v15, 2  ;;  %vm13617_vm2 = vcmp.le.f32.partialorder %v859_v53, 0.7853982  ;;  %v1081_v0 = vand.u32 31, %v1079_v37 }
 0x1bc   : > { %v1023_v61 = vadd.s32 %v1022_v58, %v1018_v8  ;;  %v12017_v20 = vpop.eup %12016  ;;  %v855_v27 = vxor.u32 2147483648, %v12015_v9  ;;  %v934_v51 = vor.u32 %v933_v28, %v932_v63  ;;  %v937_v31 = vshll.u32 %v936_v45, 23 }
 0x1bd   : > { %v948_v46 = vsel %vm13617_vm2, 0, %v946_v7  ;;  %v852_v44 = vxor.u32 2147483648, %v12017_v20  ;;  %v1074_v38 = vand.u32 8388607, %v1067_v29  ;;  %v1082_v43 = vsub.s32 32, %v1081_v0 }
 0x1be   : > { %v1024_v17 = vadd.s32 536870912, %v1023_v61  ;;  %vm850_vm3 = vcmp.lt.s32.totalorder %v849_v15, 2  ;;  %vm851_vm4 = vcmp.eq.s32.totalorder %v849_v15, 0  ;;  %v856_v53 = vsel %vm854_vm1, %v855_v27, %v12017_v20 }
 0x1bf   : > { %v938_v49 = vor.u32 4788187, %v937_v31  ;;  %v853_v35 = vsel %vm851_vm4, %v12015_v9, %v852_v44  ;;  %v941_v4 = vcvt.s32.f32 %v934_v51  ;;  %v13625_v48 = vadd.s32 3, %v948_v46 }
 0x1c0   : > { %v13627_v30 = vshrl.u32 %v1024_v17, 30  ;;  %v857_v16 = vsel %vm850_vm3, %v853_v35, %v856_v53  ;;  %v1085_v40 = vshrl.u32 %v19414_v62, %v1082_v43  ;;  %v1088_v11 = vshrl.u32 %v19402_v14, %v1082_v43  ;;  %v13655_v35 = vpop.permute.xlu1 %731 }
 0x1c1   : > { %v939_v39 = vand.u32 2147483647, %v938_v49  ;;  %v13633_v24 = vsel %vm847_vm15, nan, %v857_v16   ;;  %v1075_v21 = vor.u32 8388608, %v1074_v38  ;;  %v1080_v1 = vshrl.u32 %v1079_v37, 5 }
 0x1c2   : > { %v1026_v15 = vshll.u32 %v13627_v30, 30  ;;  %v1084_v36 = vshll.u32 %v19410_v50, %v1081_v0  ;;  %v1087_v7 = vshll.u32 %v19414_v62, %v1081_v0  ;;  %v1091_v8 = vshrl.u32 %v19403_v41, %v1082_v43 }
 0x1c3   : > { %v942_v19 = vmul.f32 %v941_v4, %v939_v39  ;;  %v1090_v28 = vshll.u32 %v19402_v14, %v1081_v0  ;;  %v1093_v45 = vshll.u32 %v19403_v41, %v1081_v0  ;;  %v1094_v10 = vshrl.u32 %v19404_v23, %v1082_v43 }
 0x1c4   : > { %v13639_v63 = vsub.s32 %v1023_v61, %v1026_v15  ;;  %v1086_v9 = vor.u32 %v1085_v40, %v1084_v36  ;;  %v1089_v20 = vor.u32 %v1088_v11, %v1087_v7  ;;  %v1097_v37 = vshrl.u32 %v19409_v57, %v1082_v43 }
 0x1c5   : > { %v943_v58 = vxor.u32 2147483648, %v942_v19  ;;  %v1092_v51 = vor.u32 %v1091_v8, %v1090_v28  ;;  %v1095_v31 = vor.u32 %v1094_v10, %v1093_v45  ;;  %v1096_v46 = vshll.u32 %v19404_v23, %v1081_v0 }
 0x1c6   : > { %v1029_v27 = vsub.s32 0, %v13639_v63  ;;  %vm1099_vm5 = vcmp.lt.s32.totalorder %v1080_v1, 1  ;;  %v1115_v44 = vshll.u32 %v1075_v21, 8  ;;  %v706_v17 = vmul.f32 %v13247_v3, %v13346_v33 }
 0x1c7   : > { %v944_v61 = vsel %vm861_vm12, %v943_v58, %v942_v19  ;;  %v1098_v49 = vor.u32 %v1097_v37, %v1096_v46  ;;  %vm1102_vm6 = vcmp.lt.s32.totalorder %v1080_v1, 4  ;;  %v1083_v0 = vshrl.u32 %v19410_v50, %v1082_v43 }
 0x1c8   : > { %v947_v38 = vsel %vm13617_vm2, %v13374_v56, %v944_v61  ;;  %v11397_v53 = vmin.u32 %v1029_v27, %v13639_v63  ;;  %v1107_v4 = vsel %vm1099_vm5, %v1086_v9, %v1089_v20  ;;  %v1108_v16 = vsel %vm1102_vm6, %v1095_v31, 920167782 }
 0x1c9   : > { %12018 = vcosq.f32 %v947_v38  ;;  %vm1101_vm7 = vcmp.lt.s32.totalorder %v1080_v1, 3  ;;  %v1104_v33 = vsel %vm1102_vm6, %v1092_v51, 2102212464  ;;  %vm1100_vm8 = vcmp.lt.s32.totalorder %v1080_v1, 2 }
 0x1ca   : > { %12020 = vsinq.f32 %v947_v38  ;;  %v1031_v39 = vclz %v11397_v53  ;;  %v1109_v18 = vsel %vm1101_vm7, %v1092_v51, %v1108_v16  ;;  %v1111_v40 = vsel %vm1099_vm5, %v1089_v20, %v1092_v51 }
 0x1cb   : > { %v13663_v11 = vadd.f32 %v13655_v35, %v706_v17  ;;  %v1103_v21 = vsel %vm1099_vm5, %v1083_v0, %v1086_v9  ;;  %v1110_v43 = vsel %vm1100_vm8, %v1107_v4, %v1109_v18  ;;  %v1112_v19 = vsel %vm1102_vm6, %v1098_v49, 1326507024 }
 0x1cc   : > { %v11398_v15 = vadd.s32 4294967294, %v1031_v39  ;;  %v1105_v36 = vsel %vm1101_vm7, %v1089_v20, %v1104_v33  ;;  %v1113_v7 = vsel %vm1101_vm7, %v1095_v31, %v1112_v19  ;;  %vm965_vm9 = vcmp.lt.s32.totalorder %v13465_v55, 0 }
 0x1cd   : > { %v13668_v8 = vmul.u32.u64.low %v1115_v44, %v1110_v43  ;;  %v13669_v28 = vmul.u32.u64.high %v1115_v44, %v1110_v43, %v13668_v8  ;;  %v1114_v45 = vsel %vm1100_vm8, %v1111_v40, %v1113_v7  ;;  %v707_v10 = vmul.f32 %v13247_v3, %v13499_v25 }
 0x1ce   : > { %vm11399_vm10 = vcmp.lt.s32.totalorder %v11398_v15, 0  ;;  %v1049_v9 = vsub.s32 4, %v13627_v30  ;;  %v13677_v37 = vmul.u32.u64.low %v1115_v44, %v1114_v45  ;;  %v13678_v27 = vmul.u32.u64.high %v1115_v44, %v1114_v45, %v13677_v37 }
 0x1cf   : > { %v1034_v58 = vsel %vm11399_vm10, 0, %v11398_v15  ;;  %v1019_v20 = vadd.s32 %v13589_v6, %v13595_v34  ;;  %v1106_v46 = vsel %vm1100_vm8, %v1103_v21, %v1105_v36  ;;  %v953_v61 = vand.u32 3, %v13625_v48 }
 0x1d0   : > { %v1035_v51 = vsub.s32 32, %v1034_v58  ;;  %v1039_v31 = vsub.s32 4294967266, %v1034_v58  ;;  %v1125_v17 = vadd.s32 1, %v13669_v28  ;;  %v13686_v38 = vadd.f32 %v13655_v35, %v707_v10 }
 0x1d1   : > { %v1590_v25 = vand.u32 2139095040, %v13663_v11  ;;  %v1036_v53 = vshll.u32 %v13639_v63, %v1034_v58  ;;  %v1587_v4 = vand.u32 2147483647, %v13663_v11  ;;  %vm951_vm11 = vweird.f32 %v13374_v56 }
 0x1d2   : > { %v1037_v49 = vshrl.u32 %v1019_v20, %v1035_v51  ;;  %v1040_v0 = vadd.s32 127, %v1039_v31  ;;  %v1050_v6 = vsel %vm965_vm9, %v1049_v9, %v13627_v30  ;;  %v1122_v34 = vmul.u32 %v1115_v44, %v1106_v46 }
 0x1d3   : > { %vm1124_vm12 = vc.u32 %v13678_v27, %v13668_v8  ;;  %v1591_v48 = vshrl.u32 %v1590_v25, 23  ;;  %vm13699_vm13 = vcmp.le.f32.partialorder %v963_v32, 0.7853982  ;;  %vm954_vm14 = vcmp.lt.s32.totalorder %v953_v61, 2 }
 0x1d4   : > { %v1038_v63 = vor.u32 %v1037_v49, %v1036_v53  ;;  %v1041_v16 = vshll.u32 %v1040_v0, 23  ;;  %v1126_v39 = vsel %vm1124_vm12, %v1125_v17, %v13669_v28  ;;  %vm955_vm15 = vcmp.eq.s32.totalorder %v953_v61, 0 }
 0x1d5   : > { %v1127_v33 = vadd.s32 %v1126_v39, %v1122_v34  ;;  %v11420_v18 = vadd.s32 4294967169, %v1591_v48  ;;  %v1052_v40 = vsel %vm13699_vm13, 0, %v1050_v6  ;;  %v1594_v15 = vand.u32 8388607, %v1587_v4 }
 0x1d6   : > { %v12019_v30 = vpop.eup %12018  ;;  %v1042_v44 = vor.u32 4788187, %v1041_v16  ;;  %v1694_v32 = vand.u32 2139095040, %v13686_v38  ;;  %vm958_vm0 = vcmp.eq.s32.totalorder %v953_v61, 2  ;;  %v1045_v45 = vcvt.s32.f32 %v1038_v63 }
 0x1d7   : > { %v12021_v21 = vpop.eup %12020  ;;  %v959_v43 = vxor.u32 2147483648, %v12019_v30  ;;  %v1128_v19 = vadd.s32 536870912, %v1127_v33  ;;  %v1597_v36 = vadd.s32 1, %v11420_v18  ;;  %vm1069_vm1 = vcmp.lt.s32.totalorder %v13524_v13, 0 }
 0x1d8   : > { %v956_v7 = vxor.u32 2147483648, %v12021_v21  ;;  %v1043_v28 = vand.u32 2147483647, %v1042_v44  ;;  %v1695_v10 = vshrl.u32 %v1694_v32, 23  ;;  %v1056_v9 = vadd.s32 3, %v1052_v40 }
 0x1d9   : > { %v960_v58 = vsel %vm958_vm0, %v959_v43, %v12021_v21  ;;  %v1129_v37 = vshrl.u32 %v1128_v19, 30  ;;  %vm1598_vm2 = vcmp.gt.s32.totalorder %v1597_v36, 0  ;;  %v1595_v31 = vor.u32 8388608, %v1594_v15 }
 0x1da   : > { %v957_v20 = vsel %vm955_vm15, %v12019_v30, %v956_v7  ;;  %v1046_v51 = vmul.f32 %v1045_v45, %v1043_v28  ;;  %v1599_v46 = vsel %vm1598_vm2, %v1597_v36, 0  ;;  %v1691_v53 = vand.u32 2147483647, %v13686_v38 }
 0x1db   : > { %v961_v17 = vsel %vm954_vm14, %v957_v20, %v960_v58  ;;  %v1130_v25 = vshll.u32 %v1129_v37, 30  ;;  %v11424_v49 = vadd.s32 4294967169, %v1695_v10  ;;  %v13719_v34 = vmul.f32 %v13247_v3, %v13599_v60 }
 0x1dc   : > { %v13715_v0 = vsel %vm951_vm11, nan, %v961_v17   ;;  %v1047_v6 = vxor.u32 2147483648, %v1046_v51  ;;  %v1601_v48 = vand.u32 31, %v1599_v46  ;;  %v13721_v63 = vand.u32 3, %v1056_v9 }
 0x1dd   : > { %v1123_v61 = vadd.s32 %v13668_v8, %v13678_v27  ;;  %v13725_v16 = vsub.s32 %v1127_v33, %v1130_v25  ;;  %v1153_v39 = vsub.s32 4, %v1129_v37  ;;  %v1600_v56 = vshrl.u32 %v1599_v46, 5 }
 0x1de   : > { %v1048_v18 = vsel %vm965_vm9, %v1047_v6, %v1046_v51  ;;  %v1602_v30 = vsub.s32 32, %v1601_v48  ;;  %v13729_v44 = vshll.u32 %v1595_v31, 8  ;;  %v13737_v15 = vand.u32 8388607, %v1691_v53 }
 0x1df   : > { %v1051_v60 = vsel %vm13699_vm13, %v13465_v55, %v1048_v18  ;;  %v1133_v40 = vsub.s32 0, %v13725_v16  ;;  %v1701_v8 = vadd.s32 1, %v11424_v49  ;;  %vm13741_vm3 = vcmp.le.f32.partialorder %v1067_v29, 0.7853982 }
 0x1e0   : > { %12022 = vcosq.f32 %v1051_v60  ;;  %v1604_v33 = vshll.u32 %v19410_v50, %v1601_v48  ;;  %v1605_v32 = vshrl.u32 %v19414_v62, %v1602_v30  ;;  %v1608_v1 = vshrl.u32 %v19402_v14, %v1602_v30 }
 0x1e1   : > { %12024 = vsinq.f32 %v1051_v60  ;;  %v11401_v21 = vmin.u32 %v1133_v40, %v13725_v16  ;;  %v1154_v43 = vsel %vm1069_vm1, %v1153_v39, %v1129_v37  ;;  %v1607_v19 = vshll.u32 %v19414_v62, %v1601_v48 }
 0x1e2   : > { %v1606_v36 = vor.u32 %v1605_v32, %v1604_v33  ;;  %v1610_v29 = vshll.u32 %v19402_v14, %v1601_v48  ;;  %v1611_v7 = vshrl.u32 %v19403_v41, %v1602_v30  ;;  %vm1619_vm4 = vcmp.lt.s32.totalorder %v1600_v56, 1 }
 0x1e3   : > { %v1135_v28 = vclz %v11401_v21  ;;  %v1603_v45 = vshrl.u32 %v19410_v50, %v1602_v30  ;;  %v1609_v10 = vor.u32 %v1608_v1, %v1607_v19  ;;  %v1613_v58 = vshll.u32 %v19403_v41, %v1601_v48 }
 0x1e4   : > { %v1612_v9 = vor.u32 %v1611_v7, %v1610_v29  ;;  %v1614_v20 = vshrl.u32 %v19404_v23, %v1602_v30  ;;  %v1616_v51 = vshll.u32 %v19404_v23, %v1601_v48  ;;  %v1617_v37 = vshrl.u32 %v19409_v57, %v1602_v30 }
 0x1e5   : > { %v11402_v31 = vadd.s32 4294967294, %v1135_v28  ;;  %vm1620_vm5 = vcmp.lt.s32.totalorder %v1600_v56, 2  ;;  %vm1621_vm6 = vcmp.lt.s32.totalorder %v1600_v56, 3  ;;  %vm1622_vm7 = vcmp.lt.s32.totalorder %v1600_v56, 4 }
 0x1e6   : > { %v1615_v46 = vor.u32 %v1614_v20, %v1613_v58  ;;  %v1618_v17 = vor.u32 %v1617_v37, %v1616_v51  ;;  %v1623_v25 = vsel %vm1619_vm4, %v1603_v45, %v1606_v36  ;;  %v1624_v49 = vsel %vm1622_vm7, %v1612_v9, 2102212464 }
 0x1e7   : > { %vm11403_vm8 = vcmp.lt.s32.totalorder %v11402_v31, 0  ;;  %v1625_v6 = vsel %vm1621_vm6, %v1609_v10, %v1624_v49  ;;  %v1627_v39 = vsel %vm1619_vm4, %v1606_v36, %v1609_v10  ;;  %vm1702_vm9 = vcmp.gt.s32.totalorder %v1701_v8, 0 }
 0x1e8   : > { %vm1059_vm10 = vcmp.eq.s32.totalorder %v13721_v63, 0  ;;  %v1138_v48 = vsel %vm11403_vm8, 0, %v11402_v31  ;;  %v1628_v18 = vsel %vm1622_vm7, %v1615_v46, 920167782  ;;  %v1631_v30 = vsel %vm1619_vm4, %v1609_v10, %v1612_v9 }
 0x1e9   : > { %v1632_v60 = vsel %vm1622_vm7, %v1618_v17, 1326507024  ;;  %vm1058_vm11 = vcmp.lt.s32.totalorder %v13721_v63, 2  ;;  %v1139_v40 = vsub.s32 32, %v1138_v48  ;;  %v1143_v33 = vsub.s32 4294967266, %v1138_v48 }
 0x1ea   : > { %v1156_v32 = vsel %vm13741_vm3, 0, %v1154_v43  ;;  %v1629_v1 = vsel %vm1621_vm6, %v1612_v9, %v1628_v18  ;;  %vm1055_vm12 = vweird.f32 %v13465_v55  ;;  %v1626_v21 = vsel %vm1620_vm5, %v1623_v25, %v1625_v6 }
 0x1eb   : > { %v1630_v19 = vsel %vm1620_vm5, %v1627_v39, %v1629_v1  ;;  %v1633_v36 = vsel %vm1621_vm6, %v1615_v46, %v1632_v60  ;;  %v1703_v29 = vsel %vm1702_vm9, %v1701_v8, 0  ;;  %v1140_v7 = vshll.u32 %v13725_v16, %v1138_v48 }
 0x1ec   : > { %v1141_v28 = vshrl.u32 %v1123_v61, %v1139_v40  ;;  %v1144_v45 = vadd.s32 127, %v1143_v33  ;;  %v1634_v10 = vsel %vm1620_vm5, %v1631_v30, %v1633_v36  ;;  %vm1062_vm13 = vcmp.eq.s32.totalorder %v13721_v63, 2 }
 0x1ed   : > { %v13775_v58 = vmul.u32.u64.low %v13729_v44, %v1634_v10  ;;  %v13776_v43 = vmul.u32.u64.high %v13729_v44, %v1634_v10, %v13775_v58  ;;  %v13779_v9 = vmul.u32.u64.low %v13729_v44, %v1630_v19  ;;  %v13780_v20 = vmul.u32.u64.high %v13729_v44, %v1630_v19, %v13779_v9  ;;  %v12023_v51 = vpop.eup %12022 }
 0x1ee   : > { %v1142_v37 = vor.u32 %v1141_v28, %v1140_v7  ;;  %v1145_v8 = vshll.u32 %v1144_v45, 23  ;;  %v1705_v31 = vand.u32 31, %v1703_v29  ;;  %v12025_v16 = vpop.eup %12024  ;;  %v1063_v61 = vxor.u32 2147483648, %v12023_v51 }
 0x1ef   : > { %v13784_v46 = vadd.s32 3, %v1156_v32  ;;  %v13788_v56 = vadd.f32 %v13655_v35, %v13719_v34  ;;  %v1699_v17 = vor.u32 8388608, %v13737_v15  ;;  %v1060_v25 = vxor.u32 2147483648, %v12025_v16 }
 0x1f0   : > { %v1146_v49 = vor.u32 4788187, %v1145_v8  ;;  %v1642_v6 = vmul.u32 %v13729_v44, %v1626_v21  ;;  %v1706_v39 = vsub.s32 32, %v1705_v31  ;;  %v1064_v48 = vsel %vm1062_vm13, %v1063_v61, %v12025_v16 }
 0x1f1   : > { %vm1644_vm14 = vc.u32 %v13776_v43, %v13779_v9  ;;  %v1645_v18 = vadd.s32 1, %v13780_v20  ;;  %v13795_v30 = vshrl.u32 %v1703_v29, 5  ;;  %v1061_v60 = vsel %vm1059_vm10, %v12023_v51, %v1060_v25 }
 0x1f2   : > { %v1147_v34 = vand.u32 2147483647, %v1146_v49  ;;  %v1149_v40 = vcvt.s32.f32 %v1142_v37  ;;  %v1708_v15 = vshll.u32 %v19410_v50, %v1705_v31  ;;  %v1065_v33 = vsel %vm1058_vm11, %v1061_v60, %v1064_v48 }
 0x1f3   : > { %v1646_v44 = vsel %vm1644_vm14, %v1645_v18, %v13780_v20  ;;  %v1709_v32 = vshrl.u32 %v19414_v62, %v1706_v39  ;;  %v1711_v1 = vshll.u32 %v19414_v62, %v1705_v31  ;;  %v13807_v21 = vsel %vm1055_vm12, nan, %v1065_v33  }
 0x1f4   : > { %v1150_v19 = vmul.f32 %v1149_v40, %v1147_v34  ;;  %v1647_v36 = vadd.s32 %v1646_v44, %v1642_v6  ;;  %v1712_v29 = vshrl.u32 %v19402_v14, %v1706_v39  ;;  %v1714_v28 = vshll.u32 %v19402_v14, %v1705_v31 }
 0x1f5   : > { %v1710_v7 = vor.u32 %v1709_v32, %v1708_v15  ;;  %v1715_v63 = vshrl.u32 %v19403_v41, %v1706_v39  ;;  %v1717_v45 = vshll.u32 %v19403_v41, %v1705_v31  ;;  %v1718_v51 = vshrl.u32 %v19404_v23, %v1706_v39 }
 0x1f6   : > { %v1151_v10 = vxor.u32 2147483648, %v1150_v19  ;;  %v1648_v58 = vadd.s32 536870912, %v1647_v36  ;;  %v1713_v20 = vor.u32 %v1712_v29, %v1711_v1  ;;  %v1720_v55 = vshll.u32 %v19404_v23, %v1705_v31 }
 0x1f7   : > { %v1716_v37 = vor.u32 %v1715_v63, %v1714_v28  ;;  %v1721_v8 = vshrl.u32 %v19409_v57, %v1706_v39  ;;  %vm1723_vm15 = vcmp.lt.s32.totalorder %v13795_v30, 1  ;;  %v1719_v25 = vor.u32 %v1718_v51, %v1717_v45 }
 0x1f8   : > { %v1152_v16 = vsel %vm1069_vm1, %v1151_v10, %v1150_v19  ;;  %v1649_v61 = vshrl.u32 %v1648_v58, 30  ;;  %vm1724_vm0 = vcmp.lt.s32.totalorder %v13795_v30, 2  ;;  %vm1725_vm2 = vcmp.lt.s32.totalorder %v13795_v30, 3 }
 0x1f9   : > { %v1155_v49 = vsel %vm13741_vm3, %v13524_v13, %v1152_v16  ;;  %v1722_v6 = vor.u32 %v1721_v8, %v1720_v55  ;;  %vm1726_vm4 = vcmp.lt.s32.totalorder %v13795_v30, 4  ;;  %v1731_v48 = vsel %vm1723_vm15, %v1710_v7, %v1713_v20 }
 0x1fa   : > { %12026 = vcosq.f32 %v1155_v49  ;;  %v1650_v31 = vshll.u32 %v1649_v61, 30  ;;  %v1735_v18 = vsel %vm1723_vm15, %v1713_v20, %v1716_v37  ;;  %v1728_v60 = vsel %vm1726_vm4, %v1716_v37, 2102212464 }
 0x1fb   : > { %12028 = vsinq.f32 %v1155_v49  ;;  %v1732_v34 = vsel %vm1726_vm4, %v1719_v25, 920167782  ;;  %v1736_v40 = vsel %vm1726_vm4, %v1722_v6, 1326507024  ;;  %v1707_v27 = vshrl.u32 %v19410_v50, %v1706_v39 }
 0x1fc   : > { %v13829_v15 = vsub.s32 %v1647_v36, %v1650_v31  ;;  %v1733_v33 = vsel %vm1725_vm2, %v1716_v37, %v1732_v34  ;;  %v1737_v44 = vsel %vm1725_vm2, %v1719_v25, %v1736_v40  ;;  %v1673_v32 = vsub.s32 4, %v1649_v61 }
 0x1fd   : > { %v1734_v1 = vsel %vm1724_vm0, %v1731_v48, %v1733_v33  ;;  %v1738_v19 = vsel %vm1724_vm0, %v1735_v18, %v1737_v44  ;;  %v1739_v29 = vshll.u32 %v1699_v17, 8  ;;  %v669_v36 = vadd.f32 %v13211_v2, %v13261_v54 }
 0x1fe   : > { %v1653_v28 = vsub.s32 0, %v13829_v15  ;;  %v1727_v39 = vsel %vm1723_vm15, %v1707_v27, %v1710_v7  ;;  %v1729_v63 = vsel %vm1725_vm2, %v1713_v20, %v1728_v60  ;;  %vm1589_vm1 = vcmp.lt.s32.totalorder %v13663_v11, 0 }
 0x1ff   : > { %v13847_v45 = vmul.u32.u64.low %v1739_v29, %v1738_v19  ;;  %v13848_v10 = vmul.u32.u64.high %v1739_v29, %v1738_v19, %v13847_v45  ;;  %v13850_v58 = vmul.u32.u64.low %v1739_v29, %v1734_v1  ;;  %v13851_v51 = vmul.u32.u64.high %v1739_v29, %v1734_v1, %v13850_v58 }
 0x200   : > { %v709_v37 = vmul.f32 %v13247_v3, %v669_v36  ;;  %v11421_v2 = vmin.u32 %v1653_v28, %v13829_v15  ;;  %v1798_v54 = vand.u32 2139095040, %v13788_v56  ;;  %v1161_v17 = vand.u32 3, %v13784_v46 }
 0x201   : > { %v1674_v7 = vsel %vm1589_vm1, %v1673_v32, %v1649_v61  ;;  %v1730_v20 = vsel %vm1724_vm0, %v1727_v39, %v1729_v63  ;;  %vm13867_vm3 = vcmp.le.f32.partialorder %v1587_v4, 0.7853982  ;;  %vm1748_vm5 = vc.u32 %v13848_v10, %v13850_v58 }
 0x202   : > { %v13863_v55 = vadd.f32 %v13655_v35, %v709_v37  ;;  %v1655_v8 = vclz %v11421_v2  ;;  %v1749_v46 = vadd.s32 1, %v13851_v51  ;;  %v1799_v16 = vshrl.u32 %v1798_v54, 23 }
 0x203   : > { %v1676_v30 = vsel %vm13867_vm3, 0, %v1674_v7  ;;  %v1746_v61 = vmul.u32 %v1739_v29, %v1730_v20  ;;  %v1795_v35 = vand.u32 2147483647, %v13788_v56  ;;  %vm1162_vm6 = vcmp.lt.s32.totalorder %v1161_v17, 2 }
 0x204   : > { %v11422_v25 = vadd.s32 4294967294, %v1655_v8  ;;  %vm1163_vm7 = vcmp.eq.s32.totalorder %v1161_v17, 0  ;;  %v1750_v49 = vsel %vm1748_vm5, %v1749_v46, %v13851_v51  ;;  %v11428_v4 = vadd.s32 4294967169, %v1799_v16 }
 0x205   : > { %vm1166_vm8 = vcmp.eq.s32.totalorder %v1161_v17, 2  ;;  %v1643_v6 = vadd.s32 %v13779_v9, %v13776_v43  ;;  %v1751_v31 = vadd.s32 %v1750_v49, %v1746_v61  ;;  %v1680_v60 = vadd.s32 3, %v1676_v30 }
 0x206   : > { %vm11423_vm9 = vcmp.lt.s32.totalorder %v11422_v25, 0  ;;  %v1805_v34 = vadd.s32 1, %v11428_v4  ;;  %v1902_v40 = vand.u32 2139095040, %v13863_v55  ;;  %v1802_v1 = vand.u32 8388607, %v1795_v35 }
 0x207   : > { %v12027_v48 = vpop.eup %12026  ;;  %v1658_v18 = vsel %vm11423_vm9, 0, %v11422_v25  ;;  %v1752_v36 = vadd.s32 536870912, %v1751_v31  ;;  %vm1159_vm11 = vweird.f32 %v13524_v13  ;;  %v13892_v16 = vand.u32 3, %v1680_v60 }
 0x208   : > { %v12029_v27 = vpop.eup %12028  ;;  %v1167_v33 = vxor.u32 2147483648, %v12027_v48  ;;  %v1659_v44 = vsub.s32 32, %v1658_v18  ;;  %v1663_v32 = vsub.s32 4294967266, %v1658_v18  ;;  %v1660_v29 = vshll.u32 %v13829_v15, %v1658_v18 }
 0x209   : > { %v1164_v19 = vxor.u32 2147483648, %v12029_v27  ;;  %vm1806_vm10 = vcmp.gt.s32.totalorder %v1805_v34, 0  ;;  %v13885_v45 = vshrl.u32 %v1752_v36, 30  ;;  %v1903_v37 = vshrl.u32 %v1902_v40, 23 }
 0x20a   : > { %v1168_v43 = vsel %vm1166_vm8, %v1167_v33, %v12029_v27  ;;  %v1661_v9 = vshrl.u32 %v1643_v6, %v1659_v44  ;;  %v1664_v28 = vadd.s32 127, %v1663_v32  ;;  %v1807_v39 = vsel %vm1806_vm10, %v1805_v34, 0 }
 0x20b   : > { %v1165_v63 = vsel %vm1163_vm7, %v12027_v48, %v1164_v19  ;;  %v1809_v51 = vand.u32 31, %v1807_v39  ;;  %v1754_v20 = vshll.u32 %v13885_v45, 30  ;;  %v1747_v25 = vadd.s32 %v13850_v58, %v13848_v10 }
 0x20c   : > { %v1169_v2 = vsel %vm1162_vm6, %v1165_v63, %v1168_v43  ;;  %v1662_v54 = vor.u32 %v1661_v9, %v1660_v29  ;;  %v1665_v7 = vshll.u32 %v1664_v28, 23  ;;  %v1899_v30 = vand.u32 2147483647, %v13863_v55 }
 0x20d   : > { %v13889_v15 = vsel %vm1159_vm11, nan, %v1169_v2   ;;  %v1810_v8 = vsub.s32 32, %v1809_v51  ;;  %v13896_v61 = vsub.s32 %v1751_v31, %v1754_v20  ;;  %v1803_v49 = vor.u32 8388608, %v1802_v1 }
 0x20e   : > { %v1666_v46 = vor.u32 4788187, %v1665_v7  ;;  %v11432_v17 = vadd.s32 4294967169, %v1903_v37  ;;  %v1669_v6 = vcvt.s32.f32 %v1662_v54  ;;  %v1812_v48 = vshll.u32 %v19410_v50, %v1809_v51 }
 0x20f   : > { %v1813_v13 = vshrl.u32 %v19414_v62, %v1810_v8  ;;  %v1816_v18 = vshrl.u32 %v19402_v14, %v1810_v8  ;;  %v1757_v34 = vsub.s32 0, %v13896_v61  ;;  %v1815_v60 = vshll.u32 %v19414_v62, %v1809_v51 }
 0x210   : > { %v1667_v4 = vand.u32 2147483647, %v1666_v46  ;;  %v1818_v10 = vshll.u32 %v19402_v14, %v1809_v51  ;;  %v1819_v58 = vshrl.u32 %v19403_v41, %v1810_v8  ;;  %v1808_v40 = vshrl.u32 %v1807_v39, 5 }
 0x211   : > { %v1821_v27 = vshll.u32 %v19403_v41, %v1809_v51  ;;  %v1822_v33 = vshrl.u32 %v19404_v23, %v1810_v8  ;;  %v11425_v44 = vmin.u32 %v1757_v34, %v13896_v61  ;;  %v1814_v32 = vor.u32 %v1813_v13, %v1812_v48 }
 0x212   : > { %v1670_v31 = vmul.f32 %v1669_v6, %v1667_v4  ;;  %v1817_v1 = vor.u32 %v1816_v18, %v1815_v60  ;;  %v1820_v19 = vor.u32 %v1819_v58, %v1818_v10  ;;  %v1824_v43 = vshll.u32 %v19404_v23, %v1809_v51 }
 0x213   : > { %v1823_v36 = vor.u32 %v1822_v33, %v1821_v27  ;;  %v1825_v9 = vshrl.u32 %v19409_v57, %v1810_v8  ;;  %v1759_v28 = vclz %v11425_v44  ;;  %v1843_v63 = vshll.u32 %v1803_v49, 8 }
 0x214   : > { %v1671_v29 = vxor.u32 2147483648, %v1670_v31  ;;  %v13912_v39 = vand.u32 8388607, %v1899_v30  ;;  %v1909_v37 = vadd.s32 1, %v11432_v17  ;;  %v1811_v54 = vshrl.u32 %v19410_v50, %v1810_v8 }
 0x215   : > { %v1826_v7 = vor.u32 %v1825_v9, %v1824_v43  ;;  %vm1827_vm12 = vcmp.lt.s32.totalorder %v1808_v40, 1  ;;  %v11426_v20 = vadd.s32 4294967294, %v1759_v28  ;;  %vm1829_vm13 = vcmp.lt.s32.totalorder %v1808_v40, 3 }
 0x216   : > { %v1672_v2 = vsel %vm1589_vm1, %v1671_v29, %v1670_v31  ;;  %vm1830_vm14 = vcmp.lt.s32.totalorder %v1808_v40, 4  ;;  %v1835_v49 = vsel %vm1827_vm12, %v1814_v32, %v1817_v1  ;;  %vm1828_vm0 = vcmp.lt.s32.totalorder %v1808_v40, 2 }
 0x217   : > { %v1675_v51 = vsel %vm13867_vm3, %v13663_v11, %v1672_v2  ;;  %v1832_v46 = vsel %vm1830_vm14, %v1820_v19, 2102212464  ;;  %v1836_v13 = vsel %vm1830_vm14, %v1823_v36, 920167782  ;;  %vm11427_vm15 = vcmp.lt.s32.totalorder %v11426_v20, 0 }
 0x218   : > { %12030 = vcosq.f32 %v1675_v51  ;;  %v1837_v8 = vsel %vm1829_vm13, %v1820_v19, %v1836_v13  ;;  %v1762_v17 = vsel %vm11427_vm15, 0, %v11426_v20  ;;  %v1831_v4 = vsel %vm1827_vm12, %v1811_v54, %v1814_v32 }
 0x219   : > { %12032 = vsinq.f32 %v1675_v51  ;;  %v1838_v3 = vsel %vm1828_vm0, %v1835_v49, %v1837_v8  ;;  %v1839_v6 = vsel %vm1827_vm12, %v1817_v1, %v1820_v19  ;;  %v1763_v48 = vsub.s32 32, %v1762_v17 }
 0x21a   : > { %v1767_v18 = vsub.s32 4294967266, %v1762_v17  ;;  %v1833_v34 = vsel %vm1829_vm13, %v1817_v1, %v1832_v46  ;;  %v1840_v60 = vsel %vm1830_vm14, %v1826_v7, 1326507024  ;;  %v1764_v10 = vshll.u32 %v13896_v61, %v1762_v17 }
 0x21b   : > { %v1841_v58 = vsel %vm1829_vm13, %v1823_v36, %v1840_v60  ;;  %v13931_v31 = vmul.u32.u64.low %v1843_v63, %v1838_v3  ;;  %v13932_v27 = vmul.u32.u64.high %v1843_v63, %v1838_v3, %v13931_v31  ;;  %v1765_v33 = vshrl.u32 %v1747_v25, %v1763_v48 }
 0x21c   : > { %v1768_v44 = vadd.s32 127, %v1767_v18  ;;  %v1842_v32 = vsel %vm1828_vm0, %v1839_v6, %v1841_v58  ;;  %vm1910_vm2 = vcmp.gt.s32.totalorder %v1909_v37, 0  ;;  %v1777_v19 = vsub.s32 4, %v13885_v45 }
 0x21d   : > { %v13937_v29 = vmul.u32.u64.low %v1843_v63, %v1842_v32  ;;  %v13938_v43 = vmul.u32.u64.high %v1843_v63, %v1842_v32, %v13937_v29  ;;  %v1911_v1 = vsel %vm1910_vm2, %v1909_v37, 0  ;;  %v1766_v9 = vor.u32 %v1765_v33, %v1764_v10 }
 0x21e   : > { %v1769_v28 = vshll.u32 %v1768_v44, 23  ;;  %v1834_v61 = vsel %vm1828_vm0, %v1831_v4, %v1833_v34  ;;  %v1913_v36 = vand.u32 31, %v1911_v1  ;;  %vm1693_vm4 = vcmp.lt.s32.totalorder %v13686_v38, 0 }
 0x21f   : > { %v1853_v2 = vadd.s32 1, %v13932_v27  ;;  %vm1682_vm1 = vcmp.lt.s32.totalorder %v13892_v16, 2  ;;  %vm1683_vm3 = vcmp.eq.s32.totalorder %v13892_v16, 0  ;;  %vm13947_vm5 = vcmp.le.f32.partialorder %v1691_v53, 0.7853982 }
 0x220   : > { %v1770_v37 = vor.u32 4788187, %v1769_v28  ;;  %v1914_v54 = vsub.s32 32, %v1913_v36  ;;  %vm1679_vm6 = vweird.f32 %v13663_v11  ;;  %vm1686_vm7 = vcmp.eq.s32.totalorder %v13892_v16, 2 }
 0x221   : > { %v1850_v40 = vmul.u32 %v1843_v63, %v1834_v61  ;;  %vm1852_vm8 = vc.u32 %v13938_v43, %v13931_v31  ;;  %v1907_v7 = vor.u32 8388608, %v13912_v39  ;;  %v1773_v20 = vcvt.s32.f32 %v1766_v9 }
 0x222   : > { %v1771_v51 = vand.u32 2147483647, %v1770_v37  ;;  %v1778_v53 = vsel %vm1693_vm4, %v1777_v19, %v13885_v45  ;;  %v1854_v46 = vsel %vm1852_vm8, %v1853_v2, %v13932_v27  ;;  %v1912_v13 = vshrl.u32 %v1911_v1, 5 }
 0x223   : > { %v1855_v49 = vadd.s32 %v1854_v46, %v1850_v40  ;;  %v1916_v8 = vshll.u32 %v19410_v50, %v1913_v36  ;;  %v1917_v17 = vshrl.u32 %v19414_v62, %v1914_v54  ;;  %v1919_v3 = vshll.u32 %v19414_v62, %v1913_v36 }
 0x224   : > { %v1774_v4 = vmul.f32 %v1773_v20, %v1771_v51  ;;  %v1920_v39 = vshrl.u32 %v19402_v14, %v1914_v54  ;;  %v1926_v6 = vshrl.u32 %v19404_v23, %v1914_v54  ;;  %v1922_v45 = vshll.u32 %v19402_v14, %v1913_v36 }
 0x225   : > { %v12031_v63 = vpop.eup %12030  ;;  %v1856_v34 = vadd.s32 536870912, %v1855_v49  ;;  %v1923_v60 = vshrl.u32 %v19403_v41, %v1914_v54  ;;  %v1925_v27 = vshll.u32 %v19403_v41, %v1913_v36  ;;  %v1929_v33 = vshrl.u32 %v19409_v57, %v1914_v54 }
 0x226   : > { %v12033_v48 = vpop.eup %12032  ;;  %v1687_v18 = vxor.u32 2147483648, %v12031_v63  ;;  %v1775_v58 = vxor.u32 2147483648, %v1774_v4  ;;  %v1918_v32 = vor.u32 %v1917_v17, %v1916_v8  ;;  %v1928_v19 = vshll.u32 %v19404_v23, %v1913_v36 }
 0x227   : > { %v1684_v10 = vxor.u32 2147483648, %v12033_v48  ;;  %v13971_v44 = vshrl.u32 %v1856_v34, 30  ;;  %v1921_v1 = vor.u32 %v1920_v39, %v1919_v3  ;;  %v1927_v9 = vor.u32 %v1926_v6, %v1925_v27 }
 0x228   : > { %v1688_v62 = vsel %vm1686_vm7, %v1687_v18, %v12033_v48  ;;  %v1776_v14 = vsel %vm1693_vm4, %v1775_v58, %v1774_v4  ;;  %v1924_v61 = vor.u32 %v1923_v60, %v1922_v45  ;;  %v1780_v36 = vsel %vm13947_vm5, 0, %v1778_v53 }
 0x229   : > { %v1685_v29 = vsel %vm1683_vm3, %v12031_v63, %v1684_v10  ;;  %v1779_v57 = vsel %vm13947_vm5, %v13686_v38, %v1776_v14  ;;  %v1858_v28 = vshll.u32 %v13971_v44, 30  ;;  %v1930_v2 = vor.u32 %v1929_v33, %v1928_v19 }
 0x22a   : > { %v1689_v41 = vsel %vm1682_vm1, %v1685_v29, %v1688_v62  ;;  %12034 = vcosq.f32 %v1779_v57  ;;  %vm1931_vm9 = vcmp.lt.s32.totalorder %v1912_v13, 1  ;;  %vm1934_vm10 = vcmp.lt.s32.totalorder %v1912_v13, 4 }
 0x22b   : > { %v13986_v23 = vsel %vm1679_vm6, nan, %v1689_v41   ;;  %12036 = vsinq.f32 %v1779_v57  ;;  %v1859_v37 = vsub.s32 %v1855_v49, %v1858_v28  ;;  %v1915_v16 = vshrl.u32 %v19410_v50, %v1914_v54 }
 0x22c   : > { %vm1933_vm11 = vcmp.lt.s32.totalorder %v1912_v13, 3  ;;  %v1939_v40 = vsel %vm1931_vm9, %v1918_v32, %v1921_v1  ;;  %v1940_v51 = vsel %vm1934_vm10, %v1927_v9, 920167782  ;;  %vm1932_vm12 = vcmp.lt.s32.totalorder %v1912_v13, 2 }
 0x22d   : > { %v1861_v20 = vsub.s32 0, %v1859_v37  ;;  %v1936_v11 = vsel %vm1934_vm10, %v1924_v61, 2102212464  ;;  %v1941_v46 = vsel %vm1933_vm11, %v1924_v61, %v1940_v51  ;;  %v1943_v25 = vsel %vm1931_vm9, %v1921_v1, %v1924_v61 }
 0x22e   : > { %v1942_v8 = vsel %vm1932_vm12, %v1939_v40, %v1941_v46  ;;  %v1944_v53 = vsel %vm1934_vm10, %v1930_v2, 1326507024  ;;  %v1947_v17 = vshll.u32 %v1907_v7, 8  ;;  %v1784_v63 = vadd.s32 3, %v1780_v36 }
 0x22f   : > { %v11429_v49 = vmin.u32 %v1861_v20, %v1859_v37  ;;  %v1935_v4 = vsel %vm1931_vm9, %v1915_v16, %v1918_v32  ;;  %v1945_v3 = vsel %vm1933_vm11, %v1927_v9, %v1944_v53  ;;  %v1937_v50 = vsel %vm1933_vm11, %v1921_v1, %v1936_v11 }
 0x230   : > { %v1946_v54 = vsel %vm1932_vm12, %v1943_v25, %v1945_v3  ;;  %v13996_v39 = vmul.u32.u64.low %v1947_v17, %v1942_v8  ;;  %v13997_v6 = vmul.u32.u64.high %v1947_v17, %v1942_v8, %v13996_v39  ;;  %v1938_v60 = vsel %vm1932_vm12, %v1935_v4, %v1937_v50 }
 0x231   : > { %v1863_v48 = vclz %v11429_v49  ;;  %v13999_v18 = vmul.u32.u64.low %v1947_v17, %v1946_v54  ;;  %v14000_v34 = vmul.u32.u64.high %v1947_v17, %v1946_v54, %v13999_v18  ;;  %v1785_v10 = vand.u32 3, %v1784_v63 }
 0x232   : > { %v1957_v7 = vadd.s32 1, %v13997_v6  ;;  %v1954_v27 = vmul.u32 %v1947_v17, %v1938_v60  ;;  %v1851_v62 = vadd.s32 %v13931_v31, %v13938_v43  ;;  %vm1783_vm4 = vweird.f32 %v13686_v38 }
 0x233   : > { %v11430_v45 = vadd.s32 4294967294, %v1863_v48  ;;  %vm1956_vm14 = vc.u32 %v14000_v34, %v13996_v39  ;;  %vm1790_vm15 = vcmp.eq.s32.totalorder %v1785_v10, 2  ;;  %vm1787_vm0 = vcmp.eq.s32.totalorder %v1785_v10, 0 }
 0x234   : > { %v1958_v29 = vsel %vm1956_vm14, %v1957_v7, %v13997_v6  ;;  %vm1786_vm2 = vcmp.lt.s32.totalorder %v1785_v10, 2  ;;  %vm1797_vm1 = vcmp.lt.s32.totalorder %v13788_v56, 0  ;;  %v1881_v63 = vsub.s32 4, %v13971_v44 }
 0x235   : > { %vm11431_vm13 = vcmp.lt.s32.totalorder %v11430_v45, 0  ;;  %v1959_v1 = vadd.s32 %v1958_v29, %v1954_v27  ;;  %vm1796_vm3 = vcmp.le.f32.partialorder %v1795_v35, 0.7853982  ;;  %v1955_v18 = vadd.s32 %v13996_v39, %v14000_v34 }
 0x236   : > { %v1866_v58 = vsel %vm11431_vm13, 0, %v11430_v45  ;;  %v1882_v50 = vsel %vm1797_vm1, %v1881_v63, %v13971_v44  ;;  %vm1887_vm9 = vweird.f32 %v13788_v56  ;;  %vm1901_vm10 = vcmp.lt.s32.totalorder %v13863_v55, 0 }
 0x237   : > { %v12035_v33 = vpop.eup %12034  ;;  %v1867_v32 = vsub.s32 32, %v1866_v58  ;;  %v1871_v19 = vsub.s32 4294967266, %v1866_v58  ;;  %v1868_v41 = vshll.u32 %v1859_v37, %v1866_v58  ;;  %v1960_v36 = vadd.s32 536870912, %v1959_v1 }
 0x238   : > { %v12037_v14 = vpop.eup %12036  ;;  %v1791_v13 = vxor.u32 2147483648, %v12035_v33  ;;  %v1884_v6 = vsel %vm1796_vm3, 0, %v1882_v50  ;;  %vm1900_vm11 = vcmp.le.f32.partialorder %v1899_v30, 0.7853982 }
 0x239   : > { %v1788_v9 = vxor.u32 2147483648, %v12037_v14  ;;  %v1869_v57 = vshrl.u32 %v1851_v62, %v1867_v32  ;;  %v1872_v28 = vadd.s32 127, %v1871_v19  ;;  %v1961_v43 = vshrl.u32 %v1960_v36, 30 }
 0x23a   : > { %v1792_v61 = vsel %vm1790_vm15, %v1791_v13, %v12037_v14  ;;  %v1888_v10 = vadd.s32 3, %v1884_v6  ;;  %vm1991_vm15 = vweird.f32 %v13863_v55 }
 0x23b   : > { %v1789_v2 = vsel %vm1787_vm0, %v12035_v33, %v1788_v9  ;;  %v1870_v16 = vor.u32 %v1869_v57, %v1868_v41  ;;  %v1873_v40 = vshll.u32 %v1872_v28, 23  ;;  %v1962_v11 = vshll.u32 %v1961_v43, 30 }
 0x23c   : > { %v1793_v31 = vsel %vm1786_vm2, %v1789_v2, %v1792_v61  ;;  %v1889_v62 = vand.u32 3, %v1888_v10  ;;  %v1985_v28 = vsub.s32 4, %v1961_v43 }
 0x23d   : > { %v14009_v51 = vsel %vm1783_vm4, nan, %v1793_v31   ;;  %v1874_v20 = vor.u32 4788187, %v1873_v40  ;;  %v1877_v8 = vcvt.s32.f32 %v1870_v16  ;;  %v1963_v37 = vsub.s32 %v1959_v1, %v1962_v11 }
 0x23e   : > { %vm1894_vm6 = vcmp.eq.s32.totalorder %v1889_v62, 2  ;;  %vm1891_vm7 = vcmp.eq.s32.totalorder %v1889_v62, 0  ;;  %vm1890_vm8 = vcmp.lt.s32.totalorder %v1889_v62, 2  ;;  %v1986_v16 = vsel %vm1901_vm10, %v1985_v28, %v1961_v43 }
 0x23f   : > { %v1875_v46 = vand.u32 2147483647, %v1874_v20  ;;  %v1965_v53 = vsub.s32 0, %v1963_v37  ;;  %v1988_v40 = vsel %vm1900_vm11, 0, %v1986_v16 }
 0x240   : > { %v1992_v31 = vadd.s32 3, %v1988_v40 }
 0x241   : > { %v1878_v25 = vmul.f32 %v1877_v8, %v1875_v46  ;;  %v11433_v49 = vmin.u32 %v1965_v53, %v1963_v37 }
 0x242   : > { %v1993_v20 = vand.u32 3, %v1992_v31 }
 0x243   : > { %v1879_v17 = vxor.u32 2147483648, %v1878_v25  ;;  %v1967_v3 = vclz %v11433_v49 }
 0x244   : > { %vm1998_vm12 = vcmp.eq.s32.totalorder %v1993_v20, 2  ;;  %vm1995_vm13 = vcmp.eq.s32.totalorder %v1993_v20, 0  ;;  %vm1994_vm14 = vcmp.lt.s32.totalorder %v1993_v20, 2 }
 0x245   : > { %v1880_v38 = vsel %vm1797_vm1, %v1879_v17, %v1878_v25  ;;  %v11434_v54 = vadd.s32 4294967294, %v1967_v3 }
 0x246   : > { %v1883_v4 = vsel %vm1796_vm3, %v13788_v56, %v1880_v38 }
 0x247   : > { %12038 = vcosq.f32 %v1883_v4  ;;  %vm11435_vm5 = vcmp.lt.s32.totalorder %v11434_v54, 0 }
 0x248   : > { %12040 = vsinq.f32 %v1883_v4  ;;  %v1970_v48 = vsel %vm11435_vm5, 0, %v11434_v54 }
 0x249   : > { %v1971_v45 = vsub.s32 32, %v1970_v48  ;;  %v1975_v60 = vsub.s32 4294967266, %v1970_v48  ;;  %v1972_v7 = vshll.u32 %v1963_v37, %v1970_v48 }
 0x24b   : > { %v1973_v58 = vshrl.u32 %v1955_v18, %v1971_v45  ;;  %v1976_v35 = vadd.s32 127, %v1975_v60 }
 0x24d   : > { %v1974_v27 = vor.u32 %v1973_v58, %v1972_v7  ;;  %v1977_v33 = vshll.u32 %v1976_v35, 23 }
 0x24f   : > { %v1978_v32 = vor.u32 4788187, %v1977_v33  ;;  %v1981_v44 = vcvt.s32.f32 %v1974_v27 }
 0x251   : > { %v1979_v29 = vand.u32 2147483647, %v1978_v32 }
 0x253   : > { %v1982_v9 = vmul.f32 %v1981_v44, %v1979_v29 }
 0x254   : > { %v12039_v19 = vpop.eup %12038 }
 0x255   : > { %v12041_v14 = vpop.eup %12040  ;;  %v1895_v13 = vxor.u32 2147483648, %v12039_v19  ;;  %v1983_v41 = vxor.u32 2147483648, %v1982_v9 }
 0x256   : > { %v1892_v1 = vxor.u32 2147483648, %v12041_v14 }
 0x257   : > { %v1896_v39 = vsel %vm1894_vm6, %v1895_v13, %v12041_v14  ;;  %v1984_v36 = vsel %vm1901_vm10, %v1983_v41, %v1982_v9 }
 0x258   : > { %v1893_v34 = vsel %vm1891_vm7, %v12039_v19, %v1892_v1  ;;  %v1987_v2 = vsel %vm1900_vm11, %v13863_v55, %v1984_v36 }
 0x259   : > { %v1897_v57 = vsel %vm1890_vm8, %v1893_v34, %v1896_v39  ;;  %12042 = vcosq.f32 %v1987_v2 }
 0x25a   : > { %v1898_v61 = vsel %vm1887_vm9, nan, %v1897_v57   ;;  %12044 = vsinq.f32 %v1987_v2 }
 0x266   : > { %v12043_v11 = vpop.eup %12042 }
 0x267   : > { %v12045_v46 = vpop.eup %12044  ;;  %v1999_v56 = vxor.u32 2147483648, %v12043_v11 }
 0x268   : > { %v1996_v8 = vxor.u32 2147483648, %v12045_v46 }
 0x269   : > { %v2000_v37 = vsel %vm1998_vm12, %v1999_v56, %v12045_v46 }
 0x26a   : > { %v1997_v25 = vsel %vm1995_vm13, %v12043_v11, %v1996_v8 }
 0x26b   : > { %v2001_v30 = vsel %vm1994_vm14, %v1997_v25, %v2000_v37 }
 0x26c   : > { %v2002_v53 = vsel %vm1991_vm15, nan, %v2001_v30  }
 0x26d LB: >> { %v14107_v55 = vand.u32 4294901760, %v12305_v59  ;;  %v14109_v43 = vand.u32 4294901760, %v12309_v26  ;;  %v14111_v17 = vand.u32 4294901760, %v12321_v51  ;;  %v14113_v63 = vand.u32 4294901760, %v12325_v23  ;;  %s11452_s16 = sadd.s32 4294967295, %s12361_s17  ;;  %s11454_s26 = sshll.u32 %s12361_s17, 5  ;;  %s12361_s17 = sphi %s14070_s17, %s2424_s17   ;;  %v12357_v24 = vphi %v13633_v24, %v19536_v24   ;;  %v12353_v0 = vphi %v13715_v0, %v19535_v0   ;;  %v12349_v21 = vphi %v13807_v21, %v19534_v21   ;;  %v12345_v15 = vphi %v13889_v15, %v19533_v15   ;;  %v12341_v52 = vphi %v12997_v52, %v19532_v52   ;;  %v12337_v12 = vphi %v13026_v12, %v19531_v12   ;;  %v12333_v42 = vphi %v13100_v42, %v19530_v42   ;;  %v12329_v47 = vphi %v13182_v47, %v19529_v47   ;;  %v12325_v23 = vphi %v13986_v23, %v19528_v23   ;;  %v12321_v51 = vphi %v14009_v51, %v19527_v51   ;;  %v12317_v61 = vphi %v1898_v61, %v19526_v61   ;;  %v12313_v53 = vphi %v2002_v53, %v19525_v53   ;;  %v12309_v26 = vphi %v13322_v26, %v19524_v26   ;;  %v12305_v59 = vphi %v13401_v59, %v19523_v59   ;;  %v12301_v22 = vphi %v13481_v22, %v19522_v22   ;;  %v12297_v5 = vphi %v13559_v5, %v19521_v5  }
 0x26e   : >> { %s11453_s21 = sshll.u32 %s11452_s16, 5  ;;  %v14129_v4 = vand.u32 4294901760, %v12337_v12  ;;  %v14131_v3 = vand.u32 4294901760, %v12341_v52  ;;  %v14139_v54 = vand.u32 4294901760, %v12353_v0  ;;  %v14158_v10 = vand.u32 4294901760, %v12357_v24  ;;  %s14476_s29 = scalar_lea.vmem %s19131_s4, %s11454_s26 }
 0x26f   : >> { %2512 = vmatprep.subr.mxu0 %v14107_v55  ;;  %v14118_v49 = vsub.f32 %v12305_v59, %v14107_v55  ;;  %v14121_v38 = vsub.f32 %v12309_v26, %v14109_v43  ;;  %s14126_s24 = scalar_lea.vmem %s19130_s3, %s11453_s21  ;;  %v14134_v50 = vsub.f32 %v12321_v51, %v14111_v17  ;;  %v14142_v6 = vsub.f32 %v12325_v23, %v14113_v63  ;;  %s14513_s12 = scalar_lea.vmem %s12495_s25, %s11454_s26 }
 0x270   : >> { %2514 = vmatpush1.msra.mxu0 %v14109_v43  ;;  %v14147_v18 = vsub.f32 %v12337_v12, %v14129_v4  ;;  %v2444_v51 = vld [vmem:[%s14126_s24] sm:$0xff]  ;;  %v12372_v7 = vmov 0.0   ;;  %vm2474_vm0 = vcmask 261120   ;;  %v14167_v35 = vsub.f32 %v12341_v52, %v14131_v3  ;;  %v2445_v27 = vld [vmem:[%s14126_s24 + $0x8] sm:$0xff]  ;;  %v2446_v13 = vld [vmem:[%s14126_s24 + $0x10] sm:$0xff]  ;;  %s2424_s17 = sadd.s32 1, %s12361_s17  }
 0x271   : >> { %2516 = vmatprep.subr.mxu0 %v14111_v17  ;;  %v2630_v26 = vand.u32 4294901760, %v14118_v49  ;;  %v2636_v59 = vand.u32 4294901760, %v14121_v38  ;;  %v2642_v48 = vand.u32 4294901760, %v14134_v50  ;;  %v2648_v60 = vand.u32 4294901760, %v14142_v6  ;;  %2559 = vmatprep.mubr.f32.mxu0 %v12372_v7  ;;  %v2447_v1 = vld [vmem:[%s14126_s24 + $0x18] sm:$0xff]  ;;  %p16050_p5 = scmp.ge.s32.totalorder %s2424_s17, 8  }
 0x272   : >> { %2518 = vmatpush1.msra.mxu0 %v14113_v63  ;;  %v2654_v58 = vand.u32 4294901760, %v14147_v18  ;;  %2708 = vmatprep.mubr.f32.mxu1 %v12372_v7  ;;  %v2476_v19 = vsel %vm2474_vm0, %v2444_v51, 0  ;;  %v2660_v14 = vand.u32 4294901760, %v14167_v35  ;;  %v14186_v39 = vsub.f32 %v12353_v0, %v14139_v54 }
 0x273   : >> { %v2631_v45 = vsub.f32 %v14118_v49, %v2630_v26  ;;  %2520 = vmatprep.subr.mxu0 %v14129_v4  ;;  %v2637_v23 = vsub.f32 %v14121_v38, %v2636_v59  ;;  %v2643_v12 = vsub.f32 %v14134_v50, %v2642_v48  ;;  %v2649_v32 = vsub.f32 %v14142_v6, %v2648_v60 }
 0x274   : >> { %2522 = vmatpush1.msra.mxu0 %v14131_v3  ;;  %v2655_v52 = vsub.f32 %v14147_v18, %v2654_v58  ;;  %v14180_v44 = vand.u32 4294901760, %v2476_v19  ;;  %v14190_v34 = vsub.f32 %v12357_v24, %v14158_v10  ;;  %v2479_v41 = vsel %vm2474_vm0, %v2445_v27, 0 }
 0x275   : >> { %v2632_v33 = vand.u32 4294901760, %v2631_v45  ;;  %v2638_v62 = vand.u32 4294901760, %v2637_v23  ;;  %2524 = vmatprep.subr.mxu0 %v14139_v54  ;;  %v2644_v29 = vand.u32 4294901760, %v2643_v12  ;;  %v2650_v9 = vand.u32 4294901760, %v2649_v32 }
 0x276   : >> { %2526 = vmatpush1.msra.mxu0 %v14158_v10  ;;  %v2656_v57 = vand.u32 4294901760, %v2655_v52  ;;  %v14194_v28 = vsub.f32 %v2476_v19, %v14180_v44  ;;  %v2661_v36 = vsub.f32 %v14167_v35, %v2660_v14  ;;  %v14199_v2 = vand.u32 4294901760, %v2479_v41 }
 0x277   : >> { %2633 = vmatprep.subr.mxu1 %v2632_v33  ;;  %2763 = vmatprep.subr.mxu0 %v14118_v49  ;;  %v2666_v0 = vand.u32 4294901760, %v14186_v39  ;;  %v2672_v16 = vand.u32 4294901760, %v14190_v34  ;;  %v2482_v24 = vsel %vm2474_vm0, %v2446_v13, 0  ;;  %v2485_v40 = vsel %vm2474_vm0, %v2447_v1, 0 }
 0x278   : >> { %2639 = vmatpush1.msra.mxu1 %v2638_v62  ;;  %v14206_v31 = vand.u32 4294901760, %v14194_v28  ;;  %v2662_v20 = vand.u32 4294901760, %v2661_v36  ;;  %v14209_v11 = vsub.f32 %v2479_v41, %v14199_v2  ;;  %v14211_v46 = vand.u32 4294901760, %v2482_v24 }
 0x279   : >> { %2645 = vmatprep.subr.mxu1 %v2644_v29  ;;  %v2667_v56 = vsub.f32 %v14186_v39, %v2666_v0  ;;  %v2673_v8 = vsub.f32 %v14190_v34, %v2672_v16  ;;  %v14219_v37 = vand.u32 4294901760, %v2485_v40  ;;  %v14288_v41 = vand.u32 4294901760, %v12301_v22 }
 0x27a   : >> { %2651 = vmatpush1.msra.mxu1 %v2650_v9  ;;  %v2563_v25 = vsub.f32 %v14194_v28, %v14206_v31  ;;  %v14224_v30 = vand.u32 4294901760, %v14209_v11  ;;  %v14227_v51 = vsub.f32 %v2482_v24, %v14211_v46  ;;  %v14282_v9 = vand.u32 4294901760, %v12297_v5 }
 0x27b   : >> { %2657 = vmatprep.subr.mxu1 %v2656_v57  ;;  %v2668_v45 = vand.u32 4294901760, %v2667_v56  ;;  %v2674_v23 = vand.u32 4294901760, %v2673_v8  ;;  %v14230_v12 = vsub.f32 %v2485_v40, %v14219_v37  ;;  %v12373_v8 = vmov 0  }
 0x27c   : >> { %2663 = vmatpush1.msra.mxu1 %v2662_v20  ;;  %v14232_v27 = vand.u32 4294901760, %v2563_v25  ;;  %v2574_v33 = vsub.f32 %v14209_v11, %v14224_v30  ;;  %v14237_v62 = vand.u32 4294901760, %v14227_v51  ;;  %v14299_v49 = vsub.f32 %v12297_v5, %v14282_v9  ;;  %12046 = vset.pattern.permute.xlu0 %v12373_v8  ;;  %v2453_v25 = vld [vmem:[%s14476_s29 + $0x18] sm:$0xff] }
 0x27d   : >> { %2669 = vmatprep.subr.mxu1 %v2668_v45  ;;  %v14245_v29 = vand.u32 4294901760, %v14230_v12  ;;  %12047 = vset.pattern.permute.xlu1 %v12373_v8  ;;  %v3870_v45 = vld [vmem:[%s14513_s12 + $0x10] sm:$0xff] }
 0x27e   : >> { %2565 = vmatmul.mubr.f32.vlgmr.msra.gmra.mxu0 %v14232_v27  ;;  %2675 = vmatpush1.msra.mxu1 %v2674_v23  ;;  %v14240_v32 = vand.u32 4294901760, %v2574_v33  ;;  %v2585_v19 = vsub.f32 %v14227_v51, %v14237_v62  ;;  %v3320_v5 = vand.u32 4294901760, %v14299_v49  ;;  %v3871_v23 = vld [vmem:[%s14513_s12 + $0x18] sm:$0xff] }
 0x27f   : >> { %2766 = vmatpush1.msra.mxu0 %v14121_v38  ;;  %2570 = vmatprep.mubr.f32.mxu0 %v12372_v7  ;;  %v2596_v13 = vsub.f32 %v14230_v12, %v14245_v29  ;;  %v14309_v38 = vsub.f32 %v12301_v22, %v14288_v41 }
 0x280   : >> { %2710 = vmatmul.mubr.f32.vlgmr.msra.gmra.mxu1 %v14180_v44  ;;  %2875 = vmatprep.subr.mxu1 %v14107_v55  ;;  %v14255_v52 = vand.u32 4294901760, %v2585_v19 }
 0x281   : >> { %2877 = vmatpush1.msra.mxu1 %v14109_v43  ;;  %2769 = vmatprep.subr.mxu0 %v14134_v50  ;;  %v14267_v1 = vand.u32 4294901760, %v2596_v13 }
 0x282   : >> { %2576 = vmatmul.mubr.f32.gmra.mxu0 %v14240_v32  ;;  %2715 = vmatprep.mubr.f32.mxu1 %v12372_v7 }
 0x283   : >> { %2772 = vmatpush1.msra.mxu0 %v14142_v6  ;;  %2581 = vmatprep.mubr.f32.mxu0 %v12372_v7  ;;  %v14356_v6 = vand.u32 4294901760, %v12345_v15 }
 0x284   : >> { %2717 = vmatmul.mubr.f32.gmra.mxu1 %v14199_v2  ;;  %2879 = vmatprep.subr.mxu1 %v14111_v17 }
 0x285   : >> { %2881 = vmatpush1.msra.mxu1 %v14113_v63  ;;  %2775 = vmatprep.subr.mxu0 %v14147_v18 }
 0x286   : >> { %2587 = vmatmul.mubr.f32.gmra.mxu0 %v14255_v52  ;;  %2722 = vmatprep.mubr.f32.mxu1 %v12372_v7 }
 0x287   : >> { %2778 = vmatpush1.msra.mxu0 %v14167_v35  ;;  %2592 = vmatprep.mubr.f32.mxu0 %v12372_v7 }
 0x288   : >> { %2724 = vmatmul.mubr.f32.gmra.mxu1 %v14211_v46  ;;  %2883 = vmatprep.subr.mxu1 %v14129_v4 }
 0x289   : >> { %2885 = vmatpush1.msra.mxu1 %v14131_v3  ;;  %2781 = vmatprep.subr.mxu0 %v14186_v39 }
 0x28a   : >> { %2598 = vmatmul.mubr.f32.gmra.mxu0 %v14267_v1  ;;  %2729 = vmatprep.mubr.f32.mxu1 %v12372_v7 }
 0x28b   : >> { %2784 = vmatpush1.msra.mxu0 %v14190_v34  ;;  %2817 = vmatprep.mubr.f32.mxu0 %v12372_v7 }
 0x28c   : >> { %2731 = vmatmul.mubr.f32.gmra.mxu1 %v14219_v37  ;;  %2887 = vmatprep.subr.mxu1 %v14139_v54 }
 0x28d   : >> { %2889 = vmatpush1.msra.mxu1 %v14158_v10  ;;  %2986 = vmatprep.subr.mxu0 %v2630_v26  ;;  %v14302_v26 = vand.u32 4294901760, %v12313_v53 }
 0x28e   : >> { %2820 = vmatmul.mubr.f32.vlgmr.msra.gmra.mxu0 %v14194_v28  ;;  %2922 = vmatprep.mubr.f32.mxu1 %v12372_v7 }
 0x28f   : >> { %2990 = vmatpush1.msra.mxu0 %v2636_v59  ;;  %2825 = vmatprep.mubr.f32.mxu0 %v12372_v7  ;;  %v14312_v59 = vand.u32 4294901760, %v12317_v61  ;;  %v14324_v22 = vsub.f32 %v12313_v53, %v14302_v26 }
 0x290   : >> { %2926 = vmatmul.mubr.f32.vlgmr.msra.gmra.mxu1 %v14206_v31  ;;  %3101 = vmatprep.subr.mxu1 %v14107_v55  ;;  %v14327_v55 = vand.u32 4294901760, %v12329_v47 }
 0x291   : >> { %3103 = vmatpush1.msra.mxu1 %v14109_v43  ;;  %2994 = vmatprep.subr.mxu0 %v2642_v48  ;;  %v3326_v43 = vand.u32 4294901760, %v14309_v38  ;;  %v14335_v50 = vsub.f32 %v12317_v61, %v14312_v59  ;;  %v3321_v61 = vsub.f32 %v14299_v49, %v3320_v5  ;;  %v3332_v53 = vand.u32 4294901760, %v14324_v22 }
 0x292   : >> { %2828 = vmatmul.mubr.f32.gmra.mxu0 %v14209_v11  ;;  %2931 = vmatprep.mubr.f32.mxu1 %v12372_v7 }
 0x293   : >> { %2998 = vmatpush1.msra.mxu0 %v2648_v60  ;;  %2833 = vmatprep.mubr.f32.mxu0 %v12372_v7  ;;  %v3338_v48 = vand.u32 4294901760, %v14335_v50 }
 0x294   : >> { %2935 = vmatmul.mubr.f32.gmra.mxu1 %v14224_v30  ;;  %3105 = vmatprep.subr.mxu1 %v14111_v17  ;;  %v14338_v17 = vand.u32 4294901760, %v12333_v42 }
 0x295   : >> { %3107 = vmatpush1.msra.mxu1 %v14113_v63  ;;  %3002 = vmatprep.subr.mxu0 %v2654_v58  ;;  %v14353_v63 = vsub.f32 %v12329_v47, %v14327_v55  ;;  %v14370_v47 = vand.u32 4294901760, %v12349_v21  ;;  %v14385_v58 = vsub.f32 %v12345_v15, %v14356_v6 }
 0x296   : >> { %2836 = vmatmul.mubr.f32.gmra.mxu0 %v14227_v51  ;;  %2940 = vmatprep.mubr.f32.mxu1 %v12372_v7  ;;  %v14367_v18 = vsub.f32 %v12333_v42, %v14338_v17  ;;  %v3333_v42 = vsub.f32 %v14324_v22, %v3332_v53 }
 0x297   : >> { %3006 = vmatpush1.msra.mxu0 %v2660_v14  ;;  %2841 = vmatprep.mubr.f32.mxu0 %v12372_v7  ;;  %v3344_v60 = vand.u32 4294901760, %v14353_v63  ;;  %v14395_v39 = vsub.f32 %v12349_v21, %v14370_v47  ;;  %v3356_v34 = vand.u32 4294901760, %v14385_v58 }
 0x298   : >> { %2944 = vmatmul.mubr.f32.gmra.mxu1 %v14237_v62  ;;  %3109 = vmatprep.subr.mxu1 %v14129_v4  ;;  %v3327_v4 = vsub.f32 %v14309_v38, %v3326_v43  ;;  %v3350_v14 = vand.u32 4294901760, %v14367_v18  ;;  %v3334_v15 = vand.u32 4294901760, %v3333_v42 }
 0x299   : >> { %3111 = vmatpush1.msra.mxu1 %v14131_v3  ;;  %3010 = vmatprep.subr.mxu0 %v2666_v0  ;;  %v3322_v3 = vand.u32 4294901760, %v3321_v61  ;;  %v3362_v36 = vand.u32 4294901760, %v14395_v39 }
 0x29a   : >> { %2844 = vmatmul.mubr.f32.gmra.mxu0 %v14230_v12  ;;  %2949 = vmatprep.mubr.f32.mxu1 %v12372_v7  ;;  %v3328_v35 = vand.u32 4294901760, %v3327_v4  ;;  %v3351_v57 = vsub.f32 %v14367_v18, %v3350_v14 }
 0x29b   : >> { %3014 = vmatpush1.msra.mxu0 %v2672_v16  ;;  %3047 = vmatprep.mubr.f32.mxu0 %v12372_v7  ;;  %v3357_v16 = vsub.f32 %v14385_v58, %v3356_v34  ;;  %v3363_v40 = vsub.f32 %v14395_v39, %v3362_v36 }
 0x29c   : >> { %2953 = vmatmul.mubr.f32.gmra.mxu1 %v14245_v29  ;;  %3113 = vmatprep.subr.mxu1 %v14139_v54  ;;  %v3339_v54 = vsub.f32 %v14335_v50, %v3338_v48  ;;  %v3352_v24 = vand.u32 4294901760, %v3351_v57 }
 0x29d   : >> { %3115 = vmatpush1.msra.mxu1 %v14158_v10  ;;  %3202 = vmatprep.subr.mxu0 %v14282_v9  ;;  %v3345_v10 = vsub.f32 %v14353_v63, %v3344_v60  ;;  %v3358_v20 = vand.u32 4294901760, %v3357_v16  ;;  %v3364_v56 = vand.u32 4294901760, %v3363_v40 }
 0x29e   : >> { %3049 = vmatmul.mubr.f32.vlgmr.msra.gmra.mxu0 %v14180_v44  ;;  %3148 = vmatprep.mubr.f32.mxu1 %v12372_v7  ;;  %v3340_v21 = vand.u32 4294901760, %v3339_v54 }
 0x29f   : >> { %3204 = vmatpush1.msra.mxu0 %v14288_v41  ;;  %3054 = vmatprep.mubr.f32.mxu0 %v12372_v7  ;;  %v3346_v0 = vand.u32 4294901760, %v3345_v10 }
 0x2a0   : >> { %3150 = vmatmul.mubr.f32.vlgmr.msra.gmra.mxu1 %v14180_v44  ;;  %3323 = vmatprep.subr.mxu1 %v3322_v3 }
 0x2a1   : >> { %3329 = vmatpush1.msra.mxu1 %v3328_v35  ;;  %3206 = vmatprep.subr.mxu0 %v14302_v26 }
 0x2a2   : >> { %3056 = vmatmul.mubr.f32.gmra.mxu0 %v14199_v2  ;;  %3155 = vmatprep.mubr.f32.mxu1 %v12372_v7 }
 0x2a3   : >> { %3208 = vmatpush1.msra.mxu0 %v14312_v59  ;;  %3061 = vmatprep.mubr.f32.mxu0 %v12372_v7 }
 0x2a4   : >> { %3157 = vmatmul.mubr.f32.gmra.mxu1 %v14199_v2  ;;  %3335 = vmatprep.subr.mxu1 %v3334_v15 }
 0x2a5   : >> { %3341 = vmatpush1.msra.mxu1 %v3340_v21  ;;  %3210 = vmatprep.subr.mxu0 %v14327_v55 }
 0x2a6   : >> { %3063 = vmatmul.mubr.f32.gmra.mxu0 %v14211_v46  ;;  %3162 = vmatprep.mubr.f32.mxu1 %v12372_v7 }
 0x2a7   : >> { %3212 = vmatpush1.msra.mxu0 %v14338_v17  ;;  %3068 = vmatprep.mubr.f32.mxu0 %v12372_v7 }
 0x2a8   : >> { %3164 = vmatmul.mubr.f32.gmra.mxu1 %v14211_v46  ;;  %3347 = vmatprep.subr.mxu1 %v3346_v0 }
 0x2a9   : >> { %3353 = vmatpush1.msra.mxu1 %v3352_v24  ;;  %3214 = vmatprep.subr.mxu0 %v14356_v6 }
 0x2aa   : >> { %3070 = vmatmul.mubr.f32.gmra.mxu0 %v14219_v37  ;;  %3169 = vmatprep.mubr.f32.mxu1 %v12372_v7 }
 0x2ab   : >> { %3216 = vmatpush1.msra.mxu0 %v14370_v47  ;;  %3249 = vmatprep.mubr.f32.mxu0 %v12372_v7 }
 0x2ac   : >> { %3171 = vmatmul.mubr.f32.gmra.mxu1 %v14219_v37  ;;  %3359 = vmatprep.subr.mxu1 %v3358_v20 }
 0x2ad   : >> { %3365 = vmatpush1.msra.mxu1 %v3364_v56  ;;  %3453 = vmatprep.subr.mxu0 %v14299_v49 }
 0x2ae   : >> { %3255 = vmatmul.mubr.f32.vlgmr.msra.gmra.mxu0 %v14232_v27  ;;  %3398 = vmatprep.mubr.f32.mxu1 %v12372_v7  ;;  %v11459_v27 = vld [vmem:[%s14513_s12 + $0x138] sm:$0xff] }
 0x2af   : >> { %3456 = vmatpush1.msra.mxu0 %v14309_v38  ;;  %3260 = vmatprep.mubr.f32.mxu0 %v12372_v7 }
 0x2b0   : >> { %3400 = vmatmul.mubr.f32.vlgmr.msra.gmra.mxu1 %v14180_v44  ;;  %3565 = vmatprep.subr.mxu1 %v14282_v9 }
 0x2b1   : >> { %3567 = vmatpush1.msra.mxu1 %v14288_v41  ;;  %3459 = vmatprep.subr.mxu0 %v14324_v22 }
 0x2b2   : >> { %3266 = vmatmul.mubr.f32.gmra.mxu0 %v14240_v32  ;;  %3405 = vmatprep.mubr.f32.mxu1 %v12372_v7 }
 0x2b3   : >> { %3462 = vmatpush1.msra.mxu0 %v14335_v50  ;;  %3271 = vmatprep.mubr.f32.mxu0 %v12372_v7 }
 0x2b4   : >> { %3407 = vmatmul.mubr.f32.gmra.mxu1 %v14199_v2  ;;  %3569 = vmatprep.subr.mxu1 %v14302_v26 }
 0x2b5   : >> { %3571 = vmatpush1.msra.mxu1 %v14312_v59  ;;  %3465 = vmatprep.subr.mxu0 %v14353_v63 }
 0x2b6   : >> { %3277 = vmatmul.mubr.f32.gmra.mxu0 %v14255_v52  ;;  %3412 = vmatprep.mubr.f32.mxu1 %v12372_v7 }
 0x2b7   : >> { %3468 = vmatpush1.msra.mxu0 %v14367_v18  ;;  %3282 = vmatprep.mubr.f32.mxu0 %v12372_v7 }
 0x2b8   : >> { %3414 = vmatmul.mubr.f32.gmra.mxu1 %v14211_v46  ;;  %3573 = vmatprep.subr.mxu1 %v14327_v55 }
 0x2b9   : >> { %3575 = vmatpush1.msra.mxu1 %v14338_v17  ;;  %3471 = vmatprep.subr.mxu0 %v14385_v58 }
 0x2ba   : >> { %3288 = vmatmul.mubr.f32.gmra.mxu0 %v14267_v1  ;;  %3419 = vmatprep.mubr.f32.mxu1 %v12372_v7 }
 0x2bb   : >> { %3474 = vmatpush1.msra.mxu0 %v14395_v39  ;;  %3507 = vmatprep.mubr.f32.mxu0 %v12372_v7 }
 0x2bc   : >> { %3421 = vmatmul.mubr.f32.gmra.mxu1 %v14219_v37  ;;  %3577 = vmatprep.subr.mxu1 %v14356_v6 }
 0x2bd   : >> { %3579 = vmatpush1.msra.mxu1 %v14370_v47  ;;  %3676 = vmatprep.subr.mxu0 %v3320_v5 }
 0x2be   : >> { %3510 = vmatmul.mubr.f32.vlgmr.msra.gmra.mxu0 %v14194_v28  ;;  %3612 = vmatprep.mubr.f32.mxu1 %v12372_v7  ;;  %v2450_v28 = vld [vmem:[%s14476_s29] sm:$0xff] }
 0x2bf   : >> { %3680 = vmatpush1.msra.mxu0 %v3326_v43  ;;  %3515 = vmatprep.mubr.f32.mxu0 %v12372_v7 }
 0x2c0   : >> { %3616 = vmatmul.mubr.f32.vlgmr.msra.gmra.mxu1 %v14206_v31  ;;  %3791 = vmatprep.subr.mxu1 %v14282_v9  ;;  %v2451_v31 = vld [vmem:[%s14476_s29 + $0x8] sm:$0xff] }
 0x2c1   : >> { %3793 = vmatpush1.msra.mxu1 %v14288_v41  ;;  %3684 = vmatprep.subr.mxu0 %v3332_v53 }
 0x2c2   : >> { %3518 = vmatmul.mubr.f32.gmra.mxu0 %v14209_v11  ;;  %3621 = vmatprep.mubr.f32.mxu1 %v12372_v7  ;;  %v2452_v11 = vld [vmem:[%s14476_s29 + $0x10] sm:$0xff] }
 0x2c3   : >> { %3688 = vmatpush1.msra.mxu0 %v3338_v48  ;;  %2456 = vperm.xlu0 %12046, %v2450_v28  }
 0x2c4   : >> { %3523 = vmatprep.mubr.f32.mxu0 %v12372_v7  ;;  %3625 = vmatmul.mubr.f32.gmra.mxu1 %v14224_v30  ;;  %v3868_v30 = vld [vmem:[%s14513_s12] sm:$0xff] }
 0x2c5   : >> { %3795 = vmatprep.subr.mxu1 %v14302_v26  ;;  %3692 = vmatprep.subr.mxu0 %v3344_v60 }
 0x2c6   : >> { %3526 = vmatmul.mubr.f32.gmra.mxu0 %v14227_v51  ;;  %3797 = vmatpush1.msra.mxu1 %v14312_v59  ;;  %v3869_v51 = vld [vmem:[%s14513_s12 + $0x8] sm:$0xff] }
 0x2c7   : >> { %3630 = vmatprep.mubr.f32.mxu1 %v12372_v7  ;;  %3696 = vmatpush1.msra.mxu0 %v3350_v14 }
 0x2c8   : >> { %2461 = vperm.xlu0 %12046, %v2451_v31   ;;  %3531 = vmatprep.mubr.f32.mxu0 %v12372_v7 }
 0x2c9   : >> { %3634 = vmatmul.mubr.f32.gmra.mxu1 %v14237_v62  ;;  %3799 = vmatprep.subr.mxu1 %v14327_v55 }
 0x2ca   : >> { %3534 = vmatmul.mubr.f32.gmra.mxu0 %v14230_v12  ;;  %3801 = vmatpush1.msra.mxu1 %v14338_v17  ;;  %v11457_v12 = vld [vmem:[%s14513_s12 + $0x128] sm:$0xff] }
 0x2cb   : >> { %3700 = vmatprep.subr.mxu0 %v3356_v34  ;;  %3639 = vmatprep.mubr.f32.mxu1 %v12372_v7 }
 0x2cc   : >> { %3704 = vmatpush1.msra.mxu0 %v3362_v36  ;;  %2466 = vperm.xlu1 %12047, %v2452_v11  }
 0x2cd   : >> { %3643 = vmatmul.mubr.f32.gmra.mxu1 %v14245_v29  ;;  %3737 = vmatprep.mubr.f32.mxu0 %v12372_v7 }
 0x2ce   : >> { %3803 = vmatprep.subr.mxu1 %v14356_v6  ;;  %3739 = vmatmul.mubr.f32.vlgmr.msra.gmra.mxu0 %v14180_v44 }
 0x2cf   : >> { %3805 = vmatpush1.msra.mxu1 %v14370_v47  ;;  %3838 = vmatprep.mubr.f32.mxu1 %v12372_v7 }
 0x2d0   : >> { %2471 = vperm.xlu1 %12047, %v2453_v25   ;;  %3744 = vmatprep.mubr.f32.mxu0 %v12372_v7 }
 0x2d1   : >> { %3840 = vmatmul.mubr.f32.vlgmr.msra.gmra.mxu1 %v14180_v44  ;;  %3874 = vperm.xlu0 %12046, %v3868_v30   ;;  %v11456_v44 = vld [vmem:[%s14513_s12 + $0x120] sm:$0xff] }
 0x2d2   : >> { %3746 = vmatmul.mubr.f32.gmra.mxu0 %v14199_v2  ;;  %3845 = vmatprep.mubr.f32.mxu1 %v12372_v7 }
 0x2d3   : >> { %3751 = vmatprep.mubr.f32.mxu0 %v12372_v7 }
 0x2d4   : >> { %3879 = vperm.xlu1 %12047, %v3869_v51  }
 0x2d5   : >> { %3847 = vmatmul.mubr.f32.gmra.mxu1 %v14199_v2  ;;  %3884 = vperm.xlu0 %12046, %v3870_v45   ;;  %v11458_v2 = vld [vmem:[%s14513_s12 + $0x130] sm:$0xff] }
 0x2d6   : >> { %3753 = vmatmul.mubr.f32.gmra.mxu0 %v14211_v46  ;;  %3852 = vmatprep.mubr.f32.mxu1 %v12372_v7 }
 0x2d7   : >> { %3758 = vmatprep.mubr.f32.mxu0 %v12372_v7 }
 0x2d8   : >> { %3889 = vperm.xlu1 %12047, %v3871_v23  }
 0x2d9   : >> { %3854 = vmatmul.mubr.f32.gmra.mxu1 %v14211_v46  ;;  %3917 = vperm.xlu0 %12046, %v11456_v44  }
 0x2da   : >> { %3760 = vmatmul.mubr.f32.gmra.mxu0 %v14219_v37  ;;  %3859 = vmatprep.mubr.f32.mxu1 %v12372_v7 }
 0x2dc   : >> { %3922 = vperm.xlu1 %12047, %v11457_v12  }
 0x2dd   : >> { %3861 = vmatmul.mubr.f32.gmra.mxu1 %v14219_v37  ;;  %3927 = vperm.xlu0 %12046, %v11458_v2  }
 0x2e0   : >> { %3932 = vperm.xlu1 %12047, %v11459_v27  }
 0x33e   : >> { %v2566_v33 = vpop.f32.mrf.mxu0  ;;  %v14546_v62 = vpop.permute.xlu0 %2456 }
 0x33f   : >> { %v2567_v19 = vadd.f32 %v2566_v33, %v14546_v62 }
 0x340   : >> { %v2568_v32 = vpop.f32.mrf.mxu0  ;;  %v2711_v46 = vpop.f32.mrf.mxu1 }
 0x341   : >> { %v2569_v29 = vadd.f32 %v2568_v32, %v14546_v62  ;;  %v2712_v52 = vadd.f32 %v2711_v46, %v2567_v19 }
 0x342   : >> { %v2577_v13 = vpop.f32.mrf.mxu0  ;;  %v2713_v1 = vpop.f32.mrf.mxu1 }
 0x343   : >> { %v2714_v7 = vadd.f32 %v2713_v1, %v2569_v29  ;;  %v14550_v9 = vpop.permute.xlu0 %2461 }
 0x344   : >> { %v2579_v41 = vpop.f32.mrf.mxu0  ;;  %v2578_v37 = vadd.f32 %v2577_v13, %v14550_v9  ;;  %v2718_v49 = vpop.f32.mrf.mxu1 }
 0x345   : >> { %v2580_v26 = vadd.f32 %v2579_v41, %v14550_v9 }
 0x346   : >> { %v2719_v38 = vadd.f32 %v2718_v49, %v2578_v37  ;;  %v2588_v59 = vpop.f32.mrf.mxu0  ;;  %v2720_v5 = vpop.f32.mrf.mxu1 }
 0x347   : >> { %v2721_v22 = vadd.f32 %v2720_v5, %v2580_v26  ;;  %v14554_v55 = vpop.permute.xlu1 %2466 }
 0x348   : >> { %v2590_v43 = vpop.f32.mrf.mxu0  ;;  %v2589_v17 = vadd.f32 %v2588_v59, %v14554_v55  ;;  %v2725_v61 = vpop.f32.mrf.mxu1 }
 0x349   : >> { %v2591_v50 = vadd.f32 %v2590_v43, %v14554_v55 }
 0x34a   : >> { %v2599_v53 = vpop.f32.mrf.mxu0  ;;  %v2726_v63 = vadd.f32 %v2725_v61, %v2589_v17  ;;  %v2727_v6 = vpop.f32.mrf.mxu1 }
 0x34b   : >> { %v2728_v4 = vadd.f32 %v2727_v6, %v2591_v50  ;;  %v14558_v48 = vpop.permute.xlu1 %2471 }
 0x34c   : >> { %v2601_v18 = vpop.f32.mrf.mxu0  ;;  %v2600_v3 = vadd.f32 %v2599_v53, %v14558_v48  ;;  %v2732_v42 = vpop.f32.mrf.mxu1 }
 0x34d   : >> { %v2602_v47 = vadd.f32 %v2601_v18, %v14558_v48  ;;  %v14566_v31 = vpop.permute.xlu0 %3874 }
 0x34e   : >> { %v2821_v60 = vpop.f32.mrf.mxu0  ;;  %v14562_v58 = vadd.f32 %v2732_v42, %v2600_v3  ;;  %v2734_v54 = vpop.f32.mrf.mxu1 }
 0x34f   : >> { %v2822_v35 = vadd.f32 %v2821_v60, %v2712_v52  ;;  %v14564_v14 = vadd.f32 %v2734_v54, %v2602_v47  ;;  %v14576_v27 = vpop.permute.xlu1 %3879 }
 0x350   : >> { %v2823_v39 = vpop.f32.mrf.mxu0  ;;  %v2927_v10 = vpop.f32.mrf.mxu1 }
 0x351   : >> { %v2824_v15 = vadd.f32 %v2823_v39, %v2714_v7  ;;  %v2928_v34 = vadd.f32 %v2927_v10, %v2822_v35  ;;  %v14580_v32 = vpop.permute.xlu0 %3884 }
 0x352   : >> { %v2829_v21 = vpop.f32.mrf.mxu0  ;;  %v2929_v36 = vpop.f32.mrf.mxu1  ;;  %19443 = vst [vmem:[#allocation8_spill] sm:$0xff] %v14580_v32 }
 0x353   : >> { %v2830_v57 = vadd.f32 %v2829_v21, %v2719_v38  ;;  %v2930_v0 = vadd.f32 %v2929_v36, %v2824_v15  ;;  %v14584_v37 = vpop.permute.xlu1 %3889 }
 0x354   : >> { %v2831_v16 = vpop.f32.mrf.mxu0  ;;  %v2936_v40 = vpop.f32.mrf.mxu1  ;;  %19444 = vst [vmem:[#allocation9_spill] sm:$0xff] %v14584_v37 }
 0x355   : >> { %v2832_v24 = vadd.f32 %v2831_v16, %v2721_v22  ;;  %v2937_v20 = vadd.f32 %v2936_v40, %v2830_v57  ;;  %v14586_v38 = vpop.permute.xlu0 %3917 }
 0x356   : >> { %v2837_v56 = vpop.f32.mrf.mxu0  ;;  %v2938_v8 = vpop.f32.mrf.mxu1 }
 0x357   : >> { %v2838_v28 = vadd.f32 %v2837_v56, %v2726_v63  ;;  %v2939_v11 = vadd.f32 %v2938_v8, %v2832_v24  ;;  %v14599_v3 = vpop.permute.xlu1 %3922 }
 0x358   : >> { %v2839_v25 = vpop.f32.mrf.mxu0  ;;  %v2945_v51 = vpop.f32.mrf.mxu1  ;;  %19445 = vst [vmem:[#allocation10_spill] sm:$0xff] %v14599_v3 }
 0x359   : >> { %v2840_v30 = vadd.f32 %v2839_v25, %v2728_v4  ;;  %v14568_v45 = vadd.f32 %v2945_v51, %v2838_v28 }
 0x35a   : >> { %v14570_v23 = vpop.f32.mrf.mxu0  ;;  %v2947_v44 = vpop.f32.mrf.mxu1 }
 0x35b   : >> { %v14572_v12 = vadd.f32 %v2947_v44, %v2840_v30 }
 0x35c   : >> { %v14574_v2 = vpop.f32.mrf.mxu0  ;;  %v14578_v33 = vpop.f32.mrf.mxu1 }
 0x35e   : >> { %v3050_v19 = vpop.f32.mrf.mxu0  ;;  %v14582_v29 = vpop.f32.mrf.mxu1 }
 0x35f   : >> { %v3051_v46 = vadd.f32 %v3050_v19, %v2928_v34  ;;  %v19183_v19 = vmov 683565275  }
 0x360   : >> { %v3052_v52 = vpop.f32.mrf.mxu0  ;;  %v3151_v1 = vpop.f32.mrf.mxu1 }
 0x361   : >> { %v3053_v13 = vadd.f32 %v3052_v52, %v2930_v0  ;;  %v3152_v7 = vadd.f32 %v3151_v1, %v3051_v46  ;;  %v19189_v52 = vmov 2475754826   ;;  %v19187_v1 = vmov 2131351028  }
 0x362   : >> { %v3057_v41 = vpop.f32.mrf.mxu0  ;;  %v3153_v26 = vpop.f32.mrf.mxu1 }
 0x363   : >> { %v3058_v49 = vadd.f32 %v3057_v41, %v2937_v20  ;;  %v3892_v59 = vmul.f32 %v14566_v31, %v3152_v7  ;;  %v3154_v5 = vadd.f32 %v3153_v26, %v3053_v13  ;;  %v19191_v41 = vmov 2102212464  }
 0x364   : >> { %v3059_v22 = vpop.f32.mrf.mxu0  ;;  %v3158_v43 = vpop.f32.mrf.mxu1  ;;  %v19180_v26 = vmov 920167782  }
 0x365   : >> { %v3893_v50 = vmul.f32 %v14566_v31, %v3154_v5  ;;  %v3060_v17 = vadd.f32 %v3059_v22, %v2939_v11  ;;  %v14591_v61 = vadd.f32 %v14586_v38, %v3892_v59  ;;  %v3159_v53 = vadd.f32 %v3158_v43, %v3058_v49 }
 0x366   : >> { %v3160_v63 = vpop.f32.mrf.mxu1 }
 0x367   : >> { %v14594_v6 = vadd.f32 %v14586_v38, %v3893_v50  ;;  %v3951_v4 = vand.u32 2147483647, %v14591_v61  ;;  %v3954_v18 = vand.u32 2139095040, %v14591_v61  ;;  %v3896_v47 = vmul.f32 %v14576_v27, %v3159_v53 }
 0x368   : >> { %v3161_v60 = vadd.f32 %v3160_v63, %v3060_v17  ;;  %v19178_v53 = vmov 1326507024   ;;  %vm3953_vm14 = vcmp.lt.s32.totalorder %v14591_v61, 0 }
 0x369   : >> { %v3955_v42 = vshrl.u32 %v3954_v18, 23  ;;  %v3958_v35 = vand.u32 8388607, %v3951_v4  ;;  %v4055_v54 = vand.u32 2147483647, %v14594_v6  ;;  %v4058_v39 = vand.u32 2139095040, %v14594_v6 }
 0x36a   : >> { %v14606_v10 = vadd.f32 %v14599_v3, %v3896_v47  ;;  %v3897_v36 = vmul.f32 %v14576_v27, %v3161_v60  ;;  %vm14714_vm15 = vcmp.le.f32.partialorder %v3951_v4, 0.7853982 }
 0x36b   : >> { %v11460_v15 = vadd.s32 4294967169, %v3955_v42  ;;  %v4059_v34 = vshrl.u32 %v4058_v39, 23  ;;  %v4062_v21 = vand.u32 8388607, %v4055_v54  ;;  %v3959_v0 = vor.u32 8388608, %v3958_v35 }
 0x36c   : >> { %v4370_v40 = vand.u32 2139095040, %v14606_v10  ;;  %v14617_v30 = vadd.f32 %v14599_v3, %v3897_v36 }
 0x36d   : >> { %v3961_v57 = vadd.s32 1, %v11460_v15  ;;  %v11464_v16 = vadd.s32 4294967169, %v4059_v34  ;;  %v4063_v24 = vor.u32 8388608, %v4062_v21  ;;  %v14612_v11 = vshll.u32 %v3959_v0, 8 }
 0x36e   : >> { %v4371_v51 = vshrl.u32 %v4370_v40, 23 }
 0x36f   : >> { %vm3962_vm2 = vcmp.gt.s32.totalorder %v3961_v57, 0  ;;  %v4065_v56 = vadd.s32 1, %v11464_v16  ;;  %v14614_v25 = vshll.u32 %v4063_v24, 8 }
 0x370   : >> { %v3963_v20 = vsel %vm3962_vm2, %v3961_v57, 0 }
 0x371   : >> { %v3964_v28 = vshrl.u32 %v3963_v20, 5  ;;  %v3965_v8 = vand.u32 31, %v3963_v20  ;;  %vm4066_vm4 = vcmp.gt.s32.totalorder %v4065_v56, 0 }
 0x372   : >> { %v4067_v60 = vsel %vm4066_vm4, %v4065_v56, 0 }
 0x373   : >> { %v3966_v44 = vsub.s32 32, %v3965_v8  ;;  %v3968_v46 = vshll.u32 %v19183_v19, %v3965_v8  ;;  %v3971_v13 = vshll.u32 %v19189_v52, %v3965_v8  ;;  %v3974_v7 = vshll.u32 %v19187_v1, %v3965_v8 }
 0x374   : >> { %v3977_v49 = vshll.u32 %v19191_v41, %v3965_v8  ;;  %v3980_v59 = vshll.u32 %v19180_v26, %v3965_v8  ;;  %vm3983_vm1 = vcmp.lt.s32.totalorder %v3964_v28, 1  ;;  %vm3984_vm3 = vcmp.lt.s32.totalorder %v3964_v28, 2 }
 0x375   : >> { %v3969_v5 = vshrl.u32 %v19189_v52, %v3966_v44  ;;  %v3972_v22 = vshrl.u32 %v19187_v1, %v3966_v44  ;;  %v3975_v43 = vshrl.u32 %v19191_v41, %v3966_v44  ;;  %v3967_v50 = vshrl.u32 %v19183_v19, %v3966_v44 }
 0x376   : >> { %v3978_v17 = vshrl.u32 %v19180_v26, %v3966_v44  ;;  %v3981_v63 = vshrl.u32 %v19178_v53, %v3966_v44  ;;  %vm3985_vm5 = vcmp.lt.s32.totalorder %v3964_v28, 3  ;;  %vm3986_vm6 = vcmp.lt.s32.totalorder %v3964_v28, 4 }
 0x377   : >> { %v3970_v18 = vor.u32 %v3969_v5, %v3968_v46  ;;  %v3973_v47 = vor.u32 %v3972_v22, %v3971_v13  ;;  %v3976_v42 = vor.u32 %v3975_v43, %v3974_v7  ;;  %v4069_v15 = vand.u32 31, %v4067_v60 }
 0x378   : >> { %v3979_v35 = vor.u32 %v3978_v17, %v3977_v49  ;;  %v3982_v39 = vor.u32 %v3981_v63, %v3980_v59  ;;  %v11476_v44 = vadd.s32 4294967169, %v4371_v51  ;;  %v4068_v7 = vshrl.u32 %v4067_v60, 5 }
 0x379   : >> { %v3987_v34 = vsel %vm3983_vm1, %v3967_v50, %v3970_v18  ;;  %v3988_v21 = vsel %vm3986_vm6, %v3976_v42, 2102212464  ;;  %v3991_v57 = vsel %vm3983_vm1, %v3970_v18, %v3973_v47  ;;  %v3995_v36 = vsel %vm3983_vm1, %v3973_v47, %v3976_v42 }
 0x37a   : >> { %v3989_v0 = vsel %vm3985_vm5, %v3973_v47, %v3988_v21  ;;  %v3992_v16 = vsel %vm3986_vm6, %v3979_v35, 920167782  ;;  %v3996_v24 = vsel %vm3986_vm6, %v3982_v39, 1326507024  ;;  %v4070_v40 = vsub.s32 32, %v4069_v15 }
 0x37b   : >> { %v3990_v20 = vsel %vm3984_vm3, %v3987_v34, %v3989_v0  ;;  %v3993_v56 = vsel %vm3985_vm5, %v3976_v42, %v3992_v16  ;;  %v3997_v8 = vsel %vm3985_vm5, %v3979_v35, %v3996_v24  ;;  %v4072_v49 = vshll.u32 %v19183_v19, %v4069_v15 }
 0x37c   : >> { %v3994_v46 = vsel %vm3984_vm3, %v3991_v57, %v3993_v56  ;;  %v3998_v13 = vsel %vm3984_vm3, %v3995_v36, %v3997_v8  ;;  %v4006_v50 = vmul.u32 %v14612_v11, %v3990_v20  ;;  %v4073_v51 = vshrl.u32 %v19189_v52, %v4070_v40 }
 0x37d   : >> { %v14642_v59 = vmul.u32.u64.low %v14612_v11, %v3998_v13  ;;  %v14643_v5 = vmul.u32.u64.high %v14612_v11, %v3998_v13, %v14642_v59  ;;  %v14646_v22 = vmul.u32.u64.low %v14612_v11, %v3994_v46  ;;  %v14647_v43 = vmul.u32.u64.high %v14612_v11, %v3994_v46, %v14646_v22 }
 0x37e   : >> { %v4075_v17 = vshll.u32 %v19189_v52, %v4069_v15  ;;  %v4076_v28 = vshrl.u32 %v19187_v1, %v4070_v40  ;;  %v4078_v63 = vshll.u32 %v19187_v1, %v4069_v15  ;;  %v4079_v18 = vshrl.u32 %v19191_v41, %v4070_v40 }
 0x37f   : >> { %v4081_v47 = vshll.u32 %v19191_v41, %v4069_v15  ;;  %v4082_v42 = vshrl.u32 %v19180_v26, %v4070_v40  ;;  %v4074_v60 = vor.u32 %v4073_v51, %v4072_v49  ;;  %v4084_v39 = vshll.u32 %v19180_v26, %v4069_v15 }
 0x380   : >> { %v4077_v35 = vor.u32 %v4076_v28, %v4075_v17  ;;  %v4085_v11 = vshrl.u32 %v19178_v53, %v4070_v40  ;;  %vm4008_vm7 = vc.u32 %v14643_v5, %v14646_v22  ;;  %v4009_v34 = vadd.s32 1, %v14647_v43 }
 0x381   : >> { %v4071_v21 = vshrl.u32 %v19183_v19, %v4070_v40  ;;  %v4080_v57 = vor.u32 %v4079_v18, %v4078_v63  ;;  %v4083_v36 = vor.u32 %v4082_v42, %v4081_v47  ;;  %vm4087_vm8 = vcmp.lt.s32.totalorder %v4068_v7, 1 }
 0x382   : >> { %v4086_v0 = vor.u32 %v4085_v11, %v4084_v39  ;;  %vm4088_vm9 = vcmp.lt.s32.totalorder %v4068_v7, 2  ;;  %v4010_v16 = vsel %vm4008_vm7, %v4009_v34, %v14647_v43  ;;  %vm4089_vm10 = vcmp.lt.s32.totalorder %v4068_v7, 3 }
 0x383   : >> { %vm4090_vm11 = vcmp.lt.s32.totalorder %v4068_v7, 4  ;;  %v4095_v24 = vsel %vm4087_vm8, %v4074_v60, %v4077_v35  ;;  %v4011_v15 = vadd.s32 %v4010_v16, %v4006_v50  ;;  %v4099_v8 = vsel %vm4087_vm8, %v4077_v35, %v4080_v57  ;;  %v3165_v7 = vpop.f32.mrf.mxu1 }
 0x384   : >> { %v4092_v20 = vsel %vm4090_vm11, %v4080_v57, 2102212464  ;;  %v4096_v56 = vsel %vm4090_vm11, %v4083_v36, 920167782  ;;  %v4091_v46 = vsel %vm4087_vm8, %v4071_v21, %v4074_v60  ;;  %v4100_v49 = vsel %vm4090_vm11, %v4086_v0, 1326507024 }
 0x385   : >> { %v4097_v13 = vsel %vm4089_vm10, %v4080_v57, %v4096_v56  ;;  %v4377_v59 = vadd.s32 1, %v11476_v44  ;;  %v4012_v51 = vadd.s32 536870912, %v4011_v15  ;;  %v4093_v40 = vsel %vm4089_vm10, %v4077_v35, %v4092_v20  ;;  %v3064_v44 = vpop.f32.mrf.mxu0 }
 0x386   : >> { %v4098_v17 = vsel %vm4088_vm9, %v4095_v24, %v4097_v13  ;;  %v4101_v28 = vsel %vm4089_vm10, %v4083_v36, %v4100_v49  ;;  %v4367_v50 = vand.u32 2147483647, %v14606_v10  ;;  %v4094_v35 = vsel %vm4088_vm9, %v4091_v46, %v4093_v40 }
 0x387   : >> { %v4102_v63 = vsel %vm4088_vm9, %v4099_v8, %v4101_v28  ;;  %v14668_v43 = vmul.u32.u64.low %v14614_v25, %v4098_v17  ;;  %v14669_v18 = vmul.u32.u64.high %v14614_v25, %v4098_v17, %v14668_v43  ;;  %v4013_v47 = vshrl.u32 %v4012_v51, 30 }
 0x388   : >> { %v14674_v42 = vmul.u32.u64.low %v14614_v25, %v4102_v63  ;;  %v14675_v60 = vmul.u32.u64.high %v14614_v25, %v4102_v63, %v14674_v42  ;;  %vm4378_vm12 = vcmp.gt.s32.totalorder %v4377_v59, 0  ;;  %v3065_v57 = vadd.f32 %v3064_v44, %v14568_v45 }
 0x389   : >> { %v4379_v39 = vsel %vm4378_vm12, %v4377_v59, 0  ;;  %v4014_v11 = vshll.u32 %v4013_v47, 30  ;;  %v4113_v21 = vadd.s32 1, %v14669_v18  ;;  %v14682_v36 = vand.u32 8388607, %v4367_v50 }
 0x38a   : >> { %v4381_v34 = vand.u32 31, %v4379_v39  ;;  %v4474_v0 = vand.u32 2139095040, %v14617_v30  ;;  %v4110_v24 = vmul.u32 %v14614_v25, %v4094_v35  ;;  %vm4112_vm13 = vc.u32 %v14675_v60, %v14668_v43 }
 0x38b   : >> { %v14685_v16 = vsub.s32 %v4011_v15, %v4014_v11  ;;  %v4114_v20 = vsel %vm4112_vm13, %v4113_v21, %v14669_v18  ;;  %v14693_v45 = vadd.f32 %v14570_v23, %v14562_v58  ;;  %v4375_v15 = vor.u32 8388608, %v14682_v36 }
 0x38c   : >> { %v4382_v56 = vsub.s32 32, %v4381_v34  ;;  %v4115_v46 = vadd.s32 %v4114_v20, %v4110_v24  ;;  %v4475_v13 = vshrl.u32 %v4474_v0, 23  ;;  %v14698_v25 = vadd.f32 %v3165_v7, %v3065_v57 }
 0x38d   : >> { %v4017_v8 = vsub.s32 0, %v14685_v16  ;;  %v4007_v58 = vadd.s32 %v14646_v22, %v14643_v5  ;;  %v4380_v23 = vshrl.u32 %v4379_v39, 5  ;;  %v4390_v28 = vshll.u32 %v19187_v1, %v4381_v34 }
 0x38e   : >> { %v4116_v59 = vadd.s32 536870912, %v4115_v46  ;;  %v4385_v51 = vshrl.u32 %v19189_v52, %v4382_v56  ;;  %v4391_v40 = vshrl.u32 %v19191_v41, %v4382_v56  ;;  %v4388_v17 = vshrl.u32 %v19187_v1, %v4382_v56 }
 0x38f   : >> { %v11461_v49 = vmin.u32 %v4017_v8, %v14685_v16  ;;  %v4037_v18 = vsub.s32 4, %v4013_v47  ;;  %v4384_v42 = vshll.u32 %v19183_v19, %v4381_v34  ;;  %v4394_v44 = vshrl.u32 %v19180_v26, %v4382_v56 }
 0x390   : >> { %v14709_v35 = vshrl.u32 %v4116_v59, 30  ;;  %v4387_v11 = vshll.u32 %v19189_v52, %v4381_v34  ;;  %v4392_v21 = vor.u32 %v4391_v40, %v4390_v28  ;;  %v11480_v57 = vadd.s32 4294967169, %v4475_v13 }
 0x391   : >> { %v4019_v63 = vclz %v11461_v49  ;;  %v4386_v39 = vor.u32 %v4385_v51, %v4384_v42  ;;  %v4393_v36 = vshll.u32 %v19191_v41, %v4381_v34  ;;  %v4397_v0 = vshrl.u32 %v19178_v53, %v4382_v56 }
 0x392   : >> { %v4118_v24 = vshll.u32 %v14709_v35, 30  ;;  %v4389_v7 = vor.u32 %v4388_v17, %v4387_v11  ;;  %v4396_v20 = vshll.u32 %v19180_v26, %v4381_v34  ;;  %vm4402_vm2 = vcmp.lt.s32.totalorder %v4380_v23, 4 }
 0x393   : >> { %v11462_v22 = vadd.s32 4294967294, %v4019_v63  ;;  %v4038_v8 = vsel %vm3953_vm14, %v4037_v18, %v4013_v47  ;;  %v4395_v4 = vor.u32 %v4394_v44, %v4393_v36  ;;  %v4404_v13 = vsel %vm4402_vm2, %v4392_v21, 2102212464 }
 0x394   : >> { %v14725_v59 = vsub.s32 %v4115_v46, %v4118_v24  ;;  %v4383_v51 = vshrl.u32 %v19183_v19, %v4382_v56  ;;  %v4398_v40 = vor.u32 %v4397_v0, %v4396_v20  ;;  %vm4399_vm1 = vcmp.lt.s32.totalorder %v4380_v23, 1 }
 0x395   : >> { %vm11463_vm4 = vcmp.lt.s32.totalorder %v11462_v22, 0  ;;  %vm4401_vm3 = vcmp.lt.s32.totalorder %v4380_v23, 3  ;;  %vm4057_vm5 = vcmp.lt.s32.totalorder %v14594_v6, 0  ;;  %v4407_v46 = vsel %vm4399_vm1, %v4386_v39, %v4389_v7 }
 0x396   : >> { %v4022_v49 = vsel %vm11463_vm4, 0, %v11462_v22  ;;  %v4121_v17 = vsub.s32 0, %v14725_v59  ;;  %v4403_v42 = vsel %vm4399_vm1, %v4383_v51, %v4386_v39  ;;  %v4405_v47 = vsel %vm4401_vm3, %v4389_v7, %v4404_v13 }
 0x397   : >> { %v4023_v28 = vsub.s32 32, %v4022_v49  ;;  %v4027_v63 = vsub.s32 4294967266, %v4022_v49  ;;  %v4024_v34 = vshll.u32 %v14685_v16, %v4022_v49  ;;  %v4408_v11 = vsel %vm4402_vm2, %v4395_v4, 920167782 }
 0x398   : >> { %v11465_v56 = vmin.u32 %v4121_v17, %v14725_v59  ;;  %v4409_v22 = vsel %vm4401_vm3, %v4392_v21, %v4408_v11  ;;  %v4411_v36 = vsel %vm4399_vm1, %v4389_v7, %v4392_v21  ;;  %v4412_v0 = vsel %vm4402_vm2, %v4398_v40, 1326507024 }
 0x399   : >> { %v4025_v18 = vshrl.u32 %v4007_v58, %v4023_v28  ;;  %v4028_v44 = vadd.s32 127, %v4027_v63  ;;  %vm4400_vm6 = vcmp.lt.s32.totalorder %v4380_v23, 2  ;;  %v4413_v20 = vsel %vm4401_vm3, %v4395_v4, %v4412_v0 }
 0x39a   : >> { %v4040_v58 = vsel %vm14714_vm15, 0, %v4038_v8  ;;  %v4123_v13 = vclz %v11465_v56  ;;  %v4410_v49 = vsel %vm4400_vm6, %v4407_v46, %v4409_v22  ;;  %v4415_v39 = vshll.u32 %v4375_v15, 8 }
 0x39b   : >> { %v4026_v16 = vor.u32 %v4025_v18, %v4024_v34  ;;  %v4029_v24 = vshll.u32 %v4028_v44, 23  ;;  %v4141_v28 = vsub.s32 4, %v14709_v35  ;;  %v4406_v63 = vsel %vm4400_vm6, %v4403_v42, %v4405_v47 }
 0x39c   : >> { %v4414_v17 = vsel %vm4400_vm6, %v4411_v36, %v4413_v20  ;;  %v11466_v21 = vadd.s32 4294967294, %v4123_v13  ;;  %v14743_v18 = vmul.u32.u64.low %v4415_v39, %v4410_v49  ;;  %v14744_v23 = vmul.u32.u64.high %v4415_v39, %v4410_v49, %v14743_v18  ;;  %v3066_v20 = vpop.f32.mrf.mxu0 }
 0x39d   : >> { %v4030_v51 = vor.u32 4788187, %v4029_v24  ;;  %v4033_v11 = vcvt.s32.f32 %v4026_v16  ;;  %v14740_v7 = vmul.u32.u64.low %v4415_v39, %v4414_v17  ;;  %v14741_v40 = vmul.u32.u64.high %v4415_v39, %v4414_v17, %v14740_v7 }
 0x39e   : >> { %v4481_v4 = vadd.s32 1, %v11480_v57  ;;  %vm14749_vm7 = vcmp.le.f32.partialorder %v4055_v54, 0.7853982  ;;  %v4111_v8 = vadd.s32 %v14668_v43, %v14675_v60  ;;  %vm11467_vm8 = vcmp.lt.s32.totalorder %v11466_v21, 0 }
 0x39f   : >> { %v4031_v34 = vand.u32 2147483647, %v4030_v51  ;;  %v4471_v42 = vand.u32 2147483647, %v14617_v30  ;;  %v4044_v44 = vadd.s32 3, %v4040_v58  ;;  %v4126_v46 = vsel %vm11467_vm8, 0, %v11466_v21 }
 0x3a0   : >> { %vm4482_vm9 = vcmp.gt.s32.totalorder %v4481_v4, 0  ;;  %v4127_v56 = vsub.s32 32, %v4126_v46  ;;  %v4131_v22 = vsub.s32 4294967266, %v4126_v46  ;;  %v4142_v57 = vsel %vm4057_vm5, %v4141_v28, %v14709_v35 }
 0x3a1   : >> { %v4034_v47 = vmul.f32 %v4033_v11, %v4031_v34  ;;  %v4422_v54 = vmul.u32 %v4415_v39, %v4406_v63  ;;  %vm4424_vm10 = vc.u32 %v14741_v40, %v14743_v18  ;;  %v4425_v43 = vadd.s32 1, %v14744_v23 }
 0x3a2   : >> { %v4483_v60 = vsel %vm4482_vm9, %v4481_v4, 0  ;;  %v4128_v0 = vshll.u32 %v14725_v59, %v4126_v46  ;;  %v4129_v16 = vshrl.u32 %v4111_v8, %v4127_v56  ;;  %v4132_v24 = vadd.s32 127, %v4131_v22 }
 0x3a3   : >> { %v4035_v36 = vxor.u32 2147483648, %v4034_v47  ;;  %v4485_v58 = vand.u32 31, %v4483_v60  ;;  %v4144_v35 = vsel %vm14749_vm7, 0, %v4142_v57  ;;  %v4426_v49 = vsel %vm4424_vm10, %v4425_v43, %v14744_v23 }
 0x3a4   : >> { %v4478_v39 = vand.u32 8388607, %v4471_v42  ;;  %v4130_v59 = vor.u32 %v4129_v16, %v4128_v0  ;;  %v4133_v28 = vshll.u32 %v4132_v24, 23  ;;  %v4427_v63 = vadd.s32 %v4426_v49, %v4422_v54  ;;  %v3167_v24 = vpop.f32.mrf.mxu1 }
 0x3a5   : >> { %v4036_v13 = vsel %vm3953_vm14, %v4035_v36, %v4034_v47  ;;  %v3067_v17 = vadd.f32 %v3066_v20, %v14572_v12  ;;  %v4486_v11 = vsub.s32 32, %v4485_v58  ;;  %v3900_v21 = vmul.f32 %v14580_v32, %v14698_v25 }
 0x3a6   : >> { %v4039_v51 = vsel %vm14714_vm15, %v14591_v61, %v4036_v13  ;;  %v14776_v7 = vand.u32 3, %v4044_v44  ;;  %v4134_v34 = vor.u32 4788187, %v4133_v28  ;;  %v4428_v23 = vadd.s32 536870912, %v4427_v63 }
 0x3a7   : >> { %12048 = vcosq.f32 %v4039_v51  ;;  %v4137_v4 = vcvt.s32.f32 %v4130_v59  ;;  %v4148_v8 = vadd.s32 3, %v4144_v35  ;;  %v4479_v47 = vor.u32 8388608, %v4478_v39 }
 0x3a8   : >> { %12050 = vsinq.f32 %v4039_v51  ;;  %v4489_v5 = vshrl.u32 %v19189_v52, %v4486_v11  ;;  %v4135_v46 = vand.u32 2147483647, %v4134_v34  ;;  %v14779_v56 = vshrl.u32 %v4428_v23, 30 }
 0x3a9   : >> { %v4492_v22 = vshrl.u32 %v19187_v1, %v4486_v11  ;;  %v4495_v12 = vshrl.u32 %v19191_v41, %v4486_v11  ;;  %v14783_v57 = vshrl.u32 %v4483_v60, 5  ;;  %v4488_v25 = vshll.u32 %v19183_v19, %v4485_v58 }
 0x3aa   : >> { %v4497_v44 = vshll.u32 %v19191_v41, %v4485_v58  ;;  %v4498_v54 = vshrl.u32 %v19180_v26, %v4486_v11  ;;  %v4138_v36 = vmul.f32 %v4137_v4, %v4135_v46  ;;  %v4430_v43 = vshll.u32 %v14779_v56, 30 }
 0x3ab   : >> { %v4491_v0 = vshll.u32 %v19189_v52, %v4485_v58  ;;  %v4494_v16 = vshll.u32 %v19187_v1, %v4485_v58  ;;  %v4490_v20 = vor.u32 %v4489_v5, %v4488_v25  ;;  %v4500_v35 = vshll.u32 %v19180_v26, %v4485_v58 }
 0x3ac   : >> { %v4499_v13 = vor.u32 %v4498_v54, %v4497_v44  ;;  %v4501_v60 = vshrl.u32 %v19178_v53, %v4486_v11  ;;  %vm4050_vm11 = vcmp.eq.s32.totalorder %v14776_v7, 2  ;;  %v4139_v49 = vxor.u32 2147483648, %v4138_v36 }
 0x3ad   : >> { %v14794_v39 = vsub.s32 %v4427_v63, %v4430_v43  ;;  %v4493_v51 = vor.u32 %v4492_v22, %v4491_v0  ;;  %v4496_v59 = vor.u32 %v4495_v12, %v4494_v16  ;;  %vm4047_vm12 = vcmp.eq.s32.totalorder %v14776_v7, 0 }
 0x3ae   : >> { %v14797_v28 = vand.u32 3, %v4148_v8  ;;  %v4502_v34 = vor.u32 %v4501_v60, %v4500_v35  ;;  %v14799_v23 = vshll.u32 %v4479_v47, 8  ;;  %v3168_v4 = vadd.f32 %v3167_v24, %v3067_v17  ;;  %v14813_v47 = vpop.permute.xlu0 %3927 }
 0x3af   : >> { %vm4046_vm13 = vcmp.lt.s32.totalorder %v14776_v7, 2  ;;  %v4140_v58 = vsel %vm4057_vm5, %v4139_v49, %v4138_v36  ;;  %v4433_v5 = vsub.s32 0, %v14794_v39  ;;  %v4487_v63 = vshrl.u32 %v19183_v19, %v4486_v11  ;;  %19450 = vst [vmem:[#allocation11_spill] sm:$0xff] %v14813_v47 }
 0x3b0   : >> { %vm4506_vm14 = vcmp.lt.s32.totalorder %v14783_v57, 4  ;;  %vm4043_vm15 = vweird.f32 %v14591_v61  ;;  %v4143_v8 = vsel %vm14749_vm7, %v14594_v6, %v4140_v58  ;;  %vm4503_vm2 = vcmp.lt.s32.totalorder %v14783_v57, 1 }
 0x3b1   : >> { %vm4505_vm4 = vcmp.lt.s32.totalorder %v14783_v57, 3  ;;  %v4512_v17 = vsel %vm4506_vm14, %v4499_v13, 920167782  ;;  %12052 = vcosq.f32 %v4143_v8  ;;  %vm4369_vm1 = vcmp.lt.s32.totalorder %v14606_v10, 0 }
 0x3b2   : >> { %v11477_v11 = vmin.u32 %v4433_v5, %v14794_v39  ;;  %v4508_v46 = vsel %vm4506_vm14, %v4496_v59, 2102212464  ;;  %v4511_v22 = vsel %vm4503_vm2, %v4490_v20, %v4493_v51  ;;  %12054 = vsinq.f32 %v4143_v8 }
 0x3b3   : >> { %v4513_v15 = vsel %vm4505_vm4, %v4496_v59, %v4512_v17  ;;  %v4515_v12 = vsel %vm4503_vm2, %v4493_v51, %v4496_v59  ;;  %v4516_v25 = vsel %vm4506_vm14, %v4502_v34, 1326507024  ;;  %vm4504_vm3 = vcmp.lt.s32.totalorder %v14783_v57, 2 }
 0x3b4   : >> { %v12049_v44 = vpop.eup %12048  ;;  %v4435_v54 = vclz %v11477_v11  ;;  %v3901_v36 = vmul.f32 %v14580_v32, %v3168_v4  ;;  %v14826_v43 = vadd.f32 %v14813_v47, %v3900_v21  ;;  %v4507_v24 = vsel %vm4503_vm2, %v4487_v63, %v4490_v20 }
 0x3b5   : >> { %v12051_v0 = vpop.eup %12050  ;;  %v4051_v16 = vxor.u32 2147483648, %v12049_v44  ;;  %v4514_v35 = vsel %vm4504_vm3, %v4511_v22, %v4513_v15  ;;  %v4517_v60 = vsel %vm4505_vm4, %v4499_v13, %v4516_v25  ;;  %vm14836_vm5 = vcmp.le.f32.partialorder %v4367_v50, 0.7853982 }
 0x3b6   : >> { %v4048_v49 = vxor.u32 2147483648, %v12051_v0  ;;  %v11478_v21 = vadd.s32 4294967294, %v4435_v54  ;;  %v4509_v34 = vsel %vm4505_vm4, %v4493_v51, %v4508_v46  ;;  %v4518_v20 = vsel %vm4504_vm3, %v4515_v12, %v4517_v60 }
 0x3b7   : >> { %v4052_v4 = vsel %vm4050_vm11, %v4051_v16, %v12051_v0  ;;  %v4453_v58 = vsub.s32 4, %v14779_v56  ;;  %v14848_v13 = vmul.u32.u64.low %v14799_v23, %v4518_v20  ;;  %v14849_v5 = vmul.u32.u64.high %v14799_v23, %v4518_v20, %v14848_v13 }
 0x3b8   : >> { %v4049_v50 = vsel %vm4047_vm12, %v12049_v44, %v4048_v49  ;;  %vm11479_vm6 = vcmp.lt.s32.totalorder %v11478_v21, 0  ;;  %v14854_v63 = vmul.u32.u64.low %v14799_v23, %v4514_v35  ;;  %v14855_v8 = vmul.u32.u64.high %v14799_v23, %v4514_v35, %v14854_v63 }
 0x3b9   : >> { %v4053_v51 = vsel %vm4046_vm13, %v4049_v50, %v4052_v4  ;;  %v4423_v17 = vadd.s32 %v14743_v18, %v14741_v40  ;;  %v4438_v11 = vsel %vm11479_vm6, 0, %v11478_v21  ;;  %v4510_v46 = vsel %vm4504_vm3, %v4507_v24, %v4509_v34 }
 0x3ba   : >> { %v14866_v24 = vsel %vm4043_vm15, nan, %v4053_v51   ;;  %v4439_v22 = vsub.s32 32, %v4438_v11  ;;  %v4443_v15 = vsub.s32 4294967266, %v4438_v11  ;;  %v14869_v12 = vadd.f32 %v14813_v47, %v3901_v36 }
 0x3bb   : >> { %19453 = vst [vmem:[#allocation7_spill] sm:$0xff] %v14866_v24  ;;  %v4454_v7 = vsel %vm4369_vm1, %v4453_v58, %v14779_v56  ;;  %vm4528_vm7 = vc.u32 %v14849_v5, %v14854_v63  ;;  %v4783_v40 = vand.u32 2147483647, %v14826_v43  ;;  %v4786_v18 = vand.u32 2139095040, %v14826_v43 }
 0x3bc   : >> { %vm4147_vm8 = vweird.f32 %v14594_v6  ;;  %v4440_v61 = vshll.u32 %v14794_v39, %v4438_v11  ;;  %v4441_v57 = vshrl.u32 %v4423_v17, %v4439_v22  ;;  %v4444_v44 = vadd.s32 127, %v4443_v15 }
 0x3bd   : >> { %v4529_v54 = vadd.s32 1, %v14855_v8  ;;  %vm4150_vm9 = vcmp.lt.s32.totalorder %v14797_v28, 2  ;;  %vm4151_vm10 = vcmp.eq.s32.totalorder %v14797_v28, 0  ;;  %v4526_v56 = vmul.u32 %v14799_v23, %v4510_v46 }
 0x3be   : >> { %v4787_v36 = vshrl.u32 %v4786_v18, 23  ;;  %v4442_v0 = vor.u32 %v4441_v57, %v4440_v61  ;;  %v4445_v16 = vshll.u32 %v4444_v44, 23  ;;  %v4890_v35 = vand.u32 2139095040, %v14869_v12  ;;  %v12053_v60 = vpop.eup %12052  ;;  %v3071_v44 = vpop.f32.mrf.mxu0 }
 0x3bf   : >> { %v4530_v24 = vsel %vm4528_vm7, %v4529_v54, %v14855_v8  ;;  %v4456_v39 = vsel %vm14836_vm5, 0, %v4454_v7  ;;  %v4790_v34 = vand.u32 8388607, %v4783_v40  ;;  %v12055_v20 = vpop.eup %12054  ;;  %vm4154_vm11 = vcmp.eq.s32.totalorder %v14797_v28, 2 }
 0x3c0   : >> { %v4531_v49 = vadd.s32 %v4530_v24, %v4526_v56  ;;  %v11492_v21 = vadd.s32 4294967169, %v4787_v36  ;;  %v4155_v23 = vxor.u32 2147483648, %v12053_v60  ;;  %v4446_v4 = vor.u32 4788187, %v4445_v16 }
 0x3c1   : >> { %v4891_v58 = vshrl.u32 %v4890_v35, 23  ;;  %v4152_v13 = vxor.u32 2147483648, %v12055_v20  ;;  %v19177_v51 = vand.u32 2147483647, %v14869_v12  ;;  %v4449_v46 = vcvt.s32.f32 %v4442_v0 }
 0x3c2   : >> { %v4532_v50 = vadd.s32 536870912, %v4531_v49  ;;  %v4793_v8 = vadd.s32 1, %v11492_v21  ;;  %v4156_v17 = vsel %vm4154_vm11, %v4155_v23, %v12055_v20  ;;  %v4447_v11 = vand.u32 2147483647, %v4446_v4 }
 0x3c3   : >> { %v4460_v22 = vadd.s32 3, %v4456_v39  ;;  %v4153_v15 = vsel %vm4151_vm10, %v12053_v60, %v4152_v13  ;;  %v4791_v18 = vor.u32 8388608, %v4790_v34  ;;  %v11496_v56 = vadd.s32 4294967169, %v4891_v58 }
 0x3c4   : >> { %v14894_v7 = vshrl.u32 %v4532_v50, 30  ;;  %vm4794_vm12 = vcmp.gt.s32.totalorder %v4793_v8, 0  ;;  %v4157_v61 = vsel %vm4150_vm9, %v4153_v15, %v4156_v17  ;;  %v4450_v57 = vmul.f32 %v4449_v46, %v4447_v11 }
 0x3c5   : >> { %v4795_v54 = vsel %vm4794_vm12, %v4793_v8, 0  ;;  %v2955_v36 = vadd.f32 %v14578_v33, %v14693_v45  ;;  %v14902_v0 = vsel %vm4147_vm8, nan, %v4157_v61   ;;  %v14907_v35 = vand.u32 8388607, %v19177_v51 }
 0x3c6   : >> { %19454 = vst [vmem:[#allocation12_spill] sm:$0xff] %v14902_v0  ;;  %v4534_v24 = vshll.u32 %v14894_v7, 30  ;;  %v14911_v28 = vadd.f32 %v14574_v2, %v14564_v14  ;;  %v4451_v60 = vxor.u32 2147483648, %v4450_v57  ;;  %v4797_v39 = vand.u32 31, %v4795_v54 }
 0x3c7   : >> { %v14913_v21 = vand.u32 3, %v4460_v22  ;;  %v4527_v33 = vadd.s32 %v14854_v63, %v14849_v5  ;;  %v14919_v45 = vadd.f32 %v3071_v44, %v2955_v36  ;;  %v14923_v20 = vshll.u32 %v4791_v18, 8 }
 0x3c8   : >> { %v14917_v6 = vsub.s32 %v4531_v49, %v4534_v24  ;;  %v4452_v0 = vsel %vm4369_vm1, %v4451_v60, %v4450_v57  ;;  %v4798_v34 = vsub.s32 32, %v4797_v39  ;;  %v4897_v23 = vadd.s32 1, %v11496_v56 }
 0x3c9   : >> { %v4455_v14 = vsel %vm14836_vm5, %v14606_v10, %v4452_v0  ;;  %v4557_v4 = vsub.s32 4, %v14894_v7  ;;  %v4895_v5 = vor.u32 8388608, %v14907_v35  ;;  %v4800_v63 = vshll.u32 %v19183_v19, %v4797_v39 }
 0x3ca   : >> { %v4537_v2 = vsub.s32 0, %v14917_v6  ;;  %12056 = vcosq.f32 %v4455_v14  ;;  %v4801_v49 = vshrl.u32 %v19189_v52, %v4798_v34  ;;  %v4804_v58 = vshrl.u32 %v19187_v1, %v4798_v34 }
 0x3cb   : >> { %12058 = vsinq.f32 %v4455_v14  ;;  %v4796_v50 = vshrl.u32 %v4795_v54, 5  ;;  %v4803_v59 = vshll.u32 %v19189_v52, %v4797_v39  ;;  %v4806_v17 = vshll.u32 %v19187_v1, %v4797_v39 }
 0x3cc   : >> { %v11481_v13 = vmin.u32 %v4537_v2, %v14917_v6  ;;  %v4802_v8 = vor.u32 %v4801_v49, %v4800_v63  ;;  %v4807_v11 = vshrl.u32 %v19191_v41, %v4798_v34  ;;  %vm4898_vm13 = vcmp.gt.s32.totalorder %v4897_v23, 0 }
 0x3cd   : >> { %v4799_v22 = vshrl.u32 %v19183_v19, %v4798_v34  ;;  %v4805_v15 = vor.u32 %v4804_v58, %v4803_v59  ;;  %v4809_v18 = vshll.u32 %v19191_v41, %v4797_v39  ;;  %v4810_v57 = vshrl.u32 %v19180_v26, %v4798_v34 }
 0x3ce   : >> { %v4539_v46 = vclz %v11481_v13  ;;  %v4808_v61 = vor.u32 %v4807_v11, %v4806_v17  ;;  %v4812_v44 = vshll.u32 %v19180_v26, %v4797_v39  ;;  %v4813_v54 = vshrl.u32 %v19178_v53, %v4798_v34 }
 0x3cf   : >> { %vm4815_vm14 = vcmp.lt.s32.totalorder %v4796_v50, 1  ;;  %vm4817_vm15 = vcmp.lt.s32.totalorder %v4796_v50, 3  ;;  %vm4818_vm2 = vcmp.lt.s32.totalorder %v4796_v50, 4  ;;  %v4811_v36 = vor.u32 %v4810_v57, %v4809_v18 }
 0x3d0   : >> { %v11482_v56 = vadd.s32 4294967294, %v4539_v46  ;;  %v4814_v24 = vor.u32 %v4813_v54, %v4812_v44  ;;  %v4819_v60 = vsel %vm4815_vm14, %v4799_v22, %v4802_v8  ;;  %v4820_v0 = vsel %vm4818_vm2, %v4808_v61, 2102212464 }
 0x3d1   : >> { %vm4466_vm4 = vcmp.eq.s32.totalorder %v14913_v21, 2  ;;  %v4821_v14 = vsel %vm4817_vm15, %v4805_v15, %v4820_v0  ;;  %v4823_v2 = vsel %vm4815_vm14, %v4802_v8, %v4805_v15  ;;  %v4827_v63 = vsel %vm4815_vm14, %v4805_v15, %v4808_v61 }
 0x3d2   : >> { %vm11483_vm1 = vcmp.lt.s32.totalorder %v11482_v56, 0  ;;  %vm4463_vm3 = vcmp.eq.s32.totalorder %v14913_v21, 0  ;;  %v4824_v49 = vsel %vm4818_vm2, %v4811_v36, 920167782  ;;  %v4828_v34 = vsel %vm4818_vm2, %v4814_v24, 1326507024 }
 0x3d3   : >> { %v4542_v39 = vsel %vm11483_vm1, 0, %v11482_v56  ;;  %v4899_v58 = vsel %vm4898_vm13, %v4897_v23, 0  ;;  %vm4462_vm5 = vcmp.lt.s32.totalorder %v14913_v21, 2  ;;  %vm4816_vm6 = vcmp.lt.s32.totalorder %v4796_v50, 2 }
 0x3d4   : >> { %v4543_v13 = vsub.s32 32, %v4542_v39  ;;  %v4547_v59 = vsub.s32 4294967266, %v4542_v39  ;;  %v4825_v17 = vsel %vm4817_vm15, %v4808_v61, %v4824_v49  ;;  %vm4459_vm7 = vweird.f32 %v14606_v10 }
 0x3d5   : >> { %vm4473_vm8 = vcmp.lt.s32.totalorder %v14617_v30, 0  ;;  %v4544_v8 = vshll.u32 %v14917_v6, %v4542_v39  ;;  %v4822_v11 = vsel %vm4816_vm6, %v4819_v60, %v4821_v14  ;;  %v4826_v46 = vsel %vm4816_vm6, %v4823_v2, %v4825_v17 }
 0x3d6   : >> { %v4829_v22 = vsel %vm4817_vm15, %v4811_v36, %v4828_v34  ;;  %v4545_v15 = vshrl.u32 %v4527_v33, %v4543_v13  ;;  %v4548_v18 = vadd.s32 127, %v4547_v59  ;;  %v4901_v57 = vand.u32 31, %v4899_v58 }
 0x3d7   : >> { %v4830_v23 = vsel %vm4816_vm6, %v4827_v63, %v4829_v22  ;;  %v14958_v61 = vmul.u32.u64.low %v14923_v20, %v4826_v46  ;;  %v14959_v56 = vmul.u32.u64.high %v14923_v20, %v4826_v46, %v14958_v61  ;;  %v12057_v24 = vpop.eup %12056  ;;  %vm14964_vm9 = vcmp.le.f32.partialorder %v4471_v42, 0.7853982 }
 0x3d8   : >> { %v14954_v44 = vmul.u32.u64.low %v14923_v20, %v4830_v23  ;;  %v14955_v54 = vmul.u32.u64.high %v14923_v20, %v4830_v23, %v14954_v44  ;;  %v4546_v33 = vor.u32 %v4545_v15, %v4544_v8  ;;  %v4549_v50 = vshll.u32 %v4548_v18, 23  ;;  %v12059_v0 = vpop.eup %12058  ;;  %v3172_v15 = vpop.f32.mrf.mxu1 }
 0x3d9   : >> { %v4838_v36 = vmul.u32 %v14923_v20, %v4822_v11  ;;  %v4902_v60 = vsub.s32 32, %v4901_v57  ;;  %v4467_v14 = vxor.u32 2147483648, %v12057_v24  ;;  %v14969_v2 = vshrl.u32 %v4899_v58, 5  ;;  %v14982_v11 = vpop.f32.mrf.mxu0 }
 0x3da   : >> { %v4904_v63 = vshll.u32 %v19183_v19, %v4901_v57  ;;  %v4907_v39 = vshll.u32 %v19189_v52, %v4901_v57  ;;  %v4464_v49 = vxor.u32 2147483648, %v12059_v0  ;;  %v4550_v34 = vor.u32 4788187, %v4549_v50 }
 0x3db   : >> { %v4910_v42 = vshll.u32 %v19187_v1, %v4901_v57  ;;  %v4913_v13 = vshll.u32 %v19191_v41, %v4901_v57  ;;  %v4468_v59 = vsel %vm4466_vm4, %v4467_v14, %v12059_v0  ;;  %v4553_v17 = vcvt.s32.f32 %v4546_v33 }
 0x3dc   : >> { %vm4840_vm10 = vc.u32 %v14955_v54, %v14958_v61  ;;  %v4841_v20 = vadd.s32 1, %v14959_v56  ;;  %v4465_v58 = vsel %vm4463_vm3, %v12057_v24, %v4464_v49  ;;  %v4551_v8 = vand.u32 2147483647, %v4550_v34 }
 0x3dd   : >> { %v4905_v46 = vshrl.u32 %v19189_v52, %v4902_v60  ;;  %v4908_v22 = vshrl.u32 %v19187_v1, %v4902_v60  ;;  %v4469_v18 = vsel %vm4462_vm5, %v4465_v58, %v4468_v59  ;;  %v4911_v44 = vshrl.u32 %v19191_v41, %v4902_v60 }
 0x3de   : >> { %v4842_v23 = vsel %vm4840_vm10, %v4841_v20, %v14959_v56  ;;  %v4914_v33 = vshrl.u32 %v19180_v26, %v4902_v60  ;;  %v14993_v24 = vsel %vm4459_vm7, nan, %v4469_v18   ;;  %v4554_v0 = vmul.f32 %v4553_v17, %v4551_v8  ;;  %v15002_v18 = vpop.f32.mrf.mxu0  ;;  %v15004_v17 = vpop.f32.mrf.mxu1 }
 0x3df   : >> { %19457 = vst [vmem:[#allocation13_spill] sm:$0xff] %v14993_v24  ;;  %v4558_v14 = vsel %vm4473_vm8, %v4557_v4, %v14894_v7  ;;  %v4843_v49 = vadd.s32 %v4842_v23, %v4838_v36  ;;  %v4906_v21 = vor.u32 %v4905_v46, %v4904_v63  ;;  %v4909_v34 = vor.u32 %v4908_v22, %v4907_v39 }
 0x3e0   : >> { %v4912_v59 = vor.u32 %v4911_v44, %v4910_v42  ;;  %v4915_v56 = vor.u32 %v4914_v33, %v4913_v13  ;;  %v4555_v20 = vxor.u32 2147483648, %v4554_v0  ;;  %v4916_v51 = vshll.u32 %v19180_v26, %v4901_v57  ;;  %v15022_v13 = vpop.f32.mrf.mxu0 }
 0x3e1   : >> { %v4844_v58 = vadd.s32 536870912, %v4843_v49  ;;  %v4917_v10 = vshrl.u32 %v19178_v53, %v4902_v60  ;;  %v4560_v8 = vsel %vm14964_vm9, 0, %v4558_v14  ;;  %v4903_v7 = vshrl.u32 %v19183_v19, %v4902_v60 }
 0x3e2   : >> { %vm4919_vm11 = vcmp.lt.s32.totalorder %v14969_v2, 1  ;;  %v4935_v4 = vshll.u32 %v4895_v5, 8  ;;  %v4556_v36 = vsel %vm4473_vm8, %v4555_v20, %v4554_v0  ;;  %vm4922_vm12 = vcmp.lt.s32.totalorder %v14969_v2, 4 }
 0x3e3   : >> { %v4845_v57 = vshrl.u32 %v4844_v58, 30  ;;  %v4918_v63 = vor.u32 %v4917_v10, %v4916_v51  ;;  %v4559_v39 = vsel %vm14964_vm9, %v14617_v30, %v4556_v36  ;;  %vm4920_vm13 = vcmp.lt.s32.totalorder %v14969_v2, 2  ;;  %v15024_v51 = vpop.f32.mrf.mxu1 }
 0x3e4   : >> { %v4927_v60 = vsel %vm4919_vm11, %v4906_v21, %v4909_v34  ;;  %v4928_v42 = vsel %vm4922_vm12, %v4915_v56, 920167782  ;;  %12060 = vcosq.f32 %v4559_v39  ;;  %vm4921_vm14 = vcmp.lt.s32.totalorder %v14969_v2, 3 }
 0x3e5   : >> { %v4846_v35 = vshll.u32 %v4845_v57, 30  ;;  %v4924_v5 = vsel %vm4922_vm12, %v4912_v59, 2102212464  ;;  %12062 = vsinq.f32 %v4559_v39  ;;  %v4929_v46 = vsel %vm4921_vm14, %v4912_v59, %v4928_v42  ;;  %v15052_v39 = vpop.permute.xlu1 %3932 }
 0x3e6   : >> { %v4931_v6 = vsel %vm4919_vm11, %v4909_v34, %v4912_v59  ;;  %v4932_v22 = vsel %vm4922_vm12, %v4918_v63, 1326507024  ;;  %v4923_v44 = vsel %vm4919_vm11, %v4903_v7, %v4906_v21  ;;  %v4930_v33 = vsel %vm4920_vm13, %v4927_v60, %v4929_v46  ;;  %v15044_v63 = vpop.f32.mrf.mxu0  ;;  %v15046_v21 = vpop.f32.mrf.mxu1  ;;  %19458 = vst [vmem:[#allocation14_spill] sm:$0xff] %v15052_v39 }
 0x3e7   : >> { %v15028_v23 = vsub.s32 %v4843_v49, %v4846_v35  ;;  %v4933_v24 = vsel %vm4921_vm14, %v4915_v56, %v4932_v22  ;;  %v4925_v0 = vsel %vm4921_vm14, %v4909_v34, %v4924_v5  ;;  %v4564_v10 = vadd.s32 3, %v4560_v8 }
 0x3e8   : >> { %v4934_v14 = vsel %vm4920_vm13, %v4931_v6, %v4933_v24  ;;  %v15036_v20 = vmul.u32.u64.low %v4935_v4, %v4930_v33  ;;  %v15037_v58 = vmul.u32.u64.high %v4935_v4, %v4930_v33, %v15036_v20  ;;  %v3173_v56 = vadd.f32 %v3172_v15, %v14919_v45  ;;  %v15058_v6 = vpop.f32.mrf.mxu0  ;;  %v15060_v45 = vpop.f32.mrf.mxu1 }
 0x3e9   : >> { %v4849_v59 = vsub.s32 0, %v15028_v23  ;;  %v15041_v49 = vmul.u32.u64.low %v4935_v4, %v4934_v14  ;;  %v15042_v36 = vmul.u32.u64.high %v4935_v4, %v4934_v14, %v15041_v49  ;;  %v4926_v7 = vsel %vm4920_vm13, %v4923_v44, %v4925_v0 }
 0x3ea   : >> { %v2957_v8 = vadd.f32 %v14582_v29, %v14911_v28  ;;  %v4869_v60 = vsub.s32 4, %v4845_v57  ;;  %v4945_v42 = vadd.s32 1, %v15037_v58  ;;  %v3904_v35 = vmul.f32 %v14584_v37, %v3173_v56  ;;  %v15082_v0 = vpop.f32.mrf.mxu0  ;;  %v15084_v14 = vpop.f32.mrf.mxu1 }
 0x3eb   : >> { %v11493_v34 = vmin.u32 %v4849_v59, %v15028_v23  ;;  %v4565_v5 = vand.u32 3, %v4564_v10  ;;  %v4942_v2 = vmul.u32 %v4935_v4, %v4926_v7  ;;  %vm4944_vm15 = vc.u32 %v15042_v36, %v15036_v20 }
 0x3ec   : >> { %v3074_v15 = vadd.f32 %v14982_v11, %v2957_v8  ;;  %v15066_v22 = vadd.f32 %v15052_v39, %v3904_v35  ;;  %vm4563_vm2 = vweird.f32 %v14617_v30  ;;  %vm4785_vm4 = vcmp.lt.s32.totalorder %v14826_v43, 0 }
 0x3ed   : >> { %v4851_v46 = vclz %v11493_v34  ;;  %v4946_v28 = vsel %vm4944_vm15, %v4945_v42, %v15037_v58  ;;  %vm15073_vm1 = vcmp.le.f32.partialorder %v4783_v40, 0.7853982  ;;  %v4870_v11 = vsel %vm4785_vm4, %v4869_v60, %v4845_v57 }
 0x3ee   : >> { %v4947_v4 = vadd.s32 %v4946_v28, %v4942_v2  ;;  %v5202_v33 = vand.u32 2139095040, %v15066_v22  ;;  %vm4567_vm3 = vcmp.eq.s32.totalorder %v4565_v5, 0  ;;  %vm4570_vm5 = vcmp.eq.s32.totalorder %v4565_v5, 2 }
 0x3ef   : >> { %v11494_v29 = vadd.s32 4294967294, %v4851_v46  ;;  %v4839_v24 = vadd.s32 %v14958_v61, %v14955_v54  ;;  %v3175_v59 = vadd.f32 %v15004_v17, %v3074_v15  ;;  %v4872_v8 = vsel %vm15073_vm1, 0, %v4870_v11  ;;  %v15092_v17 = vpop.f32.mrf.mxu0  ;;  %v15094_v15 = vpop.f32.mrf.mxu1 }
 0x3f0   : >> { %v4948_v10 = vadd.s32 536870912, %v4947_v4  ;;  %v5203_v49 = vshrl.u32 %v5202_v33, 23  ;;  %v19182_v61 = vand.u32 2147483647, %v15066_v22  ;;  %vm4566_vm7 = vcmp.lt.s32.totalorder %v4565_v5, 2 }
 0x3f1   : >> { %vm11495_vm6 = vcmp.lt.s32.totalorder %v11494_v29, 0  ;;  %v12061_v40 = vpop.eup %12060  ;;  %v3905_v11 = vmul.f32 %v14584_v37, %v3175_v59  ;;  %v15110_v59 = vpop.f32.mrf.mxu1  ;;  %vm4889_vm9 = vcmp.lt.s32.totalorder %v14869_v12, 0  ;;  %vm4875_vm15 = vweird.f32 %v14826_v43 }
 0x3f2   : >> { %v4854_v58 = vsel %vm11495_vm6, 0, %v11494_v29  ;;  %v12063_v57 = vpop.eup %12062  ;;  %v4571_v56 = vxor.u32 2147483648, %v12061_v40  ;;  %v4949_v54 = vshrl.u32 %v4948_v10, 30  ;;  %v11508_v42 = vadd.s32 4294967169, %v5203_v49  ;;  %19462 = vst [vmem:[#allocation16_spill] sm:$0xff] %v15110_v59 }
 0x3f3   : >> { %v4855_v34 = vsub.s32 32, %v4854_v58  ;;  %v4859_v7 = vsub.s32 4294967266, %v4854_v58  ;;  %v4568_v60 = vxor.u32 2147483648, %v12063_v57  ;;  %v4856_v46 = vshll.u32 %v15028_v23, %v4854_v58 }
 0x3f4   : >> { %v4572_v35 = vsel %vm4570_vm5, %v4571_v56, %v12063_v57  ;;  %v4950_v33 = vshll.u32 %v4949_v54, 30  ;;  %v5209_v49 = vadd.s32 1, %v11508_v42  ;;  %v4876_v23 = vadd.s32 3, %v4872_v8 }
 0x3f5   : >> { %v4857_v2 = vshrl.u32 %v4839_v24, %v4855_v34  ;;  %v4860_v29 = vadd.s32 127, %v4859_v7  ;;  %v4569_v28 = vsel %vm4567_vm3, %v12061_v40, %v4568_v60  ;;  %v4973_v56 = vsub.s32 4, %v4949_v54  ;;  %v15108_v40 = vpop.f32.mrf.mxu0 }
 0x3f6   : >> { %v4573_v10 = vsel %vm4566_vm7, %v4569_v28, %v4572_v35  ;;  %v15102_v24 = vsub.s32 %v4947_v4, %v4950_v33  ;;  %v15106_v5 = vand.u32 8388607, %v19182_v61  ;;  %vm5210_vm8 = vcmp.gt.s32.totalorder %v5209_v49, 0 }
 0x3f7   : >> { %v4858_v53 = vor.u32 %v4857_v2, %v4856_v46  ;;  %v4861_v26 = vshll.u32 %v4860_v29, 23  ;;  %v15100_v57 = vsel %vm4563_vm2, nan, %v4573_v10   ;;  %v15114_v30 = vadd.f32 %v15052_v39, %v3905_v11  ;;  %v15127_v33 = vpop.f32.mrf.mxu0 }
 0x3f8   : >> { %19461 = vst [vmem:[#allocation15_spill] sm:$0xff] %v15100_v57  ;;  %v4953_v34 = vsub.s32 0, %v15102_v24  ;;  %v5211_v7 = vsel %vm5210_vm8, %v5209_v49, 0  ;;  %v4943_v42 = vadd.s32 %v15036_v20, %v15042_v36  ;;  %v15124_v2 = vsel %vm4889_vm9, %v4973_v56, %v4949_v54  ;;  %19463 = vst [vmem:[#allocation17_spill] sm:$0xff] %v15127_v33 }
 0x3f9   : >> { %v4862_v58 = vor.u32 4788187, %v4861_v26  ;;  %v4865_v4 = vcvt.s32.f32 %v4858_v53  ;;  %v5213_v60 = vand.u32 31, %v5211_v7  ;;  %v15116_v26 = vand.u32 3, %v4876_v23  ;;  %v15129_v53 = vpop.f32.mrf.mxu1  ;;  %v15144_v25 = vpop.f32.mrf.mxu0 }
 0x3fa   : >> { %v11497_v35 = vmin.u32 %v4953_v34, %v15102_v24  ;;  %v5207_v29 = vor.u32 8388608, %v15106_v5  ;;  %19464 = vst [vmem:[#allocation18_spill] sm:$0xff] %v15129_v53  ;;  %v15131_v10 = vshrl.u32 %v5211_v7, 5  ;;  %v5306_v20 = vand.u32 2139095040, %v15114_v30 }
 0x3fb   : >> { %v4863_v8 = vand.u32 2147483647, %v4862_v58  ;;  %v5214_v28 = vsub.s32 32, %v5213_v60  ;;  %v5216_v49 = vshll.u32 %v19183_v19, %v5213_v60  ;;  %v5219_v54 = vshll.u32 %v19189_v52, %v5213_v60  ;;  %v15146_v16 = vpop.f32.mrf.mxu1  ;;  %v15156_v44 = vpop.f32.mrf.mxu0 }
 0x3fc   : >> { %v4955_v11 = vclz %v11497_v35  ;;  %v5222_v5 = vshll.u32 %v19187_v1, %v5213_v60  ;;  %v19465_v61 = vmov 920167782   ;;  %19466 = vst [vmem:[#allocation19_spill] sm:$0xff] %v15146_v16  ;;  %v19468_v57 = vmov 683565275  }
 0x3fd   : >> { %v4866_v46 = vmul.f32 %v4865_v4, %v4863_v8  ;;  %v5217_v23 = vshrl.u32 %v19189_v52, %v5214_v28  ;;  %v5220_v58 = vshrl.u32 %v19187_v1, %v5214_v28  ;;  %v5223_v34 = vshrl.u32 %v19191_v41, %v5214_v28 }
 0x3fe   : >> { %v11498_v56 = vadd.s32 4294967294, %v4955_v11  ;;  %v5225_v8 = vshll.u32 %v19191_v41, %v5213_v60  ;;  %v5226_v19 = vshrl.u32 %v19465_v61, %v5214_v28  ;;  %v5228_v52 = vshll.u32 %v19465_v61, %v5213_v60 }
 0x3ff   : >> { %v4867_v36 = vxor.u32 2147483648, %v4866_v46  ;;  %v5218_v4 = vor.u32 %v5217_v23, %v5216_v49  ;;  %v5221_v35 = vor.u32 %v5220_v58, %v5219_v54  ;;  %v5224_v1 = vor.u32 %v5223_v34, %v5222_v5  ;;  %v15158_v5 = vpop.f32.mrf.mxu1 }
 0x400   : >> { %vm11499_vm10 = vcmp.lt.s32.totalorder %v11498_v56, 0  ;;  %v5227_v50 = vor.u32 %v5226_v19, %v5225_v8  ;;  %v5307_v54 = vshrl.u32 %v5306_v20, 23  ;;  %v5215_v39 = vshrl.u32 %v19468_v57, %v5214_v28 }
 0x401   : >> { %v4868_v7 = vsel %vm4785_vm4, %v4867_v36, %v4866_v46  ;;  %v4958_v41 = vsel %vm11499_vm10, 0, %v11498_v56  ;;  %v19467_v46 = vmov 1326507024   ;;  %vm5231_vm11 = vcmp.lt.s32.totalorder %v15131_v10, 1 }
 0x402   : >> { %v4871_v11 = vsel %vm15073_vm1, %v14826_v43, %v4868_v7  ;;  %v5229_v49 = vshrl.u32 %v19467_v46, %v5214_v28  ;;  %v4959_v36 = vsub.s32 32, %v4958_v41  ;;  %v4963_v23 = vsub.s32 4294967266, %v4958_v41 }
 0x403   : >> { %12064 = vcosq.f32 %v4871_v11  ;;  %v4960_v58 = vshll.u32 %v15102_v24, %v4958_v41  ;;  %vm5232_vm12 = vcmp.lt.s32.totalorder %v15131_v10, 2  ;;  %vm5234_vm13 = vcmp.lt.s32.totalorder %v15131_v10, 4 }
 0x404   : >> { %12066 = vsinq.f32 %v4871_v11  ;;  %v5230_v37 = vor.u32 %v5229_v49, %v5228_v52  ;;  %v4961_v60 = vshrl.u32 %v4943_v42, %v4959_v36  ;;  %v4964_v56 = vadd.s32 127, %v4963_v23  ;;  %v15171_v49 = vpop.f32.mrf.mxu0  ;;  %v15173_v36 = vpop.f32.mrf.mxu1 }
 0x405   : >> { %vm5233_vm14 = vcmp.lt.s32.totalorder %v15131_v10, 3  ;;  %v5236_v19 = vsel %vm5234_vm13, %v5224_v1, 2102212464  ;;  %v5239_v41 = vsel %vm5231_vm11, %v5218_v4, %v5221_v35  ;;  %v5240_v24 = vsel %vm5234_vm13, %v5227_v50, 920167782 }
 0x406   : >> { %v4962_v52 = vor.u32 %v4961_v60, %v4960_v58  ;;  %v4965_v28 = vshll.u32 %v4964_v56, 23  ;;  %v5241_v20 = vsel %vm5233_vm14, %v5224_v1, %v5240_v24  ;;  %v5243_v42 = vsel %vm5231_vm11, %v5221_v35, %v5224_v1 }
 0x407   : >> { %v5242_v34 = vsel %vm5232_vm12, %v5239_v41, %v5241_v20  ;;  %v5244_v8 = vsel %vm5234_vm13, %v5230_v37, 1326507024  ;;  %v5247_v7 = vshll.u32 %v5207_v29, 8  ;;  %v11512_v11 = vadd.s32 4294967169, %v5307_v54 }
 0x408   : >> { %v4966_v23 = vor.u32 4788187, %v4965_v28  ;;  %v5235_v58 = vsel %vm5231_vm11, %v5215_v39, %v5218_v4  ;;  %v5237_v60 = vsel %vm5233_vm14, %v5221_v35, %v5236_v19  ;;  %v5245_v1 = vsel %vm5233_vm14, %v5227_v50, %v5244_v8  ;;  %v15193_v4 = vpop.f32.mrf.mxu0  ;;  %v15195_v50 = vpop.f32.mrf.mxu1 }
 0x409   : >> { %v4969_v56 = vcvt.s32.f32 %v4962_v52  ;;  %v5246_v37 = vsel %vm5232_vm12, %v5243_v42, %v5245_v1  ;;  %v15183_v29 = vmul.u32.u64.low %v5247_v7, %v5242_v34  ;;  %v15184_v54 = vmul.u32.u64.high %v5247_v7, %v5242_v34, %v15183_v29 }
 0x40a   : >> { %v4967_v41 = vand.u32 2147483647, %v4966_v23  ;;  %v15187_v24 = vmul.u32.u64.low %v5247_v7, %v5246_v37  ;;  %v15188_v28 = vmul.u32.u64.high %v5247_v7, %v5246_v37, %v15187_v24  ;;  %v5313_v20 = vadd.s32 1, %v11512_v11  ;;  %v15214_v37 = vpop.f32.mrf.mxu0 }
 0x40b   : >> { %v5238_v39 = vsel %vm5232_vm12, %v5235_v58, %v5237_v60  ;;  %vm4878_vm2 = vcmp.lt.s32.totalorder %v15116_v26, 2  ;;  %v19469_v35 = vand.u32 2147483647, %v14869_v12  ;;  %v5257_v10 = vadd.s32 1, %v15184_v54 }
 0x40c   : >> { %v4970_v52 = vmul.f32 %v4969_v56, %v4967_v41  ;;  %vm5314_vm1 = vcmp.gt.s32.totalorder %v5313_v20, 0  ;;  %vm4879_vm3 = vcmp.eq.s32.totalorder %v15116_v26, 0  ;;  %v5254_v58 = vmul.u32 %v5247_v7, %v5238_v39  ;;  %v15216_v41 = vpop.f32.mrf.mxu1 }
 0x40d   : >> { %vm15200_vm4 = vcmp.le.f32.partialorder %v19469_v35, 0.7853982  ;;  %v5315_v8 = vsel %vm5314_vm1, %v5313_v20, 0  ;;  %vm5256_vm5 = vc.u32 %v15188_v28, %v15183_v29  ;;  %vm4882_vm6 = vcmp.eq.s32.totalorder %v15116_v26, 2 }
 0x40e   : >> { %v4976_v42 = vsel %vm15200_vm4, 0, %v15124_v2  ;;  %v4971_v23 = vxor.u32 2147483648, %v4970_v52  ;;  %v5258_v56 = vsel %vm5256_vm5, %v5257_v10, %v15184_v54  ;;  %v5317_v2 = vand.u32 31, %v5315_v8 }
 0x40f   : >> { %v4980_v35 = vadd.s32 3, %v4976_v42  ;;  %v5259_v7 = vadd.s32 %v5258_v56, %v5254_v58  ;;  %v19472_v47 = vand.u32 2147483647, %v15114_v30  ;;  %v15227_v53 = vshrl.u32 %v5315_v8, 5  ;;  %v15233_v58 = vpop.f32.mrf.mxu0 }
 0x410   : >> { %v12065_v11 = vpop.eup %12064  ;;  %v4972_v20 = vsel %vm4889_vm9, %v4971_v23, %v4970_v52  ;;  %v5318_v54 = vsub.s32 32, %v5317_v2  ;;  %v5320_v42 = vshll.u32 %v19468_v57, %v5317_v2  ;;  %v19473_v23 = vmov 2475754826   ;;  %19474 = vst [vmem:[#allocation20_spill] sm:$0xff] %v15233_v58 }
 0x411   : >> { %v12067_v60 = vpop.eup %12066  ;;  %v4883_v1 = vxor.u32 2147483648, %v12065_v11  ;;  %v4975_v34 = vsel %vm15200_vm4, %v14869_v12, %v4972_v20  ;;  %v5310_v32 = vand.u32 8388607, %v19472_v47  ;;  %v5260_v16 = vadd.s32 536870912, %v5259_v7 }
 0x412   : >> { %v4880_v24 = vxor.u32 2147483648, %v12067_v60  ;;  %12068 = vcosq.f32 %v4975_v34  ;;  %v5321_v19 = vshrl.u32 %v19473_v23, %v5318_v54  ;;  %v5323_v8 = vshll.u32 %v19473_v23, %v5317_v2 }
 0x413   : >> { %v4884_v39 = vsel %vm4882_vm6, %v4883_v1, %v12067_v60  ;;  %12070 = vsinq.f32 %v4975_v34  ;;  %v15235_v60 = vpop.f32.mrf.mxu1  ;;  %v15241_v1 = vshrl.u32 %v5260_v16, 30  ;;  %v19477_v56 = vmov 2131351028  }
 0x414   : >> { %v4881_v10 = vsel %vm4879_vm3, %v12065_v11, %v4880_v24  ;;  %19475 = vst [vmem:[#allocation21_spill] sm:$0xff] %v15235_v60  ;;  %v5324_v26 = vshrl.u32 %v19477_v56, %v5318_v54  ;;  %v5326_v34 = vshll.u32 %v19477_v56, %v5317_v2  ;;  %v19478_v24 = vmov 2102212464   ;;  %v15254_v56 = vpop.f32.mrf.mxu0 }
 0x415   : >> { %v4885_v52 = vsel %vm4878_vm2, %v4881_v10, %v4884_v39  ;;  %v5327_v20 = vshrl.u32 %v19478_v24, %v5318_v54  ;;  %v5329_v39 = vshll.u32 %v19478_v24, %v5317_v2  ;;  %v5330_v10 = vshrl.u32 %v19465_v61, %v5318_v54  ;;  %v15256_v3 = vpop.f32.mrf.mxu1 }
 0x416   : >> { %v15239_v47 = vsel %vm4875_vm15, nan, %v4885_v52   ;;  %v3257_v58 = vadd.f32 %v15002_v18, %v14546_v62  ;;  %v5262_v43 = vshll.u32 %v15241_v1, 30  ;;  %v5322_v52 = vor.u32 %v5321_v19, %v5320_v42 }
 0x417   : >> { %19476 = vst [vmem:[#allocation22_spill] sm:$0xff] %v15239_v47  ;;  %v5325_v16 = vor.u32 %v5324_v26, %v5323_v8  ;;  %v5328_v47 = vor.u32 %v5327_v20, %v5326_v34  ;;  %v5331_v11 = vor.u32 %v5330_v10, %v5329_v39  ;;  %v5332_v23 = vshll.u32 %v19465_v61, %v5317_v2 }
 0x418   : >> { %v5333_v59 = vshrl.u32 %v19467_v46, %v5318_v54  ;;  %v4981_v24 = vand.u32 3, %v4980_v35  ;;  %v3259_v60 = vadd.f32 %v15022_v13, %v14546_v62  ;;  %v15260_v33 = vsub.s32 %v5259_v7, %v5262_v43  ;;  %v15273_v7 = vpop.f32.mrf.mxu0 }
 0x419   : >> { %v3268_v18 = vadd.f32 %v15044_v63, %v14550_v9  ;;  %v5311_v42 = vor.u32 8388608, %v5310_v32  ;;  %v5319_v19 = vshrl.u32 %v19468_v57, %v5318_v54  ;;  %vm5335_vm7 = vcmp.lt.s32.totalorder %v15227_v53, 1  ;;  %19479 = vst [vmem:[#allocation23_spill] sm:$0xff] %v15273_v7 }
 0x41a   : >> { %v5334_v8 = vor.u32 %v5333_v59, %v5332_v23  ;;  %v5265_v2 = vsub.s32 0, %v15260_v33  ;;  %vm5337_vm8 = vcmp.lt.s32.totalorder %v15227_v53, 3  ;;  %vm5338_vm9 = vcmp.lt.s32.totalorder %v15227_v53, 4  ;;  %v15275_v59 = vpop.f32.mrf.mxu1 }
 0x41b   : >> { %v5343_v62 = vsel %vm5335_vm7, %v5322_v52, %v5325_v16  ;;  %v5340_v13 = vsel %vm5338_vm9, %v5328_v47, 2102212464  ;;  %v5344_v35 = vsel %vm5338_vm9, %v5331_v11, 920167782  ;;  %v5347_v63 = vsel %vm5335_vm7, %v5325_v16, %v5328_v47 }
 0x41c   : >> { %v5348_v32 = vsel %vm5338_vm9, %v5334_v8, 1326507024  ;;  %vm4979_vm10 = vweird.f32 %v14869_v12  ;;  %v11509_v54 = vmin.u32 %v5265_v2, %v15260_v33  ;;  %vm5336_vm11 = vcmp.lt.s32.totalorder %v15227_v53, 2 }
 0x41d   : >> { %v5345_v23 = vsel %vm5337_vm8, %v5328_v47, %v5344_v35  ;;  %v5349_v26 = vsel %vm5337_vm8, %v5331_v11, %v5348_v32  ;;  %v5351_v39 = vshll.u32 %v5311_v42, 8  ;;  %v3402_v10 = vadd.f32 %v15024_v51, %v3257_v58  ;;  %v3740_v42 = vpop.f32.mrf.mxu0 }
 0x41e   : >> { %v5346_v34 = vsel %vm5336_vm11, %v5343_v62, %v5345_v23  ;;  %v5350_v20 = vsel %vm5336_vm11, %v5347_v63, %v5349_v26  ;;  %v5267_v43 = vclz %v11509_v54  ;;  %v5339_v8 = vsel %vm5335_vm7, %v5319_v19, %v5322_v52  ;;  %v15301_v63 = vpop.f32.mrf.mxu1 }
 0x41f   : >> { %v5341_v2 = vsel %vm5337_vm8, %v5325_v16, %v5340_v13  ;;  %v3404_v47 = vadd.f32 %v15046_v21, %v3259_v60  ;;  %v12069_v35 = vpop.eup %12068  ;;  %v15294_v11 = vmul.u32.u64.low %v5351_v39, %v5350_v20  ;;  %v15295_v32 = vmul.u32.u64.high %v5351_v39, %v5350_v20, %v15294_v11  ;;  %19480 = vst [vmem:[#allocation24_spill] sm:$0xff] %v15301_v63 }
 0x420   : >> { %v15297_v62 = vmul.u32.u64.low %v5351_v39, %v5346_v34  ;;  %v15298_v23 = vmul.u32.u64.high %v5351_v39, %v5346_v34, %v15297_v62  ;;  %v12071_v51 = vpop.eup %12070  ;;  %vm4982_vm12 = vcmp.lt.s32.totalorder %v4981_v24, 2  ;;  %vm4983_vm13 = vcmp.eq.s32.totalorder %v4981_v24, 0  ;;  %v3742_v11 = vpop.f32.mrf.mxu0 }
 0x421   : >> { %v4987_v58 = vxor.u32 2147483648, %v12069_v35  ;;  %v11510_v52 = vadd.s32 4294967294, %v5267_v43  ;;  %v4984_v19 = vxor.u32 2147483648, %v12071_v51  ;;  %vm4986_vm14 = vcmp.eq.s32.totalorder %v4981_v24, 2  ;;  %v3841_v63 = vpop.f32.mrf.mxu1 }
 0x422   : >> { %v5255_v21 = vadd.s32 %v15183_v29, %v15188_v28  ;;  %v3409_v60 = vadd.f32 %v15060_v45, %v3268_v18  ;;  %v5342_v13 = vsel %vm5336_vm11, %v5339_v8, %v5341_v2  ;;  %v3512_v54 = vadd.f32 %v15144_v25, %v3402_v10 }
 0x423   : >> { %v4988_v16 = vsel %vm4986_vm14, %v4987_v58, %v12071_v51  ;;  %vm11511_vm15 = vcmp.lt.s32.totalorder %v11510_v52, 0  ;;  %v4985_v26 = vsel %vm4983_vm13, %v12069_v35, %v4984_v19  ;;  %v3514_v20 = vadd.f32 %v15156_v44, %v3404_v47  ;;  %v3843_v47 = vpop.f32.mrf.mxu1 }
 0x424   : >> { %v5270_v34 = vsel %vm11511_vm15, 0, %v11510_v52  ;;  %v3520_v43 = vadd.f32 %v15171_v49, %v3409_v60  ;;  %v4989_v7 = vsel %vm4982_vm12, %v4985_v26, %v4988_v16  ;;  %vm5360_vm2 = vc.u32 %v15295_v32, %v15297_v62 }
 0x425   : >> { %v5271_v29 = vsub.s32 32, %v5270_v34  ;;  %v5275_v28 = vsub.s32 4294967266, %v5270_v34  ;;  %v15316_v51 = vsel %vm4979_vm10, nan, %v4989_v7   ;;  %v5285_v25 = vsub.s32 4, %v15241_v1  ;;  %v3747_v7 = vpop.f32.mrf.mxu0  ;;  %v3848_v16 = vpop.f32.mrf.mxu1 }
 0x426   : >> { %v19481_v45 = vmov %v15316_v51  ;;  %v5361_v53 = vadd.s32 1, %v15298_v23  ;;  %v5272_v44 = vshll.u32 %v15260_v33, %v5270_v34  ;;  %v5358_v10 = vmul.u32 %v5351_v39, %v5342_v13 }
 0x427   : >> { %v5273_v49 = vshrl.u32 %v5255_v21, %v5271_v29  ;;  %v5276_v18 = vadd.s32 127, %v5275_v28  ;;  %v3270_v8 = vadd.f32 %v15058_v6, %v14550_v9  ;;  %v3618_v2 = vadd.f32 %v15158_v5, %v3512_v54 }
 0x428   : >> { %v5362_v24 = vsel %vm5360_vm2, %v5361_v53, %v15298_v23  ;;  %v3620_v12 = vadd.f32 %v15173_v36, %v3514_v20  ;;  %v3627_v52 = vadd.f32 %v15195_v50, %v3520_v43  ;;  %vm5201_vm4 = vcmp.lt.s32.totalorder %v15066_v22, 0 }
 0x429   : >> { %v5274_v35 = vor.u32 %v5273_v49, %v5272_v44  ;;  %v5277_v51 = vshll.u32 %v5276_v18, 23  ;;  %v5363_v58 = vadd.s32 %v5362_v24, %v5358_v10  ;;  %v3741_v33 = vadd.f32 %v3740_v42, %v3618_v2  ;;  %v3749_v2 = vpop.f32.mrf.mxu0  ;;  %v19491_v42 = vld [vmem:[#allocation16_spill] sm:$0xff] }
 0x42a   : >> { %v3743_v39 = vadd.f32 %v3742_v11, %v3620_v12  ;;  %v5286_v9 = vsel %vm5201_vm4, %v5285_v25, %v15241_v1  ;;  %v3748_v5 = vadd.f32 %v3747_v7, %v3627_v52  ;;  %v3279_v36 = vadd.f32 %v15082_v0, %v14554_v55  ;;  %v19488_v52 = vld [vmem:[#allocation17_spill] sm:$0xff] }
 0x42b   : >> { %v5278_v19 = vor.u32 4788187, %v5277_v51  ;;  %v5364_v6 = vadd.s32 536870912, %v5363_v58  ;;  %v3411_v23 = vadd.f32 %v15084_v14, %v3270_v8  ;;  %v3842_v21 = vadd.f32 %v3841_v63, %v3741_v33 }
 0x42c   : >> { %v3844_v60 = vadd.f32 %v3843_v47, %v3743_v39  ;;  %v19482_v50 = vand.u32 2147483647, %v15066_v22  ;;  %v5281_v54 = vcvt.s32.f32 %v5274_v35  ;;  %v3849_v20 = vadd.f32 %v3848_v16, %v3748_v5  ;;  %v19489_v5 = vld [vmem:[#allocation21_spill] sm:$0xff] }
 0x42d   : >> { %v5279_v13 = vand.u32 2147483647, %v5278_v19  ;;  %v5365_v26 = vshrl.u32 %v5364_v6, 30  ;;  %v3522_v34 = vadd.f32 %v15193_v4, %v3411_v23  ;;  %v3894_v0 = vmul.f32 %v14566_v31, %v3842_v21 }
 0x42e   : >> { %vm15336_vm1 = vcmp.le.f32.partialorder %v19482_v50, 0.7853982  ;;  %v3416_v43 = vadd.f32 %v15094_v15, %v3279_v36  ;;  %v3895_v29 = vmul.f32 %v14566_v31, %v3844_v60  ;;  %vm5305_vm3 = vcmp.lt.s32.totalorder %v15114_v30, 0  ;;  %v19490_v60 = vld [vmem:[#allocation10_spill] sm:$0xff] }
 0x42f   : >> { %v5288_v1 = vsel %vm15336_vm1, 0, %v5286_v9  ;;  %v5282_v14 = vmul.f32 %v5281_v54, %v5279_v13  ;;  %v5366_v63 = vshll.u32 %v5365_v26, 30  ;;  %v15346_v11 = vadd.f32 %v14586_v38, %v3894_v0  ;;  %v19492_v54 = vld [vmem:[#allocation18_spill] sm:$0xff] }
 0x430   : >> { %v5292_v25 = vadd.s32 3, %v5288_v1  ;;  %v19485_v4 = vand.u32 2147483647, %v15114_v30  ;;  %v3528_v49 = vadd.f32 %v15214_v37, %v3416_v43  ;;  %v3629_v15 = vadd.f32 %v15216_v41, %v3522_v34 }
 0x431   : >> { %v5283_v28 = vxor.u32 2147483648, %v5282_v14  ;;  %v15350_v53 = vsub.s32 %v5363_v58, %v5366_v63  ;;  %v4159_v18 = vand.u32 2147483647, %v15346_v11  ;;  %v4162_v31 = vand.u32 2139095040, %v15346_v11 }
 0x432   : >> { %vm15354_vm5 = vcmp.le.f32.partialorder %v19485_v4, 0.7853982  ;;  %v5389_v8 = vsub.s32 4, %v5365_v26  ;;  %v3898_v12 = vmul.f32 %v14576_v27, %v3849_v20  ;;  %v15372_v47 = vadd.f32 %v14586_v38, %v3895_v29 }
 0x433   : >> { %v5284_v10 = vsel %vm5201_vm4, %v5283_v28, %v5282_v14  ;;  %v5369_v24 = vsub.s32 0, %v15350_v53  ;;  %v4163_v37 = vshrl.u32 %v4162_v31, 23  ;;  %v4166_v41 = vand.u32 8388607, %v4159_v18 }
 0x434   : >> { %v5287_v7 = vsel %vm15336_vm1, %v15066_v22, %v5284_v10  ;;  %v3281_v51 = vadd.f32 %v15092_v17, %v14554_v55  ;;  %v3290_v58 = vadd.f32 %v15108_v40, %v14558_v48  ;;  %v15381_v33 = vadd.f32 %v19488_v52, %v14558_v48  ;;  %v3754_v55 = vpop.f32.mrf.mxu0  ;;  %v3850_v17 = vpop.f32.mrf.mxu1 }
 0x435   : >> { %12072 = vcosq.f32 %v5287_v7  ;;  %v11513_v35 = vmin.u32 %v5369_v24, %v15350_v53  ;;  %v11468_v39 = vadd.s32 4294967169, %v4163_v37  ;;  %v3750_v19 = vadd.f32 %v3749_v2, %v3629_v15 }
 0x436   : >> { %12074 = vsinq.f32 %v5287_v7  ;;  %v15383_v9 = vand.u32 3, %v5292_v25  ;;  %v15387_v6 = vsel %vm5305_vm3, %v5389_v8, %v5365_v26  ;;  %v3636_v36 = vadd.f32 %v19489_v5, %v3528_v49 }
 0x437   : >> { %v5371_v38 = vclz %v11513_v35  ;;  %v4167_v23 = vor.u32 8388608, %v4166_v41  ;;  %v4169_v40 = vadd.s32 1, %v11468_v39  ;;  %v4266_v21 = vand.u32 2139095040, %v15372_v47 }
 0x438   : >> { %v15392_v48 = vadd.f32 %v19490_v60, %v3898_v12  ;;  %v5359_v16 = vadd.s32 %v15297_v62, %v15295_v32  ;;  %v15397_v13 = vadd.f32 %v19491_v42, %v3281_v51  ;;  %v15400_v26 = vadd.f32 %v19492_v54, %v3290_v58 }
 0x439   : >> { %v11514_v50 = vadd.s32 4294967294, %v5371_v38  ;;  %vm4170_vm6 = vcmp.gt.s32.totalorder %v4169_v40, 0  ;;  %v4267_v1 = vshrl.u32 %v4266_v21, 23  ;;  %v15402_v34 = vadd.f32 %v3754_v55, %v3636_v36 }
 0x43a   : >> { %v15404_v0 = vadd.f32 %v3850_v17, %v3750_v19  ;;  %v5392_v14 = vsel %vm15354_vm5, 0, %v15387_v6  ;;  %v4171_v63 = vsel %vm4170_vm6, %v4169_v40, 0  ;;  %v4263_v32 = vand.u32 2147483647, %v15372_v47 }
 0x43b   : >> { %vm11515_vm7 = vcmp.lt.s32.totalorder %v11514_v50, 0  ;;  %vm5298_vm8 = vcmp.eq.s32.totalorder %v15383_v9, 2  ;;  %v4173_v20 = vand.u32 31, %v4171_v63  ;;  %v15411_v43 = vshll.u32 %v4167_v23, 8 }
 0x43c   : >> { %v5374_v62 = vsel %vm11515_vm7, 0, %v11514_v50  ;;  %v4578_v29 = vand.u32 2139095040, %v15392_v48  ;;  %vm5295_vm9 = vcmp.eq.s32.totalorder %v15383_v9, 0  ;;  %v4172_v4 = vshrl.u32 %v4171_v63, 5 }
 0x43d   : >> { %v5375_v28 = vsub.s32 32, %v5374_v62  ;;  %v5379_v25 = vsub.s32 4294967266, %v5374_v62  ;;  %v11472_v49 = vadd.s32 4294967169, %v4267_v1  ;;  %vm5294_vm10 = vcmp.lt.s32.totalorder %v15383_v9, 2 }
 0x43e   : >> { %v5376_v15 = vshll.u32 %v15350_v53, %v5374_v62  ;;  %v4174_v31 = vsub.s32 32, %v4173_v20  ;;  %v4176_v10 = vshll.u32 %v19468_v57, %v4173_v20  ;;  %v19493_v24 = vmov 2475754826  }
 0x43f   : >> { %v4179_v8 = vshll.u32 %v19493_v24, %v4173_v20  ;;  %vm5291_vm11 = vweird.f32 %v15066_v22  ;;  %v5377_v2 = vshrl.u32 %v5359_v16, %v5375_v28  ;;  %v5380_v12 = vadd.s32 127, %v5379_v25 }
 0x440   : >> { %v19494_v7 = vmov 2131351028   ;;  %v19495_v41 = vmov 2102212464   ;;  %v4177_v51 = vshrl.u32 %v19493_v24, %v4174_v31  ;;  %v4188_v53 = vshll.u32 %v19465_v61, %v4173_v20 }
 0x441   : >> { %v4182_v37 = vshll.u32 %v19494_v7, %v4173_v20  ;;  %v4185_v35 = vshll.u32 %v19495_v41, %v4173_v20  ;;  %v4180_v58 = vshrl.u32 %v19494_v7, %v4174_v31  ;;  %v4183_v52 = vshrl.u32 %v19495_v41, %v4174_v31 }
 0x442   : >> { %v5378_v39 = vor.u32 %v5377_v2, %v5376_v15  ;;  %v5381_v19 = vshll.u32 %v5380_v12, 23  ;;  %v4186_v38 = vshrl.u32 %v19465_v61, %v4174_v31  ;;  %v4189_v5 = vshrl.u32 %v19467_v46, %v4174_v31  ;;  %v12073_v36 = vpop.eup %12072 }
 0x443   : >> { %v4175_v55 = vshrl.u32 %v19468_v57, %v4174_v31  ;;  %v4178_v17 = vor.u32 %v4177_v51, %v4176_v10  ;;  %v4181_v23 = vor.u32 %v4180_v58, %v4179_v8  ;;  %v4184_v40 = vor.u32 %v4183_v52, %v4182_v37  ;;  %v12075_v21 = vpop.eup %12074 }
 0x444   : >> { %v5299_v16 = vxor.u32 2147483648, %v12073_v36  ;;  %v5382_v50 = vor.u32 4788187, %v5381_v19  ;;  %v4187_v42 = vor.u32 %v4186_v38, %v4185_v35  ;;  %vm4191_vm12 = vcmp.lt.s32.totalorder %v4172_v4, 1 }
 0x445   : >> { %v5296_v54 = vxor.u32 2147483648, %v12075_v21  ;;  %v5385_v1 = vcvt.s32.f32 %v5378_v39  ;;  %v4190_v63 = vor.u32 %v4189_v5, %v4188_v53  ;;  %vm4192_vm13 = vcmp.lt.s32.totalorder %v4172_v4, 2 }
 0x446   : >> { %v5300_v62 = vsel %vm5298_vm8, %v5299_v16, %v12075_v21  ;;  %v5383_v20 = vand.u32 2147483647, %v5382_v50  ;;  %vm4193_vm14 = vcmp.lt.s32.totalorder %v4172_v4, 3  ;;  %vm4194_vm15 = vcmp.lt.s32.totalorder %v4172_v4, 4 }
 0x447   : >> { %v5297_v28 = vsel %vm5295_vm9, %v12073_v36, %v5296_v54  ;;  %v4196_v25 = vsel %vm4194_vm15, %v4184_v40, 2102212464  ;;  %v4199_v15 = vsel %vm4191_vm12, %v4178_v17, %v4181_v23  ;;  %v4200_v31 = vsel %vm4194_vm15, %v4187_v42, 920167782 }
 0x448   : >> { %v5301_v10 = vsel %vm5294_vm10, %v5297_v28, %v5300_v62  ;;  %v5386_v8 = vmul.f32 %v5385_v1, %v5383_v20  ;;  %v4195_v2 = vsel %vm4191_vm12, %v4175_v55, %v4178_v17  ;;  %v4201_v12 = vsel %vm4193_vm14, %v4184_v40, %v4200_v31 }
 0x449   : >> { %v15440_v37 = vsel %vm5291_vm11, nan, %v5301_v10   ;;  %v4197_v35 = vsel %vm4193_vm14, %v4181_v23, %v4196_v25  ;;  %v4202_v51 = vsel %vm4192_vm13, %v4199_v15, %v4201_v12  ;;  %v4203_v58 = vsel %vm4191_vm12, %v4181_v23, %v4184_v40  ;;  %v3855_v40 = vpop.f32.mrf.mxu1 }
 0x44a   : >> { %v5387_v52 = vxor.u32 2147483648, %v5386_v8  ;;  %v4204_v53 = vsel %vm4194_vm15, %v4190_v63, 1326507024  ;;  %v15446_v9 = vmul.u32.u64.low %v15411_v43, %v4202_v51  ;;  %v15447_v39 = vmul.u32.u64.high %v15411_v43, %v4202_v51, %v15446_v9 }
 0x44b   : >> { %v5396_v22 = vadd.s32 3, %v5392_v14  ;;  %v4205_v19 = vsel %vm4193_vm14, %v4187_v42, %v4204_v53  ;;  %v4270_v38 = vand.u32 8388607, %v4263_v32  ;;  %v4273_v5 = vadd.s32 1, %v11472_v49  ;;  %v19496_v49 = vld [vmem:[#allocation19_spill] sm:$0xff] }
 0x44c   : >> { %v5388_v36 = vsel %vm5305_vm3, %v5387_v52, %v5386_v8  ;;  %v4198_v55 = vsel %vm4192_vm13, %v4195_v2, %v4197_v35  ;;  %v4206_v17 = vsel %vm4192_vm13, %v4203_v58, %v4205_v19  ;;  %v4579_v23 = vshrl.u32 %v4578_v29, 23  ;;  %v19497_v53 = vld [vmem:[#allocation8_spill] sm:$0xff] }
 0x44d   : >> { %v5391_v6 = vsel %vm15354_vm5, %v15114_v30, %v5388_v36  ;;  %v15467_v14 = vmul.u32.u64.low %v15411_v43, %v4206_v17  ;;  %v15468_v21 = vmul.u32.u64.high %v15411_v43, %v4206_v17, %v15467_v14  ;;  %vm4274_vm2 = vcmp.gt.s32.totalorder %v4273_v5, 0 }
 0x44e   : >> { %12076 = vcosq.f32 %v5391_v6  ;;  %v15472_v16 = vadd.f32 %v19496_v49, %v15381_v33  ;;  %v4217_v4 = vadd.s32 1, %v15447_v39  ;;  %v4275_v50 = vsel %vm4274_vm2, %v4273_v5, 0 }
 0x44f   : >> { %12078 = vsinq.f32 %v5391_v6  ;;  %v4277_v29 = vand.u32 31, %v4275_v50  ;;  %v15477_v42 = vmul.f32 %v14576_v27, %v15404_v0  ;;  %v3856_v44 = vadd.f32 %v3855_v40, %v15402_v34 }
 0x450   : >> { %v15480_v54 = vand.u32 3, %v5396_v22  ;;  %v4214_v1 = vmul.u32 %v15411_v43, %v4198_v55  ;;  %v4271_v63 = vor.u32 8388608, %v4270_v38  ;;  %v4575_v62 = vand.u32 2147483647, %v15392_v48 }
 0x451   : >> { %vm4216_vm4 = vc.u32 %v15468_v21, %v15446_v9  ;;  %v15486_v33 = vshrl.u32 %v4275_v50, 5  ;;  %v4278_v20 = vsub.s32 32, %v4277_v29  ;;  %v11484_v28 = vadd.s32 4294967169, %v4579_v23 }
 0x452   : >> { %v4218_v25 = vsel %vm4216_vm4, %v4217_v4, %v15447_v39  ;;  %v4280_v27 = vshll.u32 %v19468_v57, %v4277_v29  ;;  %v4283_v34 = vshll.u32 %v19493_v24, %v4277_v29  ;;  %v4286_v0 = vshll.u32 %v19494_v7, %v4277_v29 }
 0x453   : >> { %v4219_v15 = vadd.s32 %v4218_v25, %v4214_v1  ;;  %v4281_v43 = vshrl.u32 %v19493_v24, %v4278_v20  ;;  %v4284_v31 = vshrl.u32 %v19494_v7, %v4278_v20  ;;  %v4289_v10 = vshll.u32 %v19495_v41, %v4277_v29 }
 0x454   : >> { %v4287_v8 = vshrl.u32 %v19495_v41, %v4278_v20  ;;  %v4290_v2 = vshrl.u32 %v19465_v61, %v4278_v20  ;;  %v4292_v12 = vshll.u32 %v19465_v61, %v4277_v29  ;;  %v4293_v35 = vshrl.u32 %v19467_v46, %v4278_v20 }
 0x455   : >> { %v4220_v51 = vadd.s32 536870912, %v4219_v15  ;;  %v4285_v58 = vor.u32 %v4284_v31, %v4283_v34  ;;  %v4585_v52 = vadd.s32 1, %v11484_v28  ;;  %v15500_v39 = vmul.f32 %v19497_v53, %v3856_v44 }
 0x456   : >> { %vm5399_vm1 = vcmp.eq.s32.totalorder %v15480_v54, 0  ;;  %v4282_v22 = vor.u32 %v4281_v43, %v4280_v27  ;;  %v4288_v19 = vor.u32 %v4287_v8, %v4286_v0  ;;  %v4291_v38 = vor.u32 %v4290_v2, %v4289_v10 }
 0x457   : >> { %v4294_v5 = vor.u32 %v4293_v35, %v4292_v12  ;;  %vm5402_vm3 = vcmp.eq.s32.totalorder %v15480_v54, 2  ;;  %v4221_v36 = vshrl.u32 %v4220_v51, 30  ;;  %vm4298_vm5 = vcmp.lt.s32.totalorder %v15486_v33, 4 }
 0x458   : >> { %v15505_v55 = vshll.u32 %v4271_v63, 8  ;;  %vm5395_vm6 = vweird.f32 %v15114_v30  ;;  %v4279_v17 = vshrl.u32 %v19468_v57, %v4278_v20  ;;  %vm4295_vm7 = vcmp.lt.s32.totalorder %v15486_v33, 1 }
 0x459   : >> { %v4304_v23 = vsel %vm4298_vm5, %v4291_v38, 920167782  ;;  %v15512_v40 = vand.u32 8388607, %v4575_v62  ;;  %v4222_v6 = vshll.u32 %v4221_v36, 30  ;;  %vm4297_vm8 = vcmp.lt.s32.totalorder %v15486_v33, 3 }
 0x45a   : >> { %v4300_v14 = vsel %vm4298_vm5, %v4288_v19, 2102212464  ;;  %v4307_v49 = vsel %vm4295_vm7, %v4285_v58, %v4288_v19  ;;  %v4303_v4 = vsel %vm4295_vm7, %v4282_v22, %v4285_v58  ;;  %v4305_v50 = vsel %vm4297_vm8, %v4288_v19, %v4304_v23 }
 0x45b   : >> { %v4308_v29 = vsel %vm4298_vm5, %v4294_v5, 1326507024  ;;  %vm4586_vm9 = vcmp.gt.s32.totalorder %v4585_v52, 0  ;;  %v12077_v44 = vpop.eup %12076  ;;  %v15515_v1 = vsub.s32 %v4219_v15, %v4222_v6  ;;  %vm4296_vm10 = vcmp.lt.s32.totalorder %v15486_v33, 2 }
 0x45c   : >> { %v4299_v63 = vsel %vm4295_vm7, %v4279_v17, %v4282_v22  ;;  %v4309_v20 = vsel %vm4297_vm8, %v4291_v38, %v4308_v29  ;;  %v12079_v28 = vpop.eup %12078  ;;  %v5403_v25 = vxor.u32 2147483648, %v12077_v44  ;;  %v4301_v27 = vsel %vm4297_vm8, %v4285_v58, %v4300_v14 }
 0x45d   : >> { %v4310_v34 = vsel %vm4296_vm10, %v4307_v49, %v4309_v20  ;;  %v4587_v0 = vsel %vm4586_vm9, %v4585_v52, 0  ;;  %v5400_v43 = vxor.u32 2147483648, %v12079_v28  ;;  %v4225_v31 = vsub.s32 0, %v15515_v1 }
 0x45e   : >> { %v4245_v10 = vsub.s32 4, %v4221_v36  ;;  %v4306_v8 = vsel %vm4296_vm10, %v4303_v4, %v4305_v50  ;;  %v5404_v15 = vsel %vm5402_vm3, %v5403_v25, %v12079_v28  ;;  %v4589_v35 = vand.u32 31, %v4587_v0 }
 0x45f   : >> { %v15526_v2 = vmul.u32.u64.low %v15505_v55, %v4310_v34  ;;  %v15527_v12 = vmul.u32.u64.high %v15505_v55, %v4310_v34, %v15526_v2  ;;  %vm5398_vm11 = vcmp.lt.s32.totalorder %v15480_v54, 2  ;;  %v5401_v51 = vsel %vm5399_vm1, %v12077_v44, %v5400_v43 }
 0x460   : >> { %v11469_v58 = vmin.u32 %v4225_v31, %v15515_v1  ;;  %v4302_v52 = vsel %vm4296_vm10, %v4299_v63, %v4301_v27  ;;  %v5405_v22 = vsel %vm5398_vm11, %v5401_v51, %v5404_v15  ;;  %v4590_v5 = vsub.s32 32, %v4589_v35 }
 0x461   : >> { %v15536_v19 = vmul.u32.u64.low %v15505_v55, %v4306_v8  ;;  %v15537_v38 = vmul.u32.u64.high %v15505_v55, %v4306_v8, %v15536_v19  ;;  %v15542_v17 = vsel %vm5395_vm6, nan, %v5405_v22   ;;  %vm4161_vm12 = vcmp.lt.s32.totalorder %v15346_v11, 0 }
 0x462   : >> { %v4227_v54 = vclz %v11469_v58  ;;  %v4583_v23 = vor.u32 8388608, %v15512_v40  ;;  %v4215_v33 = vadd.s32 %v15446_v9, %v15468_v21  ;;  %v15550_v6 = vsel %vm4161_vm12, %v4245_v10, %v4221_v36 }
 0x463   : >> { %v4318_v14 = vmul.u32 %v15505_v55, %v4302_v52  ;;  %v15555_v49 = vadd.f32 %v19490_v60, %v15477_v42  ;;  %vm4320_vm13 = vc.u32 %v15527_v12, %v15536_v19  ;;  %v15559_v4 = vshrl.u32 %v4587_v0, 5 }
 0x464   : >> { %v11470_v30 = vadd.s32 4294967294, %v4227_v54  ;;  %v4593_v40 = vshrl.u32 %v19493_v24, %v4590_v5  ;;  %v4321_v9 = vadd.s32 1, %v15537_v38  ;;  %v4592_v21 = vshll.u32 %v19468_v57, %v4589_v35 }
 0x465   : >> { %v4596_v36 = vshrl.u32 %v19494_v7, %v4590_v5  ;;  %v4599_v55 = vshrl.u32 %v19495_v41, %v4590_v5  ;;  %v4595_v60 = vshll.u32 %v19493_v24, %v4589_v35  ;;  %v4598_v42 = vshll.u32 %v19494_v7, %v4589_v35 }
 0x466   : >> { %vm11471_vm14 = vcmp.lt.s32.totalorder %v11470_v30, 0  ;;  %v4602_v50 = vshrl.u32 %v19465_v61, %v4590_v5  ;;  %v4322_v44 = vsel %vm4320_vm13, %v4321_v9, %v15537_v38  ;;  %v4594_v63 = vor.u32 %v4593_v40, %v4592_v21 }
 0x467   : >> { %v4230_v29 = vsel %vm11471_vm14, 0, %v11470_v30  ;;  %v4601_v20 = vshll.u32 %v19495_v41, %v4589_v35  ;;  %v4323_v27 = vadd.s32 %v4322_v44, %v4318_v14  ;;  %v4597_v34 = vor.u32 %v4596_v36, %v4595_v60 }
 0x468   : >> { %v4231_v28 = vsub.s32 32, %v4230_v29  ;;  %v4235_v25 = vsub.s32 4294967266, %v4230_v29  ;;  %v4600_v0 = vor.u32 %v4599_v55, %v4598_v42  ;;  %v4604_v31 = vshll.u32 %v19465_v61, %v4589_v35 }
 0x469   : >> { %v4603_v43 = vor.u32 %v4602_v50, %v4601_v20  ;;  %v4605_v10 = vshrl.u32 %v19467_v46, %v4590_v5  ;;  %v4232_v8 = vshll.u32 %v15515_v1, %v4230_v29  ;;  %v4324_v51 = vadd.s32 536870912, %v4323_v27 }
 0x46a   : >> { %v4233_v15 = vshrl.u32 %v4215_v33, %v4231_v28  ;;  %v4236_v2 = vadd.s32 127, %v4235_v25  ;;  %v4591_v58 = vshrl.u32 %v19468_v57, %v4590_v5  ;;  %vm4607_vm15 = vcmp.lt.s32.totalorder %v15559_v4, 1 }
 0x46b   : >> { %v4606_v52 = vor.u32 %v4605_v10, %v4604_v31  ;;  %vm4608_vm2 = vcmp.lt.s32.totalorder %v15559_v4, 2  ;;  %v4325_v54 = vshrl.u32 %v4324_v51, 30  ;;  %vm4610_vm4 = vcmp.lt.s32.totalorder %v15559_v4, 4 }
 0x46c   : >> { %v4234_v22 = vor.u32 %v4233_v15, %v4232_v8  ;;  %v4237_v38 = vshll.u32 %v4236_v2, 23  ;;  %vm4609_vm1 = vcmp.lt.s32.totalorder %v15559_v4, 3  ;;  %v4615_v35 = vsel %vm4607_vm15, %v4594_v63, %v4597_v34 }
 0x46d   : >> { %v4616_v14 = vsel %vm4610_vm4, %v4603_v43, 920167782  ;;  %v4620_v1 = vsel %vm4610_vm4, %v4606_v52, 1326507024  ;;  %v4326_v30 = vshll.u32 %v4325_v54, 30  ;;  %v4619_v9 = vsel %vm4607_vm15, %v4597_v34, %v4600_v0 }
 0x46e   : >> { %v4238_v33 = vor.u32 4788187, %v4237_v38  ;;  %v4612_v40 = vsel %vm4610_vm4, %v4600_v0, 2102212464  ;;  %v4611_v5 = vsel %vm4607_vm15, %v4591_v58, %v4594_v63  ;;  %v4617_v21 = vsel %vm4609_vm1, %v4600_v0, %v4616_v14 }
 0x46f   : >> { %v4621_v36 = vsel %vm4609_vm1, %v4603_v43, %v4620_v1  ;;  %v4623_v55 = vshll.u32 %v4583_v23, 8  ;;  %v4241_v42 = vcvt.s32.f32 %v4234_v22  ;;  %v15583_v50 = vsub.s32 %v4323_v27, %v4326_v30  ;;  %v19500_v43 = vld [vmem:[#allocation20_spill] sm:$0xff] }
 0x470   : >> { %v4239_v60 = vand.u32 2147483647, %v4238_v33  ;;  %v4618_v29 = vsel %vm4608_vm2, %v4615_v35, %v4617_v21  ;;  %v4613_v44 = vsel %vm4609_vm1, %v4597_v34, %v4612_v40  ;;  %v4622_v63 = vsel %vm4608_vm2, %v4619_v9, %v4621_v36  ;;  %v3756_v21 = vpop.f32.mrf.mxu0 }
 0x471   : >> { %v15591_v20 = vmul.u32.u64.low %v4623_v55, %v4618_v29  ;;  %v15592_v28 = vmul.u32.u64.high %v4623_v55, %v4618_v29, %v15591_v20  ;;  %vm15597_vm3 = vcmp.le.f32.partialorder %v4159_v18, 0.7853982  ;;  %v4329_v27 = vsub.s32 0, %v15583_v50 }
 0x472   : >> { %v4242_v25 = vmul.f32 %v4241_v42, %v4239_v60  ;;  %v4349_v0 = vsub.s32 4, %v4325_v54  ;;  %v3530_v34 = vadd.f32 %v19500_v43, %v15397_v13  ;;  %v4248_v31 = vsel %vm15597_vm3, 0, %v15550_v6  ;;  %v19501_v6 = vld [vmem:[#allocation11_spill] sm:$0xff] }
 0x473   : >> { %v15607_v10 = vmul.u32.u64.low %v4623_v55, %v4622_v63  ;;  %v15608_v8 = vmul.u32.u64.high %v4623_v55, %v4622_v63, %v15607_v10  ;;  %v11473_v18 = vmin.u32 %v4329_v27, %v15583_v50  ;;  %v4614_v2 = vsel %vm4608_vm2, %v4611_v5, %v4613_v44 }
 0x474   : >> { %v4243_v15 = vxor.u32 2147483648, %v4242_v25  ;;  %v4682_v51 = vand.u32 2139095040, %v15555_v49  ;;  %v15616_v58 = vadd.f32 %v15254_v56, %v15400_v26  ;;  %vm4265_vm5 = vcmp.lt.s32.totalorder %v15372_v47, 0 }
 0x475   : >> { %v4633_v13 = vadd.s32 1, %v15592_v28  ;;  %v15622_v52 = vadd.f32 %v19501_v6, %v15500_v39  ;;  %v4252_v38 = vadd.s32 3, %v4248_v31  ;;  %v4331_v4 = vclz %v11473_v18 }
 0x476   : >> { %v4244_v22 = vsel %vm4161_vm12, %v4243_v15, %v4242_v25  ;;  %v4350_v35 = vsel %vm4265_vm5, %v4349_v0, %v4325_v54  ;;  %v4630_v26 = vmul.u32 %v4623_v55, %v4614_v2  ;;  %vm4632_vm6 = vc.u32 %v15608_v8, %v15591_v20 }
 0x477   : >> { %v4247_v56 = vsel %vm15597_vm3, %v15346_v11, %v4244_v22  ;;  %v4679_v14 = vand.u32 2147483647, %v15555_v49  ;;  %v11474_v39 = vadd.s32 4294967294, %v4331_v4  ;;  %v4634_v1 = vsel %vm4632_vm6, %v4633_v13, %v15592_v28 }
 0x478   : >> { %12080 = vcosq.f32 %v4247_v56  ;;  %v4683_v33 = vshrl.u32 %v4682_v51, 23  ;;  %v3638_v30 = vadd.f32 %v15256_v3, %v3530_v34  ;;  %vm15638_vm7 = vcmp.le.f32.partialorder %v4263_v32, 0.7853982 }
 0x479   : >> { %12082 = vsinq.f32 %v4247_v56  ;;  %v4635_v40 = vadd.s32 %v4634_v1, %v4630_v26  ;;  %vm11475_vm8 = vcmp.lt.s32.totalorder %v11474_v39, 0  ;;  %v4352_v9 = vsel %vm15638_vm7, 0, %v4350_v35 }
 0x47a   : >> { %v11488_v5 = vadd.s32 4294967169, %v4683_v33  ;;  %v4994_v36 = vand.u32 2139095040, %v15622_v52  ;;  %v15645_v55 = vand.u32 3, %v4252_v38  ;;  %v4334_v60 = vsel %vm11475_vm8, 0, %v11474_v39 }
 0x47b   : >> { %v4636_v3 = vadd.s32 536870912, %v4635_v40  ;;  %v4686_v42 = vand.u32 8388607, %v4679_v14  ;;  %v4319_v32 = vadd.s32 %v15536_v19, %v15527_v12  ;;  %v4335_v29 = vsub.s32 32, %v4334_v60 }
 0x47c   : >> { %v4339_v44 = vsub.s32 4294967266, %v4334_v60  ;;  %v4689_v63 = vadd.s32 1, %v11488_v5  ;;  %v4356_v28 = vadd.s32 3, %v4352_v9  ;;  %v15651_v25 = vadd.f32 %v3756_v21, %v3638_v30 }
 0x47d   : >> { %v4637_v23 = vshrl.u32 %v4636_v3, 30  ;;  %v4995_v27 = vshrl.u32 %v4994_v36, 23  ;;  %v4336_v0 = vshll.u32 %v15583_v50, %v4334_v60  ;;  %v4337_v43 = vshrl.u32 %v4319_v32, %v4335_v29 }
 0x47e   : >> { %v4340_v34 = vadd.s32 127, %v4339_v44  ;;  %vm4690_vm9 = vcmp.gt.s32.totalorder %v4689_v63, 0  ;;  %vm4577_vm10 = vcmp.lt.s32.totalorder %v15392_v48, 0  ;;  %v4687_v10 = vor.u32 8388608, %v4686_v42 }
 0x47f   : >> { %v4638_v31 = vshll.u32 %v4637_v23, 30  ;;  %v4691_v15 = vsel %vm4690_vm9, %v4689_v63, 0  ;;  %vm4255_vm11 = vcmp.eq.s32.totalorder %v15645_v55, 0  ;;  %v4338_v12 = vor.u32 %v4337_v43, %v4336_v0 }
 0x480   : >> { %v4341_v19 = vshll.u32 %v4340_v34, 23  ;;  %v4693_v18 = vand.u32 31, %v4691_v15  ;;  %vm4254_vm12 = vcmp.lt.s32.totalorder %v15645_v55, 2  ;;  %vm4258_vm13 = vcmp.eq.s32.totalorder %v15645_v55, 2 }
 0x481   : >> { %v15658_v2 = vsub.s32 %v4635_v40, %v4638_v31  ;;  %v4661_v50 = vsub.s32 4, %v4637_v23  ;;  %v11500_v51 = vadd.s32 4294967169, %v4995_v27  ;;  %vm4251_vm14 = vweird.f32 %v15346_v11 }
 0x482   : >> { %v4342_v13 = vor.u32 4788187, %v4341_v19  ;;  %v15661_v22 = vand.u32 3, %v4356_v28  ;;  %v4631_v38 = vadd.s32 %v15591_v20, %v15608_v8  ;;  %v4694_v4 = vsub.s32 32, %v4693_v18 }
 0x483   : >> { %v4641_v35 = vsub.s32 0, %v15658_v2  ;;  %v15666_v56 = vshrl.u32 %v4691_v15, 5  ;;  %v15668_v26 = vshll.u32 %v4687_v10, 8  ;;  %v4991_v39 = vand.u32 2147483647, %v15622_v52 }
 0x484   : >> { %v4343_v1 = vand.u32 2147483647, %v4342_v13  ;;  %v4345_v33 = vcvt.s32.f32 %v4338_v12  ;;  %v4697_v30 = vshrl.u32 %v19493_v24, %v4694_v4  ;;  %v4700_v40 = vshrl.u32 %v19494_v7, %v4694_v4 }
 0x485   : >> { %v12081_v9 = vpop.eup %12080  ;;  %v11485_v5 = vmin.u32 %v4641_v35, %v15658_v2  ;;  %v15676_v20 = vsel %vm4577_vm10, %v4661_v50, %v4637_v23  ;;  %v4696_v8 = vshll.u32 %v19468_v57, %v4693_v18  ;;  %v5001_v21 = vadd.s32 1, %v11500_v51 }
 0x486   : >> { %v12083_v36 = vpop.eup %12082  ;;  %v4259_v60 = vxor.u32 2147483648, %v12081_v9  ;;  %v4346_v3 = vmul.f32 %v4345_v33, %v4343_v1  ;;  %v4695_v42 = vshrl.u32 %v19468_v57, %v4694_v4  ;;  %v4699_v32 = vshll.u32 %v19493_v24, %v4693_v18 }
 0x487   : >> { %v4256_v29 = vxor.u32 2147483648, %v12083_v36  ;;  %v4643_v44 = vclz %v11485_v5  ;;  %v4702_v63 = vshll.u32 %v19494_v7, %v4693_v18  ;;  %v4703_v28 = vshrl.u32 %v19495_v41, %v4694_v4 }
 0x488   : >> { %v4260_v23 = vsel %vm4258_vm13, %v4259_v60, %v12083_v36  ;;  %v4347_v27 = vxor.u32 2147483648, %v4346_v3  ;;  %v4698_v0 = vor.u32 %v4697_v30, %v4696_v8  ;;  %v4701_v43 = vor.u32 %v4700_v40, %v4699_v32 }
 0x489   : >> { %v4257_v34 = vsel %vm4255_vm11, %v12081_v9, %v4256_v29  ;;  %vm15689_vm15 = vcmp.le.f32.partialorder %v4575_v62, 0.7853982  ;;  %v11486_v10 = vadd.s32 4294967294, %v4643_v44  ;;  %v4705_v15 = vshll.u32 %v19495_v41, %v4693_v18 }
 0x48a   : >> { %v4706_v12 = vshrl.u32 %v19465_v61, %v4694_v4  ;;  %v4261_v19 = vsel %vm4254_vm12, %v4257_v34, %v4260_v23  ;;  %v4348_v50 = vsel %vm4265_vm5, %v4347_v27, %v4346_v3  ;;  %v4708_v51 = vshll.u32 %v19465_v61, %v4693_v18 }
 0x48b   : >> { %v4709_v13 = vshrl.u32 %v19467_v46, %v4694_v4  ;;  %v15703_v62 = vsel %vm4251_vm14, nan, %v4261_v19   ;;  %v4351_v35 = vsel %vm15638_vm7, %v15372_v47, %v4348_v50  ;;  %vm11487_vm2 = vcmp.lt.s32.totalorder %v11486_v10, 0 }
 0x48c   : >> { %v4704_v1 = vor.u32 %v4703_v28, %v4702_v63  ;;  %12084 = vcosq.f32 %v4351_v35  ;;  %v4646_v55 = vsel %vm11487_vm2, 0, %v11486_v10  ;;  %v4707_v33 = vor.u32 %v4706_v12, %v4705_v15 }
 0x48d   : >> { %v4710_v30 = vor.u32 %v4709_v13, %v4708_v51  ;;  %12086 = vsinq.f32 %v4351_v35  ;;  %v4647_v40 = vsub.s32 32, %v4646_v55  ;;  %v4651_v9 = vsub.s32 4294967266, %v4646_v55 }
 0x48e   : >> { %vm4711_vm4 = vcmp.lt.s32.totalorder %v15666_v56, 1  ;;  %v4648_v18 = vshll.u32 %v15658_v2, %v4646_v55  ;;  %vm4713_vm1 = vcmp.lt.s32.totalorder %v15666_v56, 3  ;;  %vm4714_vm3 = vcmp.lt.s32.totalorder %v15666_v56, 4 }
 0x48f   : >> { %v4715_v11 = vsel %vm4711_vm4, %v4695_v42, %v4698_v0  ;;  %v4649_v54 = vshrl.u32 %v4631_v38, %v4647_v40  ;;  %v4652_v4 = vadd.s32 127, %v4651_v9  ;;  %v4716_v5 = vsel %vm4714_vm3, %v4704_v1, 2102212464 }
 0x490   : >> { %v4719_v8 = vsel %vm4711_vm4, %v4698_v0, %v4701_v43  ;;  %v4717_v36 = vsel %vm4713_vm1, %v4701_v43, %v4716_v5  ;;  %v4720_v60 = vsel %vm4714_vm3, %v4707_v33, 920167782  ;;  %v4723_v3 = vsel %vm4711_vm4, %v4701_v43, %v4704_v1  ;;  %v3857_v43 = vpop.f32.mrf.mxu1 }
 0x491   : >> { %v4724_v32 = vsel %vm4714_vm3, %v4710_v30, 1326507024  ;;  %v4650_v29 = vor.u32 %v4649_v54, %v4648_v18  ;;  %v4653_v44 = vshll.u32 %v4652_v4, 23  ;;  %vm4712_vm5 = vcmp.lt.s32.totalorder %v15666_v56, 2 }
 0x492   : >> { %v4721_v2 = vsel %vm4713_vm1, %v4704_v1, %v4720_v60  ;;  %v4664_v38 = vsel %vm15689_vm15, 0, %v15676_v20  ;;  %v4725_v63 = vsel %vm4713_vm1, %v4707_v33, %v4724_v32  ;;  %vm5002_vm6 = vcmp.gt.s32.totalorder %v5001_v21, 0 }
 0x493   : >> { %v4722_v42 = vsel %vm4712_vm5, %v4719_v8, %v4721_v2  ;;  %v4654_v28 = vor.u32 4788187, %v4653_v44  ;;  %v4718_v23 = vsel %vm4712_vm5, %v4715_v11, %v4717_v36  ;;  %v4726_v27 = vsel %vm4712_vm5, %v4723_v3, %v4725_v63 }
 0x494   : >> { %v5003_v0 = vsel %vm5002_vm6, %v5001_v21, 0  ;;  %v15723_v34 = vmul.u32.u64.low %v15668_v26, %v4726_v27  ;;  %v15724_v10 = vmul.u32.u64.high %v15668_v26, %v4726_v27, %v15723_v34  ;;  %vm4358_vm7 = vcmp.lt.s32.totalorder %v15661_v22, 2 }
 0x495   : >> { %v15727_v15 = vmul.u32.u64.low %v15668_v26, %v4722_v42  ;;  %v15728_v12 = vmul.u32.u64.high %v15668_v26, %v4722_v42, %v15727_v15  ;;  %vm4359_vm8 = vcmp.eq.s32.totalorder %v15661_v22, 0  ;;  %v4655_v56 = vand.u32 2147483647, %v4654_v28 }
 0x496   : >> { %v4657_v20 = vcvt.s32.f32 %v4650_v29  ;;  %v5005_v19 = vand.u32 31, %v5003_v0  ;;  %vm4355_vm9 = vweird.f32 %v15372_v47  ;;  %vm4362_vm11 = vcmp.eq.s32.totalorder %v15661_v22, 2 }
 0x497   : >> { %v4668_v21 = vadd.s32 3, %v4664_v38  ;;  %v4998_v50 = vand.u32 8388607, %v4991_v39  ;;  %v3858_v51 = vadd.f32 %v3857_v43, %v15651_v25  ;;  %v4734_v35 = vmul.u32 %v15668_v26, %v4718_v23 }
 0x498   : >> { %v4658_v13 = vmul.f32 %v4657_v20, %v4655_v56  ;;  %v15739_v1 = vshrl.u32 %v5003_v0, 5  ;;  %v5006_v55 = vsub.s32 32, %v5005_v19  ;;  %vm4736_vm12 = vc.u32 %v15724_v10, %v15727_v15 }
 0x499   : >> { %v4737_v33 = vadd.s32 1, %v15728_v12  ;;  %v5008_v30 = vshll.u32 %v19468_v57, %v5005_v19  ;;  %v5011_v40 = vshll.u32 %v19493_v24, %v5005_v19  ;;  %v12085_v9 = vpop.eup %12084  ;;  %v5014_v26 = vshll.u32 %v19494_v7, %v5005_v19 }
 0x49a   : >> { %v4659_v18 = vxor.u32 2147483648, %v4658_v13  ;;  %v5009_v11 = vshrl.u32 %v19493_v24, %v5006_v55  ;;  %v5012_v25 = vshrl.u32 %v19494_v7, %v5006_v55  ;;  %v12087_v54 = vpop.eup %12086  ;;  %v4363_v4 = vxor.u32 2147483648, %v12085_v9 }
 0x49b   : >> { %v4738_v5 = vsel %vm4736_vm12, %v4737_v33, %v15728_v12  ;;  %v5015_v8 = vshrl.u32 %v19495_v41, %v5006_v55  ;;  %v5017_v36 = vshll.u32 %v19495_v41, %v5005_v19  ;;  %v4360_v60 = vxor.u32 2147483648, %v12087_v54 }
 0x49c   : >> { %v4660_v3 = vsel %vm4577_vm10, %v4659_v18, %v4658_v13  ;;  %v4739_v32 = vadd.s32 %v4738_v5, %v4734_v35  ;;  %v5010_v29 = vor.u32 %v5009_v11, %v5008_v30  ;;  %v4364_v44 = vsel %vm4362_vm11, %v4363_v4, %v12087_v54  ;;  %v19506_v54 = vld [vmem:[#allocation23_spill] sm:$0xff] }
 0x49d   : >> { %v4663_v2 = vsel %vm15689_vm15, %v15392_v48, %v4660_v3  ;;  %v5013_v38 = vor.u32 %v5012_v25, %v5011_v40  ;;  %v5016_v42 = vor.u32 %v5015_v8, %v5014_v26  ;;  %v4361_v63 = vsel %vm4359_vm8, %v12085_v9, %v4360_v60  ;;  %v3761_v9 = vpop.f32.mrf.mxu0 }
 0x49e   : >> { %12088 = vcosq.f32 %v4663_v2  ;;  %v4740_v28 = vadd.s32 536870912, %v4739_v32  ;;  %v5018_v23 = vshrl.u32 %v19465_v61, %v5006_v55  ;;  %v4365_v27 = vsel %vm4358_vm7, %v4361_v63, %v4364_v44 }
 0x49f   : >> { %12090 = vsinq.f32 %v4663_v2  ;;  %v5020_v0 = vshll.u32 %v19465_v61, %v5005_v19  ;;  %v5021_v43 = vshrl.u32 %v19467_v46, %v5006_v55  ;;  %v3645_v31 = vadd.f32 %v15275_v59, %v15616_v58 }
 0x4a0   : >> { %v15770_v34 = vsel %vm4355_vm9, nan, %v4365_v27   ;;  %v4741_v12 = vshrl.u32 %v4740_v28, 30  ;;  %v5019_v56 = vor.u32 %v5018_v23, %v5017_v36  ;;  %v15772_v20 = vand.u32 3, %v4668_v21 }
 0x4a1   : >> { %v4999_v13 = vor.u32 8388608, %v4998_v50  ;;  %v5022_v35 = vor.u32 %v5021_v43, %v5020_v0  ;;  %v3903_v22 = vmul.f32 %v19497_v53, %v3858_v51  ;;  %v5007_v19 = vshrl.u32 %v19468_v57, %v5006_v55 }
 0x4a2   : >> { %v4742_v33 = vshll.u32 %v4741_v12, 30  ;;  %vm5023_vm10 = vcmp.lt.s32.totalorder %v15739_v1, 1  ;;  %vm5026_vm13 = vcmp.lt.s32.totalorder %v15739_v1, 4  ;;  %vm5025_vm14 = vcmp.lt.s32.totalorder %v15739_v1, 3 }
 0x4a3   : >> { %v5028_v59 = vsel %vm5026_vm13, %v5016_v42, 2102212464  ;;  %v5031_v47 = vsel %vm5023_vm10, %v5010_v29, %v5013_v38  ;;  %v5032_v58 = vsel %vm5026_vm13, %v5019_v56, 920167782  ;;  %vm5024_vm15 = vcmp.lt.s32.totalorder %v15739_v1, 2 }
 0x4a4   : >> { %v15779_v30 = vsub.s32 %v4739_v32, %v4742_v33  ;;  %v5033_v21 = vsel %vm5025_vm14, %v5016_v42, %v5032_v58  ;;  %v5035_v50 = vsel %vm5023_vm10, %v5013_v38, %v5016_v42  ;;  %v5027_v40 = vsel %vm5023_vm10, %v5007_v19, %v5010_v29  ;;  %v3862_v42 = vpop.f32.mrf.mxu1 }
 0x4a5   : >> { %v5034_v53 = vsel %vm5024_vm15, %v5031_v47, %v5033_v21  ;;  %v5036_v51 = vsel %vm5026_vm13, %v5022_v35, 1326507024  ;;  %v5039_v55 = vshll.u32 %v4999_v13, 8  ;;  %v5029_v11 = vsel %vm5025_vm14, %v5013_v38, %v5028_v59 }
 0x4a6   : >> { %v4745_v18 = vsub.s32 0, %v15779_v30  ;;  %v5037_v25 = vsel %vm5025_vm14, %v5019_v56, %v5036_v51  ;;  %v15786_v26 = vadd.f32 %v19501_v6, %v3903_v22  ;;  %v3538_v4 = vadd.f32 %v19506_v54, %v15472_v16 }
 0x4a7   : >> { %v5038_v5 = vsel %vm5024_vm15, %v5035_v50, %v5037_v25  ;;  %v15792_v8 = vmul.u32.u64.low %v5039_v55, %v5034_v53  ;;  %v15793_v36 = vmul.u32.u64.high %v5039_v55, %v5034_v53, %v15792_v8  ;;  %vm4667_vm2 = vweird.f32 %v15392_v48  ;;  %v19511_v48 = vld [vmem:[#allocation24_spill] sm:$0xff] }
 0x4a8   : >> { %v11489_v60 = vmin.u32 %v4745_v18, %v15779_v30  ;;  %v15797_v3 = vmul.u32.u64.low %v5039_v55, %v5038_v5  ;;  %v15798_v32 = vmul.u32.u64.high %v5039_v55, %v5038_v5, %v15797_v3  ;;  %v3762_v29 = vadd.f32 %v3761_v9, %v3645_v31 }
 0x4a9   : >> { %vm15802_vm4 = vcmp.le.f32.partialorder %v4679_v14, 0.7853982  ;;  %vm4681_vm1 = vcmp.lt.s32.totalorder %v15555_v49, 0  ;;  %v5030_v16 = vsel %vm5024_vm15, %v5027_v40, %v5029_v11  ;;  %v5098_v44 = vand.u32 2139095040, %v15786_v26 }
 0x4aa   : >> { %vm4670_vm3 = vcmp.lt.s32.totalorder %v15772_v20, 2  ;;  %vm4671_vm5 = vcmp.eq.s32.totalorder %v15772_v20, 0  ;;  %v4747_v2 = vclz %v11489_v60  ;;  %v4765_v38 = vsub.s32 4, %v4741_v12 }
 0x4ab   : >> { %v12089_v63 = vpop.eup %12088  ;;  %vm4674_vm6 = vcmp.eq.s32.totalorder %v15772_v20, 2  ;;  %v5049_v14 = vadd.s32 1, %v15793_v36  ;;  %v5095_v28 = vand.u32 2147483647, %v15786_v26  ;;  %v5099_v23 = vshrl.u32 %v5098_v44, 23 }
 0x4ac   : >> { %v12091_v27 = vpop.eup %12090  ;;  %v4675_v1 = vxor.u32 2147483648, %v12089_v63  ;;  %v11490_v0 = vadd.s32 4294967294, %v4747_v2  ;;  %v5046_v43 = vmul.u32 %v5039_v55, %v5030_v16  ;;  %vm5048_vm7 = vc.u32 %v15798_v32, %v15792_v8 }
 0x4ad   : >> { %v4672_v31 = vxor.u32 2147483648, %v12091_v27  ;;  %v5050_v56 = vsel %vm5048_vm7, %v5049_v14, %v15793_v36  ;;  %v11504_v13 = vadd.s32 4294967169, %v5099_v23  ;;  %v3863_v35 = vadd.f32 %v3862_v42, %v3762_v29  ;;  %v19510_v36 = vld [vmem:[#allocation9_spill] sm:$0xff] }
 0x4ae   : >> { %v4676_v22 = vsel %vm4674_vm6, %v4675_v1, %v12091_v27  ;;  %vm11491_vm8 = vcmp.lt.s32.totalorder %v11490_v0, 0  ;;  %v4766_v33 = vsel %vm4681_vm1, %v4765_v38, %v4741_v12  ;;  %v5051_v19 = vadd.s32 %v5050_v56, %v5046_v43  ;;  %v19512_v1 = vld [vmem:[#allocation14_spill] sm:$0xff] }
 0x4af   : >> { %v4673_v59 = vsel %vm4671_vm5, %v12089_v63, %v4672_v31  ;;  %v4750_v47 = vsel %vm11491_vm8, 0, %v11490_v0  ;;  %v5102_v58 = vand.u32 8388607, %v5095_v28  ;;  %v5105_v21 = vadd.s32 1, %v11504_v13 }
 0x4b0   : >> { %v4677_v50 = vsel %vm4670_vm3, %v4673_v59, %v4676_v22  ;;  %v4735_v40 = vadd.s32 %v15727_v15, %v15724_v10  ;;  %v4751_v53 = vsub.s32 32, %v4750_v47  ;;  %v4755_v51 = vsub.s32 4294967266, %v4750_v47  ;;  %v3763_v15 = vpop.f32.mrf.mxu0 }
 0x4b1   : >> { %v15829_v42 = vsel %vm4667_vm2, nan, %v4677_v50   ;;  %v4768_v12 = vsel %vm15802_vm4, 0, %v4766_v33  ;;  %v5052_v9 = vadd.s32 536870912, %v5051_v19  ;;  %vm5106_vm9 = vcmp.gt.s32.totalorder %v5105_v21, 0 }
 0x4b2   : >> { %v19509_v55 = vmov %v15829_v42  ;;  %v4752_v18 = vshll.u32 %v15779_v30, %v4750_v47  ;;  %v4753_v11 = vshrl.u32 %v4735_v40, %v4751_v53  ;;  %v4756_v25 = vadd.s32 127, %v4755_v51 }
 0x4b3   : >> { %v5107_v20 = vsel %vm5106_vm9, %v5105_v21, 0  ;;  %v15834_v54 = vshrl.u32 %v5052_v9, 30  ;;  %v5103_v5 = vor.u32 8388608, %v5102_v58  ;;  %v3906_v60 = vmul.f32 %v19510_v36, %v3863_v35 }
 0x4b4   : >> { %v5109_v10 = vand.u32 31, %v5107_v20  ;;  %v3647_v3 = vadd.f32 %v19511_v48, %v3538_v4  ;;  %v4754_v29 = vor.u32 %v4753_v11, %v4752_v18  ;;  %v4757_v16 = vshll.u32 %v4756_v25, 23 }
 0x4b5   : >> { %v5054_v44 = vshll.u32 %v15834_v54, 30  ;;  %v15839_v42 = vadd.s32 3, %v4768_v12  ;;  %v5047_v30 = vadd.s32 %v15792_v8, %v15798_v32  ;;  %v15847_v27 = vshll.u32 %v5103_v5, 8 }
 0x4b6   : >> { %v5110_v2 = vsub.s32 32, %v5109_v10  ;;  %v4758_v38 = vor.u32 4788187, %v4757_v16  ;;  %v15842_v63 = vadd.f32 %v3763_v15, %v3647_v3  ;;  %v15850_v4 = vadd.f32 %v19512_v1, %v3906_v60 }
 0x4b7   : >> { %v15844_v14 = vsub.s32 %v5051_v19, %v5054_v44  ;;  %v4761_v43 = vcvt.s32.f32 %v4754_v29  ;;  %v5108_v8 = vshrl.u32 %v5107_v20, 5  ;;  %v5112_v32 = vshll.u32 %v19468_v57, %v5109_v10 }
 0x4b8   : >> { %v5113_v23 = vshrl.u32 %v19493_v24, %v5110_v2  ;;  %v4759_v0 = vand.u32 2147483647, %v4758_v38  ;;  %v5116_v31 = vshrl.u32 %v19494_v7, %v5110_v2  ;;  %v5119_v56 = vshrl.u32 %v19495_v41, %v5110_v2 }
 0x4b9   : >> { %v5057_v13 = vsub.s32 0, %v15844_v14  ;;  %v5115_v35 = vshll.u32 %v19493_v24, %v5109_v10  ;;  %v5118_v33 = vshll.u32 %v19494_v7, %v5109_v10  ;;  %v5121_v19 = vshll.u32 %v19495_v41, %v5109_v10 }
 0x4ba   : >> { %v4762_v22 = vmul.f32 %v4761_v43, %v4759_v0  ;;  %v5122_v59 = vshrl.u32 %v19465_v61, %v5110_v2  ;;  %v5114_v58 = vor.u32 %v5113_v23, %v5112_v32  ;;  %v5125_v50 = vshrl.u32 %v19467_v46, %v5110_v2 }
 0x4bb   : >> { %v11501_v47 = vmin.u32 %v5057_v13, %v15844_v14  ;;  %v5117_v21 = vor.u32 %v5116_v31, %v5115_v35  ;;  %v5120_v53 = vor.u32 %v5119_v56, %v5118_v33  ;;  %v5124_v12 = vshll.u32 %v19465_v61, %v5109_v10 }
 0x4bc   : >> { %v4763_v40 = vxor.u32 2147483648, %v4762_v22  ;;  %v5123_v51 = vor.u32 %v5122_v59, %v5121_v19  ;;  %v5077_v18 = vsub.s32 4, %v15834_v54  ;;  %v5111_v11 = vshrl.u32 %v19468_v57, %v5110_v2 }
 0x4bd   : >> { %v5059_v9 = vclz %v11501_v47  ;;  %v5410_v25 = vand.u32 2139095040, %v15850_v4  ;;  %v5126_v5 = vor.u32 %v5125_v50, %v5124_v12  ;;  %vm5127_vm11 = vcmp.lt.s32.totalorder %v5108_v8, 1 }
 0x4be   : >> { %v4764_v20 = vsel %vm4681_vm1, %v4763_v40, %v4762_v22  ;;  %vm5128_vm12 = vcmp.lt.s32.totalorder %v5108_v8, 2  ;;  %vm5129_vm10 = vcmp.lt.s32.totalorder %v5108_v8, 3  ;;  %vm5130_vm13 = vcmp.lt.s32.totalorder %v5108_v8, 4  ;;  %v3864_v22 = vpop.f32.mrf.mxu1 }
 0x4bf   : >> { %v4767_v15 = vsel %vm15802_vm4, %v15555_v49, %v4764_v20  ;;  %v11502_v60 = vadd.s32 4294967294, %v5059_v9  ;;  %v5132_v10 = vsel %vm5130_vm13, %v5120_v53, 2102212464  ;;  %v5135_v48 = vsel %vm5127_vm11, %v5114_v58, %v5117_v21 }
 0x4c0   : >> { %12092 = vcosq.f32 %v4767_v15  ;;  %v5136_v3 = vsel %vm5130_vm13, %v5123_v51, 920167782  ;;  %v5131_v29 = vsel %vm5127_vm11, %v5111_v11, %v5114_v58  ;;  %v5139_v6 = vsel %vm5127_vm11, %v5117_v21, %v5120_v53 }
 0x4c1   : >> { %12094 = vsinq.f32 %v4767_v15  ;;  %vm11503_vm14 = vcmp.lt.s32.totalorder %v11502_v60, 0  ;;  %v5137_v16 = vsel %vm5129_vm10, %v5120_v53, %v5136_v3  ;;  %v5140_v38 = vsel %vm5130_vm13, %v5126_v5, 1326507024 }
 0x4c2   : >> { %v5062_v44 = vsel %vm11503_vm14, 0, %v11502_v60  ;;  %v5138_v2 = vsel %vm5128_vm12, %v5135_v48, %v5137_v16  ;;  %v5133_v43 = vsel %vm5129_vm10, %v5117_v21, %v5132_v10  ;;  %v5141_v31 = vsel %vm5129_vm10, %v5123_v51, %v5140_v38 }
 0x4c3   : >> { %v5063_v23 = vsub.s32 32, %v5062_v44  ;;  %v5067_v0 = vsub.s32 4294967266, %v5062_v44  ;;  %v5064_v56 = vshll.u32 %v15844_v14, %v5062_v44  ;;  %v5142_v13 = vsel %vm5128_vm12, %v5139_v6, %v5141_v31 }
 0x4c4   : >> { %v15881_v32 = vmul.u32.u64.low %v15847_v27, %v5138_v2  ;;  %v15882_v35 = vmul.u32.u64.high %v15847_v27, %v5138_v2, %v15881_v32  ;;  %v15886_v59 = vmul.u32.u64.low %v15847_v27, %v5142_v13  ;;  %v15887_v47 = vmul.u32.u64.high %v15847_v27, %v5142_v13, %v15886_v59 }
 0x4c5   : >> { %v5065_v33 = vshrl.u32 %v5047_v30, %v5063_v23  ;;  %v5068_v19 = vadd.s32 127, %v5067_v0  ;;  %vm4993_vm15 = vcmp.lt.s32.totalorder %v15622_v52, 0  ;;  %v5134_v58 = vsel %vm5128_vm12, %v5131_v29, %v5133_v43 }
 0x4c6   : >> { %v5411_v21 = vshrl.u32 %v5410_v25, 23  ;;  %v5078_v40 = vsel %vm4993_vm15, %v5077_v18, %v15834_v54  ;;  %v3865_v53 = vadd.f32 %v3864_v22, %v15842_v63  ;;  %vm15897_vm2 = vcmp.le.f32.partialorder %v4991_v39, 0.7853982 }
 0x4c7   : >> { %v5066_v14 = vor.u32 %v5065_v33, %v5064_v56  ;;  %v5069_v50 = vshll.u32 %v5068_v19, 23  ;;  %v5153_v51 = vadd.s32 1, %v15882_v35  ;;  %v4773_v8 = vand.u32 3, %v15839_v42 }
 0x4c8   : >> { %v11516_v12 = vadd.s32 4294967169, %v5411_v21  ;;  %v5150_v11 = vmul.u32 %v15847_v27, %v5134_v58  ;;  %vm5152_vm4 = vc.u32 %v15887_v47, %v15881_v32  ;;  %v5080_v54 = vsel %vm15897_vm2, 0, %v5078_v40 }
 0x4c9   : >> { %v5070_v9 = vor.u32 4788187, %v5069_v50  ;;  %v5154_v63 = vsel %vm5152_vm4, %v5153_v51, %v15882_v35  ;;  %v5407_v39 = vand.u32 2147483647, %v15850_v4  ;;  %v5073_v20 = vcvt.s32.f32 %v5066_v14 }
 0x4ca   : >> { %v5417_v18 = vadd.s32 1, %v11516_v12  ;;  %v5155_v5 = vadd.s32 %v5154_v63, %v5150_v11  ;;  %v3907_v15 = vmul.f32 %v19510_v36, %v3865_v53  ;;  %vm4771_vm1 = vweird.f32 %v15555_v49 }
 0x4cb   : >> { %v5071_v25 = vand.u32 2147483647, %v5070_v9  ;;  %v5084_v60 = vadd.s32 3, %v5080_v54  ;;  %vm4778_vm5 = vcmp.eq.s32.totalorder %v4773_v8, 2  ;;  %v5414_v16 = vand.u32 8388607, %v5407_v39 }
 0x4cc   : >> { %vm5418_vm3 = vcmp.gt.s32.totalorder %v5417_v18, 0  ;;  %v5156_v10 = vadd.s32 536870912, %v5155_v5  ;;  %v15917_v36 = vadd.f32 %v19512_v1, %v3907_v15  ;;  %vm4774_vm6 = vcmp.lt.s32.totalorder %v4773_v8, 2 }
 0x4cd   : >> { %v12093_v42 = vpop.eup %12092  ;;  %v5074_v27 = vmul.f32 %v5073_v20, %v5071_v25  ;;  %v5419_v48 = vsel %vm5418_vm3, %v5417_v18, 0  ;;  %vm4775_vm7 = vcmp.eq.s32.totalorder %v4773_v8, 0  ;;  %v15921_v56 = vand.u32 3, %v5084_v60 }
 0x4ce   : >> { %v12095_v3 = vpop.eup %12094  ;;  %v4779_v29 = vxor.u32 2147483648, %v12093_v42  ;;  %v5421_v44 = vand.u32 31, %v5419_v48  ;;  %v15914_v38 = vshrl.u32 %v5156_v10, 30  ;;  %v5415_v33 = vor.u32 8388608, %v5414_v16 }
 0x4cf   : >> { %v4776_v2 = vxor.u32 2147483648, %v12095_v3  ;;  %v5075_v6 = vxor.u32 2147483648, %v5074_v27  ;;  %v5514_v58 = vand.u32 2139095040, %v15917_v36  ;;  %v5420_v53 = vshrl.u32 %v5419_v48, 5 }
 0x4d0   : >> { %v4780_v23 = vsel %vm4778_vm5, %v4779_v29, %v12095_v3  ;;  %v5422_v0 = vsub.s32 32, %v5421_v44  ;;  %v5158_v13 = vshll.u32 %v15914_v38, 30  ;;  %v5424_v21 = vshll.u32 %v19468_v57, %v5421_v44 }
 0x4d1   : >> { %v4777_v43 = vsel %vm4775_vm7, %v12093_v42, %v4776_v2  ;;  %v5076_v31 = vsel %vm4993_vm15, %v5075_v6, %v5074_v27  ;;  %v5427_v14 = vshll.u32 %v19493_v24, %v5421_v44  ;;  %v5430_v30 = vshll.u32 %v19494_v7, %v5421_v44 }
 0x4d2   : >> { %v4781_v35 = vsel %vm4774_vm6, %v4777_v43, %v4780_v23  ;;  %v5079_v22 = vsel %vm15897_vm2, %v15622_v52, %v5076_v31  ;;  %v5425_v1 = vshrl.u32 %v19493_v24, %v5422_v0  ;;  %v15932_v59 = vsub.s32 %v5155_v5, %v5158_v13 }
 0x4d3   : >> { %v15930_v19 = vsel %vm4771_vm1, nan, %v4781_v35   ;;  %12096 = vcosq.f32 %v5079_v22  ;;  %v5428_v50 = vshrl.u32 %v19494_v7, %v5422_v0  ;;  %v5431_v49 = vshrl.u32 %v19495_v41, %v5422_v0 }
 0x4d4   : >> { %12098 = vsinq.f32 %v5079_v22  ;;  %v5161_v40 = vsub.s32 0, %v15932_v59  ;;  %v5426_v51 = vor.u32 %v5425_v1, %v5424_v21  ;;  %v5433_v8 = vshll.u32 %v19495_v41, %v5421_v44 }
 0x4d5   : >> { %v5429_v12 = vor.u32 %v5428_v50, %v5427_v14  ;;  %v5434_v9 = vshrl.u32 %v19465_v61, %v5422_v0  ;;  %v5432_v54 = vor.u32 %v5431_v49, %v5430_v30  ;;  %v5437_v63 = vshrl.u32 %v19467_v46, %v5422_v0 }
 0x4d6   : >> { %v11505_v11 = vmin.u32 %v5161_v40, %v15932_v59  ;;  %v5436_v25 = vshll.u32 %v19465_v61, %v5421_v44  ;;  %v5455_v20 = vshll.u32 %v5415_v33, 8  ;;  %v5515_v5 = vshrl.u32 %v5514_v58, 23 }
 0x4d7   : >> { %v5435_v18 = vor.u32 %v5434_v9, %v5433_v8  ;;  %v5423_v42 = vshrl.u32 %v19468_v57, %v5422_v0  ;;  %vm5439_vm8 = vcmp.lt.s32.totalorder %v5420_v53, 1  ;;  %vm5440_vm9 = vcmp.lt.s32.totalorder %v5420_v53, 2 }
 0x4d8   : >> { %v5163_v15 = vclz %v11505_v11  ;;  %vm5090_vm11 = vcmp.eq.s32.totalorder %v15921_v56, 2  ;;  %v5438_v27 = vor.u32 %v5437_v63, %v5436_v25  ;;  %vm5441_vm12 = vcmp.lt.s32.totalorder %v5420_v53, 3 }
 0x4d9   : >> { %vm5442_vm10 = vcmp.lt.s32.totalorder %v5420_v53, 4  ;;  %v5447_v60 = vsel %vm5439_vm8, %v5426_v51, %v5429_v12  ;;  %vm5087_vm13 = vcmp.eq.s32.totalorder %v15921_v56, 0  ;;  %v5451_v29 = vsel %vm5439_vm8, %v5429_v12, %v5432_v54 }
 0x4da   : >> { %v11506_v10 = vadd.s32 4294967294, %v5163_v15  ;;  %v5444_v48 = vsel %vm5442_vm10, %v5432_v54, 2102212464  ;;  %v5448_v3 = vsel %vm5442_vm10, %v5435_v18, 920167782  ;;  %v5443_v16 = vsel %vm5439_vm8, %v5423_v42, %v5426_v51 }
 0x4db   : >> { %v5449_v44 = vsel %vm5441_vm12, %v5432_v54, %v5448_v3  ;;  %v5452_v2 = vsel %vm5442_vm10, %v5438_v27, 1326507024  ;;  %v11520_v6 = vadd.s32 4294967169, %v5515_v5  ;;  %v5445_v23 = vsel %vm5441_vm12, %v5429_v12, %v5444_v48 }
 0x4dc   : >> { %vm11507_vm14 = vcmp.lt.s32.totalorder %v11506_v10, 0  ;;  %v5450_v0 = vsel %vm5440_vm9, %v5447_v60, %v5449_v44  ;;  %v5453_v43 = vsel %vm5441_vm12, %v5435_v18, %v5452_v2  ;;  %v5151_v33 = vadd.s32 %v15881_v32, %v15887_v47 }
 0x4dd   : >> { %v5166_v31 = vsel %vm11507_vm14, 0, %v11506_v10  ;;  %v5454_v13 = vsel %vm5440_vm9, %v5451_v29, %v5453_v43  ;;  %v15951_v35 = vmul.u32.u64.low %v5455_v20, %v5450_v0  ;;  %v15952_v22 = vmul.u32.u64.high %v5455_v20, %v5450_v0, %v15951_v35 }
 0x4de   : >> { %v5167_v1 = vsub.s32 32, %v5166_v31  ;;  %v5171_v58 = vsub.s32 4294967266, %v5166_v31  ;;  %v5511_v21 = vand.u32 2147483647, %v15917_v36  ;;  %v5446_v50 = vsel %vm5440_vm9, %v5443_v16, %v5445_v23 }
 0x4df   : >> { %v15959_v40 = vmul.u32.u64.low %v5455_v20, %v5454_v13  ;;  %v15960_v30 = vmul.u32.u64.high %v5455_v20, %v5454_v13, %v15959_v40  ;;  %v5521_v49 = vadd.s32 1, %v11520_v6  ;;  %v5168_v8 = vshll.u32 %v15932_v59, %v5166_v31 }
 0x4e0   : >> { %v12097_v14 = vpop.eup %12096  ;;  %v5169_v9 = vshrl.u32 %v5151_v33, %v5167_v1  ;;  %v5172_v11 = vadd.s32 127, %v5171_v58  ;;  %v5181_v32 = vsub.s32 4, %v15914_v38  ;;  %v5465_v47 = vadd.s32 1, %v15952_v22 }
 0x4e1   : >> { %v12099_v51 = vpop.eup %12098  ;;  %v5091_v12 = vxor.u32 2147483648, %v12097_v14  ;;  %vm5522_vm15 = vcmp.gt.s32.totalorder %v5521_v49, 0  ;;  %vm5086_vm2 = vcmp.lt.s32.totalorder %v15921_v56, 2  ;;  %v5462_v59 = vmul.u32 %v5455_v20, %v5446_v50 }
 0x4e2   : >> { %v5088_v54 = vxor.u32 2147483648, %v12099_v51  ;;  %v5170_v63 = vor.u32 %v5169_v9, %v5168_v8  ;;  %v5173_v18 = vshll.u32 %v5172_v11, 23  ;;  %v5523_v25 = vsel %vm5522_vm15, %v5521_v49, 0 }
 0x4e3   : >> { %v5092_v53 = vsel %vm5090_vm11, %v5091_v12, %v12099_v51  ;;  %vm5464_vm4 = vc.u32 %v15960_v30, %v15951_v35  ;;  %vm5083_vm1 = vweird.f32 %v15622_v52  ;;  %vm5097_vm3 = vcmp.lt.s32.totalorder %v15786_v26, 0 }
 0x4e4   : >> { %v5089_v5 = vsel %vm5087_vm13, %v12097_v14, %v5088_v54  ;;  %v5174_v42 = vor.u32 4788187, %v5173_v18  ;;  %v5466_v27 = vsel %vm5464_vm4, %v5465_v47, %v15952_v22  ;;  %v5525_v48 = vand.u32 31, %v5523_v25 }
 0x4e5   : >> { %v5093_v15 = vsel %vm5086_vm2, %v5089_v5, %v5092_v53  ;;  %v5467_v10 = vadd.s32 %v5466_v27, %v5462_v59  ;;  %v5177_v29 = vcvt.s32.f32 %v5170_v63  ;;  %v5182_v56 = vsel %vm5097_vm3, %v5181_v32, %v15914_v38 }
 0x4e6   : >> { %v15974_v60 = vsel %vm5083_vm1, nan, %v5093_v15   ;;  %v5175_v3 = vand.u32 2147483647, %v5174_v42  ;;  %v5518_v20 = vand.u32 8388607, %v5511_v21  ;;  %v5524_v16 = vshrl.u32 %v5523_v25, 5 }
 0x4e7   : >> { %v5468_v52 = vadd.s32 536870912, %v5467_v10  ;;  %v5526_v44 = vsub.s32 32, %v5525_v48  ;;  %v5528_v2 = vshll.u32 %v19468_v57, %v5525_v48  ;;  %v5531_v23 = vshll.u32 %v19493_v24, %v5525_v48 }
 0x4e8   : >> { %v5178_v6 = vmul.f32 %v5177_v29, %v5175_v3  ;;  %v5534_v0 = vshll.u32 %v19494_v7, %v5525_v48  ;;  %v5537_v43 = vshll.u32 %v19495_v41, %v5525_v48  ;;  %v5540_v22 = vshll.u32 %v19465_v61, %v5525_v48 }
 0x4e9   : >> { %v15986_v31 = vshrl.u32 %v5468_v52, 30  ;;  %v5529_v13 = vshrl.u32 %v19493_v24, %v5526_v44  ;;  %v5532_v38 = vshrl.u32 %v19494_v7, %v5526_v44  ;;  %v5535_v1 = vshrl.u32 %v19495_v41, %v5526_v44 }
 0x4ea   : >> { %v5179_v33 = vxor.u32 2147483648, %v5178_v6  ;;  %v5538_v58 = vshrl.u32 %v19465_v61, %v5526_v44  ;;  %v5541_v14 = vshrl.u32 %v19467_v46, %v5526_v44  ;;  %vm15996_vm5 = vcmp.le.f32.partialorder %v5095_v28, 0.7853982 }
 0x4eb   : >> { %v5470_v40 = vshll.u32 %v15986_v31, 30  ;;  %v5530_v24 = vor.u32 %v5529_v13, %v5528_v2  ;;  %v5533_v49 = vor.u32 %v5532_v38, %v5531_v23  ;;  %v5536_v51 = vor.u32 %v5535_v1, %v5534_v0 }
 0x4ec   : >> { %v5180_v7 = vsel %vm5097_vm3, %v5179_v33, %v5178_v6  ;;  %v5539_v12 = vor.u32 %v5538_v58, %v5537_v43  ;;  %v5542_v41 = vor.u32 %v5541_v14, %v5540_v22  ;;  %v5184_v46 = vsel %vm15996_vm5, 0, %v5182_v56 }
 0x4ed   : >> { %v5183_v61 = vsel %vm15996_vm5, %v15786_v26, %v5180_v7  ;;  %v5471_v28 = vsub.s32 %v5467_v10, %v5470_v40  ;;  %v5519_v8 = vor.u32 8388608, %v5518_v20  ;;  %vm5543_vm6 = vcmp.lt.s32.totalorder %v5524_v16, 1 }
 0x4ee   : >> { %12100 = vcosq.f32 %v5183_v61  ;;  %vm5544_vm7 = vcmp.lt.s32.totalorder %v5524_v16, 2  ;;  %vm5545_vm8 = vcmp.lt.s32.totalorder %v5524_v16, 3  ;;  %vm5546_vm9 = vcmp.lt.s32.totalorder %v5524_v16, 4 }
 0x4ef   : >> { %12102 = vsinq.f32 %v5183_v61  ;;  %v5473_v9 = vsub.s32 0, %v5471_v28  ;;  %v5551_v11 = vsel %vm5543_vm6, %v5530_v24, %v5533_v49  ;;  %v5548_v54 = vsel %vm5546_vm9, %v5536_v51, 2102212464 }
 0x4f0   : >> { %v5552_v32 = vsel %vm5546_vm9, %v5539_v12, 920167782  ;;  %v5555_v47 = vsel %vm5543_vm6, %v5533_v49, %v5536_v51  ;;  %v5556_v53 = vsel %vm5546_vm9, %v5542_v41, 1326507024  ;;  %v5527_v18 = vshrl.u32 %v19468_v57, %v5526_v44 }
 0x4f1   : >> { %v11517_v63 = vmin.u32 %v5473_v9, %v5471_v28  ;;  %v5553_v25 = vsel %vm5545_vm8, %v5536_v51, %v5552_v32  ;;  %v5557_v5 = vsel %vm5545_vm8, %v5539_v12, %v5556_v53  ;;  %v5559_v42 = vshll.u32 %v5519_v8, 8 }
 0x4f2   : >> { %v5554_v59 = vsel %vm5544_vm7, %v5551_v11, %v5553_v25  ;;  %v5558_v15 = vsel %vm5544_vm7, %v5555_v47, %v5557_v5  ;;  %v5188_v27 = vadd.s32 3, %v5184_v46  ;;  %v5547_v48 = vsel %vm5543_vm6, %v5527_v18, %v5530_v24 }
 0x4f3   : >> { %v5475_v10 = vclz %v11517_v63  ;;  %v5549_v3 = vsel %vm5545_vm8, %v5533_v49, %v5548_v54  ;;  %v16017_v29 = vmul.u32.u64.low %v5559_v42, %v5558_v15  ;;  %v16018_v56 = vmul.u32.u64.high %v5559_v42, %v5558_v15, %v16017_v29 }
 0x4f4   : >> { %v16020_v20 = vmul.u32.u64.low %v5559_v42, %v5554_v59  ;;  %v16021_v57 = vmul.u32.u64.high %v5559_v42, %v5554_v59, %v16020_v20  ;;  %v5550_v44 = vsel %vm5544_vm7, %v5547_v48, %v5549_v3  ;;  %v5189_v2 = vand.u32 3, %v5188_v27 }
 0x4f5   : >> { %v11518_v52 = vadd.s32 4294967294, %v5475_v10  ;;  %v5463_v0 = vadd.s32 %v15951_v35, %v15960_v30  ;;  %v5566_v38 = vmul.u32 %v5559_v42, %v5550_v44  ;;  %vm5187_vm15 = vweird.f32 %v15786_v26 }
 0x4f6   : >> { %vm5568_vm12 = vc.u32 %v16018_v56, %v16020_v20  ;;  %v5569_v23 = vadd.s32 1, %v16021_v57  ;;  %vm5194_vm10 = vcmp.eq.s32.totalorder %v5189_v2, 2  ;;  %vm5191_vm13 = vcmp.eq.s32.totalorder %v5189_v2, 0 }
 0x4f7   : >> { %vm11519_vm11 = vcmp.lt.s32.totalorder %v11518_v52, 0  ;;  %vm5190_vm14 = vcmp.lt.s32.totalorder %v5189_v2, 2  ;;  %vm5409_vm2 = vcmp.lt.s32.totalorder %v15850_v4, 0  ;;  %v5493_v63 = vsub.s32 4, %v15986_v31 }
 0x4f8   : >> { %v5478_v6 = vsel %vm11519_vm11, 0, %v11518_v52  ;;  %v5570_v22 = vsel %vm5568_vm12, %v5569_v23, %v16021_v57  ;;  %vm5408_vm4 = vcmp.le.f32.partialorder %v5407_v39, 0.7853982  ;;  %v5567_v27 = vadd.s32 %v16020_v20, %v16018_v56 }
 0x4f9   : >> { %v5479_v43 = vsub.s32 32, %v5478_v6  ;;  %v5483_v13 = vsub.s32 4294967266, %v5478_v6  ;;  %v5480_v1 = vshll.u32 %v5471_v28, %v5478_v6  ;;  %v5571_v14 = vadd.s32 %v5570_v22, %v5566_v38 }
 0x4fa   : >> { %v5494_v5 = vsel %vm5409_vm2, %v5493_v63, %v15986_v31  ;;  %vm5499_vm7 = vweird.f32 %v15850_v4  ;;  %vm5513_vm8 = vcmp.lt.s32.totalorder %v15917_v36, 0  ;;  %vm5512_vm9 = vcmp.le.f32.partialorder %v5511_v21, 0.7853982 }
 0x4fb   : >> { %v12101_v33 = vpop.eup %12100  ;;  %v5481_v58 = vshrl.u32 %v5463_v0, %v5479_v43  ;;  %v5484_v16 = vadd.s32 127, %v5483_v13  ;;  %v5572_v51 = vadd.s32 536870912, %v5571_v14  ;;  %v5496_v15 = vsel %vm5408_vm4, 0, %v5494_v5 }
 0x4fc   : >> { %v12103_v50 = vpop.eup %12102  ;;  %v5195_v40 = vxor.u32 2147483648, %v12101_v33  ;;  %v5500_v3 = vadd.s32 3, %v5496_v15  ;;  %v19533_v15 = vmov %v15770_v34  ;;  %v19543_v63 = vmov (%p16050_p5), 1  }
 0x4fd   : >> { %v5192_v24 = vxor.u32 2147483648, %v12103_v50  ;;  %v5482_v49 = vor.u32 %v5481_v58, %v5480_v1  ;;  %v5485_v7 = vshll.u32 %v5484_v16, 23  ;;  %v5573_v41 = vshrl.u32 %v5572_v51, 30  ;;  %12112 = vset.pattern.permute.xlu0 (%p16050_p5), %v19543_v63 }
 0x4fe   : >> { %v5196_v12 = vsel %vm5194_vm10, %v5195_v40, %v12103_v50  ;;  %v5501_v2 = vand.u32 3, %v5500_v3  ;;  %v16151_v3 = vld [vmem:[%s19132_s5 + $0x10] sm:$0xff] (%p16050_p5) }
 0x4ff   : >> { %v5193_v35 = vsel %vm5191_vm13, %v12101_v33, %v5192_v24  ;;  %v5486_v30 = vor.u32 4788187, %v5485_v7  ;;  %v5489_v8 = vcvt.s32.f32 %v5482_v49  ;;  %v5574_v9 = vshll.u32 %v5573_v41, 30 }
 0x500   : >> { %v5197_v61 = vsel %vm5190_vm14, %v5193_v35, %v5196_v12  ;;  %vm5506_vm3 = vcmp.eq.s32.totalorder %v5501_v2, 2  ;;  %vm5503_vm5 = vcmp.eq.s32.totalorder %v5501_v2, 0  ;;  %vm5502_vm6 = vcmp.lt.s32.totalorder %v5501_v2, 2 }
 0x501   : >> { %v16030_v53 = vsel %vm5187_vm15, nan, %v5197_v61   ;;  %v5487_v28 = vand.u32 2147483647, %v5486_v30  ;;  %v5575_v54 = vsub.s32 %v5571_v14, %v5574_v9  ;;  %v5597_v16 = vsub.s32 4, %v5573_v41  ;;  %v19540_v9 = vld [vmem:[#allocation22_spill] sm:$0xff] (%p16050_p5) }
 0x502   : >> { %v19517_v46 = vmov %v16030_v53  ;;  %vm5603_vm13 = vweird.f32 %v15917_v36 }
 0x503   : >> { %v5490_v11 = vmul.f32 %v5489_v8, %v5487_v28  ;;  %v5577_v47 = vsub.s32 0, %v5575_v54  ;;  %v5598_v40 = vsel %vm5513_vm8, %v5597_v16, %v5573_v41  ;;  %v16110_v41 = vand.u32 (%p16050_p5), 4294901760, %v15440_v37 }
 0x504   : >> { %v5600_v24 = vsel %vm5512_vm9, 0, %v5598_v40  ;;  %v16113_v8 = vand.u32 (%p16050_p5), 4294901760, %v19481_v45 }
 0x505   : >> { %v5491_v32 = vxor.u32 2147483648, %v5490_v11  ;;  %v11521_v25 = vmin.u32 %v5577_v47, %v5575_v54  ;;  %v5604_v49 = vadd.s32 3, %v5600_v24  ;;  %v19529_v47 = vmov %v15930_v19  ;;  %v19536_v24 = vld [vmem:[#allocation7_spill] sm:$0xff]  ;;  %19538 = vst [vmem:[#allocation26_spill] sm:$0xff] (%p16050_p5), %v16110_v41 }
 0x506   : > { %19539 = vst [vmem:[#allocation27_spill] sm:$0xff] (%p16050_p5), %v16113_v8  ;;  %v19544_v47 = vld [vmem:[#allocation15_spill] sm:$0xff] (%p16050_p5) }
 0x507   : >> { %v5492_v18 = vsel %vm5409_vm2, %v5491_v32, %v5490_v11  ;;  %v5579_v53 = vclz %v11521_v25  ;;  %v5605_v7 = vand.u32 3, %v5604_v49  ;;  %v16116_v11 = vand.u32 (%p16050_p5), 4294901760, %v19540_v9  ;;  %v19546_v25 = vld [vmem:[#allocation13_spill] sm:$0xff] (%p16050_p5)  ;;  %v5617_v49 = vld [vmem:[%s19133_s6 + $0x10] sm:$0xff] (%p16050_p5) }
 0x508   : >> { %v5495_v26 = vsel %vm5408_vm4, %v15850_v4, %v5492_v18  ;;  %v19542_v32 = vmov (%p16050_p5), 0   ;;  %v16124_v18 = vand.u32 (%p16050_p5), 4294901760, %v19544_v47 }
 0x509   : >> { %12104 = vcosq.f32 %v5495_v26  ;;  %v11522_v59 = vadd.s32 4294967294, %v5579_v53  ;;  %vm5610_vm11 = vcmp.eq.s32.totalorder %v5605_v7, 2  ;;  %vm5607_vm12 = vcmp.eq.s32.totalorder %v5605_v7, 0  ;;  %12113 = vset.pattern.permute.xlu1 (%p16050_p5), %v19542_v32 }
 0x50a   : >> { %12106 = vsinq.f32 %v5495_v26  ;;  %vm5606_vm10 = vcmp.lt.s32.totalorder %v5605_v7, 2  ;;  %v19524_v26 = vmov %v15440_v37  ;;  %v19525_v53 = vmov %v19517_v46  ;;  %5635 = vperm.xlu1 (%p16050_p5), %12113, %v16151_v3   ;;  %v5618_v7 = vld [vmem:[%s19133_s6 + $0x18] sm:$0xff] (%p16050_p5) }
 0x50b   : >> { %vm11523_vm1 = vcmp.lt.s32.totalorder %v11522_v59, 0  ;;  %v16127_v26 = vand.u32 (%p16050_p5), 4294901760, %v19546_v25  ;;  %v19548_v53 = vld [vmem:[#allocation12_spill] sm:$0xff] (%p16050_p5) }
 0x50c   : >> { %v5582_v42 = vsel %vm11523_vm1, 0, %v11522_v59  ;;  %v19523_v59 = vmov %v15542_v17 }
 0x50d   : >> { %v5583_v10 = vsub.s32 32, %v5582_v42  ;;  %v5587_v48 = vsub.s32 4294967266, %v5582_v42  ;;  %v5584_v29 = vshll.u32 %v5575_v54, %v5582_v42  ;;  %v19530_v42 = vmov %v19509_v55  ;;  %v5615_v54 = vld [vmem:[%s19133_s6] sm:$0xff] (%p16050_p5)  ;;  %v19550_v59 = vld [vmem:[#allocation7_spill] sm:$0xff] (%p16050_p5) }
 0x50e   : > { %v16133_v15 = vand.u32 (%p16050_p5), 4294901760, %v19550_v59  ;;  %v5616_v42 = vld [vmem:[%s19133_s6 + $0x8] sm:$0xff] (%p16050_p5)  ;;  %v16183_v2 = vsub.f32 (%p16050_p5), %v19546_v25, %v16127_v26  ;;  %12114 = vset.pattern.permute.xlu1 (%p16050_p5), %v19543_v63  ;;  %v5814_v25 = vsel (%p16050_p5), %vm2474_vm0, %v5618_v7, 0 }
 0x50f   : >> { %v5585_v39 = vshrl.u32 %v5567_v27, %v5583_v10  ;;  %v5588_v57 = vadd.s32 127, %v5587_v48  ;;  %v16145_v10 = vsub.f32 (%p16050_p5), %v15440_v37, %v16110_v41  ;;  %v5805_v48 = vsel (%p16050_p5), %vm2474_vm0, %v5615_v54, 0  ;;  %5684 = vperm.xlu1 (%p16050_p5), %12114, %v16151_v3  }
 0x510   : > { %19551 = vst [vmem:[#allocation7_spill] sm:$0xff] (%p16050_p5), %v16133_v15  ;;  %v16163_v37 = vsub.f32 (%p16050_p5), %v19540_v9, %v16116_v11  ;;  %19559 = vst [vmem:[#allocation35_spill] sm:$0xff] (%p16050_p5), %v16183_v2 }
 0x511   : >> { %v5586_v52 = vor.u32 %v5585_v39, %v5584_v29  ;;  %v5589_v44 = vshll.u32 %v5588_v57, 23  ;;  %19553 = vst [vmem:[#allocation29_spill] sm:$0xff] (%p16050_p5), %v16145_v10  ;;  %v19217_v29 = vmov (%p16050_p5), 0.0   ;;  %v16155_v39 = vand.u32 (%p16050_p5), 4294901760, %v5805_v48 }
 0x512   : > { %5888 = vmatprep.mubr.f32.mxu0 (%p16050_p5), %v19217_v29  ;;  %19555 = vst [vmem:[#allocation31_spill] sm:$0xff] (%p16050_p5), %v16163_v37  ;;  %v16167_v57 = vsub.f32 (%p16050_p5), %v19544_v47, %v16124_v18  ;;  %6037 = vmatprep.mubr.f32.mxu1 (%p16050_p5), %v19217_v29  ;;  %v5811_v47 = vsel (%p16050_p5), %vm2474_vm0, %v5617_v49, 0 }
 0x513   : >> { %v5590_v6 = vor.u32 4788187, %v5589_v44  ;;  %v5593_v13 = vcvt.s32.f32 %v5586_v52  ;;  %v19532_v52 = vld [vmem:[#allocation13_spill] sm:$0xff] }
 0x514   : > { %19547 = vst [vmem:[#allocation13_spill] sm:$0xff] (%p16050_p5), %v16127_v26  ;;  %19556 = vst [vmem:[#allocation32_spill] sm:$0xff] (%p16050_p5), %v16167_v57  ;;  %v16172_v52 = vld [vmem:[%s19132_s5 + $0x18] sm:$0xff] (%p16050_p5) }
 0x515   : >> { %v5591_v43 = vand.u32 2147483647, %v5590_v6  ;;  %v5808_v6 = vsel (%p16050_p5), %vm2474_vm0, %v5616_v42, 0  ;;  %5688 = vperm.xlu0 (%p16050_p5), %12112, %v16172_v52  }
 0x516   : >> { %v12105_v23 = vpop.eup %12104 }
 0x517   : >> { %v12107_v0 = vpop.eup %12106  ;;  %v5507_v31 = vxor.u32 2147483648, %v12105_v23  ;;  %v5594_v56 = vmul.f32 %v5593_v13, %v5591_v43  ;;  %v16198_v43 = vand.u32 (%p16050_p5), 4294901760, %v16167_v57 }
 0x518   : >> { %v5504_v38 = vxor.u32 2147483648, %v12107_v0 }
 0x519   : >> { %v5508_v22 = vsel %vm5506_vm3, %v5507_v31, %v12107_v0  ;;  %v5595_v1 = vxor.u32 2147483648, %v5594_v56  ;;  %v19535_v0 = vld [vmem:[#allocation12_spill] sm:$0xff]  ;;  %v16195_v31 = vand.u32 (%p16050_p5), 4294901760, %v16163_v37  ;;  %19562 = vst [vmem:[#allocation38_spill] sm:$0xff] (%p16050_p5), %v16198_v43  ;;  %v5984_v16 = vsub.f32 (%p16050_p5), %v16167_v57, %v16198_v43 }
 0x51a   : >> { %v5505_v20 = vsel %vm5503_vm5, %v12105_v23, %v5504_v38  ;;  %v19528_v23 = vld [vmem:[#allocation22_spill] sm:$0xff] }
 0x51b   : >> { %v5509_v33 = vsel %vm5502_vm6, %v5505_v20, %v5508_v22  ;;  %v5596_v14 = vsel %vm5513_vm8, %v5595_v1, %v5594_v56  ;;  %19541 = vst [vmem:[#allocation22_spill] sm:$0xff] (%p16050_p5), %v16116_v11  ;;  %v16189_v23 = vsub.f32 (%p16050_p5), %v5805_v48, %v16155_v39  ;;  %19561 = vst [vmem:[#allocation37_spill] sm:$0xff] (%p16050_p5), %v16195_v31  ;;  %v16209_v56 = vand.u32 (%p16050_p5), 4294901760, %v5808_v6 }
 0x51c   : >> { %v16040_v22 = vsel %vm5499_vm7, nan, %v5509_v33   ;;  %v5599_v50 = vsel %vm5512_vm9, %v15917_v36, %v5596_v14  ;;  %v16107_v36 = vand.u32 (%p16050_p5), 4294901760, %v15542_v17  ;;  %v5978_v1 = vsub.f32 (%p16050_p5), %v16163_v37, %v16195_v31 }
 0x51d   : >> { %v19518_v58 = vmov %v16040_v22  ;;  %12108 = vcosq.f32 %v5599_v50  ;;  %v16214_v20 = vand.u32 (%p16050_p5), 4294901760, %v16189_v23  ;;  %v16230_v24 = vsub.f32 (%p16050_p5), %v5808_v6, %v16209_v56 }
 0x51e   : >> { %12110 = vsinq.f32 %v5599_v50  ;;  %v19522_v22 = vmov %v19518_v58  ;;  %19537 = vst [vmem:[#allocation25_spill] sm:$0xff] (%p16050_p5), %v16107_v36  ;;  %5841 = vmatprep.subr.mxu0 (%p16050_p5), %v16107_v36  ;;  %v16141_v27 = vsub.f32 (%p16050_p5), %v15542_v17, %v16107_v36  ;;  %v16159_v17 = vsub.f32 (%p16050_p5), %v19481_v45, %v16113_v8 }
 0x51f   : > { %5843 = vmatpush1.msra.mxu0 (%p16050_p5), %v16110_v41  ;;  %v16207_v22 = vand.u32 (%p16050_p5), 4294901760, %v16183_v2  ;;  %v16278_v48 = vand.u32 (%p16050_p5), 4294901760, %v5811_v47  ;;  %v19571_v6 = vmov (%p16050_p5), 2  }
 0x520   : > { %19552 = vst [vmem:[#allocation28_spill] sm:$0xff] (%p16050_p5), %v16141_v27  ;;  %19554 = vst [vmem:[#allocation30_spill] sm:$0xff] (%p16050_p5), %v16159_v17  ;;  %5845 = vmatprep.subr.mxu0 (%p16050_p5), %v16113_v8  ;;  %v16176_v44 = vand.u32 (%p16050_p5), 4294901760, %v16141_v27  ;;  %v16192_v0 = vand.u32 (%p16050_p5), 4294901760, %v16159_v17  ;;  %12119 = vset.pattern.permute.xlu0 (%p16050_p5), %v19571_v6 }
 0x521   : > { %5847 = vmatpush1.msra.mxu0 (%p16050_p5), %v16116_v11  ;;  %19563 = vst [vmem:[#allocation39_spill] sm:$0xff] (%p16050_p5), %v16207_v22  ;;  %v5990_v40 = vsub.f32 (%p16050_p5), %v16183_v2, %v16207_v22  ;;  %12115 = vset.pattern.permute.xlu1 (%p16050_p5), %v19571_v6 }
 0x522   : > { %19557 = vst [vmem:[#allocation33_spill] sm:$0xff] (%p16050_p5), %v16176_v44  ;;  %19560 = vst [vmem:[#allocation36_spill] sm:$0xff] (%p16050_p5), %v16192_v0  ;;  %5849 = vmatprep.subr.mxu0 (%p16050_p5), %v16124_v18  ;;  %v5960_v13 = vsub.f32 (%p16050_p5), %v16141_v27, %v16176_v44  ;;  %v5972_v33 = vsub.f32 (%p16050_p5), %v16159_v17, %v16192_v0  ;;  %5752 = vperm.xlu1 (%p16050_p5), %12115, %v16172_v52  }
 0x523   : > { %5851 = vmatpush1.msra.mxu0 (%p16050_p5), %v16127_v26  ;;  %v16264_v54 = vand.u32 (%p16050_p5), 4294901760, %v5990_v40 }
 0x524   : > { %v16223_v14 = vand.u32 (%p16050_p5), 4294901760, %v5960_v13  ;;  %v16283_v13 = vand.u32 (%p16050_p5), 4294901760, %v5814_v25 }
 0x525   : > { %19568 = vst [vmem:[#allocation44_spill] sm:$0xff] (%p16050_p5), %v16264_v54 }
 0x526   : > { %5962 = vmatprep.subr.mxu1 (%p16050_p5), %v16223_v14  ;;  %v16299_v40 = vsub.f32 (%p16050_p5), %v5814_v25, %v16283_v13  ;;  %12116 = vset.pattern.permute.xlu1 (%p16050_p5), %v19543_v63 }
 0x52a   : >> { %v12109_v4 = vpop.eup %12108 }
 0x52b   : >> { %v12111_v51 = vpop.eup %12110  ;;  %v5611_v12 = vxor.u32 2147483648, %v12109_v4 }
 0x52c   : >> { %v5608_v35 = vxor.u32 2147483648, %v12111_v51 }
 0x52d   : >> { %v5612_v30 = vsel %vm5610_vm11, %v5611_v12, %v12111_v51  ;;  %v19527_v51 = vmov %v19481_v45  ;;  %v19531_v12 = vld [vmem:[#allocation15_spill] sm:$0xff]  ;;  %v16179_v45 = vand.u32 (%p16050_p5), 4294901760, %v16145_v10 }
 0x52e   : >> { %v5609_v61 = vsel %vm5607_vm12, %v12109_v4, %v5608_v35  ;;  %2423 = sbr.rel (!%p16050_p5) target bundleno = 621 (0x26d), region = 111  ;;  %19545 = vst [vmem:[#allocation15_spill] sm:$0xff] (%p16050_p5), %v16124_v18  ;;  %v5892_v4 = vsub.f32 (%p16050_p5), %v16189_v23, %v16214_v20  ;;  %v16241_v51 = vand.u32 (%p16050_p5), 4294901760, %v5972_v33  ;;  %v16243_v12 = vand.u32 (%p16050_p5), 4294901760, %v5978_v1 }
 0x52f   : >> { %v5613_v21 = vsel %vm5606_vm10, %v5609_v61, %v5612_v30  ;;  %v19526_v61 = vmov %v15974_v60  ;;  %19558 = vst [vmem:[#allocation34_spill] sm:$0xff] (%p16050_p5), %v16179_v45  ;;  %v5966_v38 = vsub.f32 (%p16050_p5), %v16145_v10, %v16179_v45  ;;  %v16247_v35 = vand.u32 (%p16050_p5), 4294901760, %v5984_v16 }
 0x530   : >> { %v16047_v5 = vsel %vm5603_vm13, nan, %v5613_v21   ;;  %v19534_v21 = vmov %v15703_v62  ;;  %19564 = vst [vmem:[#allocation40_spill] sm:$0xff] (%p16050_p5), %v16243_v12  ;;  %v16250_v30 = vand.u32 (%p16050_p5), 4294901760, %v16230_v24  ;;  %v16262_v9 = vand.u32 (%p16050_p5), 4294901760, %v5892_v4 }
 0x531   : >> { %v19519_v28 = vmov %v16047_v5  ;;  %v16225_v50 = vand.u32 (%p16050_p5), 4294901760, %v5966_v38  ;;  %19565 = vst [vmem:[#allocation41_spill] sm:$0xff] (%p16050_p5), %v16247_v35  ;;  %v16259_v21 = vsub.f32 (%p16050_p5), %v19550_v59, %v16133_v15  ;;  %v16294_v16 = vsub.f32 (%p16050_p5), %v5811_v47, %v16278_v48 }
 0x532   : >> { %v19521_v5 = vmov %v19519_v28  ;;  %v16312_v47 = vand.u32 (%p16050_p5), 4294901760, %v16299_v40 }
 0x533   : > { %v16130_v5 = vand.u32 4294901760, %v19548_v53  ;;  %19567 = vst [vmem:[#allocation43_spill] sm:$0xff] %v16259_v21  ;;  %5968 = vmatpush1.msra.mxu1 %v16225_v50  ;;  %v16276_v42 = vand.u32 4294901760, %v16259_v21  ;;  %v16306_v4 = vand.u32 4294901760, %v16294_v16 }
 0x534   : > { %5974 = vmatprep.subr.mxu1 %v16241_v51 }
 0x535   : > { %19549 = vst [vmem:[#allocation12_spill] sm:$0xff] %v16130_v5  ;;  %5853 = vmatprep.subr.mxu0 %v16130_v5  ;;  %v16254_v61 = vsub.f32 %v19548_v53, %v16130_v5  ;;  %v5903_v53 = vsub.f32 %v16230_v24, %v16250_v30  ;;  %19570 = vst [vmem:[#allocation46_spill] sm:$0xff] %v16276_v42  ;;  %5980 = vmatpush1.msra.mxu1 %v16243_v12 }
 0x536   : > { %5855 = vmatpush1.msra.mxu0 %v16133_v15  ;;  %5986 = vmatprep.subr.mxu1 %v16247_v35  ;;  %v6002_v1 = vsub.f32 %v16259_v21, %v16276_v42  ;;  %v5914_v25 = vsub.f32 %v16294_v16, %v16306_v4 }
 0x537   : > { %19566 = vst [vmem:[#allocation42_spill] sm:$0xff] %v16254_v61  ;;  %6092 = vmatprep.subr.mxu0 %v16141_v27  ;;  %v16273_v59 = vand.u32 4294901760, %v16254_v61  ;;  %5894 = vmatmul.mubr.f32.vlgmr.msra.gmra.mxu0 %v16262_v9  ;;  %v16287_v38 = vand.u32 4294901760, %v5903_v53  ;;  %v5925_v53 = vsub.f32 %v16299_v40, %v16312_v47 }
 0x538   : > { %5899 = vmatprep.mubr.f32.mxu0 %v19217_v29  ;;  %5992 = vmatpush1.msra.mxu1 %v16264_v54  ;;  %v16303_v7 = vand.u32 4294901760, %v6002_v1 }
 0x539   : > { %19569 = vst [vmem:[#allocation45_spill] sm:$0xff] %v16273_v59  ;;  %v5996_v33 = vsub.f32 %v16254_v61, %v16273_v59  ;;  %6095 = vmatpush1.msra.mxu0 %v16145_v10  ;;  %v16331_v1 = vand.u32 4294901760, %v5925_v53  ;;  %v16359_v53 = vand.u32 4294901760, %v19518_v58 }
 0x53a   : > { %19573 = vst [vmem:[#allocation48_spill] sm:$0xff] %v16303_v7  ;;  %6098 = vmatprep.subr.mxu0 %v16159_v17 }
 0x53b   : > { %v16301_v49 = vand.u32 4294901760, %v5996_v33  ;;  %5905 = vmatmul.mubr.f32.gmra.mxu0 %v16287_v38  ;;  %v16325_v33 = vand.u32 4294901760, %v5914_v25  ;;  %v16350_v25 = vand.u32 4294901760, %v19519_v28  ;;  %19575 = vst [vmem:[#allocation50_spill] sm:$0xff] %v16359_v53 }
 0x53c   : > { %5910 = vmatprep.mubr.f32.mxu0 %v19217_v29  ;;  %6101 = vmatpush1.msra.mxu0 %v16163_v37  ;;  %v19591_v37 = vmov 0.0  }
 0x53d   : > { %19572 = vst [vmem:[#allocation47_spill] sm:$0xff] %v16301_v49  ;;  %5998 = vmatprep.subr.mxu1 %v16301_v49  ;;  %6104 = vmatprep.subr.mxu0 %v16167_v57  ;;  %19574 = vst [vmem:[#allocation49_spill] sm:$0xff] %v16350_v25 }
 0x53e   : > { %6004 = vmatpush1.msra.mxu1 %v16303_v7  ;;  %6107 = vmatpush1.msra.mxu0 %v16183_v2  ;;  %v16409_v2 = vand.u32 4294901760, %v19509_v55 }
 0x53f   : > { %6039 = vmatmul.mubr.f32.vlgmr.msra.gmra.mxu1 %v16155_v39  ;;  %6204 = vmatprep.subr.mxu1 %v16107_v36 }
 0x540   : > { %6206 = vmatpush1.msra.mxu1 %v16110_v41  ;;  %6044 = vmatprep.mubr.f32.mxu1 %v19217_v29  ;;  %19585 = vst [vmem:[#allocation60_spill] sm:$0xff] %v16409_v2  ;;  %v16441_v17 = vsub.f32 %v19509_v55, %v16409_v2 }
 0x541   : > { %5916 = vmatmul.mubr.f32.gmra.mxu0 %v16325_v33  ;;  %6208 = vmatprep.subr.mxu1 %v16113_v8 }
 0x542   : > { %5921 = vmatprep.mubr.f32.mxu0 %v19217_v29  ;;  %6210 = vmatpush1.msra.mxu1 %v16116_v11  ;;  %19592 = vst [vmem:[#allocation66_spill] sm:$0xff] %v16441_v17  ;;  %v16471_v54 = vand.u32 4294901760, %v16441_v17 }
 0x543   : > { %6046 = vmatmul.mubr.f32.gmra.mxu1 %v16209_v56  ;;  %6110 = vmatprep.subr.mxu0 %v16254_v61  ;;  %v16368_v61 = vand.u32 4294901760, %v19517_v46 }
 0x544   : > { %6051 = vmatprep.mubr.f32.mxu1 %v19217_v29  ;;  %6212 = vmatprep.subr.mxu1 %v16124_v18  ;;  %19598 = vst [vmem:[#allocation72_spill] sm:$0xff] %v16471_v54 }
 0x545   : > { %5927 = vmatmul.mubr.f32.gmra.mxu0 %v16331_v1  ;;  %6214 = vmatpush1.msra.mxu1 %v16127_v26  ;;  %19577 = vst [vmem:[#allocation52_spill] sm:$0xff] %v16368_v61 }
 0x546   : > { %6113 = vmatpush1.msra.mxu0 %v16259_v21  ;;  %6146 = vmatprep.mubr.f32.mxu0 %v19217_v29  ;;  %v16365_v21 = vsub.f32 %v19519_v28, %v16350_v25  ;;  %v16381_v28 = vsub.f32 %v19518_v58, %v16359_v53  ;;  %v16399_v58 = vand.u32 4294901760, %v15930_v19 }
 0x547   : > { %6053 = vmatmul.mubr.f32.gmra.mxu1 %v16278_v48  ;;  %6216 = vmatprep.subr.mxu1 %v16130_v5 }
 0x548   : > { %6058 = vmatprep.mubr.f32.mxu1 %v19217_v29  ;;  %6218 = vmatpush1.msra.mxu1 %v16133_v15  ;;  %19576 = vst [vmem:[#allocation51_spill] sm:$0xff] %v16365_v21  ;;  %19579 = vst [vmem:[#allocation54_spill] sm:$0xff] %v16381_v28 }
 0x549   : > { %6149 = vmatmul.mubr.f32.vlgmr.msra.gmra.mxu0 %v16189_v23  ;;  %6315 = vmatprep.subr.mxu0 %v16176_v44  ;;  %v16390_v44 = vsub.f32 %v19517_v46, %v16368_v61  ;;  %19583 = vst [vmem:[#allocation58_spill] sm:$0xff] %v16399_v58  ;;  %v16406_v46 = vand.u32 4294901760, %v16381_v28 }
 0x54a   : > { %6154 = vmatprep.mubr.f32.mxu0 %v19217_v29  ;;  %6319 = vmatpush1.msra.mxu0 %v16179_v45  ;;  %v16373_v45 = vand.u32 4294901760, %v15974_v60 }
 0x54b   : > { %6060 = vmatmul.mubr.f32.gmra.mxu1 %v16283_v13  ;;  %6430 = vmatprep.subr.mxu1 %v16107_v36  ;;  %19581 = vst [vmem:[#allocation56_spill] sm:$0xff] %v16390_v44  ;;  %19584 = vst [vmem:[#allocation59_spill] sm:$0xff] %v16406_v46  ;;  %v16416_v57 = vand.u32 4294901760, %v16390_v44 }
 0x54c   : > { %6251 = vmatprep.mubr.f32.mxu1 %v19217_v29  ;;  %6323 = vmatprep.subr.mxu0 %v16192_v0  ;;  %19578 = vst [vmem:[#allocation53_spill] sm:$0xff] %v16373_v45  ;;  %v16386_v0 = vand.u32 4294901760, %v16365_v21 }
 0x54d   : > { %6157 = vmatmul.mubr.f32.gmra.mxu0 %v16230_v24  ;;  %19586 = vst [vmem:[#allocation61_spill] sm:$0xff] %v16416_v57  ;;  %v6662_v10 = vsub.f32 %v16390_v44, %v16416_v57 }
 0x54e   : > { %6162 = vmatprep.mubr.f32.mxu0 %v19217_v29  ;;  %6327 = vmatpush1.msra.mxu0 %v16195_v31  ;;  %19580 = vst [vmem:[#allocation55_spill] sm:$0xff] %v16386_v0  ;;  %v16396_v31 = vsub.f32 %v15974_v60, %v16373_v45  ;;  %v6650_v60 = vsub.f32 %v16365_v21, %v16386_v0 }
 0x54f   : > { %6255 = vmatmul.mubr.f32.vlgmr.msra.gmra.mxu1 %v16214_v20  ;;  %6331 = vmatprep.subr.mxu0 %v16198_v43  ;;  %v16428_v43 = vsub.f32 %v15930_v19, %v16399_v58  ;;  %v16475_v35 = vand.u32 4294901760, %v6662_v10  ;;  %v6680_v10 = vsub.f32 %v16441_v17, %v16471_v54 }
 0x550   : > { %6432 = vmatpush1.msra.mxu1 %v16110_v41  ;;  %6260 = vmatprep.mubr.f32.mxu1 %v19217_v29  ;;  %19582 = vst [vmem:[#allocation57_spill] sm:$0xff] %v16396_v31  ;;  %v16445_v19 = vand.u32 4294901760, %v6650_v60 }
 0x551   : > { %6165 = vmatmul.mubr.f32.gmra.mxu0 %v16294_v16  ;;  %6434 = vmatprep.subr.mxu1 %v16113_v8  ;;  %19589 = vst [vmem:[#allocation64_spill] sm:$0xff] %v16428_v43  ;;  %v16458_v49 = vand.u32 4294901760, %v16428_v43  ;;  %19599 = vst [vmem:[#allocation73_spill] sm:$0xff] %v16475_v35 }
 0x552   : > { %6170 = vmatprep.mubr.f32.mxu0 %v19217_v29  ;;  %6436 = vmatpush1.msra.mxu1 %v16116_v11  ;;  %19593 = vst [vmem:[#allocation67_spill] sm:$0xff] %v16445_v19 }
 0x553   : > { %6264 = vmatmul.mubr.f32.gmra.mxu1 %v16250_v30  ;;  %6335 = vmatpush1.msra.mxu0 %v16207_v22  ;;  %v16424_v22 = vand.u32 4294901760, %v16396_v31  ;;  %19595 = vst [vmem:[#allocation69_spill] sm:$0xff] %v16458_v49 }
 0x554   : > { %6269 = vmatprep.mubr.f32.mxu1 %v19217_v29  ;;  %6339 = vmatprep.subr.mxu0 %v16273_v59  ;;  %v16419_v29 = vand.u32 4294901760, %v15770_v34  ;;  %v16431_v59 = vand.u32 4294901760, %v15703_v62 }
 0x555   : > { %6173 = vmatmul.mubr.f32.gmra.mxu0 %v16299_v40  ;;  %6438 = vmatprep.subr.mxu1 %v16124_v18  ;;  %19588 = vst [vmem:[#allocation63_spill] sm:$0xff] %v16424_v22  ;;  %v6668_v55 = vsub.f32 %v16396_v31, %v16424_v22 }
 0x556   : > { %19587 = vst [vmem:[#allocation62_spill] sm:$0xff] %v16419_v29  ;;  %6343 = vmatpush1.msra.mxu0 %v16276_v42  ;;  %19590 = vst [vmem:[#allocation65_spill] sm:$0xff] %v16431_v59  ;;  %6376 = vmatprep.mubr.f32.mxu0 %v19591_v37  ;;  %v6656_v42 = vsub.f32 %v16381_v28, %v16406_v46  ;;  %v16451_v7 = vsub.f32 %v15770_v34, %v16419_v29 }
 0x557   : > { %6273 = vmatmul.mubr.f32.gmra.mxu1 %v16306_v4  ;;  %v16462_v60 = vsub.f32 %v15703_v62, %v16431_v59  ;;  %6531 = vmatprep.subr.mxu0 %v16350_v25  ;;  %v16482_v12 = vand.u32 4294901760, %v6668_v55 }
 0x558   : > { %6440 = vmatpush1.msra.mxu1 %v16127_v26  ;;  %6278 = vmatprep.mubr.f32.mxu1 %v19591_v37  ;;  %19594 = vst [vmem:[#allocation68_spill] sm:$0xff] %v16451_v7  ;;  %v16468_v34 = vand.u32 4294901760, %v6656_v42  ;;  %v16478_v62 = vand.u32 4294901760, %v16451_v7  ;;  %v6674_v42 = vsub.f32 %v16428_v43, %v16458_v49 }
 0x559   : > { %6378 = vmatmul.mubr.f32.vlgmr.msra.gmra.mxu0 %v16155_v39  ;;  %6442 = vmatprep.subr.mxu1 %v16130_v5  ;;  %19596 = vst [vmem:[#allocation70_spill] sm:$0xff] %v16462_v60  ;;  %19601 = vst [vmem:[#allocation75_spill] sm:$0xff] %v16482_v12  ;;  %v16487_v27 = vand.u32 4294901760, %v16462_v60 }
 0x55a   : > { %6383 = vmatprep.mubr.f32.mxu0 %v19591_v37  ;;  %6444 = vmatpush1.msra.mxu1 %v16133_v15  ;;  %19597 = vst [vmem:[#allocation71_spill] sm:$0xff] %v16468_v34  ;;  %19600 = vst [vmem:[#allocation74_spill] sm:$0xff] %v16478_v62  ;;  %v6686_v55 = vsub.f32 %v16451_v7, %v16478_v62 }
 0x55b   : > { %6282 = vmatmul.mubr.f32.gmra.mxu1 %v16312_v47  ;;  %6533 = vmatpush1.msra.mxu0 %v16359_v53  ;;  %19602 = vst [vmem:[#allocation76_spill] sm:$0xff] %v16487_v27 }
 0x55c   : > { %6477 = vmatprep.mubr.f32.mxu1 %v19591_v37  ;;  %6652 = vmatprep.subr.mxu1 %v16445_v19  ;;  %v16501_v19 = vand.u32 4294901760, %v6674_v42 }
 0x55d   : > { %6385 = vmatmul.mubr.f32.gmra.mxu0 %v16209_v56  ;;  %6535 = vmatprep.subr.mxu0 %v16368_v61 }
 0x55e   : > { %6390 = vmatprep.mubr.f32.mxu0 %v19591_v37  ;;  %6537 = vmatpush1.msra.mxu0 %v16373_v45  ;;  %19603 = vst [vmem:[#allocation77_spill] sm:$0xff] %v16501_v19 }
 0x55f   : > { %6479 = vmatmul.mubr.f32.vlgmr.msra.gmra.mxu1 %v16155_v39  ;;  %6539 = vmatprep.subr.mxu0 %v16399_v58 }
 0x560   : > { %6658 = vmatpush1.msra.mxu1 %v16468_v34  ;;  %6484 = vmatprep.mubr.f32.mxu1 %v19591_v37  ;;  %v6692_v34 = vsub.f32 %v16462_v60, %v16487_v27 }
 0x561   : > { %6392 = vmatmul.mubr.f32.gmra.mxu0 %v16278_v48  ;;  %6664 = vmatprep.subr.mxu1 %v16475_v35  ;;  %v16509_v35 = vand.u32 4294901760, %v6680_v10 }
 0x562   : > { %6397 = vmatprep.mubr.f32.mxu0 %v19591_v37  ;;  %6670 = vmatpush1.msra.mxu1 %v16482_v12  ;;  %v16513_v12 = vand.u32 4294901760, %v6686_v55  ;;  %v16517_v42 = vand.u32 4294901760, %v6692_v34  ;;  %v5620_v34 = vld [vmem:[%s19132_s5 + $0x8] sm:$0xff] }
 0x563   : > { %6486 = vmatmul.mubr.f32.gmra.mxu1 %v16209_v56  ;;  %6541 = vmatpush1.msra.mxu0 %v16409_v2  ;;  %19604 = vst [vmem:[#allocation78_spill] sm:$0xff] %v16509_v35 }
 0x564   : > { %6491 = vmatprep.mubr.f32.mxu1 %v19591_v37  ;;  %6543 = vmatprep.subr.mxu0 %v16419_v29  ;;  %19605 = vst [vmem:[#allocation79_spill] sm:$0xff] %v16513_v12  ;;  %19606 = vst [vmem:[#allocation80_spill] sm:$0xff] %v16517_v42 }
 0x565   : > { %6399 = vmatmul.mubr.f32.gmra.mxu0 %v16283_v13  ;;  %6676 = vmatprep.subr.mxu1 %v16501_v19 }
 0x566   : > { %6545 = vmatpush1.msra.mxu0 %v16431_v59  ;;  %6578 = vmatprep.mubr.f32.mxu0 %v19591_v37 }
 0x567   : > { %6493 = vmatmul.mubr.f32.gmra.mxu1 %v16278_v48  ;;  %6782 = vmatprep.subr.mxu0 %v16365_v21 }
 0x568   : > { %6682 = vmatpush1.msra.mxu1 %v16509_v35  ;;  %6498 = vmatprep.mubr.f32.mxu1 %v19591_v37 }
 0x569   : > { %6584 = vmatmul.mubr.f32.vlgmr.msra.gmra.mxu0 %v16262_v9  ;;  %6688 = vmatprep.subr.mxu1 %v16513_v12  ;;  %v11524_v9 = vld [vmem:[%s12495_s25 + $0x100] sm:$0xff] }
 0x56a   : > { %6589 = vmatprep.mubr.f32.mxu0 %v19591_v37  ;;  %6694 = vmatpush1.msra.mxu1 %v16517_v42 }
 0x56b   : > { %6500 = vmatmul.mubr.f32.gmra.mxu1 %v16283_v13  ;;  %6785 = vmatpush1.msra.mxu0 %v16381_v28 }
 0x56c   : > { %6727 = vmatprep.mubr.f32.mxu1 %v19591_v37  ;;  %6894 = vmatprep.subr.mxu1 %v16350_v25 }
 0x56d   : > { %6595 = vmatmul.mubr.f32.gmra.mxu0 %v16287_v38  ;;  %5744 = vperm.xlu0 %12119, %v5620_v34   ;;  %v19610_v38 = vld [vmem:[#allocation44_spill] sm:$0xff] }
 0x56e   : > { %5680 = vperm.xlu1 %12116, %v5620_v34   ;;  %6600 = vmatprep.mubr.f32.mxu0 %v19591_v37 }
 0x56f   : > { %6729 = vmatmul.mubr.f32.vlgmr.msra.gmra.mxu1 %v16155_v39  ;;  %6788 = vmatprep.subr.mxu0 %v16390_v44 }
 0x570   : > { %6896 = vmatpush1.msra.mxu1 %v16359_v53  ;;  %6734 = vmatprep.mubr.f32.mxu1 %v19591_v37 }
 0x571   : > { %6606 = vmatmul.mubr.f32.gmra.mxu0 %v16325_v33  ;;  %6898 = vmatprep.subr.mxu1 %v16368_v61 }
 0x572   : > { %6791 = vmatpush1.msra.mxu0 %v16396_v31  ;;  %12120 = vset.pattern.permute.xlu0 %v19542_v32 }
 0x573   : > { %6736 = vmatmul.mubr.f32.gmra.mxu1 %v16209_v56  ;;  %12117 = vset.pattern.permute.xlu1 %v19571_v6 }
 0x574   : > { %6611 = vmatprep.mubr.f32.mxu0 %v19591_v37  ;;  %6900 = vmatpush1.msra.mxu1 %v16373_v45 }
 0x575   : > { %5640 = vperm.xlu0 %12120, %v16172_v52   ;;  %5748 = vperm.xlu1 %12117, %v16151_v3   ;;  %v5619_v3 = vld [vmem:[%s19132_s5] sm:$0xff]  ;;  %v7198_v52 = vld [vmem:[%s19134_s7 + $0x10] sm:$0xff] }
 0x576   : > { %6617 = vmatmul.mubr.f32.gmra.mxu0 %v16331_v1  ;;  %6794 = vmatprep.subr.mxu0 %v16428_v43 }
 0x577   : > { %6741 = vmatprep.mubr.f32.mxu1 %v19591_v37  ;;  %6797 = vmatpush1.msra.mxu0 %v16441_v17 }
 0x578   : > { %6743 = vmatmul.mubr.f32.gmra.mxu1 %v16278_v48  ;;  %6800 = vmatprep.subr.mxu0 %v16451_v7 }
 0x579   : > { %6902 = vmatprep.subr.mxu1 %v16399_v58  ;;  %6803 = vmatpush1.msra.mxu0 %v16462_v60 }
 0x57a   : > { %6836 = vmatprep.mubr.f32.mxu0 %v19591_v37  ;;  %6904 = vmatpush1.msra.mxu1 %v16409_v2 }
 0x57b   : > { %5630 = vperm.xlu0 %12120, %v5620_v34   ;;  %12118 = vset.pattern.permute.xlu1 %v19543_v63  ;;  %v7199_v63 = vld [vmem:[%s19134_s7 + $0x18] sm:$0xff] }
 0x57c   : > { %6839 = vmatmul.mubr.f32.vlgmr.msra.gmra.mxu0 %v16189_v23  ;;  %5676 = vperm.xlu1 %12118, %v5619_v3   ;;  %v11527_v23 = vld [vmem:[%s12495_s25 + $0x118] sm:$0xff] }
 0x57d   : > { %6748 = vmatprep.mubr.f32.mxu1 %v19591_v37  ;;  %6906 = vmatprep.subr.mxu1 %v16419_v29 }
 0x57e   : > { %6750 = vmatmul.mubr.f32.gmra.mxu1 %v16283_v13  ;;  %6844 = vmatprep.mubr.f32.mxu0 %v19591_v37 }
 0x57f   : > { %6908 = vmatpush1.msra.mxu1 %v16431_v59  ;;  %5625 = vperm.xlu0 %12120, %v5619_v3  }
 0x580   : > { %6847 = vmatmul.mubr.f32.gmra.mxu0 %v16230_v24  ;;  %7005 = vmatprep.subr.mxu0 %v16386_v0  ;;  %v11529_v24 = vld [vmem:[%s12495_s25 + $0x228] sm:$0xff] }
 0x581   : > { %12121 = vset.pattern.permute.xlu1 %v19571_v6  ;;  %6941 = vmatprep.mubr.f32.mxu1 %v19591_v37  ;;  %v19609_v6 = vld [vmem:[#allocation41_spill] sm:$0xff] }
 0x582   : > { %7009 = vmatpush1.msra.mxu0 %v16406_v46  ;;  %5740 = vperm.xlu1 %12121, %v5619_v3   ;;  %v19615_v3 = vld [vmem:[#allocation2_spill] sm:$0xff] }
 0x583   : > { %6945 = vmatmul.mubr.f32.vlgmr.msra.gmra.mxu1 %v16214_v20  ;;  %7120 = vmatprep.subr.mxu1 %v16350_v25  ;;  %v11526_v20 = vld [vmem:[%s12495_s25 + $0x110] sm:$0xff] }
 0x584   : > { %6852 = vmatprep.mubr.f32.mxu0 %v19591_v37  ;;  %7122 = vmatpush1.msra.mxu1 %v16359_v53 }
 0x585   : > { %6855 = vmatmul.mubr.f32.gmra.mxu0 %v16294_v16  ;;  %7013 = vmatprep.subr.mxu0 %v16416_v57  ;;  %v19611_v16 = vld [vmem:[#allocation47_spill] sm:$0xff] }
 0x586   : > { %6950 = vmatprep.mubr.f32.mxu1 %v19591_v37  ;;  %7017 = vmatpush1.msra.mxu0 %v16424_v22 }
 0x587   : > { %6954 = vmatmul.mubr.f32.gmra.mxu1 %v16250_v30  ;;  %7124 = vmatprep.subr.mxu1 %v16368_v61  ;;  %v19607_v30 = vld [vmem:[#allocation28_spill] sm:$0xff] }
 0x588   : > { %6860 = vmatprep.mubr.f32.mxu0 %v19591_v37  ;;  %7126 = vmatpush1.msra.mxu1 %v16373_v45 }
 0x589   : > { %6863 = vmatmul.mubr.f32.gmra.mxu0 %v16299_v40  ;;  %7021 = vmatprep.subr.mxu0 %v16458_v49  ;;  %v19612_v40 = vld [vmem:[#allocation48_spill] sm:$0xff] }
 0x58a   : > { %6959 = vmatprep.mubr.f32.mxu1 %v19591_v37  ;;  %7025 = vmatpush1.msra.mxu0 %v16471_v54 }
 0x58b   : > { %6963 = vmatmul.mubr.f32.gmra.mxu1 %v16306_v4  ;;  %7029 = vmatprep.subr.mxu0 %v16478_v62  ;;  %v16662_v4 = vpop.permute.xlu1 %5635 }
 0x58c   : > { %7128 = vmatprep.subr.mxu1 %v16399_v58  ;;  %7033 = vmatpush1.msra.mxu0 %v16487_v27  ;;  %v19623_v58 = vld [vmem:[#allocation6_spill] sm:$0xff] }
 0x58d   : > { %7066 = vmatprep.mubr.f32.mxu0 %v19591_v37  ;;  %7130 = vmatpush1.msra.mxu1 %v16409_v2 }
 0x58e   : > { %7068 = vmatmul.mubr.f32.vlgmr.msra.gmra.mxu0 %v16155_v39  ;;  %6968 = vmatprep.mubr.f32.mxu1 %v19591_v37 }
 0x58f   : > { %6972 = vmatmul.mubr.f32.gmra.mxu1 %v16312_v47  ;;  %7132 = vmatprep.subr.mxu1 %v16419_v29  ;;  %v16664_v47 = vpop.permute.xlu1 %5684 }
 0x590   : > { %7073 = vmatprep.mubr.f32.mxu0 %v19591_v37  ;;  %7134 = vmatpush1.msra.mxu1 %v16431_v59  ;;  %v16666_v33 = vpop.permute.xlu0 %5688 }
 0x591   : > { %7167 = vmatprep.mubr.f32.mxu1 %v19591_v37  ;;  %12122 = vset.pattern.permute.xlu1 %v19542_v32  ;;  %v7197_v32 = vld [vmem:[%s19134_s7 + $0x8] sm:$0xff] }
 0x592   : > { %7075 = vmatmul.mubr.f32.gmra.mxu0 %v16209_v56  ;;  %7217 = vperm.xlu1 %12122, %v7199_v63   ;;  %v5693_v63 = vsub.s32 4, %v19615_v3 }
 0x593   : > { %7169 = vmatmul.mubr.f32.vlgmr.msra.gmra.mxu1 %v16155_v39  ;;  %7080 = vmatprep.mubr.f32.mxu0 %v19591_v37  ;;  %v7196_v39 = vld [vmem:[%s19134_s7] sm:$0xff] }
 0x594   : > { %7174 = vmatprep.mubr.f32.mxu1 %v19591_v37  ;;  %7212 = vperm.xlu0 %12120, %v7198_v52   ;;  %v16756_v45 = vrot.slane %v19623_v58, %v5693_v63 }
 0x595   : > { %9012 = vmatprep.subr.mxu0 %v16107_v36  ;;  %9100 = vmatprep.subr.mxu1 %v16223_v14  ;;  %v11530_v14 = vld [vmem:[%s12495_s25 + $0x230] sm:$0xff] }
 0x596   : > { %7082 = vmatmul.mubr.f32.gmra.mxu0 %v16278_v48  ;;  %7258 = vperm.xlu1 %12122, %v11527_v23   ;;  %v5645_v23 = vsub.s32 3, %v19615_v3 }
 0x597   : > { %7176 = vmatmul.mubr.f32.gmra.mxu1 %v16209_v56  ;;  %7087 = vmatprep.mubr.f32.mxu0 %v19591_v37  ;;  %v11531_v56 = vld [vmem:[%s12495_s25 + $0x238] sm:$0xff] }
 0x598   : > { %7181 = vmatprep.mubr.f32.mxu1 %v19591_v37  ;;  %7253 = vperm.xlu0 %12120, %v11526_v20   ;;  %v19616_v20 = vld [vmem:[#allocation3_spill] sm:$0xff]  ;;  %v16761_v53 = vrot.slane %v19623_v58, %v5645_v23 }
 0x599   : > { %9014 = vmatpush1.msra.mxu0 %v16110_v41  ;;  %9106 = vmatpush1.msra.mxu1 %v16225_v50  ;;  %v11525_v50 = vld [vmem:[%s12495_s25 + $0x108] sm:$0xff] }
 0x59a   : > { %7089 = vmatmul.mubr.f32.gmra.mxu0 %v16283_v13  ;;  %7207 = vperm.xlu1 %12122, %v7197_v32   ;;  %v16681_v32 = vrot.slane %v19616_v20, %v5693_v63 }
 0x59b   : > { %7183 = vmatmul.mubr.f32.gmra.mxu1 %v16278_v48  ;;  %9016 = vmatprep.subr.mxu0 %v16113_v8  ;;  %v19608_v48 = vld [vmem:[#allocation40_spill] sm:$0xff] }
 0x59c   : > { %7188 = vmatprep.mubr.f32.mxu1 %v19591_v37  ;;  %7202 = vperm.xlu0 %12120, %v7196_v39  }
 0x59d   : > { %9018 = vmatpush1.msra.mxu0 %v16116_v11  ;;  %9059 = vmatprep.mubr.f32.mxu0 %v19591_v37  ;;  %v16668_v1 = vpop.permute.xlu1 %5752 }
 0x59e   : > { %7299 = vperm.xlu1 %12122, %v11531_v56   ;;  %9020 = vmatprep.subr.mxu0 %v16124_v18  ;;  %19613 = vst [vmem:[#allocation28_spill] sm:$0xff] %v16668_v1  ;;  %v16686_v56 = vsub.s32 5, %v19615_v3  ;;  %v19618_v3 = vld [vmem:[#allocation5_spill] sm:$0xff] }
 0x59f   : > { %7190 = vmatmul.mubr.f32.gmra.mxu1 %v16283_v13  ;;  %9022 = vmatpush1.msra.mxu0 %v16127_v26  ;;  %v11162_v13 = vld [vmem:[%s19137_s10] sm:$0xf]  ;;  %v16704_v27 = vrot.slane %v19618_v3, %v5645_v23  ;;  %v16707_v62 = vrot.slane %v19618_v3, %v5693_v63 }
 0x5a0   : > { %7294 = vperm.xlu0 %12120, %v11530_v14   ;;  %9024 = vmatprep.subr.mxu0 %v16130_v5  ;;  %v16689_v14 = vrot.slane %v19616_v20, %v5645_v23  ;;  %v16722_v7 = vrot.slane %v19618_v3, %v16686_v56 }
 0x5a1   : > { %9026 = vmatpush1.msra.mxu0 %v16133_v15  ;;  %9112 = vmatprep.subr.mxu1 %v16241_v51  ;;  %v11528_v51 = vld [vmem:[%s12495_s25 + $0x220] sm:$0xff] }
 0x5a2   : > { %7248 = vperm.xlu1 %12122, %v11525_v50   ;;  %9209 = vmatprep.subr.mxu0 %v19607_v30  ;;  %19619 = vst [vmem:[#allocation44_spill] sm:$0xff] %v16722_v7 }
 0x5a3   : > { %9118 = vmatpush1.msra.mxu1 %v19608_v48  ;;  %9175 = vmatprep.mubr.f32.mxu1 %v19591_v37 }
 0x5a4   : > { %7289 = vperm.xlu0 %12120, %v11529_v24   ;;  %9124 = vmatprep.subr.mxu1 %v19609_v6  ;;  %v16696_v6 = vrot.slane %v19616_v20, %v16686_v56 }
 0x5a5   : > { %9130 = vmatpush1.msra.mxu1 %v19610_v38 }
 0x5a6   : > { %7243 = vperm.xlu1 %12122, %v11524_v9   ;;  %9136 = vmatprep.subr.mxu1 %v19611_v16 }
 0x5a7   : > { %9142 = vmatpush1.msra.mxu1 %v19612_v40 }
 0x5a8   : > { %11165 = vperm.xlu0 %12120, %v11162_v13   ;;  %9297 = vmatprep.subr.mxu1 %v16107_v36 }
 0x5aa   : > { %7284 = vperm.xlu1 %12122, %v11528_v51  }
 0x5e8   : > { %v16670_v10 = vpop.permute.xlu0 %5744 }
 0x5e9   : > { %19614 = vst [vmem:[#allocation40_spill] sm:$0xff] %v16670_v10  ;;  %v16672_v55 = vpop.permute.xlu1 %5680  ;;  %v5775_v12 = vmul.f32 %v16696_v6, %v16670_v10 }
 0x5f0   : > { %v16674_v34 = vpop.permute.xlu0 %5640  ;;  %v16677_v52 = vpop.permute.xlu1 %5748 }
 0x5f6   : > { %v16683_v39 = vpop.permute.xlu0 %5630 }
 0x5f7   : > { %19617 = vst [vmem:[#allocation41_spill] sm:$0xff] %v16683_v39  ;;  %v5677_v50 = vpop.permute.xlu1 %5676  ;;  %v5895_v24 = vpop.f32.mrf.mxu0 }
 0x5f8   : > { %v5707_v30 = vmul.f32 %v16681_v32, %v5677_v50  ;;  %v5709_v20 = vmul.f32 %v16707_v62, %v5677_v50  ;;  %v5710_v42 = vmul.f32 %v16756_v45, %v5677_v50 }
 0x5f9   : > { %v16692_v9 = vpop.f32.mrf.mxu0 }
 0x5fa   : > { %v5626_v48 = vpop.permute.xlu0 %5625 }
 0x5fb   : > { %v5659_v13 = vmul.f32 %v16689_v14, %v5626_v48  ;;  %v16699_v38 = vpop.f32.mrf.mxu0  ;;  %v5661_v22 = vmul.f32 %v16704_v27, %v5626_v48  ;;  %v5662_v36 = vmul.f32 %v16761_v53, %v5626_v48 }
 0x5fd   : > { %v5741_v16 = vpop.permute.xlu1 %5740  ;;  %v16701_v51 = vpop.f32.mrf.mxu0  ;;  %v5723_v40 = vadd.f32 %v5707_v30, %v5659_v13  ;;  %v5725_v44 = vadd.f32 %v5709_v20, %v5661_v22  ;;  %v5726_v37 = vadd.f32 %v5710_v42, %v5662_v36 }
 0x5fe   : > { %v5771_v54 = vmul.f32 %v16696_v6, %v5741_v16 }
 0x5ff   : > { %v6040_v49 = vpop.f32.mrf.mxu1 }
 0x600   : > { %v5787_v57 = vadd.f32 %v5771_v54, %v5723_v40  ;;  %v5773_v54 = vmul.f32 %v16722_v7, %v5741_v16 }
 0x601   : > { %v16712_v46 = vpop.f32.mrf.mxu0  ;;  %v16714_v0 = vpop.f32.mrf.mxu1 }
 0x602   : > { %v5896_v60 = vadd.f32 %v5895_v24, %v5787_v57  ;;  %v16733_v57 = vadd.f32 %v5773_v54, %v5725_v44  ;;  %v19621_v24 = vld [vmem:[#allocation4_spill] sm:$0xff]  ;;  %v5711_v44 = vmul.f32 %v16681_v32, %v16672_v55  ;;  %v5663_v54 = vmul.f32 %v16689_v14, %v16683_v39 }
 0x603   : > { %v16716_v30 = vpop.f32.mrf.mxu0  ;;  %v16718_v13 = vpop.f32.mrf.mxu1  ;;  %v16736_v21 = vrot.slane %v19621_v24, %v5645_v23  ;;  %v16739_v3 = vrot.slane %v19621_v24, %v5693_v63  ;;  %v16745_v22 = vrot.slane %v19621_v24, %v16686_v56  ;;  %v5667_v23 = vmul.f32 %v16689_v14, %v16662_v4 }
 0x604   : > { %v6041_v17 = vadd.f32 %v6040_v49, %v5896_v60  ;;  %19620 = vst [vmem:[#allocation47_spill] sm:$0xff] %v16733_v57  ;;  %v5727_v5 = vadd.f32 %v5711_v44, %v5663_v54 }
 0x605   : > { %v16724_v43 = vpop.f32.mrf.mxu0  ;;  %v16726_v31 = vpop.f32.mrf.mxu1  ;;  %v5708_v29 = vmul.f32 %v16739_v3, %v5677_v50  ;;  %v5660_v2 = vmul.f32 %v16736_v21, %v5626_v48  ;;  %v5772_v15 = vmul.f32 %v16745_v22, %v5741_v16  ;;  %v5715_v50 = vmul.f32 %v16681_v32, %v16664_v47 }
 0x606   : > { %v16784_v48 = vrot.slane %v19623_v58, %v16686_v56  ;;  %v5791_v54 = vadd.f32 %v5775_v12, %v5727_v5  ;;  %v5712_v36 = vmul.f32 %v16739_v3, %v16672_v55 }
 0x607   : > { %v16729_v40 = vpop.f32.mrf.mxu0  ;;  %v16731_v28 = vpop.f32.mrf.mxu1  ;;  %v5724_v63 = vadd.f32 %v5708_v29, %v5660_v2  ;;  %v5731_v57 = vadd.f32 %v5715_v50, %v5667_v23 }
 0x608   : > { %19628 = vst [vmem:[#allocation81_spill] sm:$0xff] %v16784_v48  ;;  %v5774_v41 = vmul.f32 %v16784_v48, %v5741_v16  ;;  %v5907_v42 = vadd.f32 %v16699_v38, %v5791_v54  ;;  %v5776_v48 = vmul.f32 %v16745_v22, %v16670_v10  ;;  %v5717_v54 = vmul.f32 %v16707_v62, %v16664_v47 }
 0x609   : > { %v16741_v49 = vpop.f32.mrf.mxu1  ;;  %v6150_v60 = vpop.f32.mrf.mxu0  ;;  %v5788_v44 = vadd.f32 %v5772_v15, %v5724_v63  ;;  %v5664_v15 = vmul.f32 %v16736_v21, %v16683_v39 }
 0x60a   : > { %v16799_v56 = vadd.f32 %v5774_v41, %v5726_v37  ;;  %v6151_v37 = vadd.f32 %v6150_v60, %v6041_v17 }
 0x60b   : > { %v16747_v20 = vpop.f32.mrf.mxu1  ;;  %v6152_v59 = vpop.f32.mrf.mxu0  ;;  %v5898_v12 = vadd.f32 %v16692_v9, %v5788_v44  ;;  %v5728_v39 = vadd.f32 %v5712_v36, %v5664_v15  ;;  %v6048_v9 = vadd.f32 %v16718_v13, %v5907_v42 }
 0x60c   : > { %19622 = vst [vmem:[#allocation48_spill] sm:$0xff] %v16747_v20  ;;  %19632 = vst [vmem:[#allocation85_spill] sm:$0xff] %v16799_v56 }
 0x60d   : > { %v16758_v61 = vpop.f32.mrf.mxu1  ;;  %v6158_v24 = vpop.f32.mrf.mxu0  ;;  %v6043_v41 = vadd.f32 %v16714_v0, %v5898_v12  ;;  %v5792_v42 = vadd.f32 %v5776_v48, %v5728_v39  ;;  %v5716_v39 = vmul.f32 %v16739_v3, %v16664_v47 }
 0x60e   : > { %19624 = vst [vmem:[#allocation3_spill] sm:$0xff] %v16758_v61  ;;  %v16763_v25 = vpop.permute.xlu1 %7217  ;;  %v6159_v12 = vadd.f32 %v6158_v24, %v6048_v9 }
 0x60f   : > { %19625 = vst [vmem:[#allocation5_spill] sm:$0xff] %v16763_v25  ;;  %v16768_v35 = vpop.f32.mrf.mxu0  ;;  %v6256_v19 = vpop.f32.mrf.mxu1  ;;  %v5779_v25 = vmul.f32 %v16696_v6, %v16677_v52  ;;  %v6153_v44 = vadd.f32 %v6152_v59, %v6043_v41  ;;  %v5670_v59 = vmul.f32 %v16761_v53, %v16662_v4 }
 0x610   : > { %v16772_v26 = vpop.permute.xlu0 %7212  ;;  %v6257_v38 = vadd.f32 %v6256_v19, %v6151_v37  ;;  %v5718_v19 = vmul.f32 %v16756_v45, %v16664_v47  ;;  %v5719_v47 = vmul.f32 %v16681_v32, %v16666_v33  ;;  %v16869_v32 = vmul.f32 %v16756_v45, %v16666_v33 }
 0x611   : > { %19626 = vst [vmem:[#allocation4_spill] sm:$0xff] %v16772_v26  ;;  %v16778_v18 = vpop.f32.mrf.mxu0  ;;  %v6258_v11 = vpop.f32.mrf.mxu1  ;;  %v5795_v16 = vadd.f32 %v5779_v25, %v5731_v57  ;;  %v5669_v57 = vmul.f32 %v16704_v27, %v16662_v4 }
 0x612   : > { %v16780_v8 = vpop.permute.xlu1 %7258  ;;  %v6259_v10 = vadd.f32 %v6258_v11, %v6153_v44  ;;  %19643 = vst [vmem:[#allocation96_spill] sm:$0xff] %v16869_v32 }
 0x613   : > { %19627 = vst [vmem:[#allocation6_spill] sm:$0xff] %v16780_v8  ;;  %v16786_v29 = vpop.f32.mrf.mxu0  ;;  %v6265_v2 = vpop.f32.mrf.mxu1  ;;  %v5918_v17 = vadd.f32 %v16712_v46, %v5795_v16 }
 0x614   : > { %19629 = vst [vmem:[#allocation82_spill] sm:$0xff] %v16786_v29  ;;  %v16797_v58 = vpop.permute.xlu0 %7253  ;;  %v6266_v46 = vadd.f32 %v6265_v2, %v6159_v12 }
 0x615   : > { %v16791_v61 = vpop.f32.mrf.mxu0  ;;  %v16793_v20 = vpop.f32.mrf.mxu1  ;;  %19631 = vst [vmem:[#allocation84_spill] sm:$0xff] %v16797_v58  ;;  %v6055_v11 = vadd.f32 %v16731_v28, %v5918_v17  ;;  %v16847_v28 = vadd.f32 %v5718_v19, %v5670_v59  ;;  %v16860_v59 = vmul.f32 %v16707_v62, %v16666_v33 }
 0x616   : > { %v16795_v8 = vpop.permute.xlu1 %7207 }
 0x617   : > { %19630 = vst [vmem:[#allocation83_spill] sm:$0xff] %v16795_v8  ;;  %v16801_v29 = vpop.f32.mrf.mxu0  ;;  %v6274_v5 = vpop.f32.mrf.mxu1  ;;  %19641 = vst [vmem:[#allocation94_spill] sm:$0xff] %v16860_v59 }
 0x618   : > { %19633 = vst [vmem:[#allocation86_spill] sm:$0xff] %v16801_v29  ;;  %v16819_v25 = vpop.permute.xlu0 %7202 }
 0x619   : > { %v16809_v63 = vpop.f32.mrf.mxu1  ;;  %v6379_v23 = vpop.f32.mrf.mxu0  ;;  %19635 = vst [vmem:[#allocation88_spill] sm:$0xff] %v16819_v25 }
 0x61a   : > { %v16812_v50 = vpop.permute.xlu1 %7299  ;;  %v6380_v36 = vadd.f32 %v6379_v23, %v6257_v38 }
 0x61b   : > { %19634 = vst [vmem:[#allocation87_spill] sm:$0xff] %v16812_v50  ;;  %v16816_v29 = vpop.f32.mrf.mxu1  ;;  %v6381_v56 = vpop.f32.mrf.mxu0  ;;  %v5733_v50 = vadd.f32 %v5717_v54, %v5669_v57 }
 0x61c   : > { %v6382_v16 = vadd.f32 %v6381_v56, %v6259_v10  ;;  %v6167_v10 = vadd.f32 %v16778_v18, %v6055_v11  ;;  %v16843_v2 = vpop.permute.xlu0 %7294  ;;  %v5909_v56 = vadd.f32 %v16701_v51, %v5792_v42  ;;  %v5720_v18 = vmul.f32 %v16739_v3, %v16666_v33 }
 0x61d   : > { %v16824_v0 = vpop.f32.mrf.mxu1  ;;  %v6386_v60 = vpop.f32.mrf.mxu0  ;;  %19639 = vst [vmem:[#allocation92_spill] sm:$0xff] %v16843_v2  ;;  %v5671_v33 = vmul.f32 %v16689_v14, %v16674_v34  ;;  %v5672_v14 = vmul.f32 %v16736_v21, %v16674_v34 }
 0x61e   : > { %19636 = vst [vmem:[#allocation89_spill] sm:$0xff] %v16824_v0  ;;  %v16828_v15 = vpop.permute.xlu1 %7248  ;;  %v5668_v0 = vmul.f32 %v16736_v21, %v16662_v4  ;;  %v6387_v23 = vadd.f32 %v6386_v60, %v6266_v46  ;;  %v5781_v4 = vmul.f32 %v16722_v7, %v16677_v52  ;;  %v6275_v54 = vadd.f32 %v6274_v5, %v6167_v10 }
 0x61f   : > { %19637 = vst [vmem:[#allocation90_spill] sm:$0xff] %v16828_v15  ;;  %v6480_v13 = vpop.f32.mrf.mxu1  ;;  %v6388_v41 = vpop.f32.mrf.mxu0  ;;  %v6050_v51 = vadd.f32 %v16726_v31, %v5909_v56 }
 0x620   : > { %v6481_v37 = vadd.f32 %v6480_v13, %v6380_v36  ;;  %v16856_v13 = vadd.f32 %v5781_v4, %v5733_v50  ;;  %v5732_v3 = vadd.f32 %v5716_v39, %v5668_v0 }
 0x621   : > { %v6482_v24 = vpop.f32.mrf.mxu1  ;;  %v6393_v17 = vpop.f32.mrf.mxu0  ;;  %v6161_v31 = vadd.f32 %v16768_v35, %v6050_v51 }
 0x622   : > { %v7220_v9 = vadd.f32 %v16819_v25, %v6481_v37  ;;  %v16838_v44 = vpop.permute.xlu1 %7243  ;;  %v6483_v38 = vadd.f32 %v6482_v24, %v6382_v16  ;;  %19640 = vst [vmem:[#allocation93_spill] sm:$0xff] %v16856_v13  ;;  %v6394_v5 = vadd.f32 %v6393_v17, %v6275_v54  ;;  %v5783_v37 = vmul.f32 %v16696_v6, %v16668_v1 }
 0x623   : > { %19638 = vst [vmem:[#allocation91_spill] sm:$0xff] %v16838_v44  ;;  %v6487_v48 = vpop.f32.mrf.mxu1  ;;  %v16889_v6 = vmul.f32 %v16745_v22, %v16668_v1  ;;  %v6268_v35 = vadd.f32 %v16793_v20, %v6161_v31  ;;  %v5735_v54 = vadd.f32 %v5719_v47, %v5671_v33  ;;  %v16921_v47 = vmul.f32 %v16704_v27, %v16674_v34 }
 0x624   : > { %v7221_v60 = vadd.f32 %v16819_v25, %v6483_v38  ;;  %v6488_v12 = vadd.f32 %v6487_v48, %v6387_v23  ;;  %v7261_v57 = vmul.f32 %v16838_v44, %v7220_v9  ;;  %v16885_v38 = vpop.permute.xlu0 %7289  ;;  %v16923_v33 = vadd.f32 %v5720_v18, %v5672_v14 }
 0x625   : > { %v6489_v36 = vpop.f32.mrf.mxu1  ;;  %19646 = vst [vmem:[#allocation99_spill] sm:$0xff] %v16885_v38  ;;  %v6389_v17 = vadd.f32 %v6388_v41, %v6268_v35  ;;  %v16913_v41 = vmul.f32 %v16756_v45, %v16672_v55  ;;  %19650 = vst [vmem:[#allocation103_spill] sm:$0xff] %v16921_v47  ;;  %v16927_v45 = vadd.f32 %v5783_v37, %v5735_v54 }
 0x626   : > { %v7262_v19 = vmul.f32 %v16838_v44, %v7221_v60  ;;  %v7224_v42 = vadd.f32 %v16795_v8, %v6488_v12  ;;  %v16865_v46 = vpop.permute.xlu1 %7284 }
 0x627   : > { %19642 = vst [vmem:[#allocation95_spill] sm:$0xff] %v16865_v46  ;;  %v16872_v50 = vadd.f32 %v16865_v46, %v7261_v57  ;;  %v6494_v16 = vpop.f32.mrf.mxu1  ;;  %v5780_v57 = vmul.f32 %v16745_v22, %v16677_v52  ;;  %19649 = vst [vmem:[#allocation102_spill] sm:$0xff] %v16913_v41 }
 0x628   : > { %v7265_v11 = vmul.f32 %v16828_v15, %v7224_v42  ;;  %v16879_v24 = vadd.f32 %v16865_v46, %v7262_v19  ;;  %v6495_v9 = vadd.f32 %v6494_v16, %v6394_v5  ;;  %v16909_v19 = vmul.f32 %v16707_v62, %v16672_v55 }
 0x629   : > { %19644 = vst [vmem:[#allocation97_spill] sm:$0xff] %v16872_v50  ;;  %v19299_v0 = vand.u32 2147483647, %v16872_v50  ;;  %v7321_v23 = vand.u32 2139095040, %v16872_v50  ;;  %v6490_v5 = vadd.f32 %v6489_v36, %v6389_v17 }
 0x62a   : > { %19645 = vst [vmem:[#allocation98_spill] sm:$0xff] %v16879_v24  ;;  %v19298_v39 = vand.u32 2147483647, %v16879_v24  ;;  %v7425_v10 = vand.u32 2139095040, %v16879_v24  ;;  %v7228_v56 = vadd.f32 %v16772_v26, %v6495_v9  ;;  %v16902_v20 = vadd.f32 %v16885_v38, %v7265_v11  ;;  %19648 = vst [vmem:[#allocation101_spill] sm:$0xff] %v16909_v19 }
 0x62b   : > { %v7322_v48 = vshrl.u32 %v7321_v23, 23  ;;  %v7325_v4 = vand.u32 8388607, %v19299_v0  ;;  %v16925_v9 = vadd.f32 %v5780_v57, %v5732_v3  ;;  %v16931_v35 = vadd.f32 %v16795_v8, %v6490_v5 }
 0x62c   : > { %v7426_v60 = vshrl.u32 %v7425_v10, 23  ;;  %v7429_v12 = vand.u32 8388607, %v19298_v39  ;;  %19647 = vst [vmem:[#allocation100_spill] sm:$0xff] %v16902_v20  ;;  %v7269_v21 = vmul.f32 %v16797_v58, %v7228_v56  ;;  %v7737_v22 = vand.u32 2139095040, %v16902_v20 }
 0x62d   : > { %v11532_v51 = vadd.s32 4294967169, %v7322_v48  ;;  %v7326_v16 = vor.u32 8388608, %v7325_v4  ;;  %v19653_v5 = vmov 2131351028  }
 0x62e   : > { %v11536_v42 = vadd.s32 4294967169, %v7426_v60  ;;  %v16916_v11 = vadd.f32 %v16843_v2, %v7269_v21  ;;  %v7430_v62 = vor.u32 8388608, %v7429_v12  ;;  %v7738_v10 = vshrl.u32 %v7737_v22, 23 }
 0x62f   : > { %v7328_v31 = vadd.s32 1, %v11532_v51  ;;  %v16933_v56 = vshll.u32 %v7326_v16, 8  ;;  %v19651_v12 = vmov 683565275   ;;  %v19652_v21 = vmov 2475754826  }
 0x630   : > { %v7432_v23 = vadd.s32 1, %v11536_v42  ;;  %v8153_v55 = vand.u32 2139095040, %v16916_v11  ;;  %v16937_v3 = vshll.u32 %v7430_v62, 8  ;;  %v16943_v51 = vadd.s32 4294967169, %v7738_v10 }
 0x631   : > { %vm7329_vm14 = vcmp.gt.s32.totalorder %v7328_v31, 0 }
 0x632   : > { %v7330_v36 = vsel %vm7329_vm14, %v7328_v31, 0  ;;  %vm7433_vm15 = vcmp.gt.s32.totalorder %v7432_v23, 0  ;;  %v16940_v17 = vshrl.u32 %v8153_v55, 23  ;;  %v19654_v31 = vmov 2102212464  }
 0x633   : > { %v7331_v48 = vshrl.u32 %v7330_v36, 5  ;;  %v7332_v4 = vand.u32 31, %v7330_v36  ;;  %v7434_v18 = vsel %vm7433_vm15, %v7432_v23, 0  ;;  %v19655_v23 = vmov 920167782  }
 0x634   : > { %v16935_v14 = vshrl.u32 %v7434_v18, 5  ;;  %v7436_v54 = vand.u32 31, %v7434_v18  ;;  %v19656_v18 = vmov 1326507024  }
 0x635   : > { %v7333_v60 = vsub.s32 32, %v7332_v4  ;;  %v7335_v57 = vshll.u32 %v19651_v12, %v7332_v4  ;;  %v7338_v42 = vshll.u32 %v19652_v21, %v7332_v4  ;;  %v7341_v16 = vshll.u32 %v19653_v5, %v7332_v4 }
 0x636   : > { %v7344_v22 = vshll.u32 %v19654_v31, %v7332_v4  ;;  %v7347_v36 = vshll.u32 %v19655_v23, %v7332_v4  ;;  %vm7350_vm2 = vcmp.lt.s32.totalorder %v7331_v48, 1  ;;  %vm7351_vm4 = vcmp.lt.s32.totalorder %v7331_v48, 2 }
 0x637   : > { %v7336_v62 = vshrl.u32 %v19652_v21, %v7333_v60  ;;  %v7339_v39 = vshrl.u32 %v19653_v5, %v7333_v60  ;;  %v7342_v55 = vshrl.u32 %v19654_v31, %v7333_v60  ;;  %v7334_v0 = vshrl.u32 %v19651_v12, %v7333_v60 }
 0x638   : > { %v7345_v10 = vshrl.u32 %v19655_v23, %v7333_v60  ;;  %v7348_v37 = vshrl.u32 %v19656_v18, %v7333_v60  ;;  %v7437_v25 = vsub.s32 32, %v7436_v54  ;;  %vm7352_vm1 = vcmp.lt.s32.totalorder %v7331_v48, 3 }
 0x639   : > { %v7337_v46 = vor.u32 %v7336_v62, %v7335_v57  ;;  %v7340_v8 = vor.u32 %v7339_v39, %v7338_v42  ;;  %v7343_v44 = vor.u32 %v7342_v55, %v7341_v16  ;;  %vm7353_vm3 = vcmp.lt.s32.totalorder %v7331_v48, 4 }
 0x63a   : > { %v7346_v32 = vor.u32 %v7345_v10, %v7344_v22  ;;  %v7349_v4 = vor.u32 %v7348_v37, %v7347_v36  ;;  %v7439_v60 = vshll.u32 %v19651_v12, %v7436_v54  ;;  %v7440_v42 = vshrl.u32 %v19652_v21, %v7437_v25 }
 0x63b   : > { %v7354_v1 = vsel %vm7350_vm2, %v7334_v0, %v7337_v46  ;;  %v7355_v59 = vsel %vm7353_vm3, %v7343_v44, 2102212464  ;;  %v7358_v47 = vsel %vm7350_vm2, %v7337_v46, %v7340_v8  ;;  %v7362_v13 = vsel %vm7350_vm2, %v7340_v8, %v7343_v44 }
 0x63c   : > { %v7356_v41 = vsel %vm7352_vm1, %v7340_v8, %v7355_v59  ;;  %v7359_v7 = vsel %vm7353_vm3, %v7346_v32, 920167782  ;;  %v7363_v19 = vsel %vm7353_vm3, %v7349_v4, 1326507024  ;;  %v7442_v37 = vshll.u32 %v19652_v21, %v7436_v54 }
 0x63d   : > { %v7360_v57 = vsel %vm7352_vm1, %v7343_v44, %v7359_v7  ;;  %v7364_v39 = vsel %vm7352_vm1, %v7346_v32, %v7363_v19  ;;  %v7357_v16 = vsel %vm7351_vm4, %v7354_v1, %v7356_v41  ;;  %v7443_v46 = vshrl.u32 %v19653_v5, %v7437_v25 }
 0x63e   : > { %v7361_v0 = vsel %vm7351_vm4, %v7358_v47, %v7360_v57  ;;  %v7365_v22 = vsel %vm7351_vm4, %v7362_v13, %v7364_v39  ;;  %v7441_v44 = vor.u32 %v7440_v42, %v7439_v60  ;;  %v7445_v19 = vshll.u32 %v19653_v5, %v7436_v54 }
 0x63f   : > { %v16966_v8 = vmul.u32.u64.low %v16933_v56, %v7365_v22  ;;  %v16967_v59 = vmul.u32.u64.high %v16933_v56, %v7365_v22, %v16966_v8  ;;  %v16970_v36 = vmul.u32.u64.low %v16933_v56, %v7361_v0  ;;  %v16971_v7 = vmul.u32.u64.high %v16933_v56, %v7361_v0, %v16970_v36 }
 0x640   : > { %v7444_v32 = vor.u32 %v7443_v46, %v7442_v37  ;;  %v7446_v1 = vshrl.u32 %v19654_v31, %v7437_v25  ;;  %v7438_v41 = vshrl.u32 %v19651_v12, %v7437_v25  ;;  %v7448_v13 = vshll.u32 %v19654_v31, %v7436_v54 }
 0x641   : > { %v7449_v47 = vshrl.u32 %v19655_v23, %v7437_v25  ;;  %v7452_v48 = vshrl.u32 %v19656_v18, %v7437_v25  ;;  %v7373_v62 = vmul.u32 %v16933_v56, %v7357_v16  ;;  %v7451_v10 = vshll.u32 %v19655_v23, %v7436_v54 }
 0x642   : > { %v7447_v55 = vor.u32 %v7446_v1, %v7445_v19  ;;  %vm7454_vm5 = vcmp.lt.s32.totalorder %v16935_v14, 1  ;;  %vm7375_vm6 = vc.u32 %v16967_v59, %v16970_v36  ;;  %v7376_v4 = vadd.s32 1, %v16971_v7 }
 0x643   : > { %v7450_v60 = vor.u32 %v7449_v47, %v7448_v13  ;;  %vm7455_vm7 = vcmp.lt.s32.totalorder %v16935_v14, 2  ;;  %v7453_v57 = vor.u32 %v7452_v48, %v7451_v10  ;;  %vm7456_vm8 = vcmp.lt.s32.totalorder %v16935_v14, 3 }
 0x644   : > { %vm7457_vm9 = vcmp.lt.s32.totalorder %v16935_v14, 4  ;;  %v7462_v25 = vsel %vm7454_vm5, %v7441_v44, %v7444_v32  ;;  %v7377_v56 = vsel %vm7375_vm6, %v7376_v4, %v16971_v7  ;;  %v7466_v42 = vsel %vm7454_vm5, %v7444_v32, %v7447_v55 }
 0x645   : > { %v7459_v39 = vsel %vm7457_vm9, %v7447_v55, 2102212464  ;;  %v7463_v54 = vsel %vm7457_vm9, %v7450_v60, 920167782  ;;  %v7378_v37 = vadd.s32 %v7377_v56, %v7373_v62  ;;  %v7458_v16 = vsel %vm7454_vm5, %v7438_v41, %v7441_v44  ;;  %v19660_v56 = vld [vmem:[#allocation82_spill] sm:$0xff] }
 0x646   : > { %v7464_v0 = vsel %vm7456_vm8, %v7447_v55, %v7463_v54  ;;  %v7467_v22 = vsel %vm7457_vm9, %v7453_v57, 1326507024  ;;  %v7460_v46 = vsel %vm7456_vm8, %v7444_v32, %v7459_v39  ;;  %v11564_v1 = vadd.s32 4294967169, %v16940_v17 }
 0x647   : > { %v7465_v8 = vsel %vm7455_vm7, %v7462_v25, %v7464_v0  ;;  %v7468_v19 = vsel %vm7456_vm8, %v7450_v60, %v7467_v22  ;;  %v7379_v13 = vadd.s32 536870912, %v7378_v37  ;;  %v5920_v44 = vadd.f32 %v16716_v30, %v16925_v9 }
 0x648   : > { %v7469_v47 = vsel %vm7455_vm7, %v7466_v42, %v7468_v19  ;;  %v16996_v7 = vmul.u32.u64.low %v16937_v3, %v7465_v8  ;;  %v16997_v48 = vmul.u32.u64.high %v16937_v3, %v7465_v8, %v16996_v7  ;;  %v5800_v32 = vadd.f32 %v16889_v6, %v16923_v33 }
 0x649   : > { %v17005_v41 = vmul.u32.u64.low %v16937_v3, %v7469_v47  ;;  %v17006_v62 = vmul.u32.u64.high %v16937_v3, %v7469_v47, %v17005_v41  ;;  %v17008_v17 = vshrl.u32 %v7379_v13, 30  ;;  %v7461_v55 = vsel %vm7455_vm7, %v7458_v16, %v7460_v46 }
 0x64a   : > { %v8160_v10 = vadd.s32 1, %v11564_v1  ;;  %v7744_v4 = vadd.s32 1, %v16943_v51  ;;  %v17015_v60 = vmul.f32 %v16761_v53, %v16674_v34  ;;  %v17019_v30 = vadd.f32 %v16724_v43, %v16927_v45 }
 0x64b   : > { %19657 = vst [vmem:[#allocation104_spill] sm:$0xff] %v17008_v17  ;;  %v7266_v6 = vmul.f32 %v16828_v15, %v16931_v35  ;;  %v19659_v33 = vand.u32 2147483647, %v16916_v11  ;;  %v6057_v14 = vadd.f32 %v16741_v49, %v5920_v44  ;;  %v7381_v57 = vshll.u32 %v17008_v17, 30 }
 0x64c   : > { %19658 = vst [vmem:[#allocation105_spill] sm:$0xff] %v17015_v60  ;;  %v7480_v51 = vadd.s32 1, %v16997_v48  ;;  %vm8161_vm11 = vcmp.gt.s32.totalorder %v8160_v10, 0  ;;  %v7477_v34 = vmul.u32 %v16937_v3, %v7461_v55  ;;  %vm7479_vm12 = vc.u32 %v17006_v62, %v16996_v7 }
 0x64d   : > { %v8157_v9 = vand.u32 8388607, %v19659_v33  ;;  %v8162_v43 = vsel %vm8161_vm11, %v8160_v10, 0  ;;  %vm7745_vm10 = vcmp.gt.s32.totalorder %v7744_v4, 0  ;;  %v17032_v45 = vadd.f32 %v16729_v40, %v5800_v32 }
 0x64e   : > { %v17034_v35 = vsub.s32 %v7378_v37, %v7381_v57  ;;  %v7481_v25 = vsel %vm7479_vm12, %v7480_v51, %v16997_v48  ;;  %v8164_v49 = vand.u32 31, %v8162_v43  ;;  %v6169_v39 = vadd.f32 %v19660_v56, %v6057_v14 }
 0x64f   : > { %v7482_v54 = vadd.s32 %v7481_v25, %v7477_v34  ;;  %v8158_v42 = vor.u32 8388608, %v8157_v9  ;;  %v17039_v16 = vadd.f32 %v16885_v38, %v7266_v6  ;;  %v17042_v0 = vshrl.u32 %v8162_v43, 5 }
 0x650   : > { %v7384_v3 = vsub.s32 0, %v17034_v35  ;;  %v8165_v22 = vsub.s32 32, %v8164_v49  ;;  %v17044_v46 = vsel %vm7745_vm10, %v7744_v4, 0  ;;  %v8167_v37 = vshll.u32 %v19651_v12, %v8164_v49 }
 0x651   : > { %v7483_v40 = vadd.s32 536870912, %v7482_v54  ;;  %v8170_v8 = vshll.u32 %v19652_v21, %v8164_v49  ;;  %v8173_v19 = vshll.u32 %v19653_v5, %v8164_v49  ;;  %v8176_v48 = vshll.u32 %v19654_v31, %v8164_v49 }
 0x652   : > { %v11533_v1 = vmin.u32 %v7384_v3, %v17034_v35  ;;  %v8168_v13 = vshrl.u32 %v19652_v21, %v8165_v22  ;;  %v8171_v47 = vshrl.u32 %v19653_v5, %v8165_v22  ;;  %v8174_v32 = vshrl.u32 %v19654_v31, %v8165_v22 }
 0x653   : > { %v17053_v44 = vshrl.u32 %v7483_v40, 30  ;;  %v8177_v41 = vshrl.u32 %v19655_v23, %v8165_v22  ;;  %v8180_v55 = vshrl.u32 %v19656_v18, %v8165_v22  ;;  %v19314_v33 = vand.u32 2147483647, %v16902_v20 }
 0x654   : > { %v7386_v10 = vclz %v11533_v1  ;;  %v8169_v4 = vor.u32 %v8168_v13, %v8167_v37  ;;  %v8172_v6 = vor.u32 %v8171_v47, %v8170_v8  ;;  %v8175_v14 = vor.u32 %v8174_v32, %v8173_v19 }
 0x655   : > { %19661 = vst [vmem:[#allocation82_spill] sm:$0xff] %v17053_v44  ;;  %v7485_v9 = vshll.u32 %v17053_v44, 30  ;;  %v8178_v57 = vor.u32 %v8177_v41, %v8176_v48  ;;  %v8179_v51 = vshll.u32 %v19655_v23, %v8164_v49  ;;  %vm8182_vm13 = vcmp.lt.s32.totalorder %v17042_v0, 1 }
 0x656   : > { %v11534_v34 = vadd.s32 4294967294, %v7386_v10  ;;  %v8198_v43 = vshll.u32 %v8158_v42, 8  ;;  %v17063_v25 = vand.u32 31, %v17044_v46  ;;  %vm8185_vm14 = vcmp.lt.s32.totalorder %v17042_v0, 4 }
 0x657   : > { %v17065_v56 = vsub.s32 %v7482_v54, %v7485_v9  ;;  %v8181_v3 = vor.u32 %v8180_v55, %v8179_v51  ;;  %v8190_v40 = vsel %vm8182_vm13, %v8169_v4, %v8172_v6  ;;  %vm8183_vm2 = vcmp.lt.s32.totalorder %v17042_v0, 2 }
 0x658   : > { %vm11535_vm15 = vcmp.lt.s32.totalorder %v11534_v34, 0  ;;  %vm8184_vm4 = vcmp.lt.s32.totalorder %v17042_v0, 3  ;;  %v8191_v49 = vsel %vm8185_vm14, %v8178_v57, 920167782  ;;  %v8187_v8 = vsel %vm8185_vm14, %v8175_v14, 2102212464 }
 0x659   : > { %v17072_v37 = vsel %vm11535_vm15, 0, %v11534_v34  ;;  %v7488_v42 = vsub.s32 0, %v17065_v56  ;;  %v8192_v19 = vsel %vm8184_vm4, %v8175_v14, %v8191_v49  ;;  %v8166_v1 = vshrl.u32 %v19651_v12, %v8165_v22  ;;  %v19662_v34 = vld [vmem:[#allocation48_spill] sm:$0xff]  ;;  %v6395_v49 = vpop.f32.mrf.mxu0 }
 0x65a   : > { %v7394_v54 = vsub.s32 4294967266, %v17072_v37  ;;  %v8193_v13 = vsel %vm8183_vm2, %v8190_v40, %v8192_v19  ;;  %v8194_v47 = vsel %vm8182_vm13, %v8172_v6, %v8175_v14  ;;  %v8195_v32 = vsel %vm8185_vm14, %v8181_v3, 1326507024 }
 0x65b   : > { %v11537_v48 = vmin.u32 %v7488_v42, %v17065_v56  ;;  %v17082_v41 = vmul.u32.u64.low %v8198_v43, %v8193_v13  ;;  %v17083_v55 = vmul.u32.u64.high %v8198_v43, %v8193_v13, %v17082_v41  ;;  %v8186_v10 = vsel %vm8182_vm13, %v8166_v1, %v8169_v4 }
 0x65c   : > { %v8188_v9 = vsel %vm8184_vm4, %v8172_v6, %v8187_v8  ;;  %v8196_v51 = vsel %vm8184_vm4, %v8178_v57, %v8195_v32  ;;  %v7741_v22 = vand.u32 8388607, %v19314_v33  ;;  %v6062_v40 = vadd.f32 %v19662_v34, %v17019_v30 }
 0x65d   : > { %v7395_v14 = vadd.s32 127, %v7394_v54  ;;  %v7490_v19 = vclz %v11537_v48  ;;  %v8197_v3 = vsel %vm8183_vm2, %v8194_v47, %v8196_v51  ;;  %v6277_v42 = vadd.f32 %v16809_v63, %v6169_v39 }
 0x65e   : > { %v17095_v13 = vmul.u32.u64.low %v8198_v43, %v8197_v3  ;;  %v17096_v17 = vmul.u32.u64.high %v8198_v43, %v8197_v3, %v17095_v13  ;;  %v7749_v4 = vsub.s32 32, %v17063_v25  ;;  %v17100_v6 = vadd.f32 %v16791_v61, %v6062_v40 }
 0x65f   : > { %v11538_v57 = vadd.s32 4294967294, %v7490_v19  ;;  %v8189_v30 = vsel %vm8183_vm2, %v8186_v10, %v8188_v9  ;;  %v8208_v8 = vadd.s32 1, %v17083_v55  ;;  %v17105_v54 = vadd.f32 %v6395_v49, %v6277_v42 }
 0x660   : > { %v7390_v1 = vsub.s32 32, %v17072_v37  ;;  %v7742_v47 = vor.u32 8388608, %v7741_v22  ;;  %v7374_v39 = vadd.s32 %v16970_v36, %v16967_v59  ;;  %v7396_v48 = vshll.u32 %v7395_v14, 23 }
 0x661   : > { %vm11539_vm1 = vcmp.lt.s32.totalorder %v11538_v57, 0  ;;  %v7841_v61 = vand.u32 2139095040, %v17039_v16  ;;  %v8205_v32 = vmul.u32 %v8198_v43, %v8189_v30  ;;  %vm8207_vm3 = vc.u32 %v17096_v17, %v17082_v41 }
 0x662   : > { %v17115_v0 = vshrl.u32 %v17044_v46, 5  ;;  %v7752_v10 = vshrl.u32 %v19652_v21, %v7749_v4  ;;  %v7391_v9 = vshll.u32 %v17034_v35, %v17072_v37  ;;  %v8209_v51 = vsel %vm8207_vm3, %v8208_v8, %v17083_v55 }
 0x663   : > { %v7755_v59 = vshrl.u32 %v19653_v5, %v7749_v4  ;;  %v7758_v36 = vshrl.u32 %v19654_v31, %v7749_v4  ;;  %v7392_v22 = vshrl.u32 %v7374_v39, %v7390_v1  ;;  %v17123_v34 = vsel %vm11539_vm1, 0, %v11538_v57 }
 0x664   : > { %v8210_v43 = vadd.s32 %v8209_v51, %v8205_v32  ;;  %v7751_v40 = vshll.u32 %v19651_v12, %v17063_v25  ;;  %v7397_v46 = vor.u32 4788187, %v7396_v48  ;;  %v7754_v49 = vshll.u32 %v19652_v21, %v17063_v25 }
 0x665   : > { %v7757_v35 = vshll.u32 %v19653_v5, %v17063_v25  ;;  %v7761_v37 = vshrl.u32 %v19655_v23, %v7749_v4  ;;  %v7760_v19 = vshll.u32 %v19654_v31, %v17063_v25  ;;  %v7764_v3 = vshrl.u32 %v19656_v18, %v7749_v4 }
 0x666   : > { %v8211_v55 = vadd.s32 536870912, %v8210_v43  ;;  %v7753_v14 = vor.u32 %v7752_v10, %v7751_v40  ;;  %v7494_v42 = vsub.s32 32, %v17123_v34  ;;  %v7756_v13 = vor.u32 %v7755_v59, %v7754_v49  ;;  %v6400_v10 = vpop.f32.mrf.mxu0 }
 0x667   : > { %v7759_v57 = vor.u32 %v7758_v36, %v7757_v35  ;;  %v7763_v30 = vshll.u32 %v19655_v23, %v17063_v25  ;;  %v7478_v8 = vadd.s32 %v16996_v7, %v17006_v62  ;;  %v7762_v39 = vor.u32 %v7761_v37, %v7760_v19 }
 0x668   : > { %v17140_v1 = vshrl.u32 %v8211_v55, 30  ;;  %v7782_v48 = vshll.u32 %v7742_v47, 8  ;;  %v7393_v32 = vor.u32 %v7392_v22, %v7391_v9  ;;  %v7750_v51 = vshrl.u32 %v19651_v12, %v7749_v4  ;;  %v17150_v9 = vpop.f32.mrf.mxu0 }
 0x669   : > { %v7765_v40 = vor.u32 %v7764_v3, %v7763_v30  ;;  %v7842_v33 = vshrl.u32 %v7841_v61, 23  ;;  %v7398_v63 = vand.u32 2147483647, %v7397_v46  ;;  %vm7766_vm5 = vcmp.lt.s32.totalorder %v17115_v0, 1 }
 0x66a   : > { %19663 = vst [vmem:[#allocation48_spill] sm:$0xff] %v17140_v1  ;;  %v8213_v59 = vshll.u32 %v17140_v1, 30  ;;  %vm7769_vm6 = vcmp.lt.s32.totalorder %v17115_v0, 4  ;;  %v7496_v25 = vshrl.u32 %v7478_v8, %v7494_v42  ;;  %v7498_v7 = vsub.s32 4294967266, %v17123_v34 }
 0x66b   : > { %v7771_v62 = vsel %vm7769_vm6, %v7759_v57, 2102212464  ;;  %v7774_v36 = vsel %vm7766_vm5, %v7753_v14, %v7756_v13  ;;  %vm7768_vm7 = vcmp.lt.s32.totalorder %v17115_v0, 3  ;;  %v7775_v47 = vsel %vm7769_vm6, %v7762_v39, 920167782 }
 0x66c   : > { %v17147_v49 = vsub.s32 %v8210_v43, %v8213_v59  ;;  %v7778_v4 = vsel %vm7766_vm5, %v7756_v13, %v7759_v57  ;;  %vm7767_vm8 = vcmp.lt.s32.totalorder %v17115_v0, 2  ;;  %v7770_v61 = vsel %vm7766_vm5, %v7750_v51, %v7753_v14  ;;  %v6496_v43 = vpop.f32.mrf.mxu1 }
 0x66d   : > { %v7776_v22 = vsel %vm7768_vm7, %v7759_v57, %v7775_v47  ;;  %v7779_v46 = vsel %vm7769_vm6, %v7765_v40, 1326507024  ;;  %v7772_v37 = vsel %vm7768_vm7, %v7756_v13, %v7771_v62  ;;  %v7499_v3 = vadd.s32 127, %v7498_v7  ;;  %v17171_v62 = vpop.f32.mrf.mxu0 }
 0x66e   : > { %v8216_v35 = vsub.s32 0, %v17147_v49  ;;  %v7777_v55 = vsel %vm7767_vm8, %v7774_v36, %v7776_v22  ;;  %v7780_v19 = vsel %vm7768_vm7, %v7762_v39, %v7779_v46  ;;  %v11552_v40 = vadd.s32 4294967169, %v7842_v33  ;;  %v19664_v36 = vld [vmem:[#allocation41_spill] sm:$0xff] }
 0x66f   : > { %v7781_v42 = vsel %vm7767_vm8, %v7778_v4, %v7780_v19  ;;  %v17158_v30 = vmul.u32.u64.low %v7782_v48, %v7777_v55  ;;  %v17159_v8 = vmul.u32.u64.high %v7782_v48, %v7777_v55, %v17158_v30  ;;  %v7400_v13 = vcvt.s32.f32 %v7393_v32  ;;  %v19665_v4 = vld [vmem:[#allocation3_spill] sm:$0xff]  ;;  %v6501_v19 = vpop.f32.mrf.mxu1 }
 0x670   : > { %v11565_v14 = vmin.u32 %v8216_v35, %v17147_v49  ;;  %v17163_v57 = vmul.u32.u64.low %v7782_v48, %v7781_v42  ;;  %v17164_v51 = vmul.u32.u64.high %v7782_v48, %v7781_v42, %v17163_v57  ;;  %v7495_v59 = vshll.u32 %v17065_v56, %v17123_v34 }
 0x671   : > { %v7773_v39 = vsel %vm7767_vm8, %v7770_v61, %v7772_v37  ;;  %v6497_v7 = vadd.f32 %v6496_v43, %v17105_v54  ;;  %v17175_v47 = vmul.f32 %v16704_v27, %v19664_v36  ;;  %v6064_v22 = vadd.f32 %v19665_v4, %v17032_v45 }
 0x672   : > { %v8218_v46 = vclz %v11565_v14  ;;  %v7848_v33 = vadd.s32 1, %v11552_v40  ;;  %v6284_v32 = vadd.f32 %v16816_v29, %v17100_v6  ;;  %v17181_v56 = vmul.f32 %v7400_v13, %v7398_v63  ;;  %v6587_v6 = vpop.f32.mrf.mxu0 }
 0x673   : > { %v17183_v0 = vor.u32 %v7496_v25, %v7495_v59  ;;  %v7792_v54 = vadd.s32 1, %v17159_v8  ;;  %v7500_v34 = vshll.u32 %v7499_v3, 23  ;;  %v7789_v35 = vmul.u32 %v7782_v48, %v7773_v39  ;;  %v19667_v48 = vld [vmem:[#allocation85_spill] sm:$0xff]  ;;  %v19668_v3 = vld [vmem:[#allocation86_spill] sm:$0xff] }
 0x674   : > { %v11566_v61 = vadd.s32 4294967294, %v8218_v46  ;;  %vm7791_vm9 = vc.u32 %v17164_v51, %v17158_v30  ;;  %v19666_v45 = vand.u32 2147483647, %v17039_v16  ;;  %vm7849_vm11 = vcmp.gt.s32.totalorder %v7848_v33, 0 }
 0x675   : > { %v7793_v27 = vsel %vm7791_vm9, %v7792_v54, %v17159_v8  ;;  %v7229_v29 = vadd.f32 %v16772_v26, %v6497_v7  ;;  %v17194_v63 = vmul.f32 %v16761_v53, %v19664_v36  ;;  %v7850_v55 = vsel %vm7849_vm11, %v7848_v33, 0 }
 0x676   : > { %v7845_v37 = vand.u32 8388607, %v19666_v45  ;;  %v7794_v25 = vadd.s32 %v7793_v27, %v7789_v35  ;;  %v17197_v43 = vadd.f32 %v6587_v6, %v19667_v48  ;;  %v17200_v42 = vadd.f32 %v19668_v3, %v6064_v22 }
 0x677   : > { %v6401_v8 = vadd.f32 %v6400_v10, %v6284_v32  ;;  %vm11567_vm12 = vcmp.lt.s32.totalorder %v11566_v61, 0  ;;  %v7852_v14 = vand.u32 31, %v7850_v55  ;;  %v17203_v40 = vor.u32 4788187, %v7500_v34 }
 0x678   : > { %v7795_v53 = vadd.s32 536870912, %v7794_v25  ;;  %v7846_v59 = vor.u32 8388608, %v7845_v37  ;;  %v7270_v7 = vmul.f32 %v16797_v58, %v7229_v29  ;;  %v17207_v4 = vsel %vm11567_vm12, 0, %v11566_v61 }
 0x679   : > { %v7853_v39 = vsub.s32 32, %v7852_v14  ;;  %v6502_v36 = vadd.f32 %v6501_v19, %v6401_v8  ;;  %v7855_v10 = vshll.u32 %v19651_v12, %v7852_v14  ;;  %v7858_v22 = vshll.u32 %v19652_v21, %v7852_v14 }
 0x67a   : > { %v17209_v46 = vshrl.u32 %v7795_v53, 30  ;;  %v7861_v54 = vshll.u32 %v19653_v5, %v7852_v14  ;;  %v7851_v27 = vshrl.u32 %v7850_v55, 5  ;;  %v7864_v61 = vshll.u32 %v19654_v31, %v7852_v14  ;;  %v19670_v53 = vld [vmem:[#allocation5_spill] sm:$0xff] }
 0x67b   : > { %v7856_v33 = vshrl.u32 %v19652_v21, %v7853_v39  ;;  %v7859_v32 = vshrl.u32 %v19653_v5, %v7853_v39  ;;  %v7862_v34 = vshrl.u32 %v19654_v31, %v7853_v39  ;;  %v7865_v45 = vshrl.u32 %v19655_v23, %v7853_v39 }
 0x67c   : > { %19669 = vst [vmem:[#allocation41_spill] sm:$0xff] %v17209_v46  ;;  %v7797_v35 = vshll.u32 %v17209_v46, 30  ;;  %v7502_v37 = vand.u32 2147483647, %v17203_v40  ;;  %v17223_v8 = vshll.u32 %v7846_v59, 8  ;;  %v7232_v13 = vadd.f32 %v19670_v53, %v6502_v36 }
 0x67d   : > { %v7857_v29 = vor.u32 %v7856_v33, %v7855_v10  ;;  %v7860_v6 = vor.u32 %v7859_v32, %v7858_v22  ;;  %v7863_v19 = vor.u32 %v7862_v34, %v7861_v54  ;;  %v7866_v3 = vor.u32 %v7865_v45, %v7864_v61 }
 0x67e   : > { %v17221_v48 = vsub.s32 %v7794_v25, %v7797_v35  ;;  %vm7320_vm10 = vcmp.lt.s32.totalorder %v16872_v50, 0  ;;  %v8226_v55 = vsub.s32 4294967266, %v17207_v4  ;;  %v7867_v57 = vshll.u32 %v19655_v23, %v7852_v14 }
 0x67f   : > { %v7868_v44 = vshrl.u32 %v19656_v18, %v7853_v39  ;;  %v17231_v40 = vadd.f32 %v16843_v2, %v7270_v7  ;;  %vm7870_vm13 = vcmp.lt.s32.totalorder %v7851_v27, 1  ;;  %vm7872_vm14 = vcmp.lt.s32.totalorder %v7851_v27, 3 }
 0x680   : > { %v7800_v10 = vsub.s32 0, %v17221_v48  ;;  %vm7873_vm15 = vcmp.lt.s32.totalorder %v7851_v27, 4  ;;  %v7878_v36 = vsel %vm7870_vm13, %v7857_v29, %v7860_v6  ;;  %v7854_v32 = vshrl.u32 %v19651_v12, %v7853_v39 }
 0x681   : > { %19671 = vst [vmem:[#allocation3_spill] sm:$0xff] %v17231_v40  ;;  %v7869_v25 = vor.u32 %v7868_v44, %v7867_v57  ;;  %v7875_v59 = vsel %vm7873_vm15, %v7863_v19, 2102212464  ;;  %v7879_v22 = vsel %vm7873_vm15, %v7866_v3, 920167782  ;;  %vm7871_vm2 = vcmp.lt.s32.totalorder %v7851_v27, 2 }
 0x682   : > { %v11549_v33 = vmin.u32 %v7800_v10, %v17221_v48  ;;  %v7880_v14 = vsel %vm7872_vm14, %v7863_v19, %v7879_v22  ;;  %v8222_v7 = vsub.s32 32, %v17207_v4  ;;  %v7882_v34 = vsel %vm7870_vm13, %v7860_v6, %v7863_v19 }
 0x683   : > { %v7881_v54 = vsel %vm7871_vm2, %v7878_v36, %v7880_v14  ;;  %v7883_v35 = vsel %vm7873_vm15, %v7869_v25, 1326507024  ;;  %v7874_v44 = vsel %vm7870_vm13, %v7854_v32, %v7857_v29  ;;  %v7876_v57 = vsel %vm7872_vm14, %v7860_v6, %v7875_v59  ;;  %v6503_v29 = vpop.f32.mrf.mxu1  ;;  %v19672_v59 = vld [vmem:[#allocation6_spill] sm:$0xff] }
 0x684   : > { %v7802_v61 = vclz %v11549_v33  ;;  %v7884_v45 = vsel %vm7872_vm14, %v7866_v3, %v7883_v35  ;;  %v8227_v10 = vadd.s32 127, %v8226_v55  ;;  %v19321_v25 = vand.u32 2147483647, %v17231_v40  ;;  %v19675_v35 = vld [vmem:[#allocation81_spill] sm:$0xff] }
 0x685   : > { %v7885_v39 = vsel %vm7871_vm2, %v7882_v34, %v7884_v45  ;;  %v17246_v46 = vmul.u32.u64.low %v17223_v8, %v7881_v54  ;;  %v17247_v22 = vmul.u32.u64.high %v17223_v8, %v7881_v54, %v17246_v46  ;;  %v8206_v6 = vadd.s32 %v17082_v41, %v17096_v17 }
 0x686   : > { %v11550_v1 = vadd.s32 4294967294, %v7802_v61  ;;  %v17251_v36 = vmul.u32.u64.low %v17223_v8, %v7885_v39  ;;  %v17252_v19 = vmul.u32.u64.high %v17223_v8, %v7885_v39, %v17251_v36  ;;  %v7877_v3 = vsel %vm7871_vm2, %v7874_v44, %v7876_v57 }
 0x687   : > { %v8257_v55 = vand.u32 2139095040, %v17231_v40  ;;  %v7273_v33 = vmul.f32 %v19672_v59, %v7232_v13  ;;  %v19673_v32 = vxor.u32 2147483648, %v17181_v56  ;;  %v19674_v54 = vcvt.s32.f32 %v17183_v0  ;;  %v19682_v36 = vld [vmem:[#allocation89_spill] sm:$0xff] }
 0x688   : > { %vm11551_vm4 = vcmp.lt.s32.totalorder %v11550_v1, 0  ;;  %v5782_v61 = vmul.f32 %v19675_v35, %v16677_v52  ;;  %v8224_v17 = vshrl.u32 %v8206_v6, %v8222_v7  ;;  %v8228_v41 = vshll.u32 %v8227_v10, 23  ;;  %v17281_v52 = vpop.f32.mrf.mxu1  ;;  %v19680_v10 = vld [vmem:[#allocation87_spill] sm:$0xff] }
 0x689   : > { %v7403_v14 = vsel %vm7320_vm10, %v19673_v32, %v17181_v56  ;;  %v7505_v34 = vmul.f32 %v19674_v54, %v7502_v37  ;;  %v7896_v27 = vadd.s32 1, %v17247_v22  ;;  %v8258_v44 = vshrl.u32 %v8257_v55, 23 }
 0x68a   : > { %v19676_v13 = vand.u32 2147483647, %v16872_v50  ;;  %v19677_v57 = vmov 0  ;;  %v8223_v56 = vshll.u32 %v17147_v49, %v17207_v4  ;;  %v7893_v0 = vmul.u32 %v17223_v8, %v7877_v3 }
 0x68b   : > { %v8261_v37 = vand.u32 8388607, %v19321_v25  ;;  %v17283_v7 = vsel %vm11551_vm4, 0, %v11550_v1  ;;  %vm7895_vm3 = vc.u32 %v17252_v19, %v17246_v46  ;;  %v11568_v45 = vadd.s32 4294967169, %v8258_v44 }
 0x68c   : > { %vm17272_vm1 = vcmp.le.f32.partialorder %v19676_v13, 0.7853982  ;;  %v17288_v39 = vadd.f32 %v19680_v10, %v7273_v33  ;;  %v6286_v6 = vadd.f32 %v19682_v36, %v17200_v42  ;;  %v7506_v4 = vxor.u32 2147483648, %v7505_v34  ;;  %v17304_v42 = vpop.f32.mrf.mxu1 }
 0x68d   : > { %v19678_v57 = vsel %vm17272_vm1, 4294967295, %v19677_v57  ;;  %v17295_v49 = vsel %vm17272_vm1, %v16872_v50, %v7403_v14  ;;  %v7897_v8 = vsel %vm7895_vm3, %v7896_v27, %v17247_v22  ;;  %v17298_v1 = vor.u32 %v8224_v17, %v8223_v56  ;;  %v17320_v27 = vpop.f32.mrf.mxu0 }
 0x68e   : > { %19679 = vst [vmem:[#allocation85_spill] sm:$0xff] %v19678_v57  ;;  %19681 = vst [vmem:[#allocation86_spill] sm:$0xff] %v17288_v39  ;;  %v17300_v3 = vor.u32 4788187, %v8228_v41  ;;  %v7898_v55 = vadd.s32 %v7897_v8, %v7893_v0  ;;  %v8264_v32 = vadd.s32 1, %v11568_v45  ;;  %v6403_v33 = vadd.f32 %v17150_v9, %v6286_v6  ;;  %v17331_v6 = vpop.f32.mrf.mxu1 }
 0x68f   : > { %v7810_v54 = vsub.s32 4294967266, %v17283_v7  ;;  %v8262_v44 = vor.u32 8388608, %v8261_v37  ;;  %v17307_v13 = vadd.f32 %v5782_v61, %v16847_v28  ;;  %vm7424_vm5 = vcmp.lt.s32.totalorder %v16879_v24, 0 }
 0x690   : > { %v7899_v14 = vadd.s32 536870912, %v7898_v55  ;;  %vm8265_vm6 = vcmp.gt.s32.totalorder %v8264_v32, 0  ;;  %v8569_v22 = vand.u32 2139095040, %v17288_v39  ;;  %12123 = vcosq.f32 %v17295_v49  ;;  %v17349_v57 = vpop.f32.mrf.mxu1 }
 0x691   : > { %19683 = vst [vmem:[#allocation81_spill] sm:$0xff] %v17307_v13  ;;  %v17314_v17 = vsel %vm7424_vm5, %v7506_v4, %v7505_v34  ;;  %v17318_v9 = vadd.s32 %v17158_v30, %v17164_v51  ;;  %v8266_v41 = vsel %vm8265_vm6, %v8264_v32, 0  ;;  %v17327_v45 = vadd.s32 127, %v7810_v54  ;;  %v17338_v54 = vpop.f32.mrf.mxu0  ;;  %19685 = vst [vmem:[#allocation106_spill] sm:$0xff] %v17349_v57 }
 0x692   : > { %v17324_v56 = vshrl.u32 %v7899_v14, 30  ;;  %v8268_v0 = vand.u32 31, %v8266_v41  ;;  %v17329_v34 = vshll.u32 %v8262_v44, 8  ;;  %v6504_v36 = vadd.f32 %v6503_v29, %v6403_v33  ;;  %v17356_v40 = vpop.f32.mrf.mxu1 }
 0x693   : > { %v8570_v8 = vshrl.u32 %v8569_v22, 23  ;;  %v8267_v32 = vshrl.u32 %v8266_v41, 5  ;;  %v17353_v15 = vpop.f32.mrf.mxu0  ;;  %19686 = vst [vmem:[#allocation107_spill] sm:$0xff] %v17356_v40  ;;  %12125 = vsinq.f32 %v17295_v49 }
 0x694   : > { %19684 = vst [vmem:[#allocation89_spill] sm:$0xff] %v17324_v56  ;;  %v7901_v30 = vshll.u32 %v17324_v56, 30  ;;  %v8269_v51 = vsub.s32 32, %v8268_v0  ;;  %v8271_v14 = vshll.u32 %v19651_v12, %v8268_v0  ;;  %v8274_v25 = vshll.u32 %v19652_v21, %v8268_v0 }
 0x695   : > { %v8277_v61 = vshll.u32 %v19653_v5, %v8268_v0  ;;  %v8280_v28 = vshll.u32 %v19654_v31, %v8268_v0  ;;  %v8283_v41 = vshll.u32 %v19655_v23, %v8268_v0  ;;  %v11580_v56 = vadd.s32 4294967169, %v8570_v8 }
 0x696   : > { %v17340_v44 = vsub.s32 %v7898_v55, %v7901_v30  ;;  %v8272_v29 = vshrl.u32 %v19652_v21, %v8269_v51  ;;  %v8275_v33 = vshrl.u32 %v19653_v5, %v8269_v51  ;;  %v8278_v37 = vshrl.u32 %v19654_v31, %v8269_v51 }
 0x697   : > { %v8281_v22 = vshrl.u32 %v19655_v23, %v8269_v51  ;;  %v8284_v4 = vshrl.u32 %v19656_v18, %v8269_v51  ;;  %v8270_v2 = vshrl.u32 %v19651_v12, %v8269_v51  ;;  %vm8286_vm7 = vcmp.lt.s32.totalorder %v8267_v32, 1 }
 0x698   : > { %v7904_v50 = vsub.s32 0, %v17340_v44  ;;  %v8273_v55 = vor.u32 %v8272_v29, %v8271_v14  ;;  %v8276_v30 = vor.u32 %v8275_v33, %v8274_v25  ;;  %v8279_v58 = vor.u32 %v8278_v37, %v8277_v61  ;;  %v17361_v14 = vpop.f32.mrf.mxu0 }
 0x699   : > { %v8282_v26 = vor.u32 %v8281_v22, %v8280_v28  ;;  %v8285_v38 = vor.u32 %v8284_v4, %v8283_v41  ;;  %vm8287_vm8 = vcmp.lt.s32.totalorder %v8267_v32, 2  ;;  %vm8289_vm9 = vcmp.lt.s32.totalorder %v8267_v32, 4  ;;  %19687 = vst [vmem:[#allocation108_spill] sm:$0xff] %v17361_v14 }
 0x69a   : > { %v11553_v60 = vmin.u32 %v7904_v50, %v17340_v44  ;;  %vm8288_vm11 = vcmp.lt.s32.totalorder %v8267_v32, 3  ;;  %v8291_v0 = vsel %vm8289_vm9, %v8279_v58, 2102212464  ;;  %v8294_v57 = vsel %vm8286_vm7, %v8273_v55, %v8276_v30 }
 0x69b   : > { %v8295_v13 = vsel %vm8289_vm9, %v8282_v26, 920167782  ;;  %v8290_v8 = vsel %vm8286_vm7, %v8270_v2, %v8273_v55  ;;  %v8298_v61 = vsel %vm8286_vm7, %v8276_v30, %v8279_v58  ;;  %v8292_v28 = vsel %vm8288_vm11, %v8276_v30, %v8291_v0 }
 0x69c   : > { %v7906_v25 = vclz %v11553_v60  ;;  %v8296_v51 = vsel %vm8288_vm11, %v8279_v58, %v8295_v13  ;;  %v8299_v4 = vsel %vm8289_vm9, %v8285_v38, 1326507024  ;;  %v8576_v50 = vadd.s32 1, %v11580_v56 }
 0x69d   : > { %v8297_v37 = vsel %vm8287_vm8, %v8294_v57, %v8296_v51  ;;  %v17363_v29 = vpop.eup %12123  ;;  %v8300_v22 = vsel %vm8288_vm11, %v8282_v26, %v8299_v4  ;;  %v19689_v2 = vand.u32 2147483647, %v17288_v39  ;;  %v7233_v38 = vadd.f32 %v19670_v53, %v6504_v36  ;;  %v17375_v57 = vpop.f32.mrf.mxu1 }
 0x69e   : > { %19688 = vst [vmem:[#allocation109_spill] sm:$0xff] %v17363_v29  ;;  %v11554_v33 = vadd.s32 4294967294, %v7906_v25  ;;  %v17367_v41 = vmul.u32.u64.low %v17329_v34, %v8297_v37  ;;  %v17368_v60 = vmul.u32.u64.high %v17329_v34, %v8297_v37, %v17367_v41  ;;  %v8301_v58 = vsel %vm8287_vm8, %v8298_v61, %v8300_v22  ;;  %19690 = vst [vmem:[#allocation110_spill] sm:$0xff] %v17375_v57  ;;  %v17386_v61 = vpop.f32.mrf.mxu0 }
 0x69f   : > { %v8573_v13 = vand.u32 8388607, %v19689_v2  ;;  %vm8577_vm12 = vcmp.gt.s32.totalorder %v8576_v50, 0  ;;  %v17378_v56 = vmul.u32.u64.low %v17329_v34, %v8301_v58  ;;  %v17379_v55 = vmul.u32.u64.high %v17329_v34, %v8301_v58, %v17378_v56  ;;  %19691 = vst [vmem:[#allocation111_spill] sm:$0xff] %v17386_v61 }
 0x6a0   : > { %vm11555_vm13 = vcmp.lt.s32.totalorder %v11554_v33, 0  ;;  %v8578_v26 = vsel %vm8577_vm12, %v8576_v50, 0  ;;  %v8293_v25 = vsel %vm8287_vm8, %v8290_v8, %v8292_v28  ;;  %v19692_v36 = vsub.s32 32, %v17283_v7  ;;  %v17399_v28 = vpop.f32.mrf.mxu1 }
 0x6a1   : > { %v17383_v0 = vsel %vm11555_vm13, 0, %v11554_v33  ;;  %v8580_v51 = vand.u32 31, %v8578_v26  ;;  %v7894_v4 = vadd.s32 %v17246_v46, %v17252_v19  ;;  %v8312_v22 = vadd.s32 1, %v17368_v60  ;;  %19693 = vst [vmem:[#allocation112_spill] sm:$0xff] %v17399_v28 }
 0x6a2   : > { %v17391_v37 = vshrl.u32 %v17318_v9, %v19692_v36  ;;  %v7914_v50 = vsub.s32 4294967266, %v17383_v0  ;;  %v7812_v33 = vshll.u32 %v17327_v45, 23  ;;  %v8574_v58 = vor.u32 8388608, %v8573_v13 }
 0x6a3   : > { %v8581_v32 = vsub.s32 32, %v8580_v51  ;;  %v7274_v8 = vmul.f32 %v19672_v59, %v7233_v38  ;;  %v8309_v2 = vmul.u32 %v17329_v34, %v8293_v25  ;;  %vm8311_vm14 = vc.u32 %v17379_v55, %v17367_v41  ;;  %v17411_v38 = vpop.f32.mrf.mxu0 }
 0x6a4   : > { %v17404_v9 = vshrl.u32 %v8578_v26, 5  ;;  %v8583_v46 = vshll.u32 %v19651_v12, %v8580_v51  ;;  %v8313_v19 = vsel %vm8311_vm14, %v8312_v22, %v17368_v60  ;;  %v8586_v45 = vshll.u32 %v19652_v21, %v8580_v51  ;;  %19694 = vst [vmem:[#allocation113_spill] sm:$0xff] %v17411_v38  ;;  %v17417_v22 = vpop.f32.mrf.mxu1 }
 0x6a5   : > { %v8584_v56 = vshrl.u32 %v19652_v21, %v8581_v32  ;;  %v8587_v13 = vshrl.u32 %v19653_v5, %v8581_v32  ;;  %v7915_v36 = vadd.s32 127, %v7914_v50  ;;  %v8314_v30 = vadd.s32 %v8313_v19, %v8309_v2  ;;  %19695 = vst [vmem:[#allocation114_spill] sm:$0xff] %v17417_v22 }
 0x6a6   : > { %v8589_v34 = vshll.u32 %v19653_v5, %v8580_v51  ;;  %v8590_v25 = vshrl.u32 %v19654_v31, %v8581_v32  ;;  %v8592_v39 = vshll.u32 %v19654_v31, %v8580_v51  ;;  %v8593_v60 = vshrl.u32 %v19655_v23, %v8581_v32 }
 0x6a7   : > { %v8585_v26 = vor.u32 %v8584_v56, %v8583_v46  ;;  %v8588_v29 = vor.u32 %v8587_v13, %v8586_v45  ;;  %v17419_v59 = vor.u32 4788187, %v7812_v33  ;;  %v8315_v53 = vadd.s32 536870912, %v8314_v30  ;;  %v17426_v56 = vpop.f32.mrf.mxu0 }
 0x6a8   : > { %v8591_v28 = vor.u32 %v8590_v25, %v8589_v34  ;;  %v17422_v57 = vadd.f32 %v19680_v10, %v7274_v8  ;;  %v8594_v50 = vor.u32 %v8593_v60, %v8592_v39  ;;  %v8595_v2 = vshll.u32 %v19655_v23, %v8580_v51  ;;  %v17442_v25 = vpop.f32.mrf.mxu1 }
 0x6a9   : > { %v8596_v19 = vshrl.u32 %v19656_v18, %v8581_v32  ;;  %v8614_v46 = vshll.u32 %v8574_v58, 8  ;;  %v19697_v45 = vand.u32 2147483647, %v16879_v24  ;;  %v19698_v13 = vmov 0  ;;  %19702 = vst [vmem:[#allocation118_spill] sm:$0xff] %v17442_v25 }
 0x6aa   : > { %19696 = vst [vmem:[#allocation115_spill] sm:$0xff] %v17422_v57  ;;  %v7910_v33 = vsub.s32 32, %v17383_v0  ;;  %v17435_v34 = vshrl.u32 %v8315_v53, 30  ;;  %v8582_v8 = vshrl.u32 %v19651_v12, %v8581_v32  ;;  %vm8598_vm2 = vcmp.lt.s32.totalorder %v17404_v9, 1 }
 0x6ab   : > { %vm17430_vm15 = vcmp.le.f32.partialorder %v19697_v45, 0.7853982  ;;  %v7916_v39 = vshll.u32 %v7915_v36, 23  ;;  %v8597_v51 = vor.u32 %v8596_v19, %v8595_v2  ;;  %vm8601_vm4 = vcmp.lt.s32.totalorder %v17404_v9, 4  ;;  %v17449_v19 = vpop.f32.mrf.mxu0 }
 0x6ac   : > { %v19699_v13 = vsel %vm17430_vm15, 4294967295, %v19698_v13  ;;  %19701 = vst [vmem:[#allocation117_spill] sm:$0xff] %v17435_v34  ;;  %v8606_v58 = vsel %vm8598_vm2, %v8585_v26, %v8588_v29  ;;  %v8317_v60 = vshll.u32 %v17435_v34, 30  ;;  %vm8600_vm3 = vcmp.lt.s32.totalorder %v17404_v9, 3 }
 0x6ad   : > { %19700 = vst [vmem:[#allocation116_spill] sm:$0xff] %v19699_v13  ;;  %v8603_v45 = vsel %vm8601_vm4, %v8591_v28, 2102212464  ;;  %v8607_v53 = vsel %vm8601_vm4, %v8594_v50, 920167782  ;;  %vm8599_vm6 = vcmp.lt.s32.totalorder %v17404_v9, 2  ;;  %v8610_v36 = vsel %vm8598_vm2, %v8588_v29, %v8591_v28 }
 0x6ae   : > { %v8608_v32 = vsel %vm8600_vm3, %v8591_v28, %v8607_v53  ;;  %v8611_v2 = vsel %vm8601_vm4, %v8597_v51, 1326507024  ;;  %v7912_v10 = vshrl.u32 %v7894_v4, %v7910_v33  ;;  %v17451_v22 = vsub.s32 %v8314_v30, %v8317_v60  ;;  %v17461_v53 = vpop.f32.mrf.mxu1  ;;  %v17476_v51 = vpop.f32.mrf.mxu0 }
 0x6af   : > { %v8602_v38 = vsel %vm8598_vm2, %v8582_v8, %v8585_v26  ;;  %v8609_v34 = vsel %vm8599_vm6, %v8606_v58, %v8608_v32  ;;  %v8604_v40 = vsel %vm8600_vm3, %v8588_v29, %v8603_v45  ;;  %v8612_v61 = vsel %vm8600_vm3, %v8594_v50, %v8611_v2 }
 0x6b0   : > { %v17457_v14 = vmul.u32.u64.low %v8614_v46, %v8609_v34  ;;  %v17458_v25 = vmul.u32.u64.high %v8614_v46, %v8609_v34, %v17457_v14  ;;  %v7911_v28 = vshll.u32 %v17340_v44, %v17383_v0  ;;  %v7917_v4 = vor.u32 4788187, %v7916_v39  ;;  %v17495_v45 = vpop.f32.mrf.mxu1 }
 0x6b1   : > { %v8320_v30 = vsub.s32 0, %v17451_v22  ;;  %v8613_v26 = vsel %vm8599_vm6, %v8610_v36, %v8612_v61  ;;  %v19703_v33 = vshll.u32 %v17221_v48, %v17283_v7  ;;  %v8673_v8 = vand.u32 2139095040, %v17422_v57 }
 0x6b2   : > { %v17472_v50 = vmul.u32.u64.low %v8614_v46, %v8613_v26  ;;  %v17473_v34 = vmul.u32.u64.high %v8614_v46, %v8613_v26, %v17472_v50  ;;  %v7913_v58 = vor.u32 %v7912_v10, %v7911_v28  ;;  %v8605_v0 = vsel %vm8599_vm6, %v8602_v38, %v8604_v40 }
 0x6b3   : > { %v7809_v29 = vor.u32 %v17391_v37, %v19703_v33  ;;  %v11569_v44 = vmin.u32 %v8320_v30, %v17451_v22  ;;  %v19347_v61 = vand.u32 2147483647, %v17422_v57  ;;  %v17486_v48 = vsel %vm17430_vm15, %v16879_v24, %v17314_v17  ;;  %v19707_v33 = vld [vmem:[#allocation40_spill] sm:$0xff]  ;;  %v17513_v50 = vpop.f32.mrf.mxu1 }
 0x6b4   : > { %v19704_v7 = vand.u32 2147483647, %v17300_v3  ;;  %v19705_v37 = vcvt.s32.f32 %v17298_v1  ;;  %v8624_v10 = vadd.s32 1, %v17458_v25  ;;  %v8674_v60 = vshrl.u32 %v8673_v8, 23  ;;  %v17504_v3 = vpop.f32.mrf.mxu0 }
 0x6b5   : > { %v7814_v40 = vand.u32 2147483647, %v17419_v59  ;;  %v7918_v9 = vand.u32 2147483647, %v7917_v4  ;;  %v8322_v38 = vclz %v11569_v44  ;;  %v17500_v32 = vadd.f32 %v17304_v42, %v17197_v43  ;;  %v19706_v43 = vld [vmem:[#allocation101_spill] sm:$0xff]  ;;  %v19709_v44 = vld [vmem:[#allocation47_spill] sm:$0xff] }
 0x6b6   : > { %v17492_v39 = vmul.f32 %v19705_v37, %v19704_v7  ;;  %v7816_v17 = vcvt.s32.f32 %v7809_v29  ;;  %v8621_v36 = vmul.u32 %v8614_v46, %v8605_v0  ;;  %vm8623_vm7 = vc.u32 %v17473_v34, %v17457_v14  ;;  %v19708_v46 = vld [vmem:[#allocation44_spill] sm:$0xff] }
 0x6b7   : > { %v11584_v1 = vadd.s32 4294967169, %v8674_v60  ;;  %v7920_v2 = vcvt.s32.f32 %v7913_v58  ;;  %v11570_v28 = vadd.s32 4294967294, %v8322_v38  ;;  %v8625_v30 = vsel %vm8623_vm7, %v8624_v10, %v17458_v25 }
 0x6b8   : > { %v8677_v59 = vand.u32 8388607, %v19347_v61  ;;  %v8626_v4 = vadd.s32 %v8625_v30, %v8621_v36  ;;  %v5729_v42 = vadd.f32 %v19706_v43, %v17175_v47  ;;  %v5777_v29 = vmul.f32 %v19708_v46, %v19707_v33  ;;  %v17526_v47 = vpop.f32.mrf.mxu0 }
 0x6b9   : > { %v8680_v26 = vadd.s32 1, %v11584_v1  ;;  %v17516_v8 = vmul.f32 %v7816_v17, %v7814_v40  ;;  %v17518_v58 = vmul.f32 %v7920_v2, %v7918_v9  ;;  %vm11571_vm8 = vcmp.lt.s32.totalorder %v11570_v28, 0  ;;  %v17535_v17 = vpop.f32.mrf.mxu1  ;;  %v19711_v2 = vld [vmem:[#allocation102_spill] sm:$0xff] }
 0x6ba   : > { %v17520_v25 = vsel %vm11571_vm8, 0, %v11570_v28  ;;  %v17524_v0 = vadd.f32 %v17171_v62, %v19709_v44  ;;  %v8627_v7 = vadd.s32 536870912, %v8626_v4  ;;  %12127 = vcosq.f32 %v17486_v48 }
 0x6bb   : > { %vm8681_vm9 = vcmp.gt.s32.totalorder %v8680_v26, 0  ;;  %v8330_v37 = vsub.s32 4294967266, %v17520_v25  ;;  %v8678_v49 = vor.u32 8388608, %v8677_v59  ;;  %v17533_v38 = vadd.f32 %v5777_v29, %v5729_v42  ;;  %v17550_v42 = vpop.f32.mrf.mxu0 }
 0x6bc   : > { %v8682_v10 = vsel %vm8681_vm9, %v8680_v26, 0  ;;  %v17531_v40 = vshrl.u32 %v8627_v7, 30  ;;  %v8310_v1 = vadd.s32 %v17367_v41, %v17379_v55  ;;  %v17543_v28 = vadd.f32 %v19711_v2, %v17194_v63 }
 0x6bd   : > { %v8684_v9 = vand.u32 31, %v8682_v10  ;;  %v8331_v30 = vadd.s32 127, %v8330_v37  ;;  %v17548_v43 = vmul.f32 %v19675_v35, %v19707_v33  ;;  %v8326_v29 = vsub.s32 32, %v17520_v25  ;;  %v17563_v33 = vpop.f32.mrf.mxu1  ;;  %v17571_v13 = vpop.f32.mrf.mxu0 }
 0x6be   : > { %19710 = vst [vmem:[#allocation101_spill] sm:$0xff] %v17531_v40  ;;  %v8629_v59 = vshll.u32 %v17531_v40, 30  ;;  %v17553_v44 = vshrl.u32 %v8682_v10, 5  ;;  %v17556_v55 = vshll.u32 %v8678_v49, 8  ;;  %19712 = vst [vmem:[#allocation40_spill] sm:$0xff] %v17563_v33  ;;  %vm8152_vm11 = vcmp.lt.s32.totalorder %v16916_v11, 0 }
 0x6bf   : > { %v8685_v26 = vsub.s32 32, %v8684_v9  ;;  %v8687_v41 = vshll.u32 %v19651_v12, %v8684_v9  ;;  %v8690_v37 = vshll.u32 %v19652_v21, %v8684_v9  ;;  %v8693_v61 = vshll.u32 %v19653_v5, %v8684_v9 }
 0x6c0   : > { %v17558_v63 = vsub.s32 %v8626_v4, %v8629_v59  ;;  %v8696_v10 = vshll.u32 %v19654_v31, %v8684_v9  ;;  %v8332_v4 = vshll.u32 %v8331_v30, 23  ;;  %vm7736_vm12 = vcmp.lt.s32.totalorder %v16902_v20, 0 }
 0x6c1   : > { %v8688_v7 = vshrl.u32 %v19652_v21, %v8685_v26  ;;  %v8691_v2 = vshrl.u32 %v19653_v5, %v8685_v26  ;;  %v8694_v36 = vshrl.u32 %v19654_v31, %v8685_v26  ;;  %v8697_v62 = vshrl.u32 %v19655_v23, %v8685_v26 }
 0x6c2   : > { %v8632_v49 = vsub.s32 0, %v17558_v63  ;;  %v8699_v57 = vshll.u32 %v19655_v23, %v8684_v9  ;;  %v8700_v5 = vshrl.u32 %v19656_v18, %v8685_v26  ;;  %v8327_v31 = vshll.u32 %v17451_v22, %v17520_v25  ;;  %v17587_v25 = vpop.f32.mrf.mxu0 }
 0x6c3   : > { %v8689_v59 = vor.u32 %v8688_v7, %v8687_v41  ;;  %v8692_v60 = vor.u32 %v8691_v2, %v8690_v37  ;;  %v8695_v24 = vor.u32 %v8694_v36, %v8693_v61  ;;  %v8698_v40 = vor.u32 %v8697_v62, %v8696_v10  ;;  %v17580_v41 = vpop.f32.mrf.mxu1  ;;  %v17585_v61 = vpop.eup %12125 }
 0x6c4   : > { %v8328_v21 = vshrl.u32 %v8310_v1, %v8326_v29  ;;  %v11581_v30 = vmin.u32 %v8632_v49, %v17558_v63  ;;  %v8686_v33 = vshrl.u32 %v19651_v12, %v8685_v26  ;;  %v8701_v7 = vor.u32 %v8700_v5, %v8699_v57  ;;  %19713 = vst [vmem:[#allocation44_spill] sm:$0xff] %v17585_v61 }
 0x6c5   : > { %vm8702_vm13 = vcmp.lt.s32.totalorder %v17553_v44, 1  ;;  %vm8704_vm14 = vcmp.lt.s32.totalorder %v17553_v44, 3  ;;  %vm8705_vm2 = vcmp.lt.s32.totalorder %v17553_v44, 4  ;;  %v8333_v1 = vor.u32 4788187, %v8332_v4  ;;  %v17596_v49 = vpop.f32.mrf.mxu1 }
 0x6c6   : > { %v8634_v9 = vclz %v11581_v30  ;;  %v8707_v62 = vsel %vm8705_vm2, %v8695_v24, 2102212464  ;;  %v8710_v36 = vsel %vm8702_vm13, %v8689_v59, %v8692_v60  ;;  %v8711_v22 = vsel %vm8705_vm2, %v8698_v40, 920167782 }
 0x6c7   : > { %vm8703_vm4 = vcmp.lt.s32.totalorder %v17553_v44, 2  ;;  %v8712_v5 = vsel %vm8704_vm14, %v8695_v24, %v8711_v22  ;;  %v8714_v57 = vsel %vm8702_vm13, %v8692_v60, %v8695_v24  ;;  %v17592_v26 = vpop.eup %12127  ;;  %v8706_v37 = vsel %vm8702_vm13, %v8686_v33, %v8689_v59  ;;  %v7069_v59 = vpop.f32.mrf.mxu0 }
 0x6c8   : > { %19714 = vst [vmem:[#allocation47_spill] sm:$0xff] %v17592_v26  ;;  %v11582_v29 = vadd.s32 4294967294, %v8634_v9  ;;  %v8713_v2 = vsel %vm8703_vm4, %v8710_v36, %v8712_v5  ;;  %v8715_v10 = vsel %vm8705_vm2, %v8701_v7, 1326507024  ;;  %v8708_v30 = vsel %vm8704_vm14, %v8692_v60, %v8707_v62  ;;  %v7170_v36 = vpop.f32.mrf.mxu1 }
 0x6c9   : > { %v8716_v4 = vsel %vm8704_vm14, %v8698_v40, %v8715_v10  ;;  %v17603_v61 = vmul.u32.u64.low %v17556_v55, %v8713_v2  ;;  %v17604_v22 = vmul.u32.u64.high %v17556_v55, %v8713_v2, %v17603_v61  ;;  %12129 = vsinq.f32 %v17486_v48  ;;  %v7071_v10 = vpop.f32.mrf.mxu0 }
 0x6ca   : > { %vm7840_vm3 = vcmp.lt.s32.totalorder %v17039_v16, 0  ;;  %v8329_v24 = vor.u32 %v8328_v21, %v8327_v31  ;;  %v8717_v33 = vsel %vm8703_vm4, %v8714_v57, %v8716_v4  ;;  %v19715_v60 = vxor.u32 2147483648, %v17492_v39  ;;  %v19720_v4 = vld [vmem:[#allocation3_spill] sm:$0xff] }
 0x6cb   : > { %v17619_v7 = vmul.u32.u64.low %v17556_v55, %v8717_v33  ;;  %v17620_v9 = vmul.u32.u64.high %v17556_v55, %v8717_v33, %v17619_v7  ;;  %v6597_v48 = vadd.f32 %v17320_v27, %v17533_v38  ;;  %v19716_v21 = vxor.u32 2147483648, %v17516_v8  ;;  %v7172_v33 = vpop.f32.mrf.mxu1 }
 0x6cc   : > { %v17616_v40 = vsel %vm8152_vm11, %v19715_v60, %v17492_v39  ;;  %vm11583_vm6 = vcmp.lt.s32.totalorder %v11582_v29, 0  ;;  %v8709_v62 = vsel %vm8703_vm4, %v8706_v37, %v8708_v30  ;;  %v5794_v39 = vadd.f32 %v17548_v43, %v17543_v28  ;;  %v19719_v37 = vld [vmem:[#allocation93_spill] sm:$0xff] }
 0x6cd   : > { %v17629_v31 = vsel %vm7736_vm12, %v19716_v21, %v17516_v8  ;;  %v19718_v5 = vxor.u32 2147483648, %v17518_v58  ;;  %v8334_v38 = vand.u32 2147483647, %v8333_v1  ;;  %v8728_v57 = vadd.s32 1, %v17604_v22 }
 0x6ce   : > { %19717 = vst [vmem:[#allocation102_spill] sm:$0xff] %v17629_v31  ;;  %v6731_v8 = vadd.f32 %v17281_v52, %v17524_v0  ;;  %v8336_v2 = vcvt.s32.f32 %v8329_v24  ;;  %v6599_v44 = vadd.f32 %v17338_v54, %v5794_v39  ;;  %v6608_v28 = vadd.f32 %v17353_v15, %v19719_v37  ;;  %v19721_v54 = vld [vmem:[#allocation103_spill] sm:$0xff]  ;;  %v19722_v0 = vld [vmem:[#allocation94_spill] sm:$0xff]  ;;  %v19723_v15 = vld [vmem:[#allocation28_spill] sm:$0xff] }
 0x6cf   : > { %v17640_v27 = vsel %vm7840_vm3, %v19718_v5, %v17518_v58  ;;  %v6738_v43 = vadd.f32 %v17331_v6, %v6597_v48  ;;  %v17649_v30 = vsel %vm11583_vm6, 0, %v11582_v29  ;;  %v8725_v58 = vmul.u32 %v17556_v55, %v8709_v62  ;;  %v19724_v48 = vld [vmem:[#allocation118_spill] sm:$0xff]  ;;  %v19725_v62 = vld [vmem:[#allocation81_spill] sm:$0xff]  ;;  %v19726_v39 = vld [vmem:[#allocation108_spill] sm:$0xff] }
 0x6d0   : > { %vm8727_vm7 = vc.u32 %v17620_v9, %v17603_v61  ;;  %v6841_v1 = vadd.f32 %v17426_v56, %v6731_v8  ;;  %vm8256_vm8 = vcmp.lt.s32.totalorder %v19720_v4, 0  ;;  %v5737_v24 = vadd.f32 %v19722_v0, %v19721_v54  ;;  %v19728_v37 = vld [vmem:[#allocation105_spill] sm:$0xff] }
 0x6d1   : > { %v8729_v52 = vsel %vm8727_vm7, %v8728_v57, %v17604_v22  ;;  %v5785_v6 = vmul.f32 %v19708_v46, %v19723_v15  ;;  %v6843_v29 = vadd.f32 %v17449_v19, %v17500_v32  ;;  %v8337_v55 = vmul.f32 %v8336_v2, %v8334_v38  ;;  %v7076_v57 = vpop.f32.mrf.mxu0  ;;  %v19727_v19 = vld [vmem:[#allocation106_spill] sm:$0xff] }
 0x6d2   : > { %v8730_v60 = vadd.s32 %v8729_v52, %v8725_v58  ;;  %v6849_v7 = vadd.f32 %v17476_v51, %v6738_v43  ;;  %v6947_v56 = vadd.f32 %v19724_v48, %v6841_v1  ;;  %v8622_v21 = vadd.s32 %v17457_v14, %v17473_v34  ;;  %v19729_v43 = vld [vmem:[#allocation96_spill] sm:$0xff]  ;;  %v7177_v1 = vpop.f32.mrf.mxu1 }
 0x6d3   : > { %v8642_v22 = vsub.s32 4294967266, %v17649_v30  ;;  %v6610_v5 = vadd.f32 %v19726_v39, %v19725_v62  ;;  %v6949_v46 = vadd.f32 %v17461_v53, %v6843_v29  ;;  %v6740_v32 = vadd.f32 %v19727_v19, %v6599_v44  ;;  %v19733_v39 = vld [vmem:[#allocation107_spill] sm:$0xff] }
 0x6d4   : > { %v8731_v8 = vadd.s32 536870912, %v8730_v60  ;;  %v6956_v38 = vadd.f32 %v17495_v45, %v6849_v7  ;;  %v7070_v2 = vadd.f32 %v7069_v59, %v6947_v56  ;;  %v5801_v51 = vadd.f32 %v5785_v6, %v5737_v24  ;;  %v19731_v7 = vld [vmem:[#allocation111_spill] sm:$0xff] }
 0x6d5   : > { %v5738_v58 = vadd.f32 %v19729_v43, %v19728_v37  ;;  %v5786_v14 = vmul.f32 %v19675_v35, %v19723_v15  ;;  %v7072_v34 = vadd.f32 %v7071_v10, %v6949_v46  ;;  %v8338_v52 = vxor.u32 2147483648, %v8337_v55  ;;  %v7078_v35 = vpop.f32.mrf.mxu0  ;;  %v19732_v10 = vld [vmem:[#allocation88_spill] sm:$0xff]  ;;  %v19735_v19 = vld [vmem:[#allocation83_spill] sm:$0xff]  ;;  %v19736_v43 = vld [vmem:[#allocation113_spill] sm:$0xff] }
 0x6d6   : > { %v17677_v54 = vshrl.u32 %v8731_v8, 30  ;;  %v7077_v53 = vadd.f32 %v7076_v57, %v6956_v38  ;;  %v7171_v0 = vadd.f32 %v7170_v36, %v7070_v2  ;;  %v8638_v29 = vsub.s32 32, %v17649_v30  ;;  %v17681_v24 = vpop.eup %12129  ;;  %v19734_v57 = vld [vmem:[#allocation91_spill] sm:$0xff]  ;;  %v7179_v38 = vpop.f32.mrf.mxu1 }
 0x6d7   : > { %v8643_v44 = vadd.s32 127, %v8642_v22  ;;  %v6851_v45 = vadd.f32 %v17504_v3, %v6740_v32  ;;  %v7173_v59 = vadd.f32 %v7172_v33, %v7072_v34  ;;  %19730 = vst [vmem:[#allocation93_spill] sm:$0xff] %v17681_v24  ;;  %v6619_v48 = vadd.f32 %v19731_v7, %v5801_v51 }
 0x6d8   : > { %v8733_v6 = vshll.u32 %v17677_v54, 30  ;;  %v7222_v15 = vadd.f32 %v19732_v10, %v7171_v0  ;;  %v7178_v56 = vadd.f32 %v7177_v1, %v7077_v53  ;;  %v5802_v62 = vadd.f32 %v5786_v14, %v5738_v58  ;;  %v19737_v14 = vld [vmem:[#allocation110_spill] sm:$0xff]  ;;  %v17714_v7 = vpop.f32.mrf.mxu1 }
 0x6d9   : > { %v6745_v46 = vadd.f32 %v19733_v39, %v6608_v28  ;;  %v6958_v36 = vadd.f32 %v17513_v50, %v6851_v45  ;;  %v7223_v22 = vadd.f32 %v19732_v10, %v7173_v59  ;;  %v17691_v3 = vsel %vm8256_vm8, %v8338_v52, %v8337_v55  ;;  %v19738_v55 = vld [vmem:[#allocation95_spill] sm:$0xff]  ;;  %v19742_v45 = vld [vmem:[#allocation112_spill] sm:$0xff] }
 0x6da   : > { %v17693_v33 = vsub.s32 %v8730_v60, %v8733_v6  ;;  %v7263_v8 = vmul.f32 %v19734_v57, %v7222_v15  ;;  %v7226_v32 = vadd.f32 %v19735_v19, %v7178_v56  ;;  %v8640_v2 = vshrl.u32 %v8622_v21, %v8638_v29  ;;  %v7083_v60 = vpop.f32.mrf.mxu0  ;;  %v19741_v21 = vld [vmem:[#allocation90_spill] sm:$0xff] }
 0x6db   : > { %v8644_v51 = vshll.u32 %v8643_v44, 23  ;;  %v7079_v37 = vadd.f32 %v7078_v35, %v6958_v36  ;;  %v7264_v28 = vmul.f32 %v19734_v57, %v7223_v22  ;;  %v6621_v58 = vadd.f32 %v19736_v43, %v5802_v62  ;;  %v19743_v15 = vld [vmem:[#allocation114_spill] sm:$0xff] }
 0x6dc   : > { %v8736_v50 = vsub.s32 0, %v17693_v33  ;;  %v6747_v34 = vadd.f32 %v19737_v14, %v6610_v5  ;;  %v17702_v1 = vadd.f32 %v19738_v55, %v7263_v8  ;;  %v8639_v52 = vshll.u32 %v17558_v63, %v17649_v30  ;;  %v7085_v36 = vpop.f32.mrf.mxu0  ;;  %v19744_v8 = vld [vmem:[#allocation99_spill] sm:$0xff]  ;;  %v19746_v14 = vld [vmem:[#allocation40_spill] sm:$0xff] }
 0x6dd   : > { %v17707_v53 = vadd.f32 %v19738_v55, %v7264_v28  ;;  %v7267_v0 = vmul.f32 %v19741_v21, %v7226_v32  ;;  %v7180_v29 = vadd.f32 %v7179_v38, %v7079_v37  ;;  %v6752_v59 = vadd.f32 %v19742_v45, %v6619_v48 }
 0x6de   : > { %19739 = vst [vmem:[#allocation3_spill] sm:$0xff] %v17702_v1  ;;  %v11585_v44 = vmin.u32 %v8736_v50, %v17693_v33  ;;  %v19359_v6 = vand.u32 2147483647, %v17702_v1  ;;  %v7529_v5 = vand.u32 2139095040, %v17702_v1  ;;  %v8641_v35 = vor.u32 %v8640_v2, %v8639_v52 }
 0x6df   : > { %19740 = vst [vmem:[#allocation103_spill] sm:$0xff] %v17707_v53  ;;  %v8645_v10 = vor.u32 4788187, %v8644_v51  ;;  %v6754_v63 = vadd.f32 %v19743_v15, %v6621_v58  ;;  %v7633_v30 = vand.u32 2139095040, %v17707_v53  ;;  %v17720_v56 = vadd.s32 %v17603_v61, %v17620_v9  ;;  %v17732_v9 = vpop.f32.mrf.mxu1 }
 0x6e0   : > { %v8738_v62 = vclz %v11585_v44  ;;  %v6857_v39 = vadd.f32 %v17526_v47, %v6745_v46  ;;  %v7530_v48 = vshrl.u32 %v7529_v5, 23  ;;  %v19360_v22 = vand.u32 2147483647, %v17707_v53 }
 0x6e1   : > { %v7634_v57 = vshrl.u32 %v7633_v30, 23  ;;  %v17725_v32 = vadd.f32 %v19744_v8, %v7267_v0  ;;  %v7227_v38 = vadd.f32 %v19735_v19, %v7180_v29  ;;  %v6859_v2 = vadd.f32 %v17550_v42, %v6747_v34  ;;  %v7090_v42 = vpop.f32.mrf.mxu0  ;;  %v7191_v44 = vpop.f32.mrf.mxu1 }
 0x6e2   : > { %v6865_v51 = vadd.f32 %v17571_v13, %v6752_v59  ;;  %v11540_v37 = vadd.s32 4294967169, %v7530_v48  ;;  %v7533_v61 = vand.u32 8388607, %v19359_v6  ;;  %v8646_v47 = vand.u32 2147483647, %v8645_v10 }
 0x6e3   : > { %19745 = vst [vmem:[#allocation94_spill] sm:$0xff] %v17725_v32  ;;  %v8648_v46 = vcvt.s32.f32 %v8641_v35  ;;  %v6867_v28 = vadd.f32 %v17587_v25, %v6754_v63  ;;  %v11544_v50 = vadd.s32 4294967169, %v7634_v57  ;;  %v11586_v43 = vadd.s32 4294967294, %v8738_v62 }
 0x6e4   : > { %v6965_v58 = vadd.f32 %v17535_v17, %v6857_v39  ;;  %v6967_v19 = vadd.f32 %v19746_v14, %v6859_v2  ;;  %v7536_v55 = vadd.s32 1, %v11540_v37  ;;  %v6974_v13 = vadd.f32 %v17580_v41, %v6865_v51 }
 0x6e5   : > { %v17740_v34 = vand.u32 8388607, %v19360_v22  ;;  %v19361_v52 = vand.u32 2147483647, %v17725_v32  ;;  %v7268_v0 = vmul.f32 %v19741_v21, %v7227_v38  ;;  %v17745_v25 = vadd.f32 %v17596_v49, %v6867_v28 }
 0x6e6   : > { %v7534_v29 = vor.u32 8388608, %v7533_v61  ;;  %vm7537_vm9 = vcmp.gt.s32.totalorder %v7536_v55, 0  ;;  %v7945_v17 = vand.u32 2139095040, %v17725_v32  ;;  %v17748_v45 = vmul.f32 %v8648_v46, %v8646_v47 }
 0x6e7   : > { %v7538_v59 = vsel %vm7537_vm9, %v7536_v55, 0  ;;  %v7640_v41 = vadd.s32 1, %v11544_v50  ;;  %v7091_v5 = vadd.f32 %v7090_v42, %v6974_v13  ;;  %vm11587_vm13 = vcmp.lt.s32.totalorder %v11586_v43, 0 }
 0x6e8   : > { %v7540_v35 = vand.u32 31, %v7538_v59  ;;  %v17750_v10 = vadd.f32 %v7083_v60, %v6965_v58  ;;  %v17752_v15 = vadd.f32 %v7085_v36, %v6967_v19  ;;  %v7638_v21 = vor.u32 8388608, %v17740_v34 }
 0x6e9   : > { %v17757_v49 = vand.u32 8388607, %v19361_v52  ;;  %v17760_v63 = vadd.f32 %v19744_v8, %v7268_v0  ;;  %v17762_v30 = vadd.f32 %v7191_v44, %v7091_v5  ;;  %v7539_v62 = vshrl.u32 %v7538_v59, 5 }
 0x6ea   : > { %v7541_v39 = vsub.s32 32, %v7540_v35  ;;  %v17764_v48 = vshll.u32 %v7534_v29, 8  ;;  %v7946_v57 = vshrl.u32 %v7945_v17, 23  ;;  %v17766_v60 = vsel %vm11587_vm13, 0, %v11586_v43 }
 0x6eb   : > { %19747 = vst [vmem:[#allocation28_spill] sm:$0xff] %v17760_v63  ;;  %v7543_v36 = vshll.u32 %v19651_v12, %v7540_v35  ;;  %v19748_v38 = vmov 2475754826   ;;  %vm7641_vm14 = vcmp.gt.s32.totalorder %v7640_v41, 0  ;;  %v19749_v37 = vmov 2131351028  }
 0x6ec   : > { %v7546_v2 = vshll.u32 %v19748_v38, %v7540_v35  ;;  %v7544_v51 = vshrl.u32 %v19748_v38, %v7541_v39  ;;  %v7549_v61 = vshll.u32 %v19749_v37, %v7540_v35  ;;  %v19750_v8 = vmov 2102212464  }
 0x6ed   : > { %v7552_v47 = vshll.u32 %v19750_v8, %v7540_v35  ;;  %v7555_v46 = vshll.u32 %v19655_v23, %v7540_v35  ;;  %v7547_v28 = vshrl.u32 %v19749_v37, %v7541_v39  ;;  %v7550_v50 = vshrl.u32 %v19750_v8, %v7541_v39 }
 0x6ee   : > { %v7553_v43 = vshrl.u32 %v19655_v23, %v7541_v39  ;;  %v7556_v58 = vshrl.u32 %v19656_v18, %v7541_v39  ;;  %v7542_v14 = vshrl.u32 %v19651_v12, %v7541_v39  ;;  %v7545_v19 = vor.u32 %v7544_v51, %v7543_v36 }
 0x6ef   : > { %vm7558_vm2 = vcmp.lt.s32.totalorder %v7539_v62, 1  ;;  %v11556_v55 = vadd.s32 4294967169, %v7946_v57  ;;  %v7548_v42 = vor.u32 %v7547_v28, %v7546_v2  ;;  %v7551_v13 = vor.u32 %v7550_v50, %v7549_v61 }
 0x6f0   : > { %v7554_v34 = vor.u32 %v7553_v43, %v7552_v47  ;;  %v7557_v0 = vor.u32 %v7556_v58, %v7555_v46  ;;  %vm7560_vm4 = vcmp.lt.s32.totalorder %v7539_v62, 3  ;;  %vm7561_vm6 = vcmp.lt.s32.totalorder %v7539_v62, 4 }
 0x6f1   : > { %v7562_v29 = vsel %vm7558_vm2, %v7542_v14, %v7545_v19  ;;  %v7642_v17 = vsel %vm7641_vm14, %v7640_v41, 0  ;;  %v7563_v44 = vsel %vm7561_vm6, %v7551_v13, 2102212464  ;;  %v7566_v59 = vsel %vm7558_vm2, %v7545_v19, %v7548_v42 }
 0x6f2   : > { %v7567_v5 = vsel %vm7561_vm6, %v7554_v34, 920167782  ;;  %v7570_v35 = vsel %vm7558_vm2, %v7548_v42, %v7551_v13  ;;  %vm7559_vm7 = vcmp.lt.s32.totalorder %v7539_v62, 2  ;;  %v7564_v6 = vsel %vm7560_vm4, %v7548_v42, %v7563_v44 }
 0x6f3   : > { %v7568_v22 = vsel %vm7560_vm4, %v7551_v13, %v7567_v5  ;;  %v7571_v39 = vsel %vm7561_vm6, %v7557_v0, 1326507024  ;;  %v7565_v36 = vsel %vm7559_vm7, %v7562_v29, %v7564_v6  ;;  %v7643_v2 = vshrl.u32 %v7642_v17, 5 }
 0x6f4   : > { %v7569_v51 = vsel %vm7559_vm7, %v7566_v59, %v7568_v22  ;;  %v7572_v57 = vsel %vm7560_vm4, %v7554_v34, %v7571_v39  ;;  %v7952_v28 = vadd.s32 1, %v11556_v55  ;;  %v7644_v43 = vand.u32 31, %v7642_v17 }
 0x6f5   : > { %v7573_v61 = vsel %vm7559_vm7, %v7570_v35, %v7572_v57  ;;  %v17781_v47 = vmul.u32.u64.low %v17764_v48, %v7569_v51  ;;  %v17782_v46 = vmul.u32.u64.high %v17764_v48, %v7569_v51, %v17781_v47  ;;  %v17789_v62 = vshll.u32 %v7638_v21, 8 }
 0x6f6   : > { %v17786_v41 = vmul.u32.u64.low %v17764_v48, %v7573_v61  ;;  %v17787_v50 = vmul.u32.u64.high %v17764_v48, %v7573_v61, %v17786_v41  ;;  %v7581_v6 = vmul.u32 %v17764_v48, %v7565_v36  ;;  %vm7662_vm9 = vcmp.lt.s32.totalorder %v7643_v2, 1 }
 0x6f7   : > { %v7645_v14 = vsub.s32 32, %v7644_v43  ;;  %v7647_v19 = vshll.u32 %v19651_v12, %v7644_v43  ;;  %vm7663_vm13 = vcmp.lt.s32.totalorder %v7643_v2, 2  ;;  %vm7664_vm14 = vcmp.lt.s32.totalorder %v7643_v2, 3 }
 0x6f8   : > { %v7584_v55 = vadd.s32 1, %v17782_v46  ;;  %v7650_v42 = vshll.u32 %v19748_v38, %v7644_v43  ;;  %v7653_v13 = vshll.u32 %v19749_v37, %v7644_v43  ;;  %vm7953_vm2 = vcmp.gt.s32.totalorder %v7952_v28, 0 }
 0x6f9   : > { %vm7583_vm4 = vc.u32 %v17787_v50, %v17781_v47  ;;  %v7648_v21 = vshrl.u32 %v19748_v38, %v7645_v14  ;;  %v7656_v48 = vshll.u32 %v19750_v8, %v7644_v43  ;;  %v7659_v34 = vshll.u32 %v19655_v23, %v7644_v43 }
 0x6fa   : > { %v7585_v0 = vsel %vm7583_vm4, %v7584_v55, %v17782_v46  ;;  %v7651_v29 = vshrl.u32 %v19749_v37, %v7645_v14  ;;  %v7654_v17 = vshrl.u32 %v19750_v8, %v7645_v14  ;;  %v7657_v44 = vshrl.u32 %v19655_v23, %v7645_v14 }
 0x6fb   : > { %v7586_v59 = vadd.s32 %v7585_v0, %v7581_v6  ;;  %v7649_v5 = vor.u32 %v7648_v21, %v7647_v19  ;;  %v7660_v35 = vshrl.u32 %v19656_v18, %v7645_v14  ;;  %v7954_v39 = vsel %vm7953_vm2, %v7952_v28, 0 }
 0x6fc   : > { %v7652_v36 = vor.u32 %v7651_v29, %v7650_v42  ;;  %v7655_v51 = vor.u32 %v7654_v17, %v7653_v13  ;;  %v7658_v57 = vor.u32 %v7657_v44, %v7656_v48  ;;  %vm7665_vm6 = vcmp.lt.s32.totalorder %v7643_v2, 4 }
 0x6fd   : > { %v7587_v61 = vadd.s32 536870912, %v7586_v59  ;;  %v7646_v41 = vshrl.u32 %v19651_v12, %v7645_v14  ;;  %v7661_v43 = vor.u32 %v7660_v35, %v7659_v34  ;;  %v7956_v46 = vand.u32 31, %v7954_v39 }
 0x6fe   : > { %v7667_v55 = vsel %vm7665_vm6, %v7655_v51, 2102212464  ;;  %v7670_v52 = vsel %vm7662_vm9, %v7649_v5, %v7652_v36  ;;  %v7671_v58 = vsel %vm7665_vm6, %v7658_v57, 920167782  ;;  %v7674_v22 = vsel %vm7662_vm9, %v7652_v36, %v7655_v51 }
 0x6ff   : > { %v17811_v6 = vshrl.u32 %v7587_v61, 30  ;;  %v7666_v19 = vsel %vm7662_vm9, %v7646_v41, %v7649_v5  ;;  %v7672_v28 = vsel %vm7664_vm14, %v7655_v51, %v7671_v58  ;;  %v7675_v42 = vsel %vm7665_vm6, %v7661_v43, 1326507024 }
 0x700   : > { %v7668_v13 = vsel %vm7664_vm14, %v7652_v36, %v7667_v55  ;;  %v7673_v21 = vsel %vm7663_vm13, %v7670_v52, %v7672_v28  ;;  %v7676_v14 = vsel %vm7664_vm14, %v7658_v57, %v7675_v42  ;;  %v7957_v48 = vsub.s32 32, %v7956_v46 }
 0x701   : > { %19751 = vst [vmem:[#allocation118_spill] sm:$0xff] %v17811_v6  ;;  %v7589_v34 = vshll.u32 %v17811_v6, 30  ;;  %v7677_v0 = vsel %vm7663_vm13, %v7674_v22, %v7676_v14  ;;  %v17821_v29 = vmul.u32.u64.low %v17789_v62, %v7673_v21  ;;  %v17822_v17 = vmul.u32.u64.high %v17789_v62, %v7673_v21, %v17821_v29 }
 0x702   : > { %v8746_v44 = vsub.s32 4294967266, %v17766_v60  ;;  %v17827_v58 = vmul.u32.u64.low %v17789_v62, %v7677_v0  ;;  %v17828_v5 = vmul.u32.u64.high %v17789_v62, %v7677_v0, %v17827_v58  ;;  %v17830_v35 = vshrl.u32 %v7954_v39, 5 }
 0x703   : > { %v17832_v52 = vsub.s32 %v7586_v59, %v7589_v34  ;;  %v7669_v36 = vsel %vm7663_vm13, %v7666_v19, %v7668_v13  ;;  %v7959_v51 = vshll.u32 %v19651_v12, %v7956_v46  ;;  %v7960_v22 = vshrl.u32 %v19748_v38, %v7957_v48 }
 0x704   : > { %v7962_v57 = vshll.u32 %v19748_v38, %v7956_v46  ;;  %v7963_v61 = vshrl.u32 %v19749_v37, %v7957_v48  ;;  %v7965_v41 = vshll.u32 %v19749_v37, %v7956_v46  ;;  %v7966_v43 = vshrl.u32 %v19750_v8, %v7957_v48 }
 0x705   : > { %v7592_v55 = vsub.s32 0, %v17832_v52  ;;  %v7688_v39 = vadd.s32 1, %v17822_v17  ;;  %v7968_v59 = vshll.u32 %v19750_v8, %v7956_v46  ;;  %v7969_v2 = vshrl.u32 %v19655_v23, %v7957_v48 }
 0x706   : > { %v7685_v19 = vmul.u32 %v17789_v62, %v7669_v36  ;;  %vm7687_vm7 = vc.u32 %v17828_v5, %v17821_v29  ;;  %v7961_v28 = vor.u32 %v7960_v22, %v7959_v51  ;;  %v7964_v42 = vor.u32 %v7963_v61, %v7962_v57 }
 0x707   : > { %v11541_v13 = vmin.u32 %v7592_v55, %v17832_v52  ;;  %v7689_v21 = vsel %vm7687_vm7, %v7688_v39, %v17822_v17  ;;  %v7967_v14 = vor.u32 %v7966_v43, %v7965_v41  ;;  %v7970_v34 = vor.u32 %v7969_v2, %v7968_v59 }
 0x708   : > { %v7690_v0 = vadd.s32 %v7689_v21, %v7685_v19  ;;  %v7971_v58 = vshll.u32 %v19655_v23, %v7956_v46  ;;  %v7972_v6 = vshrl.u32 %v19656_v18, %v7957_v48  ;;  %v19752_v32 = vor.u32 8388608, %v17757_v49 }
 0x709   : > { %v8747_v62 = vadd.s32 127, %v8746_v44  ;;  %v7594_v36 = vclz %v11541_v13  ;;  %vm7974_vm9 = vcmp.lt.s32.totalorder %v17830_v35, 1  ;;  %v8049_v51 = vand.u32 2139095040, %v17760_v63 }
 0x70a   : > { %v17854_v53 = vshll.u32 %v19752_v32, 8  ;;  %v7691_v22 = vadd.s32 536870912, %v7690_v0  ;;  %v7973_v57 = vor.u32 %v7972_v6, %v7971_v58  ;;  %vm7976_vm13 = vcmp.lt.s32.totalorder %v17830_v35, 3 }
 0x70b   : > { %vm7977_vm14 = vcmp.lt.s32.totalorder %v17830_v35, 4  ;;  %v11542_v17 = vadd.s32 4294967294, %v7594_v36  ;;  %v7982_v46 = vsel %vm7974_vm9, %v7961_v28, %v7964_v42  ;;  %v7986_v32 = vsel %vm7974_vm9, %v7964_v42, %v7967_v14 }
 0x70c   : > { %v7983_v61 = vsel %vm7977_vm14, %v7970_v34, 920167782  ;;  %v17864_v49 = vshrl.u32 %v7691_v22, 30  ;;  %v7979_v44 = vsel %vm7977_vm14, %v7967_v14, 2102212464  ;;  %v7958_v6 = vshrl.u32 %v19651_v12, %v7957_v48 }
 0x70d   : > { %v7984_v41 = vsel %vm7976_vm13, %v7967_v14, %v7983_v61  ;;  %v7987_v43 = vsel %vm7977_vm14, %v7973_v57, 1326507024  ;;  %vm11543_vm2 = vcmp.lt.s32.totalorder %v11542_v17, 0  ;;  %vm7975_vm4 = vcmp.lt.s32.totalorder %v17830_v35, 2 }
 0x70e   : > { %19753 = vst [vmem:[#allocation81_spill] sm:$0xff] %v17864_v49  ;;  %v7988_v55 = vsel %vm7976_vm13, %v7970_v34, %v7987_v43  ;;  %v7693_v39 = vshll.u32 %v17864_v49, 30  ;;  %v7985_v59 = vsel %vm7975_vm4, %v7982_v46, %v7984_v41  ;;  %v8050_v19 = vshrl.u32 %v8049_v51, 23 }
 0x70f   : > { %v7989_v2 = vsel %vm7975_vm4, %v7986_v32, %v7988_v55  ;;  %v8743_v13 = vshll.u32 %v17693_v33, %v17766_v60  ;;  %v19754_v21 = vsub.s32 32, %v17766_v60  ;;  %v7978_v14 = vsel %vm7974_vm9, %v7958_v6, %v7961_v28  ;;  %v19755_v32 = vld [vmem:[#allocation5_spill] sm:$0xff] }
 0x710   : > { %v7980_v34 = vsel %vm7976_vm13, %v7964_v42, %v7979_v44  ;;  %v17886_v58 = vsub.s32 %v7690_v0, %v7693_v39  ;;  %v17889_v36 = vmul.u32.u64.low %v17854_v53, %v7989_v2  ;;  %v17890_v22 = vmul.u32.u64.high %v17854_v53, %v7989_v2, %v17889_v36  ;;  %v19756_v2 = vld [vmem:[#allocation4_spill] sm:$0xff] }
 0x711   : > { %v8744_v48 = vshrl.u32 %v17720_v56, %v19754_v21  ;;  %v11560_v51 = vadd.s32 4294967169, %v8050_v19  ;;  %v8748_v57 = vshll.u32 %v8747_v62, 23  ;;  %v17893_v33 = vsel %vm11543_vm2, 0, %v11542_v17 }
 0x712   : > { %v17896_v60 = vmul.u32.u64.low %v17854_v53, %v7985_v59  ;;  %v17897_v56 = vmul.u32.u64.high %v17854_v53, %v7985_v59, %v17896_v60  ;;  %v7696_v28 = vsub.s32 0, %v17886_v58  ;;  %v7981_v42 = vsel %vm7975_vm4, %v7978_v14, %v7980_v34 }
 0x713   : > { %v19368_v0 = vand.u32 2147483647, %v17760_v63  ;;  %v8056_v46 = vadd.s32 1, %v11560_v51  ;;  %v17904_v61 = vor.u32 %v8744_v48, %v8743_v13  ;;  %v7185_v62 = vadd.f32 %v17714_v7, %v17750_v10 }
 0x714   : > { %v7187_v17 = vadd.f32 %v17732_v9, %v17752_v15  ;;  %v17912_v44 = vadd.f32 %v19755_v32, %v17762_v30  ;;  %v7602_v41 = vsub.s32 4294967266, %v17893_v33  ;;  %v11545_v35 = vmin.u32 %v7696_v28, %v17886_v58 }
 0x715   : > { %vm7999_vm6 = vc.u32 %v17890_v22, %v17896_v60  ;;  %vm8057_vm7 = vcmp.gt.s32.totalorder %v8056_v46, 0  ;;  %v17918_v43 = vor.u32 4788187, %v8748_v57  ;;  %v7997_v6 = vmul.u32 %v17854_v53, %v7981_v42 }
 0x716   : > { %v8000_v7 = vadd.s32 1, %v17897_v56  ;;  %v8058_v10 = vsel %vm8057_vm7, %v8056_v46, 0  ;;  %v7598_v9 = vsub.s32 32, %v17893_v33  ;;  %v7698_v15 = vclz %v11545_v35 }
 0x717   : > { %v8053_v30 = vand.u32 8388607, %v19368_v0  ;;  %v8060_v55 = vand.u32 31, %v8058_v10  ;;  %v7582_v39 = vadd.s32 %v17781_v47, %v17787_v50  ;;  %v7230_v19 = vadd.f32 %v19756_v2, %v7185_v62  ;;  %v19757_v62 = vld [vmem:[#allocation84_spill] sm:$0xff] }
 0x718   : > { %v8001_v59 = vsel %vm7999_vm6, %v8000_v7, %v17897_v56  ;;  %v7231_v13 = vadd.f32 %v19756_v2, %v7187_v17  ;;  %v17930_v53 = vadd.s32 127, %v7602_v41  ;;  %v11546_v21 = vadd.s32 4294967294, %v7698_v15  ;;  %v19759_v0 = vld [vmem:[#allocation92_spill] sm:$0xff] }
 0x719   : > { %v8002_v48 = vadd.s32 %v8001_v59, %v7997_v6  ;;  %v8061_v14 = vsub.s32 32, %v8060_v55  ;;  %v8750_v36 = vand.u32 2147483647, %v17918_v43  ;;  %v8752_v51 = vcvt.s32.f32 %v17904_v61 }
 0x71a   : > { %v7686_v47 = vadd.s32 %v17821_v29, %v17828_v5  ;;  %v17937_v50 = vshrl.u32 %v7582_v39, %v7598_v9  ;;  %v8054_v56 = vor.u32 8388608, %v8053_v30  ;;  %vm11547_vm9 = vcmp.lt.s32.totalorder %v11546_v21, 0 }
 0x71b   : > { %v8003_v57 = vadd.s32 536870912, %v8002_v48  ;;  %v8064_v28 = vshrl.u32 %v19748_v38, %v8061_v14  ;;  %v8067_v42 = vshrl.u32 %v19749_v37, %v8061_v14  ;;  %v8070_v46 = vshrl.u32 %v19750_v8, %v8061_v14 }
 0x71c   : > { %v7271_v17 = vmul.f32 %v19757_v62, %v7230_v19  ;;  %v8063_v61 = vshll.u32 %v19651_v12, %v8060_v55  ;;  %v7272_v29 = vmul.f32 %v19757_v62, %v7231_v13  ;;  %v8059_v5 = vshrl.u32 %v8058_v10, 5 }
 0x71d   : > { %v17944_v35 = vshrl.u32 %v8003_v57, 30  ;;  %v8066_v43 = vshll.u32 %v19748_v38, %v8060_v55  ;;  %v8069_v6 = vshll.u32 %v19749_v37, %v8060_v55  ;;  %v8072_v7 = vshll.u32 %v19750_v8, %v8060_v55 }
 0x71e   : > { %v7701_v9 = vsel %vm11547_vm9, 0, %v11546_v21  ;;  %v8065_v30 = vor.u32 %v8064_v28, %v8063_v61  ;;  %v8073_v39 = vshrl.u32 %v19655_v23, %v8061_v14  ;;  %v8075_v19 = vshll.u32 %v19655_v23, %v8060_v55 }
 0x71f   : > { %19758 = vst [vmem:[#allocation108_spill] sm:$0xff] %v17944_v35  ;;  %v8005_v15 = vshll.u32 %v17944_v35, 30  ;;  %v8068_v59 = vor.u32 %v8067_v42, %v8066_v43  ;;  %v8071_v2 = vor.u32 %v8070_v46, %v8069_v6  ;;  %v8076_v57 = vshrl.u32 %v19656_v18, %v8061_v14 }
 0x720   : > { %v8074_v10 = vor.u32 %v8073_v39, %v8072_v7  ;;  %v8094_v62 = vshll.u32 %v8054_v56, 8  ;;  %v17958_v34 = vadd.f32 %v19759_v0, %v7271_v17  ;;  %v7706_v41 = vsub.s32 4294967266, %v7701_v9 }
 0x721   : > { %v17955_v13 = vsub.s32 %v8002_v48, %v8005_v15  ;;  %v8062_v21 = vshrl.u32 %v19651_v12, %v8061_v14  ;;  %v8077_v49 = vor.u32 %v8076_v57, %v8075_v19  ;;  %v17962_v28 = vadd.f32 %v19759_v0, %v7272_v29 }
 0x722   : > { %19760 = vst [vmem:[#allocation106_spill] sm:$0xff] %v17958_v34  ;;  %v7702_v42 = vsub.s32 32, %v7701_v9  ;;  %vm8078_vm13 = vcmp.lt.s32.totalorder %v8059_v5, 1  ;;  %vm8081_vm14 = vcmp.lt.s32.totalorder %v8059_v5, 4  ;;  %vm8080_vm2 = vcmp.lt.s32.totalorder %v8059_v5, 3 }
 0x723   : > { %19761 = vst [vmem:[#allocation105_spill] sm:$0xff] %v17962_v28  ;;  %v8008_v46 = vsub.s32 0, %v17955_v13  ;;  %v8083_v55 = vsel %vm8081_vm14, %v8071_v2, 2102212464  ;;  %v8086_v48 = vsel %vm8078_vm13, %v8065_v30, %v8068_v59  ;;  %v8087_v61 = vsel %vm8081_vm14, %v8074_v10, 920167782 }
 0x724   : > { %vm8079_vm4 = vcmp.lt.s32.totalorder %v8059_v5, 2  ;;  %v8088_v17 = vsel %vm8080_vm2, %v8071_v2, %v8087_v61  ;;  %v8090_v43 = vsel %vm8078_vm13, %v8068_v59, %v8071_v2  ;;  %v7707_v6 = vadd.s32 127, %v7706_v41 }
 0x725   : > { %v11557_v56 = vmin.u32 %v8008_v46, %v17955_v13  ;;  %v8082_v14 = vsel %vm8078_vm13, %v8062_v21, %v8065_v30  ;;  %v8089_v7 = vsel %vm8079_vm4, %v8086_v48, %v8088_v17  ;;  %v8091_v0 = vsel %vm8081_vm14, %v8077_v49, 1326507024 }
 0x726   : > { %v8084_v15 = vsel %vm8080_vm2, %v8068_v59, %v8083_v55  ;;  %v8092_v39 = vsel %vm8080_vm2, %v8074_v10, %v8091_v0  ;;  %v19375_v19 = vand.u32 2147483647, %v17958_v34  ;;  %v8361_v46 = vand.u32 2139095040, %v17958_v34  ;;  %v7092_v10 = vpop.f32.mrf.mxu0 }
 0x727   : > { %v8010_v29 = vclz %v11557_v56  ;;  %v8093_v57 = vsel %vm8079_vm4, %v8090_v43, %v8092_v39  ;;  %v17969_v35 = vmul.u32.u64.low %v8094_v62, %v8089_v7  ;;  %v17970_v1 = vmul.u32.u64.high %v8094_v62, %v8089_v7, %v17969_v35 }
 0x728   : > { %v7704_v61 = vshrl.u32 %v7686_v47, %v7702_v42  ;;  %v17974_v41 = vmul.u32.u64.low %v8094_v62, %v8093_v57  ;;  %v17975_v30 = vmul.u32.u64.high %v8094_v62, %v8093_v57, %v17974_v41  ;;  %v17977_v21 = vmul.f32 %v8752_v51, %v8750_v36 }
 0x729   : > { %v11558_v2 = vadd.s32 4294967294, %v8010_v29  ;;  %v7599_v49 = vshll.u32 %v17832_v52, %v17893_v33  ;;  %v7708_v59 = vshll.u32 %v7707_v6, 23  ;;  %v8362_v55 = vshrl.u32 %v8361_v46, 23 }
 0x72a   : > { %v7703_v48 = vshll.u32 %v17886_v58, %v7701_v9  ;;  %v8085_v56 = vsel %vm8079_vm4, %v8082_v14, %v8084_v15  ;;  %v8365_v47 = vand.u32 8388607, %v19375_v19  ;;  %v8104_v17 = vadd.s32 1, %v17970_v1 }
 0x72b   : > { %vm11559_vm6 = vcmp.lt.s32.totalorder %v11558_v2, 0  ;;  %v11572_v36 = vadd.s32 4294967169, %v8362_v55  ;;  %v8465_v51 = vand.u32 2139095040, %v17962_v28  ;;  %v17990_v52 = vor.u32 %v17937_v50, %v7599_v49  ;;  %v19763_v55 = vld [vmem:[#allocation6_spill] sm:$0xff] }
 0x72c   : > { %v17985_v42 = vsel %vm11559_vm6, 0, %v11558_v2  ;;  %v19762_v33 = vshll.u32 %v17930_v53, 23  ;;  %v17996_v58 = vor.u32 %v7704_v61, %v7703_v48  ;;  %v17999_v5 = vadd.f32 %v7092_v10, %v17745_v25 }
 0x72d   : > { %v18001_v9 = vor.u32 4788187, %v7708_v59  ;;  %v8101_v6 = vmul.u32 %v8094_v62, %v8085_v56  ;;  %vm8103_vm7 = vc.u32 %v17975_v30, %v17969_v35  ;;  %v8368_v14 = vadd.s32 1, %v11572_v36 }
 0x72e   : > { %v17994_v43 = vor.u32 4788187, %v19762_v33  ;;  %v8014_v50 = vsub.s32 32, %v17985_v42  ;;  %v8105_v53 = vsel %vm8103_vm7, %v8104_v17, %v17970_v1  ;;  %v8366_v0 = vor.u32 8388608, %v8365_v47 }
 0x72f   : > { %v8018_v29 = vsub.s32 4294967266, %v17985_v42  ;;  %v8106_v15 = vadd.s32 %v8105_v53, %v8101_v6  ;;  %vm8369_vm9 = vcmp.gt.s32.totalorder %v8368_v14, 0  ;;  %v8466_v25 = vshrl.u32 %v8465_v51, 23 }
 0x730   : > { %v7998_v57 = vadd.s32 %v17896_v60, %v17890_v22  ;;  %v8370_v46 = vsel %vm8369_vm9, %v8368_v14, 0  ;;  %v18017_v59 = vshll.u32 %v8366_v0, 8  ;;  %v19383_v10 = vand.u32 2147483647, %v17962_v28 }
 0x731   : > { %v8107_v41 = vadd.s32 536870912, %v8106_v15  ;;  %v8372_v1 = vand.u32 31, %v8370_v46  ;;  %v7275_v48 = vmul.f32 %v19763_v55, %v17912_v44  ;;  %v18022_v56 = vadd.s32 127, %v8018_v29 }
 0x732   : > { %v18015_v49 = vshrl.u32 %v7998_v57, %v8014_v50  ;;  %v11576_v60 = vadd.s32 4294967169, %v8466_v25  ;;  %v8371_v17 = vshrl.u32 %v8370_v46, 5  ;;  %v19765_v57 = vld [vmem:[#allocation86_spill] sm:$0xff]  ;;  %v19766_v46 = vld [vmem:[#allocation115_spill] sm:$0xff]  ;;  %v8469_v61 = vand.u32 8388607, %v19383_v10 }
 0x733   : > { %v18024_v47 = vshrl.u32 %v8107_v41, 30  ;;  %v8373_v22 = vsub.s32 32, %v8372_v1  ;;  %v8375_v36 = vshll.u32 %v19651_v12, %v8372_v1  ;;  %v8378_v51 = vshll.u32 %v19748_v38, %v8372_v1 }
 0x734   : > { %v8381_v33 = vshll.u32 %v19749_v37, %v8372_v1  ;;  %v8384_v44 = vshll.u32 %v19750_v8, %v8372_v1  ;;  %v8387_v29 = vshll.u32 %v19655_v23, %v8372_v1  ;;  %vm8568_vm13 = vcmp.lt.s32.totalorder %v19765_v57, 0  ;;  %v19767_v1 = vld [vmem:[#allocation87_spill] sm:$0xff] }
 0x735   : > { %19764 = vst [vmem:[#allocation96_spill] sm:$0xff] %v18024_v47  ;;  %v8109_v6 = vshll.u32 %v18024_v47, 30  ;;  %v8376_v14 = vshrl.u32 %v19748_v38, %v8373_v22  ;;  %v8379_v50 = vshrl.u32 %v19749_v37, %v8373_v22  ;;  %v8382_v53 = vshrl.u32 %v19750_v8, %v8373_v22 }
 0x736   : > { %v8385_v0 = vshrl.u32 %v19655_v23, %v8373_v22  ;;  %v8388_v25 = vshrl.u32 %v19656_v18, %v8373_v22  ;;  %vm8672_vm14 = vcmp.lt.s32.totalorder %v19766_v46, 0  ;;  %v8472_v47 = vadd.s32 1, %v11576_v60 }
 0x737   : > { %v18039_v41 = vsub.s32 %v8106_v15, %v8109_v6  ;;  %v8377_v19 = vor.u32 %v8376_v14, %v8375_v36  ;;  %v8380_v2 = vor.u32 %v8379_v50, %v8378_v51  ;;  %v8383_v62 = vor.u32 %v8382_v53, %v8381_v33 }
 0x738   : > { %v8386_v39 = vor.u32 %v8385_v0, %v8384_v44  ;;  %v8389_v7 = vor.u32 %v8388_v25, %v8387_v29  ;;  %vm8390_vm2 = vcmp.lt.s32.totalorder %v8371_v17, 1  ;;  %vm8393_vm4 = vcmp.lt.s32.totalorder %v8371_v17, 4 }
 0x739   : > { %v8112_v63 = vsub.s32 0, %v18039_v41  ;;  %v18045_v34 = vadd.f32 %v19767_v1, %v7275_v48  ;;  %v8374_v26 = vshrl.u32 %v19651_v12, %v8373_v22  ;;  %vm8391_vm6 = vcmp.lt.s32.totalorder %v8371_v17, 2 }
 0x73a   : > { %v8395_v15 = vsel %vm8393_vm4, %v8383_v62, 2102212464  ;;  %v8398_v36 = vsel %vm8390_vm2, %v8377_v19, %v8380_v2  ;;  %vm8392_vm7 = vcmp.lt.s32.totalorder %v8371_v17, 3  ;;  %v8399_v6 = vsel %vm8393_vm4, %v8386_v39, 920167782 }
 0x73b   : > { %19768 = vst [vmem:[#allocation111_spill] sm:$0xff] %v18045_v34  ;;  %v11561_v51 = vmin.u32 %v8112_v63, %v18039_v41  ;;  %v8402_v33 = vsel %vm8390_vm2, %v8380_v2, %v8383_v62  ;;  %v8394_v14 = vsel %vm8390_vm2, %v8374_v26, %v8377_v19  ;;  %v8400_v50 = vsel %vm8392_vm7, %v8383_v62, %v8399_v6 }
 0x73c   : > { %v8403_v60 = vsel %vm8393_vm4, %v8389_v7, 1326507024  ;;  %vm8473_vm9 = vcmp.gt.s32.totalorder %v8472_v47, 0  ;;  %v8396_v53 = vsel %vm8392_vm7, %v8380_v2, %v8395_v15  ;;  %v8401_v0 = vsel %vm8391_vm6, %v8398_v36, %v8400_v50 }
 0x73d   : > { %v8114_v44 = vclz %v11561_v51  ;;  %v8404_v48 = vsel %vm8392_vm7, %v8386_v39, %v8403_v60  ;;  %v18052_v22 = vmul.u32.u64.low %v18017_v59, %v8401_v0  ;;  %v18053_v25 = vmul.u32.u64.high %v18017_v59, %v8401_v0, %v18052_v22 }
 0x73e   : > { %v8405_v29 = vsel %vm8391_vm6, %v8402_v33, %v8404_v48  ;;  %v8474_v63 = vsel %vm8473_vm9, %v8472_v47, 0  ;;  %v8470_v19 = vor.u32 8388608, %v8469_v61  ;;  %v19769_v7 = vxor.u32 2147483648, %v17748_v45 }
 0x73f   : > { %v11562_v10 = vadd.s32 4294967294, %v8114_v44  ;;  %v18057_v28 = vmul.u32.u64.low %v18017_v59, %v8405_v29  ;;  %v18058_v26 = vmul.u32.u64.high %v18017_v59, %v8405_v29, %v18057_v28  ;;  %v19770_v62 = vxor.u32 2147483648, %v17977_v21 }
 0x740   : > { %v18065_v39 = vsel %vm8568_vm13, %v19769_v7, %v17748_v45  ;;  %v8015_v47 = vshll.u32 %v17955_v13, %v17985_v42  ;;  %v8476_v15 = vand.u32 31, %v8474_v63  ;;  %v19771_v28 = vand.u32 2147483647, %v17994_v43 }
 0x741   : > { %v18072_v2 = vsel %vm8672_vm14, %v19770_v62, %v17977_v21  ;;  %v19772_v61 = vcvt.s32.f32 %v17990_v52  ;;  %v19774_v45 = vand.u32 2147483647, %v18001_v9  ;;  %v19775_v51 = vcvt.s32.f32 %v17996_v58 }
 0x742   : > { %vm11563_vm2 = vcmp.lt.s32.totalorder %v11562_v10, 0  ;;  %v8397_v21 = vsel %vm8391_vm6, %v8394_v14, %v8396_v53  ;;  %v18090_v33 = vor.u32 %v18015_v49, %v8015_v47  ;;  %v18094_v13 = vadd.s32 %v17969_v35, %v17975_v30 }
 0x743   : > { %v18080_v36 = vmul.f32 %v19772_v61, %v19771_v28  ;;  %v18086_v6 = vmul.f32 %v19775_v51, %v19774_v45  ;;  %v8416_v42 = vadd.s32 1, %v18053_v25  ;;  %v8477_v52 = vsub.s32 32, %v8476_v15 }
 0x744   : > { %v8020_v43 = vshll.u32 %v18022_v56, 23  ;;  %v8475_v9 = vshrl.u32 %v8474_v63, 5  ;;  %v18098_v50 = vshll.u32 %v8470_v19, 8  ;;  %v19386_v58 = vand.u32 2147483647, %v18045_v34 }
 0x745   : > { %19773 = vst [vmem:[#allocation88_spill] sm:$0xff] %v18080_v36  ;;  %19776 = vst [vmem:[#allocation107_spill] sm:$0xff] %v18086_v6  ;;  %v18101_v60 = vsel %vm11563_vm2, 0, %v11562_v10  ;;  %v8413_v17 = vmul.u32 %v18017_v59, %v8397_v21  ;;  %vm8415_vm4 = vc.u32 %v18058_v26, %v18052_v22  ;;  %v8480_v35 = vshrl.u32 %v19748_v38, %v8477_v52 }
 0x746   : > { %v8417_v30 = vsel %vm8415_vm4, %v8416_v42, %v18053_v25  ;;  %v8479_v49 = vshll.u32 %v19651_v12, %v8476_v15  ;;  %v8482_v56 = vshll.u32 %v19748_v38, %v8476_v15  ;;  %v8483_v14 = vshrl.u32 %v19749_v37, %v8477_v52 }
 0x747   : > { %v8418_v44 = vadd.s32 %v8417_v30, %v8413_v17  ;;  %v8485_v53 = vshll.u32 %v19749_v37, %v8476_v15  ;;  %v8486_v10 = vshrl.u32 %v19750_v8, %v8477_v52  ;;  %v8777_v59 = vand.u32 2139095040, %v18045_v34 }
 0x748   : > { %v8122_v0 = vsub.s32 4294967266, %v18101_v60  ;;  %v8481_v48 = vor.u32 %v8480_v35, %v8479_v49  ;;  %v8484_v29 = vor.u32 %v8483_v14, %v8482_v56  ;;  %vm8494_vm6 = vcmp.lt.s32.totalorder %v8475_v9, 1 }
 0x749   : > { %v8419_v63 = vadd.s32 536870912, %v8418_v44  ;;  %v8487_v25 = vor.u32 %v8486_v10, %v8485_v53  ;;  %v8488_v19 = vshll.u32 %v19750_v8, %v8476_v15  ;;  %v8489_v7 = vshrl.u32 %v19655_v23, %v8477_v52 }
 0x74a   : > { %v8478_v62 = vshrl.u32 %v19651_v12, %v8477_v52  ;;  %v8491_v47 = vshll.u32 %v19655_v23, %v8476_v15  ;;  %v8492_v28 = vshrl.u32 %v19656_v18, %v8477_v52  ;;  %vm8497_vm7 = vcmp.lt.s32.totalorder %v8475_v9, 4 }
 0x74b   : > { %v18120_v61 = vshrl.u32 %v8419_v63, 30  ;;  %v8490_v45 = vor.u32 %v8489_v7, %v8488_v19  ;;  %vm8495_vm9 = vcmp.lt.s32.totalorder %v8475_v9, 2  ;;  %v8499_v51 = vsel %vm8497_vm7, %v8487_v25, 2102212464 }
 0x74c   : > { %v8493_v21 = vor.u32 %v8492_v28, %v8491_v47  ;;  %vm8496_vm2 = vcmp.lt.s32.totalorder %v8475_v9, 3  ;;  %v8498_v42 = vsel %vm8494_vm6, %v8478_v62, %v8481_v48  ;;  %v8502_v17 = vsel %vm8494_vm6, %v8481_v48, %v8484_v29  ;;  %v7193_v48 = vpop.f32.mrf.mxu1  ;;  %v8983_v62 = vld [vmem:[%s19136_s9] sm:$0xf] }
 0x74d   : > { %19777 = vst [vmem:[#allocation91_spill] sm:$0xff] %v18120_v61  ;;  %v8421_v35 = vshll.u32 %v18120_v61, 30  ;;  %v8500_v30 = vsel %vm8496_vm2, %v8484_v29, %v8499_v51  ;;  %v8503_v15 = vsel %vm8497_vm7, %v8490_v45, 920167782  ;;  %v8506_v52 = vsel %vm8494_vm6, %v8484_v29, %v8487_v25  ;;  %v19786_v61 = vld [vmem:[#allocation25_spill] sm:$0xff] }
 0x74e   : > { %v8118_v49 = vsub.s32 32, %v18101_v60  ;;  %v8123_v56 = vadd.s32 127, %v8122_v0  ;;  %v8504_v14 = vsel %vm8496_vm2, %v8487_v25, %v8503_v15  ;;  %v8507_v53 = vsel %vm8497_vm7, %v8493_v21, 1326507024 }
 0x74f   : > { %v18130_v10 = vsub.s32 %v8418_v44, %v8421_v35  ;;  %v8505_v63 = vsel %vm8495_vm9, %v8502_v17, %v8504_v14  ;;  %v8508_v19 = vsel %vm8496_vm2, %v8490_v45, %v8507_v53  ;;  %v8778_v7 = vshrl.u32 %v8777_v59, 23 }
 0x750   : > { %v8501_v47 = vsel %vm8495_vm9, %v8498_v42, %v8500_v30  ;;  %v8509_v29 = vsel %vm8495_vm9, %v8506_v52, %v8508_v19  ;;  %v18139_v0 = vmul.u32.u64.low %v18098_v50, %v8505_v63  ;;  %v18140_v25 = vmul.u32.u64.high %v18098_v50, %v8505_v63, %v18139_v0 }
 0x751   : > { %v8424_v44 = vsub.s32 0, %v18130_v10  ;;  %v18145_v28 = vmul.u32.u64.low %v18098_v50, %v8509_v29  ;;  %v18146_v45 = vmul.u32.u64.high %v18098_v50, %v8509_v29, %v18145_v28  ;;  %v11588_v59 = vadd.s32 4294967169, %v8778_v7  ;;  %v19780_v29 = vld [vmem:[#allocation27_spill] sm:$0xff] }
 0x752   : > { %v18148_v51 = vor.u32 4788187, %v8020_v43  ;;  %v7194_v42 = vadd.f32 %v7193_v48, %v17999_v5  ;;  %v8985_v9 = vsel %vm2474_vm0, %v8983_v62, 0  ;;  %v8781_v35 = vand.u32 8388607, %v19386_v58  ;;  %v19781_v28 = vld [vmem:[#allocation22_spill] sm:$0xff] }
 0x753   : > { %v11573_v17 = vmin.u32 %v8424_v44, %v18130_v10  ;;  %v8784_v30 = vadd.s32 1, %v11588_v59  ;;  %v18156_v15 = vand.u32 4294901760, %v8985_v9  ;;  %v8120_v52 = vshrl.u32 %v18094_v13, %v8118_v49 }
 0x754   : > { %v8124_v14 = vshll.u32 %v8123_v56, 23  ;;  %v8517_v43 = vmul.u32 %v18098_v50, %v8501_v47  ;;  %v8520_v53 = vadd.s32 1, %v18140_v25  ;;  %vm8519_vm4 = vc.u32 %v18146_v45, %v18139_v0  ;;  %v19778_v50 = vld [vmem:[#allocation26_spill] sm:$0xff] }
 0x755   : > { %v8426_v63 = vclz %v11573_v17  ;;  %vm8785_vm6 = vcmp.gt.s32.totalorder %v8784_v30, 0  ;;  %v7235_v5 = vadd.f32 %v19755_v32, %v7194_v42  ;;  %9177 = vmatmul.mubr.f32.vlgmr.msra.gmra.mxu1 %v18156_v15  ;;  %v8119_v19 = vshll.u32 %v18039_v41, %v18101_v60  ;;  %v19782_v17 = vld [vmem:[#allocation15_spill] sm:$0xff] }
 0x756   : > { %v8521_v7 = vsel %vm8519_vm4, %v8520_v53, %v18140_v25  ;;  %v8786_v13 = vsel %vm8785_vm6, %v8784_v30, 0  ;;  %v18169_v49 = vsub.f32 %v8985_v9, %v18156_v15  ;;  %9299 = vmatpush1.msra.mxu1 %v19778_v50  ;;  %v19779_v56 = vmov 0.0  }
 0x757   : > { %9344 = vmatprep.mubr.f32.mxu1 %v19779_v56  ;;  %v11574_v62 = vadd.s32 4294967294, %v8426_v63  ;;  %v8522_v47 = vadd.s32 %v8521_v7, %v8517_v43  ;;  %v8788_v32 = vand.u32 31, %v8786_v13  ;;  %9301 = vmatprep.subr.mxu1 %v19780_v29  ;;  %v18175_v44 = vor.u32 %v8120_v52, %v8119_v19  ;;  %v19784_v63 = vld [vmem:[#allocation12_spill] sm:$0xff] }
 0x758   : > { %v18177_v41 = vor.u32 4788187, %v8124_v14  ;;  %v8414_v60 = vadd.s32 %v18052_v22, %v18058_v26  ;;  %v8782_v25 = vor.u32 8388608, %v8781_v35  ;;  %9303 = vmatpush1.msra.mxu1 %v19781_v28  ;;  %v7276_v9 = vmul.f32 %v19763_v55, %v7235_v5  ;;  %v19783_v22 = vld [vmem:[#allocation13_spill] sm:$0xff] }
 0x759   : > { %vm11575_vm7 = vcmp.lt.s32.totalorder %v11574_v62, 0  ;;  %v8523_v59 = vadd.s32 536870912, %v8522_v47  ;;  %v8789_v42 = vsub.s32 32, %v8788_v32  ;;  %9305 = vmatprep.subr.mxu1 %v19782_v17  ;;  %v18186_v43 = vshrl.u32 %v8786_v13, 5 }
 0x75a   : > { %v18184_v30 = vsel %vm11575_vm7, 0, %v11574_v62  ;;  %v8791_v52 = vshll.u32 %v19651_v12, %v8788_v32  ;;  %v18190_v14 = vand.u32 4294901760, %v18169_v49  ;;  %9307 = vmatpush1.msra.mxu1 %v19783_v22  ;;  %v8794_v53 = vshll.u32 %v19748_v38, %v8788_v32  ;;  %v19785_v62 = vld [vmem:[#allocation7_spill] sm:$0xff] }
 0x75b   : > { %v8434_v26 = vsub.s32 4294967266, %v18184_v30  ;;  %v18194_v35 = vshrl.u32 %v8523_v59, 30  ;;  %v8797_v55 = vshll.u32 %v19749_v37, %v8788_v32  ;;  %9309 = vmatprep.subr.mxu1 %v19784_v63  ;;  %v8792_v5 = vshrl.u32 %v19748_v38, %v8789_v42 }
 0x75c   : > { %v8795_v19 = vshrl.u32 %v19749_v37, %v8789_v42  ;;  %v8798_v7 = vshrl.u32 %v19750_v8, %v8789_v42  ;;  %v8800_v13 = vshll.u32 %v19750_v8, %v8788_v32  ;;  %9311 = vmatpush1.msra.mxu1 %v19785_v62  ;;  %v8430_v58 = vsub.s32 32, %v18184_v30 }
 0x75d   : > { %v8435_v59 = vadd.s32 127, %v8434_v26  ;;  %v8525_v21 = vshll.u32 %v18194_v35, 30  ;;  %v8801_v48 = vshrl.u32 %v19655_v23, %v8789_v42  ;;  %9475 = vmatprep.subr.mxu1 %v19786_v61  ;;  %9348 = vmatmul.mubr.f32.vlgmr.msra.gmra.mxu1 %v18190_v14  ;;  %v8793_v6 = vor.u32 %v8792_v5, %v8791_v52 }
 0x75e   : > { %v8796_v36 = vor.u32 %v8795_v19, %v8794_v53  ;;  %v18209_v34 = vshll.u32 %v8782_v25, 8  ;;  %v18212_v24 = vadd.f32 %v19767_v1, %v7276_v9  ;;  %9477 = vmatpush1.msra.mxu1 %v19778_v50  ;;  %v8799_v26 = vor.u32 %v8798_v7, %v8797_v55  ;;  %9522 = vmatprep.mubr.f32.mxu1 %v19779_v56  ;;  %v19790_v7 = vld [vmem:[#allocation67_spill] sm:$0xff] }
 0x75f   : > { %v18215_v31 = vsub.s32 %v8522_v47, %v8525_v21  ;;  %v8802_v20 = vor.u32 %v8801_v48, %v8800_v13  ;;  %9479 = vmatprep.subr.mxu1 %v19780_v29  ;;  %v8756_v61 = vsub.s32 4, %v17677_v54  ;;  %v8431_v52 = vshll.u32 %v18130_v10, %v18184_v30 }
 0x760   : > { %v8436_v25 = vshll.u32 %v8435_v59, 23  ;;  %v8803_v53 = vshll.u32 %v19655_v23, %v8788_v32  ;;  %v8804_v1 = vshrl.u32 %v19656_v18, %v8789_v42  ;;  %9481 = vmatpush1.msra.mxu1 %v19781_v28  ;;  %v8432_v21 = vshrl.u32 %v8414_v60, %v8430_v58  ;;  %v19805_v32 = vld [vmem:[#allocation31_spill] sm:$0xff] }
 0x761   : > { %v8528_v50 = vsub.s32 0, %v18215_v31  ;;  %v8790_v48 = vshrl.u32 %v19651_v12, %v8789_v42  ;;  %vm8806_vm9 = vcmp.lt.s32.totalorder %v18186_v43, 1  ;;  %9483 = vmatprep.subr.mxu1 %v19782_v17  ;;  %vm8807_vm2 = vcmp.lt.s32.totalorder %v18186_v43, 2 }
 0x762   : > { %v8805_v47 = vor.u32 %v8804_v1, %v8803_v53  ;;  %vm8809_vm4 = vcmp.lt.s32.totalorder %v18186_v43, 4  ;;  %v8814_v10 = vsel %vm8806_vm9, %v8793_v6, %v8796_v36  ;;  %9485 = vmatpush1.msra.mxu1 %v19783_v22  ;;  %v19787_v58 = vand.u32 2147483647, %v19766_v46  ;;  %v19792_v1 = vld [vmem:[#allocation73_spill] sm:$0xff] }
 0x763   : > { %v11577_v29 = vmin.u32 %v8528_v50, %v18215_v31  ;;  %vm8808_vm7 = vcmp.lt.s32.totalorder %v18186_v43, 3  ;;  %v8811_v60 = vsel %vm8809_vm4, %v8799_v26, 2102212464  ;;  %v8815_v28 = vsel %vm8809_vm4, %v8802_v20, 920167782  ;;  %9487 = vmatprep.subr.mxu1 %v19784_v63  ;;  %v19796_v43 = vld [vmem:[#allocation79_spill] sm:$0xff] }
 0x764   : > { %vm18236_vm6 = vcmp.le.f32.partialorder %v19787_v58, 0.7853982  ;;  %v8437_v42 = vor.u32 4788187, %v8436_v25  ;;  %v8816_v9 = vsel %vm8808_vm7, %v8799_v26, %v8815_v28  ;;  %v8818_v17 = vsel %vm8806_vm9, %v8796_v36, %v8799_v26  ;;  %9489 = vmatpush1.msra.mxu1 %v19785_v62  ;;  %v19791_v62 = vld [vmem:[#allocation71_spill] sm:$0xff]  ;;  %v19794_v58 = vld [vmem:[#allocation77_spill] sm:$0xff] }
 0x765   : > { %v8819_v30 = vsel %vm8809_vm4, %v8805_v47, 1326507024  ;;  %v8530_v22 = vclz %v11577_v29  ;;  %v8810_v55 = vsel %vm8806_vm9, %v8790_v48, %v8793_v6  ;;  %v8817_v5 = vsel %vm8807_vm2, %v8814_v10, %v8816_v9  ;;  %9643 = vmatprep.subr.mxu1 %v19790_v7  ;;  %9524 = vmatmul.mubr.f32.vlgmr.msra.gmra.mxu1 %v18156_v15  ;;  %v19793_v10 = vld [vmem:[#allocation75_spill] sm:$0xff]  ;;  %v19795_v9 = vld [vmem:[#allocation78_spill] sm:$0xff] }
 0x766   : > { %v8820_v19 = vsel %vm8808_vm7, %v8802_v20, %v8819_v30  ;;  %v8812_v63 = vsel %vm8808_vm7, %v8796_v36, %v8811_v60  ;;  %v18255_v59 = vmul.u32.u64.low %v18209_v34, %v8817_v5  ;;  %v18256_v26 = vmul.u32.u64.high %v18209_v34, %v8817_v5, %v18255_v59  ;;  %9649 = vmatpush1.msra.mxu1 %v19791_v62  ;;  %9718 = vmatprep.mubr.f32.mxu1 %v19779_v56  ;;  %v19797_v5 = vld [vmem:[#allocation80_spill] sm:$0xff] }
 0x767   : > { %v8821_v13 = vsel %vm8807_vm2, %v8818_v17, %v8820_v19  ;;  %v8433_v6 = vor.u32 %v8432_v21, %v8431_v52  ;;  %v11578_v25 = vadd.s32 4294967294, %v8530_v22  ;;  %9655 = vmatprep.subr.mxu1 %v19792_v1  ;;  %v8518_v36 = vadd.s32 %v18139_v0, %v18146_v45 }
 0x768   : > { %v18261_v20 = vmul.u32.u64.low %v18209_v34, %v8821_v13  ;;  %v18262_v53 = vmul.u32.u64.high %v18209_v34, %v8821_v13, %v18261_v20  ;;  %v8878_v50 = vand.u32 2147483647, %v18212_v24  ;;  %v8881_v48 = vand.u32 2139095040, %v18212_v24  ;;  %9661 = vmatpush1.msra.mxu1 %v19793_v10  ;;  %v19803_v10 = vld [vmem:[#allocation30_spill] sm:$0xff] }
 0x769   : > { %v9063_v47 = vsub.f32 %v18169_v49, %v18190_v14  ;;  %v8438_v52 = vand.u32 2147483647, %v8437_v42  ;;  %vm11579_vm9 = vcmp.lt.s32.totalorder %v11578_v25, 0  ;;  %v8813_v21 = vsel %vm8807_vm2, %v8810_v55, %v8812_v63  ;;  %9667 = vmatprep.subr.mxu1 %v19794_v58 }
 0x76a   : > { %v8757_v0 = vsel %vm8672_vm14, %v8756_v61, %v17677_v54  ;;  %v8533_v45 = vsel %vm11579_vm9, 0, %v11578_v25  ;;  %v8832_v29 = vadd.s32 1, %v18256_v26  ;;  %v8882_v60 = vshrl.u32 %v8881_v48, 23  ;;  %9673 = vmatpush1.msra.mxu1 %v19795_v9  ;;  %v19807_v9 = vld [vmem:[#allocation32_spill] sm:$0xff] }
 0x76b   : > { %v8885_v28 = vand.u32 8388607, %v8878_v50  ;;  %v8440_v42 = vcvt.s32.f32 %v8433_v6  ;;  %v8534_v17 = vsub.s32 32, %v8533_v45  ;;  %v8538_v30 = vsub.s32 4294967266, %v8533_v45  ;;  %9679 = vmatprep.subr.mxu1 %v19796_v43 }
 0x76c   : > { %v8758_v22 = vsel %vm18236_vm6, %v19766_v46, %v18072_v2  ;;  %v8829_v54 = vmul.u32 %v18209_v34, %v8813_v21  ;;  %vm8831_vm14 = vc.u32 %v18262_v53, %v18255_v59  ;;  %v11592_v61 = vadd.s32 4294967169, %v8882_v60  ;;  %9685 = vmatpush1.msra.mxu1 %v19797_v5  ;;  %v19800_v34 = vld [vmem:[#allocation49_spill] sm:$0xff] }
 0x76d   : > { %v18289_v55 = vand.u32 4294901760, %v9063_v47  ;;  %v19798_v19 = vand.u32 2147483647, %v18148_v51  ;;  %v19799_v7 = vcvt.s32.f32 %v18090_v33  ;;  %v8126_v13 = vand.u32 2147483647, %v18177_v41  ;;  %9840 = vmatprep.subr.mxu1 %v19800_v34  ;;  %9720 = vmatmul.mubr.f32.vlgmr.msra.gmra.mxu1 %v18156_v15  ;;  %v19801_v51 = vld [vmem:[#allocation50_spill] sm:$0xff] }
 0x76e   : > { %v18299_v62 = vmul.f32 %v8440_v42, %v8438_v52  ;;  %v8833_v2 = vsel %vm8831_vm14, %v8832_v29, %v18256_v26  ;;  %v8536_v6 = vshrl.u32 %v8518_v36, %v8534_v17  ;;  %v8886_v20 = vor.u32 8388608, %v8885_v28  ;;  %9842 = vmatpush1.msra.mxu1 %v19801_v51  ;;  %v19802_v41 = vld [vmem:[#allocation29_spill] sm:$0xff]  ;;  %v19804_v52 = vld [vmem:[#allocation52_spill] sm:$0xff]  ;;  %v19808_v42 = vld [vmem:[#allocation58_spill] sm:$0xff]  ;;  %9887 = vmatprep.mubr.f32.mxu1 %v19779_v56 }
 0x76f   : > { %v18296_v63 = vmul.f32 %v19799_v7, %v19798_v19  ;;  %v8834_v25 = vadd.s32 %v8833_v2, %v8829_v54  ;;  %v8888_v1 = vadd.s32 1, %v11592_v61  ;;  %9065 = vmatmul.mubr.f32.vlgmr.msra.gmra.mxu0 %v18289_v55  ;;  %v8128_v33 = vcvt.s32.f32 %v18175_v44  ;;  %9844 = vmatprep.subr.mxu1 %v19804_v52  ;;  %v19814_v54 = vld [vmem:[#allocation101_spill] sm:$0xff]  ;;  %v19816_v2 = vld [vmem:[#allocation62_spill] sm:$0xff] }
 0x770   : > { %v8539_v48 = vadd.s32 127, %v8538_v30  ;;  %9212 = vmatpush1.msra.mxu0 %v19802_v41  ;;  %9263 = vmatprep.mubr.f32.mxu0 %v19779_v56  ;;  %v8759_v26 = vsel %vm18236_vm6, 0, %v8757_v0  ;;  %12131 = vsinq.f32 %v8758_v22  ;;  %v8535_v36 = vshll.u32 %v18215_v31, %v8533_v45  ;;  %v19806_v0 = vld [vmem:[#allocation53_spill] sm:$0xff]  ;;  %v19809_v30 = vld [vmem:[#allocation35_spill] sm:$0xff] }
 0x771   : > { %v8835_v47 = vadd.s32 536870912, %v8834_v25  ;;  %vm8889_vm2 = vcmp.gt.s32.totalorder %v8888_v1, 0  ;;  %9215 = vmatprep.subr.mxu0 %v19803_v10  ;;  %12133 = vcosq.f32 %v8758_v22  ;;  %v18314_v21 = vmul.f32 %v8128_v33, %v8126_v13  ;;  %9846 = vmatpush1.msra.mxu1 %v19806_v0  ;;  %v19815_v13 = vld [vmem:[#allocation42_spill] sm:$0xff]  ;;  %v19817_v41 = vld [vmem:[#allocation43_spill] sm:$0xff]  ;;  %v19827_v22 = vld [vmem:[#allocation117_spill] sm:$0xff] }
 0x772   : > { %v8442_v44 = vxor.u32 2147483648, %v18299_v62  ;;  %v18318_v58 = vadd.s32 %v18255_v59, %v18262_v53  ;;  %v8890_v29 = vsel %vm8889_vm2, %v8888_v1, 0  ;;  %9218 = vmatpush1.msra.mxu0 %v19805_v32  ;;  %v18322_v31 = vor.u32 %v8536_v6, %v8535_v36  ;;  %9848 = vmatprep.subr.mxu1 %v19808_v42  ;;  %v19810_v59 = vld [vmem:[#allocation60_spill] sm:$0xff] }
 0x773   : > { %v18324_v45 = vshrl.u32 %v8835_v47, 30  ;;  %v8892_v60 = vand.u32 31, %v8890_v29  ;;  %v18326_v28 = vshll.u32 %v8886_v20, 8  ;;  %9221 = vmatprep.subr.mxu0 %v19807_v9  ;;  %v8540_v17 = vshll.u32 %v8539_v48, 23  ;;  %9850 = vmatpush1.msra.mxu1 %v19810_v59 }
 0x774   : > { %9224 = vmatpush1.msra.mxu0 %v19809_v30  ;;  %v8763_v53 = vadd.s32 3, %v8759_v26  ;;  %v19811_v43 = vand.u32 2147483647, %v19765_v57  ;;  %v8652_v61 = vsub.s32 4, %v19814_v54  ;;  %v18340_v19 = vshrl.u32 %v8890_v29, 5  ;;  %9852 = vmatprep.subr.mxu1 %v19816_v2 }
 0x775   : > { %v8837_v5 = vshll.u32 %v18324_v45, 30  ;;  %v8893_v7 = vsub.s32 32, %v8892_v60  ;;  %9227 = vmatprep.subr.mxu0 %v19815_v13  ;;  %v8895_v20 = vshll.u32 %v19651_v12, %v8892_v60  ;;  %v8898_v1 = vshll.u32 %v19748_v38, %v8892_v60 }
 0x776   : > { %vm18334_vm4 = vcmp.le.f32.partialorder %v19811_v43, 0.7853982  ;;  %v8901_v33 = vshll.u32 %v19749_v37, %v8892_v60  ;;  %v8904_v48 = vshll.u32 %v19750_v8, %v8892_v60  ;;  %9230 = vmatpush1.msra.mxu0 %v19817_v41  ;;  %v8907_v10 = vshll.u32 %v19655_v23, %v8892_v60 }
 0x777   : > { %v18348_v6 = vsel %vm18334_vm4, %v19765_v57, %v18065_v39  ;;  %v18355_v26 = vsub.s32 %v8834_v25, %v8837_v5  ;;  %v8896_v36 = vshrl.u32 %v19748_v38, %v8893_v7  ;;  %v8899_v47 = vshrl.u32 %v19749_v37, %v8893_v7  ;;  %v19818_v39 = vld [vmem:[#allocation33_spill] sm:$0xff]  ;;  %9266 = vmatmul.mubr.f32.vlgmr.msra.gmra.mxu0 %v18169_v49  ;;  %v19820_v5 = vld [vmem:[#allocation34_spill] sm:$0xff] }
 0x778   : > { %9381 = vmatprep.subr.mxu0 %v19818_v39  ;;  %v18361_v29 = vor.u32 4788187, %v8540_v17  ;;  %v8902_v32 = vshrl.u32 %v19750_v8, %v8893_v7  ;;  %v8905_v9 = vshrl.u32 %v19655_v23, %v8893_v7  ;;  %v8908_v30 = vshrl.u32 %v19656_v18, %v8893_v7  ;;  %v19819_v25 = vld [vmem:[#allocation65_spill] sm:$0xff]  ;;  %9442 = vmatprep.mubr.f32.mxu0 %v19779_v56  ;;  %v19821_v23 = vld [vmem:[#allocation36_spill] sm:$0xff] }
 0x779   : > { %9854 = vmatpush1.msra.mxu1 %v19819_v25  ;;  %v8840_v38 = vsub.s32 0, %v18355_v26  ;;  %v8894_v37 = vshrl.u32 %v19651_v12, %v8893_v7  ;;  %v8897_v43 = vor.u32 %v8896_v36, %v8895_v20  ;;  %v8900_v60 = vor.u32 %v8899_v47, %v8898_v1  ;;  %9385 = vmatpush1.msra.mxu0 %v19820_v5  ;;  %v19822_v12 = vld [vmem:[#allocation37_spill] sm:$0xff] }
 0x77a   : > { %v8903_v17 = vor.u32 %v8902_v32, %v8901_v33  ;;  %v8906_v8 = vor.u32 %v8905_v9, %v8904_v48  ;;  %v8909_v13 = vor.u32 %v8908_v30, %v8907_v10  ;;  %vm8910_vm6 = vcmp.lt.s32.totalorder %v18340_v19, 1  ;;  %9389 = vmatprep.subr.mxu0 %v19821_v23  ;;  %v19823_v48 = vld [vmem:[#allocation38_spill] sm:$0xff]  ;;  %10018 = vmatprep.subr.mxu1 %v19800_v34  ;;  %v19824_v32 = vld [vmem:[#allocation39_spill] sm:$0xff] }
 0x77b   : > { %v11589_v18 = vmin.u32 %v8840_v38, %v18355_v26  ;;  %vm8911_vm7 = vcmp.lt.s32.totalorder %v18340_v19, 2  ;;  %vm8912_vm9 = vcmp.lt.s32.totalorder %v18340_v19, 3  ;;  %vm8913_vm14 = vcmp.lt.s32.totalorder %v18340_v19, 4  ;;  %9393 = vmatpush1.msra.mxu0 %v19822_v12  ;;  %9891 = vmatmul.mubr.f32.vlgmr.msra.gmra.mxu1 %v18190_v14 }
 0x77c   : > { %v8914_v7 = vsel %vm8910_vm6, %v8894_v37, %v8897_v43  ;;  %v8915_v20 = vsel %vm8913_vm14, %v8903_v17, 2102212464  ;;  %v8918_v1 = vsel %vm8910_vm6, %v8897_v43, %v8900_v60  ;;  %v8919_v33 = vsel %vm8913_vm14, %v8906_v8, 920167782  ;;  %9397 = vmatprep.subr.mxu0 %v19823_v48  ;;  %v19825_v43 = vld [vmem:[#allocation45_spill] sm:$0xff]  ;;  %10020 = vmatpush1.msra.mxu1 %v19801_v51 }
 0x77d   : > { %v12132_v41 = vpop.eup %12131  ;;  %v8842_v36 = vclz %v11589_v18  ;;  %v8916_v47 = vsel %vm8912_vm9, %v8900_v60, %v8915_v20  ;;  %v8920_v10 = vsel %vm8912_vm9, %v8903_v17, %v8919_v33  ;;  %v8922_v39 = vsel %vm8910_vm6, %v8900_v60, %v8903_v17  ;;  %9401 = vmatpush1.msra.mxu0 %v19824_v32  ;;  %10022 = vmatprep.subr.mxu1 %v19804_v52 }
 0x77e   : > { %v12134_v9 = vpop.eup %12133  ;;  %v8544_v30 = vcvt.s32.f32 %v18322_v31  ;;  %v8921_v38 = vsel %vm8911_vm7, %v8918_v1, %v8920_v10  ;;  %v8923_v37 = vsel %vm8913_vm14, %v8909_v13, 1326507024  ;;  %9405 = vmatprep.subr.mxu0 %v19825_v43  ;;  %v8764_v5 = vand.u32 3, %v8763_v53  ;;  %v19826_v31 = vld [vmem:[#allocation46_spill] sm:$0xff]  ;;  %10024 = vmatpush1.msra.mxu1 %v19806_v0  ;;  %v19833_v43 = vld [vmem:[#allocation56_spill] sm:$0xff] }
 0x77f   : > { %v11590_v23 = vadd.s32 4294967294, %v8842_v36  ;;  %v8924_v60 = vsel %vm8912_vm9, %v8906_v8, %v8923_v37  ;;  %v18408_v14 = vmul.u32.u64.low %v18326_v28, %v8921_v38  ;;  %v18409_v17 = vmul.u32.u64.high %v18326_v28, %v8921_v38, %v18408_v14  ;;  %9409 = vmatpush1.msra.mxu0 %v19826_v31  ;;  %10026 = vmatprep.subr.mxu1 %v19808_v42 }
 0x780   : > { %v8917_v13 = vsel %vm8911_vm7, %v8914_v7, %v8916_v47  ;;  %v8925_v53 = vsel %vm8911_vm7, %v8922_v39, %v8924_v60  ;;  %9555 = vmatprep.subr.mxu0 %v19800_v34  ;;  %9444 = vmatmul.mubr.f32.vlgmr.msra.gmra.mxu0 %v18156_v15  ;;  %v8767_v8 = vxor.u32 2147483648, %v12132_v41  ;;  %v8653_v18 = vsel %vm8568_vm13, %v8652_v61, %v19814_v54  ;;  %v19834_v60 = vld [vmem:[#allocation57_spill] sm:$0xff] }
 0x781   : > { %vm11591_vm2 = vcmp.lt.s32.totalorder %v11590_v23, 0  ;;  %v18426_v12 = vmul.u32.u64.low %v18326_v28, %v8925_v53  ;;  %v18427_v20 = vmul.u32.u64.high %v18326_v28, %v8925_v53, %v18426_v12  ;;  %9557 = vmatpush1.msra.mxu0 %v19801_v51  ;;  %9602 = vmatprep.mubr.f32.mxu0 %v19779_v56  ;;  %v8770_v19 = vxor.u32 2147483648, %v12134_v9 }
 0x782   : > { %v8542_v34 = vand.u32 2147483647, %v18361_v29  ;;  %v8845_v7 = vsel %vm11591_vm2, 0, %v11590_v23  ;;  %9559 = vmatprep.subr.mxu0 %v19804_v52  ;;  %vm8766_vm6 = vcmp.eq.s32.totalorder %v8764_v5, 0  ;;  %12135 = vcosq.f32 %v18348_v6  ;;  %10028 = vmatpush1.msra.mxu1 %v19810_v59 }
 0x783   : > { %v8846_v54 = vsub.s32 32, %v8845_v7  ;;  %v8850_v61 = vsub.s32 4294967266, %v8845_v7  ;;  %v8936_v1 = vadd.s32 1, %v18409_v17  ;;  %9561 = vmatpush1.msra.mxu0 %v19806_v0  ;;  %vm8769_vm13 = vcmp.eq.s32.totalorder %v8764_v5, 2  ;;  %10030 = vmatprep.subr.mxu1 %v19816_v2 }
 0x784   : > { %v8933_v51 = vmul.u32 %v18326_v28, %v8917_v13  ;;  %9563 = vmatprep.subr.mxu0 %v19808_v42  ;;  %v8768_v29 = vsel %vm8766_vm6, %v12134_v9, %v8767_v8  ;;  %v8655_v52 = vsel %vm18334_vm4, 0, %v8653_v18  ;;  %12137 = vsinq.f32 %v18348_v6  ;;  %10032 = vmatpush1.msra.mxu1 %v19819_v25  ;;  %v19838_v13 = vld [vmem:[#allocation64_spill] sm:$0xff] }
 0x785   : > { %v8848_v33 = vshrl.u32 %v18318_v58, %v8846_v54  ;;  %v8851_v48 = vadd.s32 127, %v8850_v61  ;;  %vm8935_vm7 = vc.u32 %v18427_v20, %v18408_v14  ;;  %9565 = vmatpush1.msra.mxu0 %v19810_v59  ;;  %v8771_v0 = vsel %vm8769_vm13, %v8770_v19, %v12132_v41  ;;  %10065 = vmatprep.mubr.f32.mxu1 %v19779_v56  ;;  %v19828_v41 = vld [vmem:[#allocation51_spill] sm:$0xff]  ;;  %v19839_v8 = vld [vmem:[#allocation48_spill] sm:$0xff] }
 0x786   : > { %v18449_v28 = vmul.f32 %v8544_v30, %v8542_v34  ;;  %v8937_v42 = vsel %vm8935_vm7, %v8936_v1, %v18409_v17  ;;  %9567 = vmatprep.subr.mxu0 %v19816_v2  ;;  %vm8765_vm4 = vcmp.lt.s32.totalorder %v8764_v5, 2  ;;  %v8340_v6 = vsub.s32 4, %v19827_v22  ;;  %v19832_v30 = vld [vmem:[#allocation54_spill] sm:$0xff]  ;;  %10067 = vmatmul.mubr.f32.vlgmr.msra.gmra.mxu1 %v18156_v15  ;;  %v19841_v54 = vld [vmem:[#allocation68_spill] sm:$0xff]  ;;  %v19845_v1 = vld [vmem:[#allocation89_spill] sm:$0xff] }
 0x787   : > { %v8847_v58 = vshll.u32 %v18355_v26, %v8845_v7  ;;  %v8852_v36 = vshll.u32 %v8851_v48, 23  ;;  %v8938_v47 = vadd.s32 %v8937_v42, %v8933_v51  ;;  %9569 = vmatpush1.msra.mxu0 %v19819_v25  ;;  %v8659_v59 = vadd.s32 3, %v8655_v52  ;;  %10264 = vmatprep.mubr.f32.mxu1 %v19779_v56  ;;  %v19840_v34 = vld [vmem:[#allocation66_spill] sm:$0xff] }
 0x788   : > { %9752 = vmatprep.subr.mxu0 %v19828_v41  ;;  %9608 = vmatmul.mubr.f32.vlgmr.msra.gmra.mxu0 %v18289_v55  ;;  %vm8762_vm9 = vweird.f32 %v19766_v46  ;;  %v8772_v2 = vsel %vm8765_vm4, %v8768_v29, %v8771_v0  ;;  %v19829_v10 = vand.u32 2147483647, %v19720_v4  ;;  %v8341_v26 = vsel %vm8256_vm8, %v8340_v6, %v19827_v22  ;;  %v19847_v22 = vld [vmem:[#allocation55_spill] sm:$0xff] }
 0x789   : > { %v8849_v25 = vor.u32 %v8848_v33, %v8847_v58  ;;  %v8853_v32 = vor.u32 4788187, %v8852_v36  ;;  %v8939_v9 = vadd.s32 536870912, %v8938_v47  ;;  %9755 = vmatpush1.msra.mxu0 %v19832_v30  ;;  %9806 = vmatprep.mubr.f32.mxu0 %v19779_v56  ;;  %v8546_v38 = vxor.u32 2147483648, %v18449_v28  ;;  %v19846_v33 = vld [vmem:[#allocation70_spill] sm:$0xff]  ;;  %v19848_v41 = vld [vmem:[#allocation59_spill] sm:$0xff] }
 0x78a   : > { %vm18463_vm14 = vcmp.le.f32.partialorder %v19829_v10, 0.7853982  ;;  %v18479_v37 = vadd.s32 %v18408_v14, %v18427_v20  ;;  %9758 = vmatprep.subr.mxu0 %v19833_v43  ;;  %v8660_v17 = vand.u32 3, %v8659_v59  ;;  %v18498_v53 = vsel %vm8762_vm9, nan, %v8772_v2  ;;  %v19849_v10 = vld [vmem:[#allocation61_spill] sm:$0xff] }
 0x78b   : > { %v8342_v55 = vsel %vm18463_vm14, %v19720_v4, %v17691_v3  ;;  %v8343_v5 = vsel %vm18463_vm14, 0, %v8341_v26  ;;  %v18485_v23 = vshrl.u32 %v8939_v9, 30  ;;  %9761 = vmatpush1.msra.mxu0 %v19834_v60  ;;  %v19835_v3 = vand.u32 2147483647, %v16916_v11  ;;  %v19852_v60 = vld [vmem:[#allocation41_spill] sm:$0xff] }
 0x78c   : > { %12139 = vcosq.f32 %v8342_v55  ;;  %v8854_v14 = vand.u32 2147483647, %v8853_v32  ;;  %9764 = vmatprep.subr.mxu0 %v19838_v13  ;;  %v8236_v18 = vsub.s32 4, %v19839_v8  ;;  %v8856_v20 = vcvt.s32.f32 %v8849_v25  ;;  %v19850_v32 = vld [vmem:[#allocation63_spill] sm:$0xff] }
 0x78d   : > { %12141 = vsinq.f32 %v8342_v55  ;;  %vm18490_vm8 = vcmp.le.f32.partialorder %v19835_v3, 0.7853982  ;;  %v8941_v19 = vshll.u32 %v18485_v23, 30  ;;  %9767 = vmatpush1.msra.mxu0 %v19840_v34  ;;  %vm8658_vm2 = vweird.f32 %v19765_v57  ;;  %v19851_v55 = vld [vmem:[#allocation69_spill] sm:$0xff]  ;;  %v19860_v57 = vld [vmem:[#allocation102_spill] sm:$0xff] }
 0x78e   : > { %v8238_v12 = vsel %vm18490_vm8, %v16916_v11, %v17616_v40  ;;  %v8347_v7 = vadd.s32 3, %v8343_v5  ;;  %9770 = vmatprep.subr.mxu0 %v19841_v54  ;;  %v8237_v46 = vsel %vm8152_vm11, %v8236_v18, %v19839_v8  ;;  %v19842_v61 = vand.u32 2147483647, %v17039_v16  ;;  %v19854_v8 = vld [vmem:[#allocation74_spill] sm:$0xff] }
 0x78f   : > { %12143 = vcosq.f32 %v8238_v12  ;;  %v7924_v51 = vsub.s32 4, %v19845_v1  ;;  %v12136_v29 = vpop.eup %12135  ;;  %v18519_v52 = vsub.s32 %v8938_v47, %v8941_v19  ;;  %9773 = vmatpush1.msra.mxu0 %v19846_v33  ;;  %v18523_v48 = vand.u32 4294901760, %v18498_v53 }
 0x790   : > { %12145 = vsinq.f32 %v8238_v12  ;;  %vm18514_vm6 = vcmp.le.f32.partialorder %v19842_v61, 0.7853982  ;;  %vm8665_vm13 = vcmp.eq.s32.totalorder %v8660_v17, 2  ;;  %v18529_v42 = vmul.f32 %v8856_v20, %v8854_v14  ;;  %9924 = vmatprep.subr.mxu0 %v19847_v22  ;;  %9809 = vmatmul.mubr.f32.vlgmr.msra.gmra.mxu0 %v18169_v49  ;;  %v19853_v14 = vld [vmem:[#allocation72_spill] sm:$0xff] }
 0x791   : > { %v7926_v0 = vsel %vm18514_vm6, %v17039_v16, %v17640_v27  ;;  %v8666_v6 = vxor.u32 2147483648, %v12136_v29  ;;  %v8239_v58 = vsel %vm18490_vm8, 0, %v8237_v46  ;;  %v7925_v36 = vsel %vm7840_vm3, %v7924_v51, %v19845_v1  ;;  %v12138_v47 = vpop.eup %12137  ;;  %9928 = vmatpush1.msra.mxu0 %v19848_v41  ;;  %9985 = vmatprep.mubr.f32.mxu0 %v19779_v56  ;;  %v19855_v20 = vld [vmem:[#allocation100_spill] sm:$0xff] }
 0x792   : > { %v8944_v59 = vsub.s32 0, %v18519_v52  ;;  %v8348_v27 = vand.u32 3, %v8347_v7  ;;  %v8243_v2 = vadd.s32 3, %v8239_v58  ;;  %v7927_v49 = vsel %vm18514_vm6, 0, %v7925_v36  ;;  %9932 = vmatprep.subr.mxu0 %v19849_v10  ;;  %v19859_v46 = vld [vmem:[#allocation76_spill] sm:$0xff] }
 0x793   : > { %vm8661_vm11 = vcmp.lt.s32.totalorder %v8660_v17, 2  ;;  %v8663_v39 = vxor.u32 2147483648, %v12138_v47  ;;  %v8667_v26 = vsel %vm8665_vm13, %v8666_v6, %v12138_v47  ;;  %12147 = vcosq.f32 %v7926_v0  ;;  %9936 = vmatpush1.msra.mxu0 %v19850_v32 }
 0x794   : > { %v11593_v25 = vmin.u32 %v8944_v59, %v18519_v52  ;;  %vm8662_vm3 = vcmp.eq.s32.totalorder %v8660_v17, 0  ;;  %12149 = vsinq.f32 %v7926_v0  ;;  %v7931_v9 = vadd.s32 3, %v7927_v49  ;;  %9940 = vmatprep.subr.mxu0 %v19851_v55 }
 0x795   : > { %v8858_v30 = vxor.u32 2147483648, %v18529_v42  ;;  %v8664_v43 = vsel %vm8662_vm3, %v12136_v29, %v8663_v39  ;;  %vm8346_vm7 = vweird.f32 %v19720_v4  ;;  %v8244_v5 = vand.u32 3, %v8243_v2  ;;  %9944 = vmatpush1.msra.mxu0 %v19853_v14 }
 0x796   : > { %v7820_v3 = vsub.s32 4, %v19852_v60  ;;  %v8946_v31 = vclz %v11593_v25  ;;  %v8668_v13 = vsel %vm8661_vm11, %v8664_v43, %v8667_v26  ;;  %vm8349_vm4 = vcmp.lt.s32.totalorder %v8348_v27, 2  ;;  %9948 = vmatprep.subr.mxu0 %v19854_v8 }
 0x797   : > { %vm8350_vm9 = vcmp.eq.s32.totalorder %v8348_v27, 0  ;;  %v8669_v18 = vsel %vm8658_vm2, nan, %v8668_v13  ;;  %v18556_v12 = vand.u32 3, %v7931_v9  ;;  %v19856_v19 = vand.u32 2147483647, %v19855_v20  ;;  %9952 = vmatpush1.msra.mxu0 %v19859_v46 }
 0x798   : > { %v7821_v17 = vsel %vm7736_vm12, %v7820_v3, %v19852_v60  ;;  %v11594_v54 = vadd.s32 4294967294, %v8946_v31  ;;  %v18568_v61 = vand.u32 4294901760, %v8669_v18  ;;  %vm8242_vm8 = vweird.f32 %v16916_v11  ;;  %10101 = vmatprep.subr.mxu0 %v18523_v48  ;;  %9987 = vmatmul.mubr.f32.vlgmr.msra.gmra.mxu0 %v18156_v15 }
 0x799   : > { %vm18560_vm14 = vcmp.le.f32.partialorder %v19856_v19, 0.7853982  ;;  %v12140_v7 = vpop.eup %12139  ;;  %vm8353_vm12 = vcmp.eq.s32.totalorder %v8348_v27, 2  ;;  %vm8245_vm2 = vcmp.lt.s32.totalorder %v8244_v5, 2  ;;  %vm8246_vm6 = vcmp.eq.s32.totalorder %v8244_v5, 0  ;;  %10148 = vmatprep.mubr.f32.mxu0 %v19779_v56  ;;  %v19862_v19 = vld [vmem:[#allocation98_spill] sm:$0xff] }
 0x79a   : > { %v7822_v40 = vsel %vm18560_vm14, %v19855_v20, %v19860_v57  ;;  %v7823_v1 = vsel %vm18560_vm14, 0, %v7821_v17  ;;  %v12142_v51 = vpop.eup %12141  ;;  %v8354_v29 = vxor.u32 2147483648, %v12140_v7  ;;  %vm11595_vm13 = vcmp.lt.s32.totalorder %v11594_v54, 0  ;;  %10103 = vmatpush1.msra.mxu0 %v18568_v61 }
 0x79b   : > { %v8351_v33 = vxor.u32 2147483648, %v12142_v51  ;;  %vm8249_vm11 = vcmp.eq.s32.totalorder %v8244_v5, 2  ;;  %12151 = vcosq.f32 %v7822_v40  ;;  %v8949_v22 = vsel %vm11595_vm13, 0, %v11594_v54 }
 0x79c   : > { %v12144_v0 = vpop.eup %12143  ;;  %v8355_v6 = vsel %vm8353_vm12, %v8354_v29, %v12142_v51  ;;  %12153 = vsinq.f32 %v7822_v40  ;;  %v7827_v58 = vadd.s32 3, %v7823_v1  ;;  %v8950_v47 = vsub.s32 32, %v8949_v22  ;;  %v19864_v51 = vld [vmem:[#allocation93_spill] sm:$0xff] }
 0x79d   : > { %v12146_v36 = vpop.eup %12145  ;;  %v8951_v15 = vshll.u32 %v18519_v52, %v8949_v22  ;;  %v8954_v59 = vsub.s32 4294967266, %v8949_v22  ;;  %v8352_v41 = vsel %vm8350_vm9, %v12140_v7, %v8351_v33  ;;  %vm7933_vm3 = vcmp.lt.s32.totalorder %v18556_v12, 2  ;;  %v19861_v52 = vld [vmem:[#allocation82_spill] sm:$0xff]  ;;  %v8982_v33 = vld [vmem:[%s19135_s8] sm:$0xf] }
 0x79e   : > { %v8356_v2 = vsel %vm8349_vm4, %v8352_v41, %v8355_v6  ;;  %v8247_v49 = vxor.u32 2147483648, %v12146_v36  ;;  %v8250_v10 = vxor.u32 2147483648, %v12144_v0  ;;  %vm7930_vm14 = vweird.f32 %v17039_v16  ;;  %v19865_v6 = vld [vmem:[#allocation47_spill] sm:$0xff] }
 0x79f   : > { %v18586_v39 = vand.u32 3, %v7827_v58  ;;  %v8952_v26 = vshrl.u32 %v18479_v37, %v8950_v47  ;;  %v8955_v25 = vadd.s32 127, %v8954_v59  ;;  %v18591_v32 = vsel %vm8346_vm7, nan, %v8356_v2  ;;  %v19867_v2 = vld [vmem:[#allocation44_spill] sm:$0xff] }
 0x7a0   : > { %v7508_v9 = vsub.s32 4, %v19861_v52  ;;  %v18595_v55 = vand.u32 4294901760, %v18591_v32  ;;  %v8248_v27 = vsel %vm8246_vm6, %v12144_v0, %v8247_v49  ;;  %v8251_v43 = vsel %vm8249_vm11, %v8250_v10, %v12146_v36  ;;  %v12148_v60 = vpop.eup %12147  ;;  %v19866_v36 = vld [vmem:[#allocation104_spill] sm:$0xff] }
 0x7a1   : > { %vm7934_vm4 = vcmp.eq.s32.totalorder %v18556_v12, 0  ;;  %v8953_v3 = vor.u32 %v8952_v26, %v8951_v15  ;;  %v8956_v31 = vshll.u32 %v8955_v25, 23  ;;  %v8252_v37 = vsel %vm8245_vm2, %v8248_v27, %v8251_v43  ;;  %v12150_v4 = vpop.eup %12149  ;;  %v19868_v25 = vld [vmem:[#allocation97_spill] sm:$0xff] }
 0x7a2   : > { %vm7937_vm9 = vcmp.eq.s32.totalorder %v18556_v12, 2  ;;  %vm8880_vm7 = vcmp.lt.s32.totalorder %v18212_v24, 0  ;;  %v18604_v14 = vsub.f32 %v8669_v18, %v18568_v61  ;;  %10105 = vmatprep.subr.mxu0 %v18595_v55  ;;  %v8253_v13 = vsel %vm8242_vm8, nan, %v8252_v37  ;;  %v19869_v12 = vld [vmem:[#allocation109_spill] sm:$0xff] }
 0x7a3   : > { %v7938_v8 = vxor.u32 2147483648, %v12148_v60  ;;  %v7509_v34 = vsel %vm7424_vm5, %v7508_v9, %v19861_v52  ;;  %v8957_v5 = vor.u32 4788187, %v8956_v31  ;;  %v18612_v17 = vand.u32 4294901760, %v8253_v13 }
 0x7a4   : > { %v7935_v7 = vxor.u32 2147483648, %v12150_v4  ;;  %vm7830_vm12 = vcmp.eq.s32.totalorder %v18586_v39, 0  ;;  %vm7833_vm2 = vcmp.eq.s32.totalorder %v18586_v39, 2  ;;  %v8960_v18 = vcvt.s32.f32 %v8953_v3 }
 0x7a5   : > { %v7939_v54 = vsel %vm7937_vm9, %v7938_v8, %v12150_v4  ;;  %vm7829_vm6 = vcmp.lt.s32.totalorder %v18586_v39, 2  ;;  %v7511_v11 = vsel %vm17430_vm15, 0, %v7509_v34  ;;  %vm7514_vm8 = vweird.f32 %v19862_v19  ;;  %10107 = vmatpush1.msra.mxu0 %v18612_v17 }
 0x7a6   : > { %v8958_v57 = vand.u32 2147483647, %v8957_v5  ;;  %v7936_v40 = vsel %vm7934_vm4, %v12148_v60, %v7935_v7  ;;  %vm7826_vm5 = vweird.f32 %v19855_v20  ;;  %v7515_v1 = vadd.s32 3, %v7511_v11  ;;  %v19871_v7 = vld [vmem:[#allocation111_spill] sm:$0xff] }
 0x7a7   : > { %v7519_v29 = vxor.u32 2147483648, %v19864_v51  ;;  %v18629_v0 = vsub.f32 %v8253_v13, %v18612_v17  ;;  %v7940_v22 = vsel %vm7933_vm3, %v7936_v40, %v7939_v54  ;;  %v7522_v58 = vxor.u32 2147483648, %v19865_v6 }
 0x7a8   : > { %v7404_v47 = vsub.s32 4, %v19866_v36  ;;  %v8961_v15 = vmul.f32 %v8960_v18, %v8958_v57  ;;  %v7941_v59 = vsel %vm7930_vm14, nan, %v7940_v22  ;;  %v7516_v41 = vand.u32 3, %v7515_v1  ;;  %v12152_v10 = vpop.eup %12151 }
 0x7a9   : > { %v7415_v49 = vxor.u32 2147483648, %v19867_v2  ;;  %v18638_v26 = vand.u32 4294901760, %v7941_v59  ;;  %v7418_v9 = vxor.u32 2147483648, %v19869_v12  ;;  %v10074_v27 = vsel %vm2474_vm0, %v8982_v33, 0  ;;  %v12154_v43 = vpop.eup %12153 }
 0x7aa   : > { %v7405_v52 = vsel %vm7320_vm10, %v7404_v47, %v19866_v36  ;;  %v8962_v60 = vxor.u32 2147483648, %v8961_v15  ;;  %v7834_v3 = vxor.u32 2147483648, %v12152_v10  ;;  %vm7517_vm15 = vcmp.lt.s32.totalorder %v7516_v41, 2  ;;  %v19872_v36 = vld [vmem:[#allocation105_spill] sm:$0xff] }
 0x7ab   : > { %vm7518_vm13 = vcmp.eq.s32.totalorder %v7516_v41, 0  ;;  %vm7410_vm11 = vweird.f32 %v19868_v25  ;;  %10109 = vmatprep.subr.mxu0 %v18638_v26  ;;  %v7831_v16 = vxor.u32 2147483648, %v12154_v43  ;;  %vm7521_vm3 = vcmp.eq.s32.totalorder %v7516_v41, 2 }
 0x7ac   : > { %v7520_v31 = vsel %vm7518_vm13, %v19865_v6, %v7519_v29  ;;  %v7407_v4 = vsel %vm17272_vm1, 0, %v7405_v52  ;;  %v18652_v13 = vsel %vm8880_vm7, %v8962_v60, %v8961_v15  ;;  %v7835_v8 = vsel %vm7833_vm2, %v7834_v3, %v12154_v43 }
 0x7ad   : > { %v7523_v34 = vsel %vm7521_vm3, %v7522_v58, %v19864_v51  ;;  %v7411_v5 = vadd.s32 3, %v7407_v4  ;;  %vm8776_vm0 = vcmp.lt.s32.totalorder %v19871_v7, 0  ;;  %v7832_v18 = vsel %vm7830_vm12, %v12152_v10, %v7831_v16 }
 0x7ae   : > { %v7524_v54 = vsel %vm7517_vm15, %v7520_v31, %v7523_v34  ;;  %v18660_v46 = vand.u32 4294901760, %v10074_v27  ;;  %v18664_v11 = vsub.f32 %v18498_v53, %v18523_v48  ;;  %v7836_v57 = vsel %vm7829_vm6, %v7832_v18, %v7835_v8 }
 0x7af   : > { %v7525_v40 = vsel %vm7514_vm8, nan, %v7524_v54  ;;  %v7412_v1 = vand.u32 3, %v7411_v5  ;;  %v10192_v51 = vand.u32 4294901760, %v18604_v14  ;;  %v7837_v29 = vsel %vm7826_vm5, nan, %v7836_v57 }
 0x7b0   : > { %v18673_v33 = vand.u32 4294901760, %v7525_v40  ;;  %v18676_v22 = vsub.f32 %v10074_v27, %v18660_v46  ;;  %v10186_v53 = vand.u32 4294901760, %v18664_v11  ;;  %v18679_v6 = vand.u32 4294901760, %v7837_v29 }
 0x7b1   : > { %vm7413_vm10 = vcmp.lt.s32.totalorder %v7412_v1, 2  ;;  %vm7414_vm1 = vcmp.eq.s32.totalorder %v7412_v1, 0  ;;  %vm7417_vm14 = vcmp.eq.s32.totalorder %v7412_v1, 2  ;;  %vm8464_vm4 = vcmp.lt.s32.totalorder %v19872_v36, 0 }
 0x7b2   : > { %v7416_v39 = vsel %vm7414_vm1, %v19869_v12, %v7415_v49  ;;  %v7419_v19 = vsel %vm7417_vm14, %v7418_v9, %v19867_v2  ;;  %v18684_v58 = vand.u32 4294901760, %v18676_v22  ;;  %v10187_v20 = vsub.f32 %v18664_v11, %v10186_v53  ;;  %10111 = vmatpush1.msra.mxu0 %v18679_v6  ;;  %v19873_v49 = vld [vmem:[#allocation106_spill] sm:$0xff] }
 0x7b3   : > { %v18692_v47 = vsub.f32 %v7837_v29, %v18679_v6  ;;  %v7420_v15 = vsel %vm7413_vm10, %v7416_v39, %v7419_v19  ;;  %v10193_v41 = vsub.f32 %v18604_v14, %v10192_v51  ;;  %v18699_v2 = vsub.f32 %v18591_v32, %v18595_v55  ;;  %10113 = vmatprep.subr.mxu0 %v18673_v33 }
 0x7b4   : > { %vm8360_vm9 = vcmp.lt.s32.totalorder %v19873_v49, 0  ;;  %v7421_v10 = vsel %vm7410_vm11, nan, %v7420_v15  ;;  %v10152_v52 = vsub.f32 %v18676_v22, %v18684_v58  ;;  %v10188_v12 = vand.u32 4294901760, %v10187_v20  ;;  %v19877_v15 = vld [vmem:[#allocation3_spill] sm:$0xff] }
 0x7b5   : > { %v10204_v9 = vand.u32 4294901760, %v18629_v0  ;;  %v18708_v27 = vand.u32 4294901760, %v7421_v10  ;;  %v10194_v43 = vand.u32 4294901760, %v10193_v41  ;;  %v10198_v60 = vand.u32 4294901760, %v18699_v2  ;;  %v19878_v41 = vld [vmem:[#allocation103_spill] sm:$0xff] }
 0x7b6   : > { %v18712_v32 = vsub.f32 %v7941_v59, %v18638_v26  ;;  %v18714_v3 = vand.u32 4294901760, %v10152_v52  ;;  %10189 = vmatprep.subr.mxu1 %v10188_v12  ;;  %v10216_v16 = vand.u32 4294901760, %v18692_v47  ;;  %v18721_v31 = vsub.f32 %v7525_v40, %v18673_v33  ;;  %v19876_v40 = vld [vmem:[#allocation28_spill] sm:$0xff] }
 0x7b7   : > { %v10205_v25 = vsub.f32 %v18629_v0, %v10204_v9  ;;  %v8859_v37 = vsel %vm8776_vm0, %v8858_v30, %v18529_v42  ;;  %10115 = vmatpush1.msra.mxu0 %v18708_v27  ;;  %v18730_v59 = vsub.f32 %v7421_v10, %v18708_v27  ;;  %10195 = vmatpush1.msra.mxu1 %v10194_v43  ;;  %vm18744_vm12 = vcmp.le.f32.partialorder %v8878_v50, 0.7853982 }
 0x7b8   : > { %v10199_v4 = vsub.f32 %v18699_v2, %v10198_v60  ;;  %v10210_v8 = vand.u32 4294901760, %v18712_v32  ;;  %10154 = vmatmul.mubr.f32.vlgmr.msra.gmra.mxu0 %v18714_v3  ;;  %10298 = vmatprep.subr.mxu0 %v18664_v11  ;;  %v10217_v42 = vsub.f32 %v18692_v47, %v10216_v16  ;;  %v10222_v30 = vand.u32 4294901760, %v18721_v31 }
 0x7b9   : > { %v8964_v5 = vsub.s32 4, %v18485_v23  ;;  %10301 = vmatpush1.msra.mxu0 %v18604_v14  ;;  %v10228_v57 = vand.u32 4294901760, %v18730_v59  ;;  %10352 = vmatprep.mubr.f32.mxu0 %v19779_v56  ;;  %v8966_v50 = vsel %vm18744_vm12, %v18212_v24, %v18652_v13  ;;  %vm8048_vm2 = vcmp.lt.s32.totalorder %v19876_v40, 0 }
 0x7ba   : > { %v10200_v18 = vand.u32 4294901760, %v10199_v4  ;;  %v10211_v54 = vsub.f32 %v18712_v32, %v10210_v8  ;;  %10304 = vmatprep.subr.mxu0 %v18699_v2  ;;  %v10206_v1 = vand.u32 4294901760, %v10205_v25  ;;  %v10223_v29 = vsub.f32 %v18721_v31, %v10222_v30 }
 0x7bb   : > { %v8965_v39 = vsel %vm8880_vm7, %v8964_v5, %v18485_v23  ;;  %12155 = vcosq.f32 %v8966_v50  ;;  %v8130_v19 = vxor.u32 2147483648, %v18314_v21  ;;  %10307 = vmatpush1.msra.mxu0 %v18629_v0  ;;  %v10229_v20 = vsub.f32 %v18730_v59, %v10228_v57 }
 0x7bc   : > { %10201 = vmatprep.subr.mxu1 %v10200_v18  ;;  %v10212_v13 = vand.u32 4294901760, %v10211_v54  ;;  %12157 = vsinq.f32 %v8966_v50  ;;  %vm7528_vm6 = vcmp.lt.s32.totalorder %v19877_v15, 0  ;;  %vm7632_vm8 = vcmp.lt.s32.totalorder %v19878_v41, 0  ;;  %10310 = vmatprep.subr.mxu0 %v18712_v32  ;;  %v19885_v54 = vld [vmem:[#allocation88_spill] sm:$0xff] }
 0x7bd   : > { %v8547_v23 = vsel %vm8464_vm4, %v8546_v38, %v18449_v28  ;;  %10207 = vmatpush1.msra.mxu1 %v10206_v1  ;;  %v10218_v10 = vand.u32 4294901760, %v10217_v42  ;;  %v8967_v52 = vsel %vm18744_vm12, 0, %v8965_v39  ;;  %v19879_v12 = vand.u32 2147483647, %v19871_v7  ;;  %10313 = vmatpush1.msra.mxu0 %v18692_v47  ;;  %v19886_v1 = vld [vmem:[#allocation107_spill] sm:$0xff] }
 0x7be   : > { %v8443_v25 = vsel %vm8360_vm9, %v8442_v44, %v18299_v62  ;;  %10213 = vmatprep.subr.mxu1 %v10212_v13  ;;  %v10224_v28 = vand.u32 4294901760, %v10223_v29  ;;  %v8860_v38 = vsub.s32 4, %v18324_v45  ;;  %10316 = vmatprep.subr.mxu0 %v18721_v31  ;;  %v10230_v42 = vand.u32 4294901760, %v10229_v20 }
 0x7bf   : > { %vm18784_vm7 = vcmp.le.f32.partialorder %v19879_v12, 0.7853982  ;;  %10219 = vmatpush1.msra.mxu1 %v10218_v10  ;;  %v19882_v34 = vand.u32 2147483647, %v19872_v36  ;;  %v8548_v62 = vsub.s32 4, %v18194_v35  ;;  %10319 = vmatpush1.msra.mxu0 %v18730_v59  ;;  %v8971_v44 = vadd.s32 3, %v8967_v52 }
 0x7c0   : > { %v8862_v4 = vsel %vm18784_vm7, %v19871_v7, %v8859_v37  ;;  %10225 = vmatprep.subr.mxu1 %v10224_v28  ;;  %v8861_v37 = vsel %vm8776_vm0, %v8860_v38, %v18324_v45  ;;  %v7610_v50 = vxor.u32 2147483648, %v19885_v54  ;;  %v7714_v29 = vxor.u32 2147483648, %v19886_v1  ;;  %10470 = vmatprep.subr.mxu0 %v10186_v53  ;;  %v19890_v53 = vld [vmem:[#allocation91_spill] sm:$0xff]  ;;  %v19891_v12 = vld [vmem:[#allocation94_spill] sm:$0xff]  ;;  %v19899_v59 = vld [vmem:[#allocation108_spill] sm:$0xff] }
 0x7c1   : > { %12159 = vcosq.f32 %v8862_v4  ;;  %vm18801_vm5 = vcmp.le.f32.partialorder %v19882_v34, 0.7853982  ;;  %v8026_v39 = vxor.u32 2147483648, %v18296_v63  ;;  %10231 = vmatpush1.msra.mxu1 %v10230_v42  ;;  %v8863_v13 = vsel %vm18784_vm7, 0, %v8861_v37  ;;  %10355 = vmatmul.mubr.f32.vlgmr.msra.gmra.mxu0 %v18676_v22 }
 0x7c2   : > { %12161 = vsinq.f32 %v8862_v4  ;;  %v8550_v18 = vsel %vm18801_vm5, %v19872_v36, %v8547_v23  ;;  %10266 = vmatmul.mubr.f32.vlgmr.msra.gmra.mxu1 %v18660_v46  ;;  %10386 = vmatprep.subr.mxu1 %v18523_v48  ;;  %v8867_v45 = vadd.s32 3, %v8863_v13  ;;  %v8549_v20 = vsel %vm8464_vm4, %v8548_v62, %v18194_v35  ;;  %v19892_v4 = vld [vmem:[#allocation96_spill] sm:$0xff] }
 0x7c3   : > { %12163 = vcosq.f32 %v8550_v18  ;;  %v19887_v23 = vand.u32 2147483647, %v19873_v49  ;;  %10388 = vmatpush1.msra.mxu1 %v18568_v61  ;;  %v8551_v11 = vsel %vm18801_vm5, 0, %v8549_v20  ;;  %v8444_v52 = vsub.s32 4, %v19890_v53  ;;  %10474 = vmatpush1.msra.mxu0 %v10192_v51 }
 0x7c4   : > { %12165 = vsinq.f32 %v8550_v18  ;;  %vm7944_vm13 = vcmp.lt.s32.totalorder %v19891_v12, 0  ;;  %v8131_v43 = vsel %vm8048_vm2, %v8130_v19, %v18314_v21  ;;  %10390 = vmatprep.subr.mxu1 %v18595_v55  ;;  %v8972_v28 = vand.u32 3, %v8971_v44  ;;  %10478 = vmatprep.subr.mxu0 %v10198_v60 }
 0x7c5   : > { %vm18827_vm15 = vcmp.le.f32.partialorder %v19887_v23, 0.7853982  ;;  %10392 = vmatpush1.msra.mxu1 %v18612_v17  ;;  %v8555_v38 = vadd.s32 3, %v8551_v11  ;;  %v8132_v21 = vsub.s32 4, %v19892_v4  ;;  %v18856_v14 = vsel %vm7528_vm6, %v7610_v50, %v19885_v54  ;;  %10482 = vmatpush1.msra.mxu0 %v10204_v9 }
 0x7c6   : > { %v8446_v35 = vsel %vm18827_vm15, %v19873_v49, %v8443_v25  ;;  %v8445_v25 = vsel %vm8360_vm9, %v8444_v52, %v19890_v53  ;;  %v18861_v51 = vsel %vm7632_vm8, %v7714_v29, %v19886_v1  ;;  %v8027_v2 = vsel %vm7944_vm13, %v8026_v39, %v18296_v63  ;;  %10394 = vmatprep.subr.mxu1 %v18638_v26 }
 0x7c7   : > { %12167 = vcosq.f32 %v8446_v35  ;;  %v19893_v60 = vand.u32 2147483647, %v19876_v40  ;;  %10486 = vmatprep.subr.mxu0 %v10210_v8  ;;  %10396 = vmatpush1.msra.mxu1 %v18679_v6  ;;  %v18878_v42 = vand.u32 3, %v8867_v45  ;;  %v8447_v63 = vsel %vm18827_vm15, 0, %v8445_v25 }
 0x7c8   : > { %12169 = vsinq.f32 %v8446_v35  ;;  %v8133_v0 = vsel %vm8048_vm2, %v8132_v21, %v19892_v4  ;;  %v12156_v34 = vpop.eup %12155  ;;  %10490 = vmatpush1.msra.mxu0 %v10216_v16  ;;  %10398 = vmatprep.subr.mxu1 %v18673_v33  ;;  %vm8970_vm3 = vweird.f32 %v18212_v24  ;;  %vm8973_vm0 = vcmp.lt.s32.totalorder %v8972_v28, 2 }
 0x7c9   : > { %vm18871_vm11 = vcmp.le.f32.partialorder %v19893_v60, 0.7853982  ;;  %vm8974_vm10 = vcmp.eq.s32.totalorder %v8972_v28, 0  ;;  %v8451_v32 = vadd.s32 3, %v8447_v63  ;;  %v12158_v8 = vpop.eup %12157  ;;  %10494 = vmatprep.subr.mxu0 %v10222_v30  ;;  %10400 = vmatpush1.msra.mxu1 %v18708_v27  ;;  %vm8977_vm1 = vcmp.eq.s32.totalorder %v8972_v28, 2 }
 0x7ca   : > { %v8134_v9 = vsel %vm18871_vm11, %v19876_v40, %v8131_v43  ;;  %v8978_v5 = vxor.u32 2147483648, %v12156_v34  ;;  %vm8866_vm14 = vweird.f32 %v19871_v7  ;;  %v18896_v62 = vand.u32 3, %v8555_v38  ;;  %10433 = vmatprep.mubr.f32.mxu1 %v19779_v56  ;;  %10498 = vmatpush1.msra.mxu0 %v10228_v57  ;;  %v19903_v7 = vld [vmem:[#allocation81_spill] sm:$0xff] }
 0x7cb   : > { %12171 = vcosq.f32 %v8134_v9  ;;  %v8975_v47 = vxor.u32 2147483648, %v12158_v8  ;;  %v8135_v16 = vsel %vm18871_vm11, 0, %v8133_v0  ;;  %v19896_v31 = vand.u32 2147483647, %v19891_v12  ;;  %10437 = vmatmul.mubr.f32.vlgmr.msra.gmra.mxu1 %v18684_v58  ;;  %10564 = vmatprep.subr.mxu1 %v18523_v48 }
 0x7cc   : > { %12173 = vsinq.f32 %v8134_v9  ;;  %v8979_v44 = vsel %vm8977_vm1, %v8978_v5, %v12158_v8  ;;  %vm8869_vm9 = vcmp.lt.s32.totalorder %v18878_v42, 2  ;;  %v8028_v57 = vsub.s32 4, %v19899_v59  ;;  %10531 = vmatprep.mubr.f32.mxu0 %v19779_v56  ;;  %10566 = vmatpush1.msra.mxu1 %v18568_v61 }
 0x7cd   : > { %vm18905_vm4 = vcmp.le.f32.partialorder %v19896_v31, 0.7853982  ;;  %v8976_v54 = vsel %vm8974_vm10, %v12156_v34, %v8975_v47  ;;  %vm8870_vm12 = vcmp.eq.s32.totalorder %v18878_v42, 0  ;;  %vm8873_vm2 = vcmp.eq.s32.totalorder %v18878_v42, 2  ;;  %10533 = vmatmul.mubr.f32.vlgmr.msra.gmra.mxu0 %v18660_v46  ;;  %10568 = vmatprep.subr.mxu1 %v18595_v55 }
 0x7ce   : > { %v8030_v37 = vsel %vm18905_vm4, %v19891_v12, %v8027_v2  ;;  %v12160_v18 = vpop.eup %12159  ;;  %vm8554_vm7 = vweird.f32 %v19872_v36  ;;  %v8452_v48 = vand.u32 3, %v8451_v32  ;;  %v8980_v1 = vsel %vm8973_vm0, %v8976_v54, %v8979_v44  ;;  %10570 = vmatpush1.msra.mxu1 %v18612_v17  ;;  %10611 = vmatprep.mubr.f32.mxu1 %v19779_v56 }
 0x7cf   : > { %v12162_v50 = vpop.eup %12161  ;;  %v8874_v29 = vxor.u32 2147483648, %v12160_v18  ;;  %vm8557_vm5 = vcmp.lt.s32.totalorder %v18896_v62, 2  ;;  %v8139_v61 = vadd.s32 3, %v8135_v16  ;;  %v18930_v39 = vsel %vm8970_vm3, nan, %v8980_v1  ;;  %10572 = vmatprep.subr.mxu1 %v18638_v26  ;;  %10691 = vmatprep.mubr.f32.mxu0 %v19779_v56 }
 0x7d0   : > { %v8871_v13 = vxor.u32 2147483648, %v12162_v50  ;;  %vm8450_vm15 = vweird.f32 %v19873_v49  ;;  %v8029_v55 = vsel %vm7944_vm13, %v8028_v57, %v19899_v59  ;;  %12175 = vcosq.f32 %v8030_v37  ;;  %v12164_v45 = vpop.eup %12163  ;;  %10574 = vmatpush1.msra.mxu1 %v18679_v6  ;;  %v19907_v59 = vld [vmem:[#allocation118_spill] sm:$0xff] }
 0x7d1   : > { %v18938_v20 = vand.u32 4294901760, %v18930_v39  ;;  %v8875_v17 = vsel %vm8873_vm2, %v8874_v29, %v12162_v50  ;;  %vm8558_vm11 = vcmp.eq.s32.totalorder %v18896_v62, 0  ;;  %vm8561_vm3 = vcmp.eq.s32.totalorder %v18896_v62, 2  ;;  %v12166_v24 = vpop.eup %12165  ;;  %10576 = vmatprep.subr.mxu1 %v18673_v33 }
 0x7d2   : > { %v8872_v23 = vsel %vm8870_vm12, %v12160_v18, %v8871_v13  ;;  %v8562_v10 = vxor.u32 2147483648, %v12164_v45  ;;  %vm8457_vm13 = vcmp.eq.s32.totalorder %v8452_v48, 2  ;;  %12177 = vsinq.f32 %v8030_v37  ;;  %10578 = vmatpush1.msra.mxu1 %v18708_v27 }
 0x7d3   : > { %10644 = vmatprep.subr.mxu0 %v18938_v20  ;;  %v8876_v11 = vsel %vm8869_vm9, %v8872_v23, %v8875_v17  ;;  %v8559_v53 = vxor.u32 2147483648, %v12166_v24  ;;  %v8140_v52 = vand.u32 3, %v8139_v61  ;;  %v8031_v35 = vsel %vm18905_vm4, 0, %v8029_v55  ;;  %10613 = vmatmul.mubr.f32.vlgmr.msra.gmra.mxu1 %v18660_v46 }
 0x7d4   : > { %v12168_v26 = vpop.eup %12167  ;;  %v8877_v43 = vsel %vm8866_vm14, nan, %v8876_v11  ;;  %v8563_v28 = vsel %vm8561_vm3, %v8562_v10, %v12166_v24  ;;  %v19900_v38 = vand.u32 2147483647, %v19878_v41  ;;  %v7716_v2 = vsub.s32 4, %v19903_v7  ;;  %10807 = vmatprep.mubr.f32.mxu1 %v19779_v56 }
 0x7d5   : > { %v12170_v6 = vpop.eup %12169  ;;  %v8458_v33 = vxor.u32 2147483648, %v12168_v26  ;;  %v18966_v4 = vand.u32 4294901760, %v8877_v43  ;;  %v8560_v27 = vsel %vm8558_vm11, %v12164_v45, %v8559_v53  ;;  %vm8454_vm10 = vcmp.eq.s32.totalorder %v8452_v48, 0 }
 0x7d6   : > { %vm18961_vm0 = vcmp.le.f32.partialorder %v19900_v38, 0.7853982  ;;  %v8455_v21 = vxor.u32 2147483648, %v12170_v6  ;;  %v8564_v60 = vsel %vm8557_vm5, %v8560_v27, %v8563_v28  ;;  %vm8453_vm1 = vcmp.lt.s32.totalorder %v8452_v48, 2 }
 0x7d7   : > { %v8459_v19 = vsel %vm8457_vm13, %v8458_v33, %v12170_v6  ;;  %v7718_v42 = vsel %vm18961_vm0, %v19878_v41, %v18861_v51  ;;  %10646 = vmatpush1.msra.mxu0 %v18966_v4  ;;  %v8565_v63 = vsel %vm8554_vm7, nan, %v8564_v60  ;;  %v8035_v9 = vadd.s32 3, %v8031_v35 }
 0x7d8   : > { %v8456_v0 = vsel %vm8454_vm10, %v12168_v26, %v8455_v21  ;;  %v12172_v34 = vpop.eup %12171  ;;  %v18982_v32 = vand.u32 4294901760, %v8565_v63  ;;  %vm8138_vm14 = vweird.f32 %v19876_v40  ;;  %vm8142_vm4 = vcmp.eq.s32.totalorder %v8140_v52, 0 }
 0x7d9   : > { %v8460_v8 = vsel %vm8453_vm1, %v8456_v0, %v8459_v19  ;;  %v12174_v5 = vpop.eup %12173  ;;  %v8146_v62 = vxor.u32 2147483648, %v12172_v34  ;;  %v7717_v36 = vsel %vm7632_vm8, %v7716_v2, %v19903_v7  ;;  %12179 = vcosq.f32 %v7718_v42 }
 0x7da   : > { %v8461_v51 = vsel %vm8450_vm15, nan, %v8460_v8  ;;  %10648 = vmatprep.subr.mxu0 %v18982_v32  ;;  %v8143_v16 = vxor.u32 2147483648, %v12174_v5  ;;  %vm8145_vm9 = vcmp.eq.s32.totalorder %v8140_v52, 2  ;;  %12181 = vsinq.f32 %v7718_v42 }
 0x7db   : > { %v18991_v47 = vand.u32 4294901760, %v8461_v51  ;;  %v8147_v31 = vsel %vm8145_vm9, %v8146_v62, %v12174_v5  ;;  %v8036_v30 = vand.u32 3, %v8035_v9  ;;  %v19904_v44 = vand.u32 2147483647, %v19877_v15 }
 0x7dc   : > { %v7612_v57 = vsub.s32 4, %v19907_v59  ;;  %vm8141_vm8 = vcmp.lt.s32.totalorder %v8140_v52, 2  ;;  %v8144_v37 = vsel %vm8142_vm4, %v12172_v34, %v8143_v16  ;;  %v7719_v18 = vsel %vm18961_vm0, 0, %v7717_v36 }
 0x7dd   : > { %vm18995_vm12 = vcmp.le.f32.partialorder %v19904_v44, 0.7853982  ;;  %10650 = vmatpush1.msra.mxu0 %v18991_v47  ;;  %v12176_v48 = vpop.eup %12175  ;;  %v19009_v50 = vsub.f32 %v8877_v43, %v18966_v4  ;;  %v19012_v1 = vsub.f32 %v8461_v51, %v18991_v47  ;;  %v8148_v29 = vsel %vm8141_vm8, %v8144_v37, %v8147_v31 }
 0x7de   : > { %v7614_v54 = vsel %vm18995_vm12, %v19877_v15, %v18856_v14  ;;  %v8149_v61 = vsel %vm8138_vm14, nan, %v8148_v29  ;;  %v8042_v13 = vxor.u32 2147483648, %v12176_v48  ;;  %v7613_v55 = vsel %vm7528_vm6, %v7612_v57, %v19907_v59 }
 0x7df   : > { %12183 = vcosq.f32 %v7614_v54  ;;  %v12178_v45 = vpop.eup %12177  ;;  %v19019_v14 = vand.u32 4294901760, %v8149_v61  ;;  %vm8041_vm2 = vcmp.eq.s32.totalorder %v8036_v30, 2  ;;  %v7723_v17 = vadd.s32 3, %v7719_v18 }
 0x7e0   : > { %12185 = vsinq.f32 %v7614_v54  ;;  %vm8037_vm7 = vcmp.lt.s32.totalorder %v8036_v30, 2  ;;  %v8039_v24 = vxor.u32 2147483648, %v12178_v45  ;;  %v8043_v23 = vsel %vm8041_vm2, %v8042_v13, %v12178_v45 }
 0x7e1   : > { %v19023_v10 = vsub.f32 %v18930_v39, %v18938_v20  ;;  %10652 = vmatprep.subr.mxu0 %v19019_v14  ;;  %vm8038_vm5 = vcmp.eq.s32.totalorder %v8036_v30, 0  ;;  %v7615_v40 = vsel %vm18995_vm12, 0, %v7613_v55  ;;  %v10735_v26 = vand.u32 4294901760, %v19009_v50 }
 0x7e2   : > { %v19030_v11 = vsub.f32 %v8565_v63, %v18982_v32  ;;  %v8040_v53 = vsel %vm8038_vm5, %v12176_v48, %v8039_v24  ;;  %v10747_v35 = vand.u32 4294901760, %v19012_v1  ;;  %v19035_v6 = vsub.f32 %v8149_v61, %v19019_v14 }
 0x7e3   : > { %v10729_v52 = vand.u32 4294901760, %v19023_v10  ;;  %vm8034_vm6 = vweird.f32 %v19891_v12  ;;  %v8044_v39 = vsel %vm8037_vm7, %v8040_v53, %v8043_v23  ;;  %v7724_v43 = vand.u32 3, %v7723_v17 }
 0x7e4   : > { %v10741_v28 = vand.u32 4294901760, %v19030_v11  ;;  %v8045_v33 = vsel %vm8034_vm6, nan, %v8044_v39  ;;  %v7619_v38 = vadd.s32 3, %v7615_v40  ;;  %v10736_v25 = vsub.f32 %v19009_v50, %v10735_v26 }
 0x7e5   : > { %v19042_v27 = vand.u32 4294901760, %v8045_v33  ;;  %v10730_v21 = vsub.f32 %v19023_v10, %v10729_v52  ;;  %v10748_v2 = vsub.f32 %v19012_v1, %v10747_v35  ;;  %v10753_v60 = vand.u32 4294901760, %v19035_v6 }
 0x7e6   : > { %v10742_v12 = vsub.f32 %v19030_v11, %v10741_v28  ;;  %v12180_v7 = vpop.eup %12179  ;;  %vm7729_vm15 = vcmp.eq.s32.totalorder %v7724_v43, 2  ;;  %v7620_v34 = vand.u32 3, %v7619_v38  ;;  %v10737_v8 = vand.u32 4294901760, %v10736_v25 }
 0x7e7   : > { %v12182_v19 = vpop.eup %12181  ;;  %10654 = vmatpush1.msra.mxu0 %v19042_v27  ;;  %v19056_v42 = vsub.f32 %v8045_v33, %v19042_v27  ;;  %v7730_v63 = vxor.u32 2147483648, %v12180_v7  ;;  %v10731_v0 = vand.u32 4294901760, %v10730_v21  ;;  %v10754_v5 = vsub.f32 %v19035_v6, %v10753_v60 }
 0x7e8   : > { %v7727_v9 = vxor.u32 2147483648, %v12182_v19  ;;  %vm7726_vm11 = vcmp.eq.s32.totalorder %v7724_v43, 0  ;;  %v10743_v62 = vand.u32 4294901760, %v10742_v12  ;;  %vm7722_vm3 = vweird.f32 %v19878_v41 }
 0x7e9   : > { %v7731_v51 = vsel %vm7729_vm15, %v7730_v63, %v12182_v19  ;;  %10732 = vmatprep.subr.mxu1 %v10731_v0  ;;  %v10759_v36 = vand.u32 4294901760, %v19056_v42  ;;  %vm7725_vm13 = vcmp.lt.s32.totalorder %v7724_v43, 2  ;;  %v10749_v30 = vand.u32 4294901760, %v10748_v2 }
 0x7ea   : > { %v7728_v31 = vsel %vm7726_vm11, %v12180_v7, %v7727_v9  ;;  %10738 = vmatpush1.msra.mxu1 %v10737_v8  ;;  %v10755_v57 = vand.u32 4294901760, %v10754_v5  ;;  %vm7625_vm0 = vcmp.eq.s32.totalorder %v7620_v34, 2  ;;  %vm7622_vm10 = vcmp.eq.s32.totalorder %v7620_v34, 0 }
 0x7eb   : > { %v7732_v49 = vsel %vm7725_vm13, %v7728_v31, %v7731_v51  ;;  %10744 = vmatprep.subr.mxu1 %v10743_v62  ;;  %v10760_v37 = vsub.f32 %v19056_v42, %v10759_v36  ;;  %vm7621_vm1 = vcmp.lt.s32.totalorder %v7620_v34, 2  ;;  %vm7618_vm14 = vweird.f32 %v19877_v15 }
 0x7ec   : > { %v12184_v16 = vpop.eup %12183  ;;  %v7733_v18 = vsel %vm7722_vm3, nan, %v7732_v49  ;;  %10750 = vmatpush1.msra.mxu1 %v10749_v30 }
 0x7ed   : > { %v12186_v44 = vpop.eup %12185  ;;  %v7626_v59 = vxor.u32 2147483648, %v12184_v16  ;;  %v10655_v48 = vand.u32 4294901760, %v7733_v18  ;;  %10756 = vmatprep.subr.mxu1 %v10755_v57  ;;  %v10761_v29 = vand.u32 4294901760, %v10760_v37 }
 0x7ee   : > { %v7623_v54 = vxor.u32 2147483648, %v12186_v44 }
 0x7ef   : > { %v7627_v41 = vsel %vm7625_vm0, %v7626_v59, %v12186_v44  ;;  %10656 = vmatprep.subr.mxu0 %v10655_v48  ;;  %10762 = vmatpush1.msra.mxu1 %v10761_v29  ;;  %v10764_v55 = vsub.f32 %v7733_v18, %v10655_v48 }
 0x7f0   : > { %v7624_v61 = vsel %vm7622_vm10, %v12184_v16, %v7623_v54 }
 0x7f1   : > { %v7628_v13 = vsel %vm7621_vm1, %v7624_v61, %v7627_v41  ;;  %v10765_v24 = vand.u32 4294901760, %v10764_v55 }
 0x7f2   : > { %v7629_v45 = vsel %vm7618_vm14, nan, %v7628_v13 }
 0x7f3   : > { %v10657_v17 = vand.u32 4294901760, %v7629_v45  ;;  %v10766_v40 = vsub.f32 %v10764_v55, %v10765_v24 }
 0x7f5   : > { %10658 = vmatpush1.msra.mxu0 %v10657_v17  ;;  %v10770_v23 = vsub.f32 %v7629_v45, %v10657_v17  ;;  %v10767_v53 = vand.u32 4294901760, %v10766_v40 }
 0x7f6   : > { %10697 = vmatmul.mubr.f32.vlgmr.msra.gmra.mxu0 %v18714_v3  ;;  %10841 = vmatprep.subr.mxu0 %v19023_v10 }
 0x7f7   : > { %10844 = vmatpush1.msra.mxu0 %v19009_v50  ;;  %v10771_v39 = vand.u32 4294901760, %v10770_v23  ;;  %10895 = vmatprep.mubr.f32.mxu0 %v19779_v56 }
 0x7f8   : > { %10847 = vmatprep.subr.mxu0 %v19030_v11  ;;  %10768 = vmatprep.subr.mxu1 %v10767_v53 }
 0x7f9   : > { %10850 = vmatpush1.msra.mxu0 %v19012_v1  ;;  %v10772_v15 = vsub.f32 %v10770_v23, %v10771_v39 }
 0x7fa   : > { %10853 = vmatprep.subr.mxu0 %v19035_v6 }
 0x7fb   : > { %10856 = vmatpush1.msra.mxu0 %v19056_v42  ;;  %v10773_v43 = vand.u32 4294901760, %v10772_v15 }
 0x7fc   : > { %10859 = vmatprep.subr.mxu0 %v10764_v55 }
 0x7fd   : > { %10774 = vmatpush1.msra.mxu1 %v10773_v43  ;;  %10862 = vmatpush1.msra.mxu0 %v10770_v23 }
 0x7fe   : > { %10809 = vmatmul.mubr.f32.vlgmr.msra.gmra.mxu1 %v18660_v46  ;;  %10929 = vmatprep.subr.mxu1 %v18938_v20 }
 0x7ff   : > { %11013 = vmatprep.subr.mxu0 %v10729_v52  ;;  %10898 = vmatmul.mubr.f32.vlgmr.msra.gmra.mxu0 %v18676_v22 }
 0x800   : > { %10931 = vmatpush1.msra.mxu1 %v18966_v4  ;;  %11017 = vmatpush1.msra.mxu0 %v10735_v26 }
 0x801   : > { %10933 = vmatprep.subr.mxu1 %v18982_v32  ;;  %11021 = vmatprep.subr.mxu0 %v10741_v28 }
 0x802   : > { %10935 = vmatpush1.msra.mxu1 %v18991_v47  ;;  %11025 = vmatpush1.msra.mxu0 %v10747_v35 }
 0x803   : > { %10937 = vmatprep.subr.mxu1 %v19019_v14  ;;  %11029 = vmatprep.subr.mxu0 %v10753_v60 }
 0x804   : > { %10939 = vmatpush1.msra.mxu1 %v19042_v27  ;;  %11033 = vmatpush1.msra.mxu0 %v10759_v36 }
 0x805   : > { %10941 = vmatprep.subr.mxu1 %v10655_v48  ;;  %11037 = vmatprep.subr.mxu0 %v10765_v24 }
 0x806   : > { %10943 = vmatpush1.msra.mxu1 %v10657_v17  ;;  %10976 = vmatprep.mubr.f32.mxu1 %v19779_v56 }
 0x807   : > { %11041 = vmatpush1.msra.mxu0 %v10771_v39  ;;  %10980 = vmatmul.mubr.f32.vlgmr.msra.gmra.mxu1 %v18684_v58 }
 0x808   : > { %11107 = vmatprep.subr.mxu1 %v18938_v20  ;;  %11074 = vmatprep.mubr.f32.mxu0 %v19779_v56 }
 0x809   : > { %11109 = vmatpush1.msra.mxu1 %v18966_v4  ;;  %11076 = vmatmul.mubr.f32.vlgmr.msra.gmra.mxu0 %v18660_v46 }
 0x80a   : > { %11111 = vmatprep.subr.mxu1 %v18982_v32  ;;  %11154 = vmatprep.mubr.f32.mxu1 %v19779_v56 }
 0x80b   : > { %11113 = vmatpush1.msra.mxu1 %v18991_v47 }
 0x80c   : > { %11115 = vmatprep.subr.mxu1 %v19019_v14 }
 0x80d   : > { %11117 = vmatpush1.msra.mxu1 %v19042_v27 }
 0x80e   : > { %11119 = vmatprep.subr.mxu1 %v10655_v48 }
 0x80f   : > { %11121 = vmatpush1.msra.mxu1 %v10657_v17  ;;  %v11166_v17 = vpop.permute.xlu0 %11165 }
 0x810   : > { %11156 = vmatmul.mubr.f32.vlgmr.msra.gmra.mxu1 %v18660_v46 }
 0x815   : > { %v9178_v3 = vpop.f32.mrf.mxu1 }
 0x817   : > { %v9180_v4 = vpop.f32.mrf.mxu1 }
 0x81d   : > { %v9349_v1 = vpop.f32.mrf.mxu1 }
 0x81f   : > { %v9351_v10 = vpop.f32.mrf.mxu1 }
 0x825   : > { %v9525_v26 = vpop.f32.mrf.mxu1 }
 0x827   : > { %v9527_v11 = vpop.f32.mrf.mxu1 }
 0x82d   : > { %v9721_v14 = vpop.f32.mrf.mxu1 }
 0x82f   : > { %v9066_v22 = vpop.f32.mrf.mxu0  ;;  %v9723_v35 = vpop.f32.mrf.mxu1 }
 0x830   : > { %v9179_v33 = vadd.f32 %v9178_v3, %v9066_v22 }
 0x831   : > { %v9068_v58 = vpop.f32.mrf.mxu0 }
 0x832   : > { %v9181_v38 = vadd.f32 %v9180_v4, %v9068_v58 }
 0x837   : > { %v9267_v20 = vpop.f32.mrf.mxu0 }
 0x838   : > { %v9268_v27 = vadd.f32 %v9267_v20, %v9179_v33 }
 0x839   : > { %v9269_v50 = vpop.f32.mrf.mxu0 }
 0x83a   : > { %v9270_v12 = vadd.f32 %v9269_v50, %v9181_v38  ;;  %v9350_v2 = vadd.f32 %v9349_v1, %v9268_v27 }
 0x83b   : > { %v9892_v28 = vpop.f32.mrf.mxu1 }
 0x83c   : > { %v9352_v19 = vadd.f32 %v9351_v10, %v9270_v12 }
 0x83d   : > { %v9894_v25 = vpop.f32.mrf.mxu1 }
 0x840   : > { %v9445_v32 = vpop.f32.mrf.mxu0 }
 0x841   : > { %v9446_v63 = vadd.f32 %v9445_v32, %v9350_v2 }
 0x842   : > { %v9447_v56 = vpop.f32.mrf.mxu0 }
 0x843   : > { %v9448_v9 = vadd.f32 %v9447_v56, %v9352_v19  ;;  %v9526_v8 = vadd.f32 %v9525_v26, %v9446_v63  ;;  %v19908_v26 = vld [vmem:[#allocation2_spill] sm:$0xff] }
 0x844   : > { %vm11174_vm4 = vcmp.lt.s32.totalorder %v19908_v26, 3 }
 0x845   : > { %v9528_v51 = vadd.f32 %v9527_v11, %v9448_v9 }
 0x846   : > { %v10068_v7 = vpop.f32.mrf.mxu1 }
 0x848   : > { %v9609_v47 = vpop.f32.mrf.mxu0  ;;  %v10070_v42 = vpop.f32.mrf.mxu1 }
 0x849   : > { %v9722_v20 = vadd.f32 %v9721_v14, %v9609_v47 }
 0x84a   : > { %v9611_v52 = vpop.f32.mrf.mxu0 }
 0x84b   : > { %v9724_v4 = vadd.f32 %v9723_v35, %v9611_v52 }
 0x850   : > { %v9810_v6 = vpop.f32.mrf.mxu0 }
 0x851   : > { %v9811_v50 = vadd.f32 %v9810_v6, %v9722_v20 }
 0x852   : > { %v9812_v46 = vpop.f32.mrf.mxu0 }
 0x853   : > { %v9813_v1 = vadd.f32 %v9812_v46, %v9724_v4  ;;  %v9893_v32 = vadd.f32 %v9892_v28, %v9811_v50 }
 0x855   : > { %v9895_v56 = vadd.f32 %v9894_v25, %v9813_v1 }
 0x858   : > { %v9988_v21 = vpop.f32.mrf.mxu0 }
 0x859   : > { %v9989_v33 = vadd.f32 %v9988_v21, %v9893_v32 }
 0x85a   : > { %v9990_v60 = vpop.f32.mrf.mxu0 }
 0x85b   : > { %v9991_v2 = vadd.f32 %v9990_v60, %v9895_v56  ;;  %v10069_v52 = vadd.f32 %v10068_v7, %v9989_v33 }
 0x85d   : > { %v10071_v6 = vadd.f32 %v10070_v42, %v9991_v2 }
 0x878   : > { %v10155_v0 = vpop.f32.mrf.mxu0 }
 0x879   : > { %v10156_v62 = vadd.f32 %v10155_v0, %v9526_v8 }
 0x87a   : > { %v10157_v5 = vpop.f32.mrf.mxu0 }
 0x87b   : > { %v10158_v31 = vadd.f32 %v10157_v5, %v9528_v51 }
 0x881   : > { %v10356_v16 = vpop.f32.mrf.mxu0 }
 0x882   : > { %v10267_v34 = vpop.f32.mrf.mxu1 }
 0x883   : > { %v10268_v30 = vadd.f32 %v10267_v34, %v10156_v62  ;;  %v10358_v49 = vpop.f32.mrf.mxu0 }
 0x884   : > { %v10269_v36 = vpop.f32.mrf.mxu1 }
 0x885   : > { %v10270_v44 = vadd.f32 %v10269_v36, %v10158_v31  ;;  %v10357_v57 = vadd.f32 %v10356_v16, %v10268_v30 }
 0x887   : > { %v10359_v54 = vadd.f32 %v10358_v49, %v10270_v44 }
 0x88b   : > { %v10438_v59 = vpop.f32.mrf.mxu1 }
 0x88c   : > { %v10439_v48 = vadd.f32 %v10438_v59, %v10357_v57 }
 0x88d   : > { %v10440_v37 = vpop.f32.mrf.mxu1  ;;  %v10534_v18 = vpop.f32.mrf.mxu0 }
 0x88e   : > { %v10441_v41 = vadd.f32 %v10440_v37, %v10359_v54  ;;  %v10535_v61 = vadd.f32 %v10534_v18, %v10439_v48 }
 0x88f   : > { %v10536_v29 = vpop.f32.mrf.mxu0 }
 0x890   : > { %v10537_v55 = vadd.f32 %v10536_v29, %v10441_v41 }
 0x893   : > { %v10614_v13 = vpop.f32.mrf.mxu1 }
 0x894   : > { %v10615_v45 = vadd.f32 %v10614_v13, %v10535_v61 }
 0x895   : > { %v10616_v24 = vpop.f32.mrf.mxu1 }
 0x896   : > { %v11168_v23 = vadd.f32 %v11166_v17, %v10615_v45  ;;  %v10617_v40 = vadd.f32 %v10616_v24, %v10537_v55 }
 0x898   : > { %v11596_v53 = vmul.f32 -1.442695, %v11168_v23  ;;  %v11169_v39 = vadd.f32 %v11166_v17, %v10617_v40 }
 0x89a   : > { %12187 = vpow2.f32 %v11596_v53  ;;  %v11597_v15 = vmul.f32 -1.442695, %v11169_v39 }
 0x89c   : > { %12189 = vpow2.f32 %v11597_v15 }
 0x8a7   : > { %v12188_v43 = vpop.eup %12187 }
 0x8a8   : > { %v11187_v22 = vadd.f32 1.0, %v12188_v43 }
 0x8a9   : > { %v12190_v58 = vpop.eup %12189 }
 0x8aa   : > { %12191 = vrcp.f32 %v11187_v22  ;;  %v11188_v3 = vadd.f32 1.0, %v12190_v58 }
 0x8ac   : > { %12193 = vrcp.f32 %v11188_v3 }
 0x8b6   : > { %v10698_v12 = vpop.f32.mrf.mxu0 }
 0x8b7   : > { %v12192_v10 = vpop.eup %12191  ;;  %v10699_v28 = vadd.f32 %v10698_v12, %v10069_v52 }
 0x8b8   : > { %v11199_v38 = vsel %vm11174_vm4, %v12192_v10, %v11168_v23  ;;  %v10700_v35 = vpop.f32.mrf.mxu0 }
 0x8b9   : > { %v12194_v11 = vpop.eup %12193  ;;  %v10701_v19 = vadd.f32 %v10700_v35, %v10071_v6 }
 0x8ba   : > { %v11200_v27 = vsel %vm11174_vm4, %v12194_v11, %v11169_v39 }
 0x8bb   : > { %v11207_v47 = vcombine.low %v11199_v38, %v11200_v27 }
 0x8bd   : > { %11211 = vst [vmem:[%s12476_s30] sm:$0xff] %v11207_v47 }
 0x8be   : > { %v10810_v14 = vpop.f32.mrf.mxu1 }
 0x8bf   : > { %v10899_v25 = vpop.f32.mrf.mxu0  ;;  %v10811_v63 = vadd.f32 %v10810_v14, %v10699_v28 }
 0x8c0   : > { %v10812_v46 = vpop.f32.mrf.mxu1 }
 0x8c1   : > { %v10813_v21 = vadd.f32 %v10812_v46, %v10701_v19  ;;  %v10901_v9 = vpop.f32.mrf.mxu0  ;;  %v10900_v34 = vadd.f32 %v10899_v25, %v10811_v63 }
 0x8c3   : > { %v10902_v51 = vadd.f32 %v10901_v9, %v10813_v21 }
 0x8c7   : > { %v10981_v0 = vpop.f32.mrf.mxu1 }
 0x8c8   : > { %v10982_v62 = vadd.f32 %v10981_v0, %v10900_v34 }
 0x8c9   : > { %v10983_v8 = vpop.f32.mrf.mxu1  ;;  %v11077_v5 = vpop.f32.mrf.mxu0 }
 0x8ca   : > { %v10984_v60 = vadd.f32 %v10983_v8, %v10902_v51  ;;  %v11078_v16 = vadd.f32 %v11077_v5, %v10982_v62 }
 0x8cb   : > { %v11079_v36 = vpop.f32.mrf.mxu0 }
 0x8cc   : > { %v11080_v31 = vadd.f32 %v11079_v36, %v10984_v60 }
 0x8d0   : > { %v11157_v7 = vpop.f32.mrf.mxu1 }
 0x8d1   : > { %v11158_v30 = vadd.f32 %v11157_v7, %v11078_v16 }
 0x8d2   : > { %v11159_v42 = vpop.f32.mrf.mxu1 }
 0x8d3   : > { %v11170_v44 = vadd.f32 %v11166_v17, %v11158_v30  ;;  %v11160_v49 = vadd.f32 %v11159_v42, %v11080_v31 }
 0x8d5   : > { %v11598_v59 = vmul.f32 -1.442695, %v11170_v44  ;;  %v11171_v57 = vadd.f32 %v11166_v17, %v11160_v49 }
 0x8d7   : > { %12195 = vpow2.f32 %v11598_v59  ;;  %v11599_v37 = vmul.f32 -1.442695, %v11171_v57 }
 0x8d9   : > { %12197 = vpow2.f32 %v11599_v37 }
 0x8e4   : > { %v12196_v18 = vpop.eup %12195 }
 0x8e5   : > { %v11189_v54 = vadd.f32 1.0, %v12196_v18 }
 0x8e6   : > { %v12198_v48 = vpop.eup %12197 }
 0x8e7   : > { %12199 = vrcp.f32 %v11189_v54  ;;  %v11190_v41 = vadd.f32 1.0, %v12198_v48 }
 0x8e9   : > { %12201 = vrcp.f32 %v11190_v41 }
 0x8f4   : > { %v12200_v29 = vpop.eup %12199 }
 0x8f5   : > { %v11201_v13 = vsel %vm11174_vm4, %v12200_v29, %v11170_v44 }
 0x8f6   : > { %v12202_v61 = vpop.eup %12201 }
 0x8f7   : > { %v11202_v55 = vsel %vm11174_vm4, %v12202_v61, %v11171_v57 }
 0x8f8   : > { %v11208_v45 = vcombine.low %v11201_v13, %v11202_v55 }
 0x8fa   : > { %11212 = vst [vmem:[%s12476_s30 + $0x8] sm:$0xff] %v11208_v45 }
 0x8fb PF: > { %s21_s19 = sadd.s32 1, %s12293_s19   ;;  %s19909_s17 = smov %s12289_s18 }
 0x8fc   : > { %p18_p6 = scmp.ge.s32.totalorder %s21_s19, 4   ;;  %s19910_s18 = smov %s19912_s20 }
 0x8fe   :  { %20 = sbr.rel (!%p18_p6) target bundleno = 2 (0x2), region = 122 }

</bundles_post_ra>
